<compile_context>
chip_gen: v7x
topology: tpu7x:2x2x1
jax: 0.10.0
libtpu: 0.0.40
codegen_flags: <defaults>
</compile_context>

<pallas_src>
import functools

import jax
import jax.numpy as jnp
from jax.experimental import pallas as pl
from jax.experimental.pallas import tpu as pltpu

n_embed = 384


def mha_fused_kernel(x_ref, wqkv_ref, wp_ref, b_ref, o_ref, *, num_heads, head_size):
    """One batch element: fused QKV proj + causal attention (all heads) + output proj."""
    T = x_ref.shape[1]
    C = o_ref.shape[2]
    HHS = num_heads * head_size            # H * hs

    # ---- fused QKV projection: (T, C) @ (C, 3*H*hs), f32 accumulation ----
    x = x_ref[0].astype(jnp.bfloat16)                                   # (T, C)
    qkv = jnp.dot(x, wqkv_ref[...], preferred_element_type=jnp.float32)  # (T, 3*H*hs)

    # causal (tril) mask, built once and reused for every head
    row = jax.lax.broadcasted_iota(jnp.int32, (T, T), 0)
    col = jax.lax.broadcasted_iota(jnp.int32, (T, T), 1)
    causal = col <= row

    acc = jnp.zeros((T, C), jnp.float32)

    # short unrolled loop over heads (num_heads = 6)
    for h in range(num_heads):
        lo = h * head_size
        # Q weights were pre-scaled by hs**-0.5, so q is already scaled.
        q = qkv[:, lo:lo + head_size].astype(jnp.bfloat16)                       # (T, hs)
        k = qkv[:, HHS + lo:HHS + lo + head_size].astype(jnp.bfloat16)           # (T, hs)
        v = qkv[:, 2 * HHS + lo:2 * HHS + lo + head_size].astype(jnp.bfloat16)   # (T, hs)

        # QK^T without materializing a transpose: contract last axes.
        wei = jax.lax.dot_general(
            q, k, (((1,), (1,)), ((), ())),
            preferred_element_type=jnp.float32)                                  # (T, T)

        # causal mask with a large finite negative (robust vs. -inf NaN traps)
        wei = jnp.where(causal, wei, jnp.float32(-1e30))

        # numerically-stable softmax, kept in f32
        wei = wei - jnp.max(wei, axis=-1, keepdims=True)
        p = jnp.exp(wei)
        p = p * pl.reciprocal(jnp.sum(p, axis=-1, keepdims=True), approx=True)

        # PV: (T, T) @ (T, hs)
        head_out = jnp.dot(p.astype(jnp.bfloat16), v,
                           preferred_element_type=jnp.float32)                   # (T, hs)

        # fused output projection for this head: (T, hs) @ (hs, C), accumulate
        acc = acc + jnp.dot(head_out.astype(jnp.bfloat16),
                            wp_ref[lo:lo + head_size, :],
                            preferred_element_type=jnp.float32)                  # (T, C)

    o_ref[0] = (acc + b_ref[...].astype(jnp.float32)).astype(o_ref.dtype)


def multihead_attention(x, wq, wk, wv, wp, bp):
    """x: (B, T, C); wq/wk/wv: (H, C, hs); wp: (H*hs, C); bp: (1, C)."""
    B, T, C = x.shape
    H, _, hs = wq.shape

    # --- pack weights (one-time prep): fold 1/sqrt(hs) into Q, fuse QKV, bf16 ---
    scale = jnp.float32(hs) ** -0.5

    def pack(w):  # (H, C, hs) -> (C, H*hs), head-major on the last axis
        return jnp.transpose(w, (1, 0, 2)).reshape(C, H * hs)

    wqkv = jnp.concatenate([pack(wq * scale), pack(wk), pack(wv)],
                           axis=-1).astype(jnp.bfloat16)                 # (C, 3*H*hs)
    wp_b = wp.astype(jnp.bfloat16)                                       # (H*hs, C)
    bp_f = bp.astype(jnp.float32)                                        # (1, C)

    kernel = functools.partial(mha_fused_kernel, num_heads=H, head_size=hs)

    out = pl.pallas_call(
        kernel,
        out_shape=jax.ShapeDtypeStruct((B, T, C), x.dtype),
        grid=(B,),
        in_specs=[
            pl.BlockSpec((1, T, C), lambda b: (b, 0, 0)),
            pl.BlockSpec((C, 3 * H * hs), lambda b: (0, 0)),
            pl.BlockSpec((H * hs, C), lambda b: (0, 0)),
            pl.BlockSpec((1, C), lambda b: (0, 0)),
        ],
        out_specs=pl.BlockSpec((1, T, C), lambda b: (b, 0, 0)),
        compiler_params=pltpu.CompilerParams(
            dimension_semantics=("parallel",)),
    )(x, wqkv, wp_b, bp_f)

    return out


def multihead_attention_ref(x, wq, wk, wv, wp, bp):
    """Pure-JAX f32 reference (matches the PyTorch module in eval mode)."""
    B, T, C = x.shape
    H, _, hs = wq.shape
    q = jnp.einsum("btc,hcd->bhtd", x, wq)
    k = jnp.einsum("btc,hcd->bhtd", x, wk)
    v = jnp.einsum("btc,hcd->bhtd", x, wv)
    wei = jnp.einsum("bhtd,bhsd->bhts", q, k) * (hs ** -0.5)
    mask = jnp.tril(jnp.ones((T, T), dtype=bool))
    wei = jnp.where(mask, wei, -jnp.inf)
    p = jax.nn.softmax(wei, axis=-1)
    heads = jnp.einsum("bhts,bhsd->bhtd", p, v)                 # (B, H, T, hs)
    cat = jnp.transpose(heads, (0, 2, 1, 3)).reshape(B, T, H * hs)
    return cat @ wp + bp


if __name__ == "__main__":
    B = 2
    T = 128          # == block_size, so tril[:T,:T] == full causal mask
    C = n_embed      # 384
    H = 6            # num_heads
    hs = C // H      # head_size = 64

    key = jax.random.PRNGKey(0)
    kx, kq, kk, kv, kp, kb = jax.random.split(key, 6)

    x = jax.random.normal(kx, (B, T, C), dtype=jnp.float32)

    # nn.Linear(n_embed, head_size, bias=False) weight is (hs, C); we store the
    # transposed (C, hs) per head, stacked over heads -> (H, C, hs).
    scale = 0.02
    wq = scale * jax.random.normal(kq, (H, C, hs), dtype=jnp.float32)
    wk = scale * jax.random.normal(kk, (H, C, hs), dtype=jnp.float32)
    wv = scale * jax.random.normal(kv, (H, C, hs), dtype=jnp.float32)

    # nn.Linear(H*hs, n_embed) weight is (C, H*hs); pass transposed (H*hs, C).
    wp = scale * jax.random.normal(kp, (H * hs, C), dtype=jnp.float32)
    bp = scale * jax.random.normal(kb, (1, C), dtype=jnp.float32)

    out = multihead_attention(x, wq, wk, wv, wp, bp)
    out = jax.block_until_ready(out)

    assert out.shape == (B, T, C)
    assert bool(jnp.all(jnp.isfinite(out)))

    # loose tolerance: kernel uses bf16 MXU operands with f32 accumulation
    ref = multihead_attention_ref(x, wq, wk, wv, wp, bp)
    assert bool(jnp.allclose(out, ref, atol=5e-2, rtol=5e-2))

    print("KERNEL_OK")
</pallas_src>

<mosaic_0001>
module attributes {stable_mosaic.version = 11 : i64} {
  func.func @mha_fused_kernel(%arg0: i32, %arg1: memref<1x128x384xf32, #tpu.memory_space<vmem>>, %arg2: memref<384x1152xbf16, #tpu.memory_space<vmem>>, %arg3: memref<384x384xbf16, #tpu.memory_space<vmem>>, %arg4: memref<1x384xf32, #tpu.memory_space<vmem>>, %arg5: memref<1x128x384xf32, #tpu.memory_space<vmem>>) attributes {dimension_semantics = [#tpu.dimension_semantics<parallel>], iteration_bounds = array<i64: 2>, scalar_prefetch = 0 : i64, scratch_operands = 0 : i64, tpu.core_type = #tpu.core_type<tc>, window_params = [{transform_indices = @transform_0, window_bounds = array<i64: 1, 128, 384>}, {pipeline_mode = #tpu.pipeline_mode<synchronous>, transform_indices = @transform_1, window_bounds = array<i64: 384, 1152>}, {pipeline_mode = #tpu.pipeline_mode<synchronous>, transform_indices = @transform_2, window_bounds = array<i64: 384, 384>}, {pipeline_mode = #tpu.pipeline_mode<synchronous>, transform_indices = @transform_3, window_bounds = array<i64: 1, 384>}, {transform_indices = @transform_4, window_bounds = array<i64: 1, 128, 384>}]} {
    %c0 = arith.constant 0 : index
    %c0_0 = arith.constant 0 : index
    %c0_1 = arith.constant 0 : index
    %0 = vector.load %arg1[%c0, %c0_0, %c0_1] : memref<1x128x384xf32, #tpu.memory_space<vmem>>, vector<1x128x384xf32>
    %1 = vector.shape_cast %0 : vector<1x128x384xf32> to vector<128x384xf32>
    %2 = arith.truncf %1 : vector<128x384xf32> to vector<128x384xbf16>
    %c0_2 = arith.constant 0 : index
    %c0_3 = arith.constant 0 : index
    %3 = vector.load %arg2[%c0_2, %c0_3] : memref<384x1152xbf16, #tpu.memory_space<vmem>>, vector<384x1152xbf16>
    %cst = arith.constant dense<0.000000e+00> : vector<128x1152xf32>
    %4 = tpu.matmul %2, %3, %cst {dimension_numbers = #tpu.dot_dimension_numbers<[1], [0], [0], [1], [0, 0, 1, 1], [], []>} : vector<128x384xbf16>, vector<384x1152xbf16>, vector<128x1152xf32> -> vector<128x1152xf32>
    %5 = tpu.iota {dimensions = array<i32: 0>} : vector<128x128xi32>
    %6 = tpu.iota {dimensions = array<i32: 1>} : vector<128x128xi32>
    %7 = arith.cmpi sle, %6, %5 : vector<128x128xi32>
    %cst_4 = arith.constant 0.000000e+00 : f32
    %8 = vector.broadcast %cst_4 : f32 to vector<128x384xf32>
    %9 = vector.extract_strided_slice %4 {offsets = [0, 0], sizes = [128, 64], strides = [1, 1]} : vector<128x1152xf32> to vector<128x64xf32>
    %10 = arith.truncf %9 : vector<128x64xf32> to vector<128x64xbf16>
    %11 = vector.extract_strided_slice %4 {offsets = [0, 384], sizes = [128, 64], strides = [1, 1]} : vector<128x1152xf32> to vector<128x64xf32>
    %12 = arith.truncf %11 : vector<128x64xf32> to vector<128x64xbf16>
    %13 = vector.extract_strided_slice %4 {offsets = [0, 768], sizes = [128, 64], strides = [1, 1]} : vector<128x1152xf32> to vector<128x64xf32>
    %14 = arith.truncf %13 : vector<128x64xf32> to vector<128x64xbf16>
    %cst_5 = arith.constant dense<0.000000e+00> : vector<128x128xf32>
    %15 = tpu.matmul %10, %12, %cst_5 {dimension_numbers = #tpu.dot_dimension_numbers<[1], [1], [0], [0], [0, 0, 1, 0], [], []>} : vector<128x64xbf16>, vector<128x64xbf16>, vector<128x128xf32> -> vector<128x128xf32>
    %cst_6 = arith.constant -1.000000e+30 : f32
    %16 = vector.broadcast %cst_6 : f32 to vector<128x128xf32>
    %17 = arith.select %7, %15, %16 : vector<128x128xi1>, vector<128x128xf32>
    %cst_7 = arith.constant dense<0xFF800000> : vector<128xf32>
    %18 = vector.multi_reduction <maximumf>, %17, %cst_7 [1] : vector<128x128xf32> to vector<128xf32>
    %19 = vector.shape_cast %18 : vector<128xf32> to vector<128x1xf32>
    %20 = vector.broadcast %19 : vector<128x1xf32> to vector<128x128xf32>
    %21 = arith.subf %17, %20 : vector<128x128xf32>
    %22 = math.exp %21 : vector<128x128xf32>
    %cst_8 = arith.constant dense<0.000000e+00> : vector<128xf32>
    %23 = vector.multi_reduction <add>, %22, %cst_8 [1] : vector<128x128xf32> to vector<128xf32>
    %24 = vector.shape_cast %23 : vector<128xf32> to vector<128x1xf32>
    %25 = tpu.reciprocal %24 {approx = true} : vector<128x1xf32> -> vector<128x1xf32>
    %26 = vector.broadcast %25 : vector<128x1xf32> to vector<128x128xf32>
    %27 = arith.mulf %22, %26 : vector<128x128xf32>
    %28 = arith.truncf %27 : vector<128x128xf32> to vector<128x128xbf16>
    %cst_9 = arith.constant dense<0.000000e+00> : vector<128x64xf32>
    %29 = tpu.matmul %28, %14, %cst_9 {dimension_numbers = #tpu.dot_dimension_numbers<[1], [0], [0], [1], [0, 0, 1, 1], [], []>} : vector<128x128xbf16>, vector<128x64xbf16>, vector<128x64xf32> -> vector<128x64xf32>
    %30 = arith.truncf %29 : vector<128x64xf32> to vector<128x64xbf16>
    %c0_10 = arith.constant 0 : index
    %c0_11 = arith.constant 0 : index
    %31 = vector.load %arg3[%c0_10, %c0_11] : memref<384x384xbf16, #tpu.memory_space<vmem>>, vector<64x384xbf16>
    %cst_12 = arith.constant dense<0.000000e+00> : vector<128x384xf32>
    %32 = tpu.matmul %30, %31, %cst_12 {dimension_numbers = #tpu.dot_dimension_numbers<[1], [0], [0], [1], [0, 0, 1, 1], [], []>} : vector<128x64xbf16>, vector<64x384xbf16>, vector<128x384xf32> -> vector<128x384xf32>
    %33 = arith.addf %8, %32 : vector<128x384xf32>
    %34 = vector.extract_strided_slice %4 {offsets = [0, 64], sizes = [128, 64], strides = [1, 1]} : vector<128x1152xf32> to vector<128x64xf32>
    %35 = arith.truncf %34 : vector<128x64xf32> to vector<128x64xbf16>
    %36 = vector.extract_strided_slice %4 {offsets = [0, 448], sizes = [128, 64], strides = [1, 1]} : vector<128x1152xf32> to vector<128x64xf32>
    %37 = arith.truncf %36 : vector<128x64xf32> to vector<128x64xbf16>
    %38 = vector.extract_strided_slice %4 {offsets = [0, 832], sizes = [128, 64], strides = [1, 1]} : vector<128x1152xf32> to vector<128x64xf32>
    %39 = arith.truncf %38 : vector<128x64xf32> to vector<128x64xbf16>
    %cst_13 = arith.constant dense<0.000000e+00> : vector<128x128xf32>
    %40 = tpu.matmul %35, %37, %cst_13 {dimension_numbers = #tpu.dot_dimension_numbers<[1], [1], [0], [0], [0, 0, 1, 0], [], []>} : vector<128x64xbf16>, vector<128x64xbf16>, vector<128x128xf32> -> vector<128x128xf32>
    %cst_14 = arith.constant -1.000000e+30 : f32
    %41 = vector.broadcast %cst_14 : f32 to vector<128x128xf32>
    %42 = arith.select %7, %40, %41 : vector<128x128xi1>, vector<128x128xf32>
    %cst_15 = arith.constant dense<0xFF800000> : vector<128xf32>
    %43 = vector.multi_reduction <maximumf>, %42, %cst_15 [1] : vector<128x128xf32> to vector<128xf32>
    %44 = vector.shape_cast %43 : vector<128xf32> to vector<128x1xf32>
    %45 = vector.broadcast %44 : vector<128x1xf32> to vector<128x128xf32>
    %46 = arith.subf %42, %45 : vector<128x128xf32>
    %47 = math.exp %46 : vector<128x128xf32>
    %cst_16 = arith.constant dense<0.000000e+00> : vector<128xf32>
    %48 = vector.multi_reduction <add>, %47, %cst_16 [1] : vector<128x128xf32> to vector<128xf32>
    %49 = vector.shape_cast %48 : vector<128xf32> to vector<128x1xf32>
    %50 = tpu.reciprocal %49 {approx = true} : vector<128x1xf32> -> vector<128x1xf32>
    %51 = vector.broadcast %50 : vector<128x1xf32> to vector<128x128xf32>
    %52 = arith.mulf %47, %51 : vector<128x128xf32>
    %53 = arith.truncf %52 : vector<128x128xf32> to vector<128x128xbf16>
    %cst_17 = arith.constant dense<0.000000e+00> : vector<128x64xf32>
    %54 = tpu.matmul %53, %39, %cst_17 {dimension_numbers = #tpu.dot_dimension_numbers<[1], [0], [0], [1], [0, 0, 1, 1], [], []>} : vector<128x128xbf16>, vector<128x64xbf16>, vector<128x64xf32> -> vector<128x64xf32>
    %55 = arith.truncf %54 : vector<128x64xf32> to vector<128x64xbf16>
    %c64 = arith.constant 64 : index
    %c0_18 = arith.constant 0 : index
    %56 = vector.load %arg3[%c64, %c0_18] : memref<384x384xbf16, #tpu.memory_space<vmem>>, vector<64x384xbf16>
    %cst_19 = arith.constant dense<0.000000e+00> : vector<128x384xf32>
    %57 = tpu.matmul %55, %56, %cst_19 {dimension_numbers = #tpu.dot_dimension_numbers<[1], [0], [0], [1], [0, 0, 1, 1], [], []>} : vector<128x64xbf16>, vector<64x384xbf16>, vector<128x384xf32> -> vector<128x384xf32>
    %58 = arith.addf %33, %57 : vector<128x384xf32>
    %59 = vector.extract_strided_slice %4 {offsets = [0, 128], sizes = [128, 64], strides = [1, 1]} : vector<128x1152xf32> to vector<128x64xf32>
    %60 = arith.truncf %59 : vector<128x64xf32> to vector<128x64xbf16>
    %61 = vector.extract_strided_slice %4 {offsets = [0, 512], sizes = [128, 64], strides = [1, 1]} : vector<128x1152xf32> to vector<128x64xf32>
    %62 = arith.truncf %61 : vector<128x64xf32> to vector<128x64xbf16>
    %63 = vector.extract_strided_slice %4 {offsets = [0, 896], sizes = [128, 64], strides = [1, 1]} : vector<128x1152xf32> to vector<128x64xf32>
    %64 = arith.truncf %63 : vector<128x64xf32> to vector<128x64xbf16>
    %cst_20 = arith.constant dense<0.000000e+00> : vector<128x128xf32>
    %65 = tpu.matmul %60, %62, %cst_20 {dimension_numbers = #tpu.dot_dimension_numbers<[1], [1], [0], [0], [0, 0, 1, 0], [], []>} : vector<128x64xbf16>, vector<128x64xbf16>, vector<128x128xf32> -> vector<128x128xf32>
    %cst_21 = arith.constant -1.000000e+30 : f32
    %66 = vector.broadcast %cst_21 : f32 to vector<128x128xf32>
    %67 = arith.select %7, %65, %66 : vector<128x128xi1>, vector<128x128xf32>
    %cst_22 = arith.constant dense<0xFF800000> : vector<128xf32>
    %68 = vector.multi_reduction <maximumf>, %67, %cst_22 [1] : vector<128x128xf32> to vector<128xf32>
    %69 = vector.shape_cast %68 : vector<128xf32> to vector<128x1xf32>
    %70 = vector.broadcast %69 : vector<128x1xf32> to vector<128x128xf32>
    %71 = arith.subf %67, %70 : vector<128x128xf32>
    %72 = math.exp %71 : vector<128x128xf32>
    %cst_23 = arith.constant dense<0.000000e+00> : vector<128xf32>
    %73 = vector.multi_reduction <add>, %72, %cst_23 [1] : vector<128x128xf32> to vector<128xf32>
    %74 = vector.shape_cast %73 : vector<128xf32> to vector<128x1xf32>
    %75 = tpu.reciprocal %74 {approx = true} : vector<128x1xf32> -> vector<128x1xf32>
    %76 = vector.broadcast %75 : vector<128x1xf32> to vector<128x128xf32>
    %77 = arith.mulf %72, %76 : vector<128x128xf32>
    %78 = arith.truncf %77 : vector<128x128xf32> to vector<128x128xbf16>
    %cst_24 = arith.constant dense<0.000000e+00> : vector<128x64xf32>
    %79 = tpu.matmul %78, %64, %cst_24 {dimension_numbers = #tpu.dot_dimension_numbers<[1], [0], [0], [1], [0, 0, 1, 1], [], []>} : vector<128x128xbf16>, vector<128x64xbf16>, vector<128x64xf32> -> vector<128x64xf32>
    %80 = arith.truncf %79 : vector<128x64xf32> to vector<128x64xbf16>
    %c128 = arith.constant 128 : index
    %c0_25 = arith.constant 0 : index
    %81 = vector.load %arg3[%c128, %c0_25] : memref<384x384xbf16, #tpu.memory_space<vmem>>, vector<64x384xbf16>
    %cst_26 = arith.constant dense<0.000000e+00> : vector<128x384xf32>
    %82 = tpu.matmul %80, %81, %cst_26 {dimension_numbers = #tpu.dot_dimension_numbers<[1], [0], [0], [1], [0, 0, 1, 1], [], []>} : vector<128x64xbf16>, vector<64x384xbf16>, vector<128x384xf32> -> vector<128x384xf32>
    %83 = arith.addf %58, %82 : vector<128x384xf32>
    %84 = vector.extract_strided_slice %4 {offsets = [0, 192], sizes = [128, 64], strides = [1, 1]} : vector<128x1152xf32> to vector<128x64xf32>
    %85 = arith.truncf %84 : vector<128x64xf32> to vector<128x64xbf16>
    %86 = vector.extract_strided_slice %4 {offsets = [0, 576], sizes = [128, 64], strides = [1, 1]} : vector<128x1152xf32> to vector<128x64xf32>
    %87 = arith.truncf %86 : vector<128x64xf32> to vector<128x64xbf16>
    %88 = vector.extract_strided_slice %4 {offsets = [0, 960], sizes = [128, 64], strides = [1, 1]} : vector<128x1152xf32> to vector<128x64xf32>
    %89 = arith.truncf %88 : vector<128x64xf32> to vector<128x64xbf16>
    %cst_27 = arith.constant dense<0.000000e+00> : vector<128x128xf32>
    %90 = tpu.matmul %85, %87, %cst_27 {dimension_numbers = #tpu.dot_dimension_numbers<[1], [1], [0], [0], [0, 0, 1, 0], [], []>} : vector<128x64xbf16>, vector<128x64xbf16>, vector<128x128xf32> -> vector<128x128xf32>
    %cst_28 = arith.constant -1.000000e+30 : f32
    %91 = vector.broadcast %cst_28 : f32 to vector<128x128xf32>
    %92 = arith.select %7, %90, %91 : vector<128x128xi1>, vector<128x128xf32>
    %cst_29 = arith.constant dense<0xFF800000> : vector<128xf32>
    %93 = vector.multi_reduction <maximumf>, %92, %cst_29 [1] : vector<128x128xf32> to vector<128xf32>
    %94 = vector.shape_cast %93 : vector<128xf32> to vector<128x1xf32>
    %95 = vector.broadcast %94 : vector<128x1xf32> to vector<128x128xf32>
    %96 = arith.subf %92, %95 : vector<128x128xf32>
    %97 = math.exp %96 : vector<128x128xf32>
    %cst_30 = arith.constant dense<0.000000e+00> : vector<128xf32>
    %98 = vector.multi_reduction <add>, %97, %cst_30 [1] : vector<128x128xf32> to vector<128xf32>
    %99 = vector.shape_cast %98 : vector<128xf32> to vector<128x1xf32>
    %100 = tpu.reciprocal %99 {approx = true} : vector<128x1xf32> -> vector<128x1xf32>
    %101 = vector.broadcast %100 : vector<128x1xf32> to vector<128x128xf32>
    %102 = arith.mulf %97, %101 : vector<128x128xf32>
    %103 = arith.truncf %102 : vector<128x128xf32> to vector<128x128xbf16>
    %cst_31 = arith.constant dense<0.000000e+00> : vector<128x64xf32>
    %104 = tpu.matmul %103, %89, %cst_31 {dimension_numbers = #tpu.dot_dimension_numbers<[1], [0], [0], [1], [0, 0, 1, 1], [], []>} : vector<128x128xbf16>, vector<128x64xbf16>, vector<128x64xf32> -> vector<128x64xf32>
    %105 = arith.truncf %104 : vector<128x64xf32> to vector<128x64xbf16>
    %c192 = arith.constant 192 : index
    %c0_32 = arith.constant 0 : index
    %106 = vector.load %arg3[%c192, %c0_32] : memref<384x384xbf16, #tpu.memory_space<vmem>>, vector<64x384xbf16>
    %cst_33 = arith.constant dense<0.000000e+00> : vector<128x384xf32>
    %107 = tpu.matmul %105, %106, %cst_33 {dimension_numbers = #tpu.dot_dimension_numbers<[1], [0], [0], [1], [0, 0, 1, 1], [], []>} : vector<128x64xbf16>, vector<64x384xbf16>, vector<128x384xf32> -> vector<128x384xf32>
    %108 = arith.addf %83, %107 : vector<128x384xf32>
    %109 = vector.extract_strided_slice %4 {offsets = [0, 256], sizes = [128, 64], strides = [1, 1]} : vector<128x1152xf32> to vector<128x64xf32>
    %110 = arith.truncf %109 : vector<128x64xf32> to vector<128x64xbf16>
    %111 = vector.extract_strided_slice %4 {offsets = [0, 640], sizes = [128, 64], strides = [1, 1]} : vector<128x1152xf32> to vector<128x64xf32>
    %112 = arith.truncf %111 : vector<128x64xf32> to vector<128x64xbf16>
    %113 = vector.extract_strided_slice %4 {offsets = [0, 1024], sizes = [128, 64], strides = [1, 1]} : vector<128x1152xf32> to vector<128x64xf32>
    %114 = arith.truncf %113 : vector<128x64xf32> to vector<128x64xbf16>
    %cst_34 = arith.constant dense<0.000000e+00> : vector<128x128xf32>
    %115 = tpu.matmul %110, %112, %cst_34 {dimension_numbers = #tpu.dot_dimension_numbers<[1], [1], [0], [0], [0, 0, 1, 0], [], []>} : vector<128x64xbf16>, vector<128x64xbf16>, vector<128x128xf32> -> vector<128x128xf32>
    %cst_35 = arith.constant -1.000000e+30 : f32
    %116 = vector.broadcast %cst_35 : f32 to vector<128x128xf32>
    %117 = arith.select %7, %115, %116 : vector<128x128xi1>, vector<128x128xf32>
    %cst_36 = arith.constant dense<0xFF800000> : vector<128xf32>
    %118 = vector.multi_reduction <maximumf>, %117, %cst_36 [1] : vector<128x128xf32> to vector<128xf32>
    %119 = vector.shape_cast %118 : vector<128xf32> to vector<128x1xf32>
    %120 = vector.broadcast %119 : vector<128x1xf32> to vector<128x128xf32>
    %121 = arith.subf %117, %120 : vector<128x128xf32>
    %122 = math.exp %121 : vector<128x128xf32>
    %cst_37 = arith.constant dense<0.000000e+00> : vector<128xf32>
    %123 = vector.multi_reduction <add>, %122, %cst_37 [1] : vector<128x128xf32> to vector<128xf32>
    %124 = vector.shape_cast %123 : vector<128xf32> to vector<128x1xf32>
    %125 = tpu.reciprocal %124 {approx = true} : vector<128x1xf32> -> vector<128x1xf32>
    %126 = vector.broadcast %125 : vector<128x1xf32> to vector<128x128xf32>
    %127 = arith.mulf %122, %126 : vector<128x128xf32>
    %128 = arith.truncf %127 : vector<128x128xf32> to vector<128x128xbf16>
    %cst_38 = arith.constant dense<0.000000e+00> : vector<128x64xf32>
    %129 = tpu.matmul %128, %114, %cst_38 {dimension_numbers = #tpu.dot_dimension_numbers<[1], [0], [0], [1], [0, 0, 1, 1], [], []>} : vector<128x128xbf16>, vector<128x64xbf16>, vector<128x64xf32> -> vector<128x64xf32>
    %130 = arith.truncf %129 : vector<128x64xf32> to vector<128x64xbf16>
    %c256 = arith.constant 256 : index
    %c0_39 = arith.constant 0 : index
    %131 = vector.load %arg3[%c256, %c0_39] : memref<384x384xbf16, #tpu.memory_space<vmem>>, vector<64x384xbf16>
    %cst_40 = arith.constant dense<0.000000e+00> : vector<128x384xf32>
    %132 = tpu.matmul %130, %131, %cst_40 {dimension_numbers = #tpu.dot_dimension_numbers<[1], [0], [0], [1], [0, 0, 1, 1], [], []>} : vector<128x64xbf16>, vector<64x384xbf16>, vector<128x384xf32> -> vector<128x384xf32>
    %133 = arith.addf %108, %132 : vector<128x384xf32>
    %134 = vector.extract_strided_slice %4 {offsets = [0, 320], sizes = [128, 64], strides = [1, 1]} : vector<128x1152xf32> to vector<128x64xf32>
    %135 = arith.truncf %134 : vector<128x64xf32> to vector<128x64xbf16>
    %136 = vector.extract_strided_slice %4 {offsets = [0, 704], sizes = [128, 64], strides = [1, 1]} : vector<128x1152xf32> to vector<128x64xf32>
    %137 = arith.truncf %136 : vector<128x64xf32> to vector<128x64xbf16>
    %138 = vector.extract_strided_slice %4 {offsets = [0, 1088], sizes = [128, 64], strides = [1, 1]} : vector<128x1152xf32> to vector<128x64xf32>
    %139 = arith.truncf %138 : vector<128x64xf32> to vector<128x64xbf16>
    %cst_41 = arith.constant dense<0.000000e+00> : vector<128x128xf32>
    %140 = tpu.matmul %135, %137, %cst_41 {dimension_numbers = #tpu.dot_dimension_numbers<[1], [1], [0], [0], [0, 0, 1, 0], [], []>} : vector<128x64xbf16>, vector<128x64xbf16>, vector<128x128xf32> -> vector<128x128xf32>
    %cst_42 = arith.constant -1.000000e+30 : f32
    %141 = vector.broadcast %cst_42 : f32 to vector<128x128xf32>
    %142 = arith.select %7, %140, %141 : vector<128x128xi1>, vector<128x128xf32>
    %cst_43 = arith.constant dense<0xFF800000> : vector<128xf32>
    %143 = vector.multi_reduction <maximumf>, %142, %cst_43 [1] : vector<128x128xf32> to vector<128xf32>
    %144 = vector.shape_cast %143 : vector<128xf32> to vector<128x1xf32>
    %145 = vector.broadcast %144 : vector<128x1xf32> to vector<128x128xf32>
    %146 = arith.subf %142, %145 : vector<128x128xf32>
    %147 = math.exp %146 : vector<128x128xf32>
    %cst_44 = arith.constant dense<0.000000e+00> : vector<128xf32>
    %148 = vector.multi_reduction <add>, %147, %cst_44 [1] : vector<128x128xf32> to vector<128xf32>
    %149 = vector.shape_cast %148 : vector<128xf32> to vector<128x1xf32>
    %150 = tpu.reciprocal %149 {approx = true} : vector<128x1xf32> -> vector<128x1xf32>
    %151 = vector.broadcast %150 : vector<128x1xf32> to vector<128x128xf32>
    %152 = arith.mulf %147, %151 : vector<128x128xf32>
    %153 = arith.truncf %152 : vector<128x128xf32> to vector<128x128xbf16>
    %cst_45 = arith.constant dense<0.000000e+00> : vector<128x64xf32>
    %154 = tpu.matmul %153, %139, %cst_45 {dimension_numbers = #tpu.dot_dimension_numbers<[1], [0], [0], [1], [0, 0, 1, 1], [], []>} : vector<128x128xbf16>, vector<128x64xbf16>, vector<128x64xf32> -> vector<128x64xf32>
    %155 = arith.truncf %154 : vector<128x64xf32> to vector<128x64xbf16>
    %c320 = arith.constant 320 : index
    %c0_46 = arith.constant 0 : index
    %156 = vector.load %arg3[%c320, %c0_46] : memref<384x384xbf16, #tpu.memory_space<vmem>>, vector<64x384xbf16>
    %cst_47 = arith.constant dense<0.000000e+00> : vector<128x384xf32>
    %157 = tpu.matmul %155, %156, %cst_47 {dimension_numbers = #tpu.dot_dimension_numbers<[1], [0], [0], [1], [0, 0, 1, 1], [], []>} : vector<128x64xbf16>, vector<64x384xbf16>, vector<128x384xf32> -> vector<128x384xf32>
    %158 = arith.addf %133, %157 : vector<128x384xf32>
    %c0_48 = arith.constant 0 : index
    %c0_49 = arith.constant 0 : index
    %159 = vector.load %arg4[%c0_48, %c0_49] : memref<1x384xf32, #tpu.memory_space<vmem>>, vector<1x384xf32>
    %160 = vector.broadcast %159 : vector<1x384xf32> to vector<128x384xf32>
    %161 = arith.addf %158, %160 : vector<128x384xf32>
    %c0_50 = arith.constant 0 : index
    %c0_51 = arith.constant 0 : index
    %c0_52 = arith.constant 0 : index
    %162 = vector.load %arg5[%c0_50, %c0_51, %c0_52] : memref<1x128x384xf32, #tpu.memory_space<vmem>>, vector<1x128x384xf32>
    %163 = vector.shape_cast %162 : vector<1x128x384xf32> to vector<128x384xf32>
    %164 = vector.shape_cast %161 : vector<128x384xf32> to vector<1x128x384xf32>
    tpu.vector_store %arg5[%c0_50, %c0_51, %c0_52], %164 {strides = array<i32>} : memref<1x128x384xf32, #tpu.memory_space<vmem>>, vector<1x128x384xf32>,
    return
  }
  func.func @transform_0(%arg0: i32) -> (i32, i32, i32) {
    %c0_i32 = arith.constant 0 : i32
    %c0_i32_0 = arith.constant 0 : i32
    %c0_i32_1 = arith.constant 0 : i32
    return %arg0, %c0_i32, %c0_i32_0 : i32, i32, i32
  }
  func.func @transform_1(%arg0: i32) -> (i32, i32) {
    %c0_i32 = arith.constant 0 : i32
    %c0_i32_0 = arith.constant 0 : i32
    %c0_i32_1 = arith.constant 0 : i32
    return %c0_i32, %c0_i32_0 : i32, i32
  }
  func.func @transform_2(%arg0: i32) -> (i32, i32) {
    %c0_i32 = arith.constant 0 : i32
    %c0_i32_0 = arith.constant 0 : i32
    %c0_i32_1 = arith.constant 0 : i32
    return %c0_i32, %c0_i32_0 : i32, i32
  }
  func.func @transform_3(%arg0: i32) -> (i32, i32) {
    %c0_i32 = arith.constant 0 : i32
    %c0_i32_0 = arith.constant 0 : i32
    %c0_i32_1 = arith.constant 0 : i32
    return %c0_i32, %c0_i32_0 : i32, i32
  }
  func.func @transform_4(%arg0: i32) -> (i32, i32, i32) {
    %c0_i32 = arith.constant 0 : i32
    %c0_i32_0 = arith.constant 0 : i32
    %c0_i32_1 = arith.constant 0 : i32
    return %arg0, %c0_i32, %c0_i32_0 : i32, i32, i32
  }
}

</mosaic_0001>

<bundles_post_ra>
// kernel: tpu_custom_call.1
= control target key start
LH: loop header
LB: loop body
LE: loop exit
PB: predicated region body
PF: predicated region fallthrough
CT: control target
= control target key end

     0   :  { %9 = vsyncpa [#allocation3], 0  ;;  %s13181_s0 = inlined_call_operand.hbm [shape: f32[2,128,384], index: 0, kind: input, shape index: {}]   ;;  %s13182_s1 = inlined_call_operand.hbm [shape: bf16[384,1152], index: 1, kind: input, shape index: {}]   ;;  %s13183_s2 = inlined_call_operand.hbm [shape: bf16[384,384], index: 2, kind: input, shape index: {}]   ;;  %s13184_s3 = inlined_call_operand.vmem [shape: f32[1,384], index: 3, kind: input, shape index: {}]   ;;  %s13185_s4 = inlined_call_operand.hbm [shape: f32[2,128,384], index: 4, kind: output, shape index: {}]  }
   0x1   :  { %11 = vsyncpa [#allocation3 + $0x1], 0 }
   0x2   :  { %12 = vsyncpa [#allocation6], 0 }
   0x3   :  { %13 = vsyncpa [#allocation4], 0 }
   0x4   :  { %15 = vsyncpa [#allocation4 + $0x1], 0  ;;  %s10753_s15 = smov 0   ;;  %s10755_s16 = smov 0  }
   0x5   :  { %s10757_s17 = smov 0   ;;  %s10759_s18 = smov 0  }
   0x6 LB: > { %s10774_s19 = sadd.s32 4294967295, %s10712_s18   ;;  %s7911_s20 = sadd.s32 4294967294, %s10712_s18   ;;  %s10712_s18 = sphi %s10759_s18, %s13727_s18   ;;  %s10708_s17 = sphi %s10757_s17, %s13726_s17   ;;  %s10704_s16 = sphi %s10755_s16, %s13725_s16   ;;  %s10700_s15 = sphi %s10753_s15, %s13724_s15  }
   0x7   : > { %p41_p0 = scmp.ne.s32.totalorder %s10704_s16, %s10700_s15  ;;  %p13186_p1 = scmp.eq.s32.totalorder %s10774_s19, 0 }
   0x8   : > { %p134_p3 = scmp.eq.s32.totalorder %s7911_s20, 1  ;;  %p7912_p5 = scmp.ge.s32.totalorder %s10712_s18, 1 }
   0x9   : > { %p10783_p4 = por %p13186_p1, %p41_p0  ;;  %p141_p7 = scmp.lt.s32.totalorder %s10712_s18, 3 }
   0xa   : > { %p10788_p6 = por %p134_p3, %p41_p0  ;;  %s10714_s24 = smov [#allocation5]  }
   0xb   : > { %s13299_s21 = scalar_select %p10783_p4, 1, 0 }
   0xc   : > { %s13300_s22 = scalar_select %p10788_p6, 1, 0 }
   0xd   : > { %p10793_p8 = pnand %p7912_p5, %p141_p7  ;;  %s153_s25 = sshll.u32 %s10714_s24, 4  ;;  %s10797_s25 = int_to_ptr.vmem [resolvable:$true] %s153_s25 }
   0xe   : > { %s10715_s27 = smov [#allocation7]   ;;  %s10556_s5 = scalar_lea.hbm %s13182_s1, 27648 }
   0xf   : > { %p9699_p9 = pneg %p10793_p8  ;;  %s166_s28 = sshll.u32 %s10715_s27, 4  ;;  %s10808_s28 = int_to_ptr.vmem [resolvable:$true] %s166_s28 }
  0x10   : > { %p10557_p12 = scmp.ne.s32.totalorder %s13182_s1, %s10556_s5  ;;  %p10563_p5 = scmp.lt.u32.totalorder %s10556_s5, %s13182_s1 }
  0x11   : > { %p10804_p11 = pnand %p9699_p9, %p13186_p1 }
  0x13   : > { %p10558_p13 = pneg %p10804_p11 }
  0x15   : > { %p10559_p0 = pnand %p10558_p13, %p10557_p12 }
  0x17   : > { %p10560_p3 = pneg %p10559_p0 }
  0x19   : > { %p10565_p7 = pnand %p10563_p5, %p10560_p3 }
  0x1b   : > { %10568 = shalt.err (!%p10565_p7)
}
  0x1c   : > { %s10569_s10 = scalar_lea.vmem %s10797_s25, 27648  ;;  %p10577_p2 = scmp.lt.s32.totalorder %s10797_s25, %s10797_s25 }
  0x1d   : > { %p10570_p9 = scmp.ne.s32.totalorder %s10797_s25, %s10569_s10  ;;  %p10578_p12 = scmp.lt.s32.totalorder %s10569_s10, %s10569_s10 }
  0x1f   : > { %p10572_p10 = pnand %p10570_p9, %p10558_p13  ;;  %p10579_p0 = por %p10578_p12, %p10577_p2 }
  0x21   : > { %p10573_p1 = pneg %p10572_p10 }
  0x23   : > { %p10580_p6 = pnand %p10579_p0, %p10573_p1 }
  0x25   : > { %10583 = shalt.err (!%p10580_p6)
}
  0x26   : > { %s10716_s11 = smov 576   ;;  %s10717_s12 = smov 36  }
  0x27   : > { %9702 = dma.hbm_to_vmem [thread:$0]  (!%p10804_p11), %s13182_s1, 27648, %s10797_s25, [#allocation6], %s10716_s11, %s10716_s11, %s10717_s12  }
  0x28   : > { %s10584_s27 = scalar_lea.hbm %s13183_s2, 9216 }
  0x29   : > { %p10585_p2 = scmp.ne.s32.totalorder %s13183_s2, %s10584_s27  ;;  %p10591_p10 = scmp.lt.u32.totalorder %s10584_s27, %s13183_s2 }
  0x2b   : > { %p10587_p1 = pnand %p10585_p2, %p10558_p13 }
  0x2d   : > { %p10588_p6 = pneg %p10587_p1 }
  0x2f   : > { %p10593_p3 = pnand %p10591_p10, %p10588_p6 }
  0x31   : > { %10596 = shalt.err (!%p10593_p3)
}
  0x32   : > { %s10597_s25 = scalar_lea.vmem %s10808_s28, 9216  ;;  %p10605_p12 = scmp.lt.s32.totalorder %s10808_s28, %s10808_s28 }
  0x33   : > { %p10598_p5 = scmp.ne.s32.totalorder %s10808_s28, %s10597_s25  ;;  %p10606_p0 = scmp.lt.s32.totalorder %s10597_s25, %s10597_s25 }
  0x35   : > { %p10600_p7 = pnand %p10598_p5, %p10558_p13  ;;  %p10607_p2 = por %p10606_p0, %p10605_p12 }
  0x37   : > { %p10601_p9 = pneg %p10600_p7 }
  0x39   : > { %p10608_p1 = pnand %p10607_p2, %p10601_p9 }
  0x3b   : > { %10611 = shalt.err (!%p10608_p1)
}
  0x3c   : > { %s10718_s7 = smov 192   ;;  %s10719_s8 = smov 12  }
  0x3d   : > { %9705 = dma.hbm_to_vmem [thread:$0]  (!%p10804_p11), %s13183_s2, 9216, %s10808_s28, [#allocation6], %s10718_s7, %s10718_s7, %s10719_s8  }
  0x3e   : > { %s10863_s11 = sadd.s32 1, %s10712_s18   ;;  %s28_s13 = sadd.s32 1, %s10708_s17 }
  0x3f   : > { %s25_s12 = ssub.s32 %s10712_s18, %s10863_s11  ;;  %p35_p6 = scmp.ne.s32.totalorder %s10708_s17, %s10704_s16 }
  0x40   : > { %p26_p13 = scmp.eq.s32.totalorder %s25_s12, 0  ;;  %p36_p10 = scmp.eq.s32.totalorder %s10712_s18, 0 }
  0x41   : > { %p13303_p5 = scmp.eq.s32.totalorder %s10774_s19, 1  ;;  %p9716_p9 = scmp.lt.s32.totalorder %s10712_s18, 2 }
  0x42   : > { %s10872_s14 = scalar_select %p26_p13, %s10708_s17, %s28_s13  }
  0x43   : > { %p37_p3 = por %p36_p10, %p35_p6  ;;  %p10876_p7 = por %p13303_p5, %p35_p6 }
  0x44   : > { %s183_s26 = sand.u32 1, %s10708_s17   ;;  %s9684_s28 = smul.u32 6144, %s10712_s18 }
  0x45   : > { %s13304_s20 = scalar_select %p10876_p7, 1, 0 }
  0x46   : > { %s9683_s24 = smul.u32 384, %s183_s26  ;;  %p10883_p11 = pnand %p9716_p9, %p37_p3 }
  0x47   : > { %s10890_s5 = scalar_lea.hbm %s13181_s0, %s9684_s28  ;;  %s10894_s7 = scalar_lea.sflag [#allocation3], %s183_s26 }
  0x48   : > { %s187_s6 = scalar_lea.vmem [#allocation2], %s9683_s24  ;;  %s10612_s8 = scalar_lea.hbm %s10890_s5, 6144 }
  0x49   : > { %s194_s25 = sshll.u32 %s187_s6, 4  ;;  %p10613_p12 = scmp.ne.s32.totalorder %s10890_s5, %s10612_s8  ;;  %s10892_s25 = int_to_ptr.vmem [resolvable:$true] %s194_s25 }
  0x4a   : > { %p10614_p0 = pneg %p10883_p11  ;;  %s10617_s12 = scalar_lea.hbm %s13181_s0, 12288 }
  0x4b   : > { %p10618_p13 = scmp.lt.u32.totalorder %s10890_s5, %s13181_s0  ;;  %p10619_p6 = scmp.lt.u32.totalorder %s10617_s12, %s10612_s8 }
  0x4c   : > { %p10615_p2 = pnand %p10614_p0, %p10613_p12  ;;  %p10621_p3 = scmp.lt.u32.totalorder %s10612_s8, %s10890_s5 }
  0x4d   : > { %p10620_p10 = por %p10619_p6, %p10618_p13 }
  0x4e   : > { %p10616_p1 = pneg %p10615_p2 }
  0x4f   : > { %p10622_p5 = por %p10621_p3, %p10620_p10 }
  0x51   : > { %p10623_p9 = pnand %p10622_p5, %p10616_p1 }
  0x53   : > { %10626 = shalt.err (!%p10623_p9)
}
  0x54   : > { %s10627_s26 = scalar_lea.vmem %s10892_s25, 6144  ;;  %s10720_s24 = smov [#allocation2]  }
  0x55   : > { %p10628_p12 = scmp.ne.s32.totalorder %s10892_s25, %s10627_s26  ;;  %s10632_s29 = sshll.u32 %s10720_s24, 4  ;;  %s10633_s29 = int_to_ptr.vmem [resolvable:$false] %s10632_s29 }
  0x56   : > { %s10634_s30 = scalar_lea.vmem %s10633_s29, 12288  ;;  %p10635_p4 = scmp.lt.s32.totalorder %s10892_s25, %s10633_s29 }
  0x57   : > { %p10630_p2 = pnand %p10628_p12, %p10614_p0  ;;  %p10636_p13 = scmp.lt.s32.totalorder %s10634_s30, %s10627_s26 }
  0x59   : > { %p10631_p7 = pneg %p10630_p2  ;;  %p10637_p6 = por %p10636_p13, %p10635_p4 }
  0x5b   : > { %p10638_p10 = pnand %p10637_p6, %p10631_p7 }
  0x5d   : > { %10641 = shalt.err (!%p10638_p10)
}
  0x5e   : > { %s10721_s6 = smov 384   ;;  %s10722_s8 = smov 24  }
  0x5f   : > { %9709 = dma.hbm_to_vmem [thread:$0]  (!%p10883_p11), %s10890_s5, 6144, %s10892_s25, %s10894_s7, %s10721_s6, %s10721_s6, %s10722_s8  }
  0x60   : > { %206 = sbr.rel (%p10793_p8) target bundleno = 5638 (0x1606), region = 36 }
  0x67   : > { %s10925_s9 = sand.u32 1, %s10704_s16   ;;  %p13306_p4 = scmp.ne.s32.totalorder %s13299_s21, 0 }
  0x68   : > { %s9685_s10 = smul.u32 384, %s10925_s9  ;;  %s209_s12 = scalar_lea.sflag [#allocation3], %s10925_s9 }
  0x6a   : > { %s10931_s13 = scalar_lea.vmem [#allocation2], %s9685_s10 }
  0x6b   : > { %10687 = dma.done.wait (%p13306_p4), %s209_s12, 6144  }
  0x6c   : > { %10689 = vsyncadd (%p13306_p4), %s209_s12, 4294961152  ;;  %p13307_p7 = scmp.eq.s32.totalorder %s10774_s19, 0 }
  0x6e   : > { %10691 = dma.done.wait (%p13307_p7), [#allocation6], 36864   ;;  %p13308_p8 = pmov %p13307_p7 }
  0x6f   : > { %v13189_v0 = vmov 0   ;;  %v9764_v1 = vld [vmem:[#allocation5 + $0x4] ss:$36 sps:$4 sm:$0xff]   ;;  %v9770_v5 = vld [vmem:[#allocation5 + $0x4c] ss:$36 sps:$4 sm:$0xff]   ;;  %v257_v46 = vld [vmem:[%s10931_s13 + $0x58] sm:$0xff] }
  0x70   : > { %10693 = vsyncadd (%p13308_p8), [#allocation6], 4294930432  ;;  %1807 = vmatprep.mubr.bf16.mxu1 %v13189_v0  ;;  %v9766_v2 = vld [vmem:[#allocation5 + $0x484] ss:$36 sps:$4 sm:$0xff]   ;;  %1662 = vmatprep.subr.bf16.mxu0 %v9764_v1  ;;  %v9772_v6 = vld [vmem:[#allocation5 + $0x4cc] ss:$36 sps:$4 sm:$0xff]  }
  0x71   : > { %v9768_v3 = vld [vmem:[#allocation5] ss:$36 sps:$4 sm:$0xff]   ;;  %1775 = vmatprep.subr.bf16.mxu1 %v9766_v2  ;;  %v9774_v7 = vld [vmem:[#allocation5 + $0x48] ss:$36 sps:$4 sm:$0xff]   ;;  %v9776_v9 = vld [vmem:[#allocation5 + $0x94] ss:$36 sps:$4 sm:$0xff]  }
  0x72   : > { %v9769_v4 = vld [vmem:[#allocation5 + $0x480] ss:$36 sps:$4 sm:$0xff]   ;;  %1663 = vmatpush1.bf16.msra.mxu0 %v9768_v3  ;;  %v9775_v8 = vld [vmem:[#allocation5 + $0x4c8] ss:$36 sps:$4 sm:$0xff]   ;;  %v9778_v10 = vld [vmem:[#allocation5 + $0x514] ss:$36 sps:$4 sm:$0xff]  }
  0x73   : > { %1776 = vmatpush1.bf16.msra.mxu1 %v9769_v4  ;;  %1664 = vmatprep.subr.bf16.mxu0 %v9770_v5  ;;  %v9780_v11 = vld [vmem:[#allocation5 + $0x90] ss:$36 sps:$4 sm:$0xff]   ;;  %v9782_v13 = vld [vmem:[#allocation5 + $0xdc] ss:$36 sps:$4 sm:$0xff]   ;;  %v9788_v17 = vld [vmem:[#allocation5 + $0x124] ss:$36 sps:$4 sm:$0xff]  }
  0x74   : > { %1777 = vmatprep.subr.bf16.mxu1 %v9772_v6  ;;  %v9781_v12 = vld [vmem:[#allocation5 + $0x510] ss:$36 sps:$4 sm:$0xff]   ;;  %v9784_v14 = vld [vmem:[#allocation5 + $0x55c] ss:$36 sps:$4 sm:$0xff]   ;;  %v9790_v18 = vld [vmem:[#allocation5 + $0x5a4] ss:$36 sps:$4 sm:$0xff]  }
  0x75   : > { %v9786_v15 = vld [vmem:[#allocation5 + $0xd8] ss:$36 sps:$4 sm:$0xff]   ;;  %v9792_v19 = vld [vmem:[#allocation5 + $0x120] ss:$36 sps:$4 sm:$0xff]   ;;  %v9794_v21 = vld [vmem:[#allocation5 + $0x16c] ss:$36 sps:$4 sm:$0xff]  }
  0x76   : > { %1665 = vmatpush1.bf16.msra.mxu0 %v9774_v7  ;;  %v9787_v16 = vld [vmem:[#allocation5 + $0x558] ss:$36 sps:$4 sm:$0xff]   ;;  %v9793_v20 = vld [vmem:[#allocation5 + $0x5a0] ss:$36 sps:$4 sm:$0xff]   ;;  %v9796_v22 = vld [vmem:[#allocation5 + $0x5ec] ss:$36 sps:$4 sm:$0xff]  }
  0x77   : > { %1778 = vmatpush1.bf16.msra.mxu1 %v9775_v8  ;;  %1666 = vmatprep.subr.bf16.mxu0 %v9776_v9  ;;  %v9798_v23 = vld [vmem:[#allocation5 + $0x168] ss:$36 sps:$4 sm:$0xff]   ;;  %v9800_v25 = vld [vmem:[#allocation5 + $0x1b4] ss:$36 sps:$4 sm:$0xff]   ;;  %v9806_v29 = vld [vmem:[#allocation5 + $0x1fc] ss:$36 sps:$4 sm:$0xff]  }
  0x78   : > { %1779 = vmatprep.subr.bf16.mxu1 %v9778_v10  ;;  %v9799_v24 = vld [vmem:[#allocation5 + $0x5e8] ss:$36 sps:$4 sm:$0xff]   ;;  %v9802_v26 = vld [vmem:[#allocation5 + $0x634] ss:$36 sps:$4 sm:$0xff]   ;;  %v9808_v30 = vld [vmem:[#allocation5 + $0x67c] ss:$36 sps:$4 sm:$0xff]  }
  0x79   : > { %v9804_v27 = vld [vmem:[#allocation5 + $0x1b0] ss:$36 sps:$4 sm:$0xff]   ;;  %v9810_v31 = vld [vmem:[#allocation5 + $0x1f8] ss:$36 sps:$4 sm:$0xff]   ;;  %v9812_v33 = vld [vmem:[#allocation5 + $0x244] ss:$36 sps:$4 sm:$0xff]  }
  0x7a   : > { %1667 = vmatpush1.bf16.msra.mxu0 %v9780_v11  ;;  %v9805_v28 = vld [vmem:[#allocation5 + $0x630] ss:$36 sps:$4 sm:$0xff]   ;;  %v9811_v32 = vld [vmem:[#allocation5 + $0x678] ss:$36 sps:$4 sm:$0xff]   ;;  %v251_v35 = vld [vmem:[%s10931_s13 + $0x28] sm:$0xff]  ;;  %vm13234_vm0 = vcmask 523264  }
  0x7b   : > { %1780 = vmatpush1.bf16.msra.mxu1 %v9781_v12  ;;  %1668 = vmatprep.subr.bf16.mxu0 %v9782_v13  ;;  %v248_v34 = vld [vmem:[%s10931_s13 + $0x10] sm:$0xff]  ;;  %v9814_v38 = vld [vmem:[#allocation5 + $0x8] ss:$36 sps:$4 sm:$0xff]   ;;  %v9817_v39 = vld [vmem:[#allocation5 + $0x240] ss:$36 sps:$4 sm:$0xff]   ;;  %s10724_s21 = smov 64  }
  0x7c   : > { %1781 = vmatprep.subr.bf16.mxu1 %v9784_v14  ;;  %v9816_v36 = vld [vmem:[#allocation5 + $0xc] ss:$36 sps:$4 sm:$0xff]   ;;  %v10944_v37 = vpack.c.bf16 %v251_v35, %v248_v34  ;;  %v9822_v41 = vld [vmem:[#allocation5 + $0x54] ss:$36 sps:$4 sm:$0xff]   ;;  %v254_v45 = vld [vmem:[%s10931_s13 + $0x40] sm:$0xff]  ;;  %s13027_s5 = scalar_lea.vmem [#allocation8], %s9685_s10 }
  0x7d   : > { %v9818_v40 = vld [vmem:[#allocation5 + $0x28c] ss:$36 sps:$4 sm:$0xff]   ;;  %v9824_v44 = vld [vmem:[#allocation5 + $0x2d4] ss:$36 sps:$4 sm:$0xff]   ;;  %v9828_v47 = vld [vmem:[#allocation5 + $0x9c] ss:$36 sps:$4 sm:$0xff]   ;;  %v10950_v48 = vpack.c.bf16 %v257_v46, %v254_v45 }
  0x7e   : > { %1669 = vmatpush1.bf16.msra.mxu0 %v9786_v15  ;;  %v9820_v42 = vld [vmem:[#allocation5 + $0x50] ss:$36 sps:$4 sm:$0xff]   ;;  %v9823_v43 = vld [vmem:[#allocation5 + $0x288] ss:$36 sps:$4 sm:$0xff]   ;;  %v9826_v49 = vld [vmem:[#allocation5 + $0x98] ss:$36 sps:$4 sm:$0xff]  }
  0x7f   : > { %1782 = vmatpush1.bf16.msra.mxu1 %v9787_v16  ;;  %1670 = vmatprep.subr.bf16.mxu0 %v9788_v17  ;;  %v9829_v50 = vld [vmem:[#allocation5 + $0x2d0] ss:$36 sps:$4 sm:$0xff]   ;;  %v9830_v51 = vld [vmem:[#allocation5 + $0x31c] ss:$36 sps:$4 sm:$0xff]   ;;  %v9834_v52 = vld [vmem:[#allocation5 + $0xe4] ss:$36 sps:$4 sm:$0xff]  }
  0x80   : > { %1783 = vmatprep.subr.bf16.mxu1 %v9790_v18  ;;  %v9832_v53 = vld [vmem:[#allocation5 + $0xe0] ss:$36 sps:$4 sm:$0xff]   ;;  %v9835_v54 = vld [vmem:[#allocation5 + $0x318] ss:$36 sps:$4 sm:$0xff]   ;;  %v260_v56 = vld [vmem:[%s10931_s13 + $0x70] sm:$0xff]  ;;  %s9686_s25 = smul.u32 6144, %s10774_s19 }
  0x81   : > { %v9836_v55 = vld [vmem:[#allocation5 + $0x364] ss:$36 sps:$4 sm:$0xff]   ;;  %v9840_v58 = vld [vmem:[#allocation5 + $0x12c] ss:$36 sps:$4 sm:$0xff]   ;;  %v9846_v3 = vld [vmem:[#allocation5 + $0x174] ss:$36 sps:$4 sm:$0xff]  }
  0x82   : > { %1671 = vmatpush1.bf16.msra.mxu0 %v9792_v19  ;;  %v263_v57 = vld [vmem:[%s10931_s13 + $0x88] sm:$0xff]  ;;  %v250_v60 = vld [vmem:[%s10931_s13 + $0x20] sm:$0xff]  ;;  %v9844_v4 = vld [vmem:[#allocation5 + $0x170] ss:$36 sps:$4 sm:$0xff]   ;;  %s7819_s7 = sshll.u32 %s13027_s5, 4  ;;  %s13131_s24 = scalar_lea.hbm %s13185_s4, %s9686_s25  ;;  %s13133_s7 = int_to_ptr.vmem [resolvable:$true] %s7819_s7 }
  0x83   : > { %1784 = vmatpush1.bf16.msra.mxu1 %v9793_v20  ;;  %1672 = vmatprep.subr.bf16.mxu0 %v9794_v21  ;;  %v247_v59 = vld [vmem:[%s10931_s13 + $0x8] sm:$0xff]  ;;  %v10960_v62 = vpack.c.bf16 %v263_v57, %v260_v56  ;;  %v9841_v1 = vld [vmem:[#allocation5 + $0x360] ss:$36 sps:$4 sm:$0xff]   ;;  %v269_v7 = vld [vmem:[%s10931_s13 + $0xb8] sm:$0xff]  ;;  %s7806_s19 = scalar_lea.sflag [#allocation4], %s10925_s9  ;;  %s10642_s29 = scalar_lea.vmem %s13133_s7, 6144 }
  0x84   : > { %1785 = vmatprep.subr.bf16.mxu1 %v9796_v22  ;;  %v10958_v61 = vpack.c.bf16 %v250_v60, %v247_v59  ;;  %v9838_v63 = vld [vmem:[#allocation5 + $0x128] ss:$36 sps:$4 sm:$0xff]   ;;  %v266_v6 = vld [vmem:[%s10931_s13 + $0xa0] sm:$0xff]  ;;  %v9848_v8 = vld [vmem:[#allocation5 + $0x3f4] ss:$36 sps:$4 sm:$0xff]   ;;  %p10643_p11 = scmp.ne.s32.totalorder %s13133_s7, %s10642_s29  ;;  %p13721_p0 = scmp.ne.s32.totalorder %s13304_s20, 0 }
  0x85   : > { %v9842_v2 = vld [vmem:[#allocation5 + $0x3ac] ss:$36 sps:$4 sm:$0xff]   ;;  %v9852_v9 = vld [vmem:[#allocation5 + $0x1bc] ss:$36 sps:$4 sm:$0xff]   ;;  %v10967_v10 = vpack.c.bf16 %v269_v7, %v266_v6  ;;  %v9858_v14 = vld [vmem:[#allocation5 + $0x204] ss:$36 sps:$4 sm:$0xff]  }
  0x86   : > { %1673 = vmatpush1.bf16.msra.mxu0 %v9798_v23  ;;  %1694 = vmatprep.mubr.bf16.mxu0 %v10958_v61  ;;  %v9847_v5 = vld [vmem:[#allocation5 + $0x3a8] ss:$36 sps:$4 sm:$0xff]   ;;  %v9850_v11 = vld [vmem:[#allocation5 + $0x1b8] ss:$36 sps:$4 sm:$0xff]   ;;  %v9853_v12 = vld [vmem:[#allocation5 + $0x3f0] ss:$36 sps:$4 sm:$0xff]   ;;  %p10644_p1 = pnand %p10643_p11, %p13721_p0 }
  0x87   : > { %1786 = vmatpush1.bf16.msra.mxu1 %v9799_v24  ;;  %1674 = vmatprep.subr.bf16.mxu0 %v9800_v25  ;;  %v9854_v13 = vld [vmem:[#allocation5 + $0x43c] ss:$36 sps:$4 sm:$0xff]   ;;  %v272_v19 = vld [vmem:[%s10931_s13 + $0xd0] sm:$0xff]  ;;  %v275_v20 = vld [vmem:[%s10931_s13 + $0xe8] sm:$0xff]  ;;  %s10725_s30 = smov [#allocation8]  }
  0x88   : > { %1787 = vmatprep.subr.bf16.mxu1 %v9802_v26  ;;  %v9856_v15 = vld [vmem:[#allocation5 + $0x200] ss:$36 sps:$4 sm:$0xff]   ;;  %v9859_v16 = vld [vmem:[#allocation5 + $0x438] ss:$36 sps:$4 sm:$0xff]   ;;  %v9862_v21 = vld [vmem:[#allocation5 + $0x24c] ss:$36 sps:$4 sm:$0xff]   ;;  %v10978_v25 = vpack.c.bf16 %v275_v20, %v272_v19  ;;  %p10645_p3 = pneg %p10644_p1 }
  0x89   : > { %v246_v17 = vld [vmem:[%s10931_s13] sm:$0xff]  ;;  %v249_v18 = vld [vmem:[%s10931_s13 + $0x18] sm:$0xff]  ;;  %v256_v26 = vld [vmem:[%s10931_s13 + $0x50] sm:$0xff]  ;;  %s10646_s6 = sshll.u32 %s10725_s30, 4  ;;  %s10647_s6 = int_to_ptr.vmem [resolvable:$false] %s10646_s6 }
  0x8a   : > { %1675 = vmatpush1.bf16.msra.mxu0 %v9804_v27  ;;  %v9865_v22 = vld [vmem:[#allocation5 + $0x14] ss:$36 sps:$4 sm:$0xff]   ;;  %v10976_v24 = vpack.c.bf16 %v249_v18, %v246_v17  ;;  %v9860_v27 = vld [vmem:[#allocation5 + $0x248] ss:$36 sps:$4 sm:$0xff]   ;;  %v262_v46 = vld [vmem:[%s10931_s13 + $0x80] sm:$0xff]  ;;  %s10648_s8 = scalar_lea.vmem %s10647_s6, 12288  ;;  %p10649_p5 = scmp.lt.s32.totalorder %s13133_s7, %s10647_s6 }
  0x8b   : > { %1788 = vmatpush1.bf16.msra.mxu1 %v9805_v28  ;;  %1676 = vmatprep.subr.bf16.mxu0 %v9806_v29  ;;  %v253_v23 = vld [vmem:[%s10931_s13 + $0x38] sm:$0xff]  ;;  %v9863_v28 = vld [vmem:[#allocation5 + $0x10] ss:$36 sps:$4 sm:$0xff]   ;;  %v255_v35 = vld [vmem:[%s10931_s13 + $0x48] sm:$0xff]  ;;  %p10650_p9 = scmp.lt.s32.totalorder %s10648_s8, %s10642_s29 }
  0x8c   : > { %1789 = vmatprep.subr.bf16.mxu1 %v9808_v30  ;;  %v9868_v29 = vld [vmem:[#allocation5 + $0x294] ss:$36 sps:$4 sm:$0xff]   ;;  %v9871_v30 = vld [vmem:[#allocation5 + $0x5c] ss:$36 sps:$4 sm:$0xff]   ;;  %v259_v45 = vld [vmem:[%s10931_s13 + $0x68] sm:$0xff] }
  0x8d   : > { %v252_v34 = vld [vmem:[%s10931_s13 + $0x30] sm:$0xff]  ;;  %v287_v56 = vld [vmem:[%s10931_s13 + $0x148] sm:$0xff]  ;;  %v9893_v7 = vld [vmem:[#allocation5 + $0x178] ss:$36 sps:$4 sm:$0xff]   ;;  %p10651_p12 = por %p10650_p9, %p10649_p5 }
  0x8e   : > { %1677 = vmatpush1.bf16.msra.mxu0 %v9810_v31  ;;  %v9866_v31 = vld [vmem:[#allocation5 + $0x290] ss:$36 sps:$4 sm:$0xff]   ;;  %v9899_v17 = vld [vmem:[#allocation5 + $0x1c0] ss:$36 sps:$4 sm:$0xff]   ;;  %v271_v20 = vld [vmem:[%s10931_s13 + $0xc8] sm:$0xff] }
  0x8f   : > { %1790 = vmatpush1.bf16.msra.mxu1 %v9811_v32  ;;  %1678 = vmatprep.subr.bf16.mxu0 %v9812_v33  ;;  %v10981_v32 = vpack.c.bf16 %v256_v26, %v253_v23  ;;  %v9869_v33 = vld [vmem:[#allocation5 + $0x58] ss:$36 sps:$4 sm:$0xff]   ;;  %v9886_v57 = vld [vmem:[#allocation5 + $0x36c] ss:$36 sps:$4 sm:$0xff]   ;;  %v9902_v26 = vld [vmem:[#allocation5 + $0x440] ss:$36 sps:$4 sm:$0xff]   ;;  %p10652_p2 = pnand %p10651_p12, %p10645_p3 }
  0x90   : > { %1888 = vmatprep.subr.bf16.mxu1 %v9816_v36  ;;  %v278_v36 = vld [vmem:[%s10931_s13 + $0x100] sm:$0xff]  ;;  %v9890_v6 = vld [vmem:[#allocation5 + $0x3b0] ss:$36 sps:$4 sm:$0xff]  }
  0x91   : > { %v9907_v23 = vld [vmem:[#allocation5 + $0x20c] ss:$36 sps:$4 sm:$0xff]  }
  0x92   : > { %1808 = vmatmul.mubr.bf16.vlgmr.msra.gmra.mrb[0].mxu1 %v10944_v37  ;;  %1679 = vmatpush1.bf16.msra.mxu0 %v9817_v39  ;;  %v9874_v39 = vld [vmem:[#allocation5 + $0x2dc] ss:$36 sps:$4 sm:$0xff]  }
  0x93   : > { %1889 = vmatpush1.bf16.msra.mxu1 %v9814_v38  ;;  %1680 = vmatprep.subr.bf16.mxu0 %v9818_v40  ;;  %v281_v38 = vld [vmem:[%s10931_s13 + $0x118] sm:$0xff]  ;;  %v9877_v40 = vld [vmem:[#allocation5 + $0xa4] ss:$36 sps:$4 sm:$0xff]  }
  0x94   : > { %1890 = vmatprep.subr.bf16.mxu1 %v9822_v41  ;;  %1817 = vmatprep.mubr.bf16.mxu1 %v13189_v0  ;;  %v9872_v41 = vld [vmem:[#allocation5 + $0x2d8] ss:$36 sps:$4 sm:$0xff]  }
  0x96   : > { %1681 = vmatpush1.bf16.msra.mxu0 %v9823_v43  ;;  %v10991_v43 = vpack.c.bf16 %v255_v35, %v252_v34  ;;  %v277_v34 = vld [vmem:[%s10931_s13 + $0xf8] sm:$0xff]  ;;  %v280_v35 = vld [vmem:[%s10931_s13 + $0x110] sm:$0xff] }
  0x97   : > { %1891 = vmatpush1.bf16.msra.mxu1 %v9820_v42  ;;  %1682 = vmatprep.subr.bf16.mxu0 %v9824_v44  ;;  %v9875_v42 = vld [vmem:[#allocation5 + $0xa0] ss:$36 sps:$4 sm:$0xff]   ;;  %v10993_v44 = vpack.c.bf16 %v281_v38, %v278_v36  ;;  %v9908_v38 = vld [vmem:[#allocation5 + $0x488] ss:$36 sps:$4 sm:$0xff]  }
  0x98   : > { %1892 = vmatprep.subr.bf16.mxu1 %v9828_v47  ;;  %v9880_v47 = vld [vmem:[#allocation5 + $0x324] ss:$36 sps:$4 sm:$0xff]  }
  0x9a   : > { %1818 = vmatmul.mubr.bf16.gmra.mrb[4].mxu1 %v10950_v48  ;;  %1683 = vmatpush1.bf16.msra.mxu0 %v9829_v50  ;;  %v9878_v50 = vld [vmem:[#allocation5 + $0x320] ss:$36 sps:$4 sm:$0xff]  }
  0x9b   : > { %1893 = vmatpush1.bf16.msra.mxu1 %v9826_v49  ;;  %1684 = vmatprep.subr.bf16.mxu0 %v9830_v51  ;;  %v9883_v49 = vld [vmem:[#allocation5 + $0xec] ss:$36 sps:$4 sm:$0xff]  }
  0x9c   : > { %1894 = vmatprep.subr.bf16.mxu1 %v9834_v52  ;;  %1827 = vmatprep.mubr.bf16.mxu1 %v13189_v0  ;;  %v9881_v51 = vld [vmem:[#allocation5 + $0xe8] ss:$36 sps:$4 sm:$0xff]   ;;  %v10997_v52 = vpack.c.bf16 %v262_v46, %v259_v45  ;;  %v276_v45 = vld [vmem:[%s10931_s13 + $0xf0] sm:$0xff] }
  0x9d   : > { %v279_v46 = vld [vmem:[%s10931_s13 + $0x108] sm:$0xff] }
  0x9e   : > { %1685 = vmatpush1.bf16.msra.mxu0 %v9835_v54  ;;  %v261_v54 = vld [vmem:[%s10931_s13 + $0x78] sm:$0xff] }
  0x9f   : > { %1895 = vmatpush1.bf16.msra.mxu1 %v9832_v53  ;;  %1686 = vmatprep.subr.bf16.mxu0 %v9836_v55  ;;  %v258_v53 = vld [vmem:[%s10931_s13 + $0x60] sm:$0xff]  ;;  %v284_v55 = vld [vmem:[%s10931_s13 + $0x130] sm:$0xff] }
  0xa0   : > { %1896 = vmatprep.subr.bf16.mxu1 %v9840_v58  ;;  %v9889_v58 = vld [vmem:[#allocation5 + $0x134] ss:$36 sps:$4 sm:$0xff]   ;;  %v11007_v59 = vpack.c.bf16 %v261_v54, %v258_v53  ;;  %v11009_v60 = vpack.c.bf16 %v287_v56, %v284_v55  ;;  %v286_v53 = vld [vmem:[%s10931_s13 + $0x140] sm:$0xff]  ;;  %v11051_v55 = vpack.c.bf16 %v279_v46, %v276_v45 }
  0xa1   : > { %v9928_v54 = vld [vmem:[#allocation5 + $0x51c] ss:$36 sps:$4 sm:$0xff]  }
  0xa2   : > { %1828 = vmatmul.mubr.bf16.gmra.mrb[8].mxu1 %v10960_v62  ;;  %1687 = vmatpush1.bf16.msra.mxu0 %v9841_v1  ;;  %v268_v1 = vld [vmem:[%s10931_s13 + $0xb0] sm:$0xff]  ;;  %v9920_v56 = vld [vmem:[#allocation5 + $0x2e0] ss:$36 sps:$4 sm:$0xff]   ;;  %v9962_v46 = vld [vmem:[#allocation5 + $0x4d8] ss:$36 sps:$4 sm:$0xff]  }
  0xa3   : > { %1897 = vmatpush1.bf16.msra.mxu1 %v9838_v63  ;;  %1688 = vmatprep.subr.bf16.mxu0 %v9842_v2  ;;  %v265_v63 = vld [vmem:[%s10931_s13 + $0x98] sm:$0xff]  ;;  %v9884_v2 = vld [vmem:[#allocation5 + $0x368] ss:$36 sps:$4 sm:$0xff]  }
  0xa4   : > { %1898 = vmatprep.subr.bf16.mxu1 %v9846_v3  ;;  %1837 = vmatprep.mubr.bf16.mxu1 %v13189_v0  ;;  %v9887_v3 = vld [vmem:[#allocation5 + $0x130] ss:$36 sps:$4 sm:$0xff]   ;;  %v9961_v45 = vld [vmem:[#allocation5 + $0x1c] ss:$36 sps:$4 sm:$0xff]  }
  0xa6   : > { %1689 = vmatpush1.bf16.msra.mxu0 %v9847_v5  ;;  %v9895_v5 = vld [vmem:[#allocation5 + $0x17c] ss:$36 sps:$4 sm:$0xff]  }
  0xa7   : > { %1899 = vmatpush1.bf16.msra.mxu1 %v9844_v4  ;;  %1690 = vmatprep.subr.bf16.mxu0 %v9848_v8  ;;  %v9892_v4 = vld [vmem:[#allocation5 + $0x3b4] ss:$36 sps:$4 sm:$0xff]   ;;  %v11013_v8 = vpack.c.bf16 %v268_v1, %v265_v63  ;;  %v9923_v63 = vld [vmem:[#allocation5 + $0x328] ss:$36 sps:$4 sm:$0xff]   ;;  %v282_v1 = vld [vmem:[%s10931_s13 + $0x120] sm:$0xff] }
  0xa8   : > { %1900 = vmatprep.subr.bf16.mxu1 %v9852_v9  ;;  %v264_v9 = vld [vmem:[%s10931_s13 + $0x90] sm:$0xff] }
  0xaa   : > { %1838 = vmatmul.mubr.bf16.gmra.mrb[12].mxu1 %v10967_v10  ;;  %1691 = vmatpush1.bf16.msra.mxu0 %v9853_v12  ;;  %v290_v12 = vld [vmem:[%s10931_s13 + $0x160] sm:$0xff] }
  0xab   : > { %1901 = vmatpush1.bf16.msra.mxu1 %v9850_v11  ;;  %1692 = vmatprep.subr.bf16.mxu0 %v9854_v13  ;;  %v267_v11 = vld [vmem:[%s10931_s13 + $0xa8] sm:$0xff]  ;;  %v293_v13 = vld [vmem:[%s10931_s13 + $0x178] sm:$0xff] }
  0xac   : > { %1902 = vmatprep.subr.bf16.mxu1 %v9858_v14  ;;  %1847 = vmatprep.mubr.bf16.mxu1 %v13189_v0  ;;  %v9898_v14 = vld [vmem:[#allocation5 + $0x3fc] ss:$36 sps:$4 sm:$0xff]   ;;  %v11023_v18 = vpack.c.bf16 %v267_v11, %v264_v9  ;;  %v11025_v19 = vpack.c.bf16 %v293_v13, %v290_v12  ;;  %v9929_v12 = vld [vmem:[#allocation5 + $0x370] ss:$36 sps:$4 sm:$0xff]  }
  0xad   : > { %v9935_v9 = vld [vmem:[#allocation5 + $0x560] ss:$36 sps:$4 sm:$0xff]  }
  0xae   : > { %1693 = vmatpush1.bf16.msra.mxu0 %v9859_v16  ;;  %v9896_v16 = vld [vmem:[#allocation5 + $0x3f8] ss:$36 sps:$4 sm:$0xff]  }
  0xaf   : > { %1903 = vmatpush1.bf16.msra.mxu1 %v9856_v15  ;;  %2114 = vmatprep.subr.bf16.mxu0 %v9865_v22  ;;  %v9901_v15 = vld [vmem:[#allocation5 + $0x1c4] ss:$36 sps:$4 sm:$0xff]  }
  0xb0   : > { %1904 = vmatprep.subr.bf16.mxu1 %v9862_v21  ;;  %v274_v21 = vld [vmem:[%s10931_s13 + $0xe0] sm:$0xff] }
  0xb1   : > { %1695 = vmatmul.mubr.bf16.vlgmr.msra.gmra.mrb[0].mxu0 %v10976_v24  ;;  %v9904_v22 = vld [vmem:[#allocation5 + $0x444] ss:$36 sps:$4 sm:$0xff]  }
  0xb2   : > { %1848 = vmatmul.mubr.bf16.gmra.mrb[16].mxu1 %v10978_v25  ;;  %2115 = vmatpush1.bf16.msra.mxu0 %v9863_v28  ;;  %v9905_v28 = vld [vmem:[#allocation5 + $0x208] ss:$36 sps:$4 sm:$0xff]  }
  0xb3   : > { %1905 = vmatpush1.bf16.msra.mxu1 %v9860_v27  ;;  %2116 = vmatprep.subr.bf16.mxu0 %v9871_v30  ;;  %v11029_v27 = vpack.c.bf16 %v274_v21, %v271_v20  ;;  %v273_v30 = vld [vmem:[%s10931_s13 + $0xd8] sm:$0xff]  ;;  %v291_v20 = vld [vmem:[%s10931_s13 + $0x168] sm:$0xff] }
  0xb4   : > { %1906 = vmatprep.subr.bf16.mxu1 %v9868_v29  ;;  %1704 = vmatprep.mubr.bf16.mxu0 %v10981_v32  ;;  %v270_v29 = vld [vmem:[%s10931_s13 + $0xc0] sm:$0xff]  ;;  %v9944_v21 = vld [vmem:[#allocation5 + $0x5a8] ss:$36 sps:$4 sm:$0xff]  }
  0xb5   : > { %1857 = vmatprep.mubr.bf16.mxu1 %v13189_v0  ;;  %v11039_v36 = vpack.c.bf16 %v273_v30, %v270_v29  ;;  %v9943_v29 = vld [vmem:[#allocation5 + $0x44c] ss:$36 sps:$4 sm:$0xff]  }
  0xb6   : > { %2117 = vmatpush1.bf16.msra.mxu0 %v9869_v33  ;;  %v9913_v33 = vld [vmem:[#allocation5 + $0x254] ss:$36 sps:$4 sm:$0xff]  }
  0xb7   : > { %1907 = vmatpush1.bf16.msra.mxu1 %v9866_v31  ;;  %2118 = vmatprep.subr.bf16.mxu0 %v9877_v40  ;;  %v9910_v31 = vld [vmem:[#allocation5 + $0x48c] ss:$36 sps:$4 sm:$0xff]   ;;  %v9916_v40 = vld [vmem:[#allocation5 + $0x29c] ss:$36 sps:$4 sm:$0xff]  }
  0xb8   : > { %1908 = vmatprep.subr.bf16.mxu1 %v9874_v39  ;;  %v9911_v39 = vld [vmem:[#allocation5 + $0x250] ss:$36 sps:$4 sm:$0xff]  }
  0xb9   : > { %1705 = vmatmul.mubr.bf16.gmra.mrb[4].mxu0 %v10991_v43  ;;  %v9947_v30 = vld [vmem:[#allocation5 + $0x5f0] ss:$36 sps:$4 sm:$0xff]  }
  0xba   : > { %1858 = vmatmul.mubr.bf16.gmra.mrb[20].mxu1 %v10993_v44  ;;  %2119 = vmatpush1.bf16.msra.mxu0 %v9875_v42  ;;  %v9914_v42 = vld [vmem:[#allocation5 + $0x298] ss:$36 sps:$4 sm:$0xff]  }
  0xbb   : > { %1909 = vmatpush1.bf16.msra.mxu1 %v9872_v41  ;;  %2120 = vmatprep.subr.bf16.mxu0 %v9883_v49  ;;  %v11041_v41 = vpack.c.bf16 %v280_v35, %v277_v34  ;;  %v9919_v49 = vld [vmem:[#allocation5 + $0x4d4] ss:$36 sps:$4 sm:$0xff]  }
  0xbc   : > { %1910 = vmatprep.subr.bf16.mxu1 %v9880_v47  ;;  %1714 = vmatprep.mubr.bf16.mxu0 %v10997_v52  ;;  %v9917_v47 = vld [vmem:[#allocation5 + $0x4d0] ss:$36 sps:$4 sm:$0xff]   ;;  %v9950_v35 = vld [vmem:[#allocation5 + $0x638] ss:$36 sps:$4 sm:$0xff]  }
  0xbd   : > { %1867 = vmatprep.mubr.bf16.mxu1 %v13189_v0  ;;  %v9958_v34 = vld [vmem:[#allocation5 + $0x494] ss:$36 sps:$4 sm:$0xff]  }
  0xbe   : > { %2121 = vmatpush1.bf16.msra.mxu0 %v9881_v51  ;;  %v283_v51 = vld [vmem:[%s10931_s13 + $0x128] sm:$0xff] }
  0xbf   : > { %1911 = vmatpush1.bf16.msra.mxu1 %v9878_v50  ;;  %2122 = vmatprep.subr.bf16.mxu0 %v9889_v58  ;;  %v9922_v50 = vld [vmem:[#allocation5 + $0x2e4] ss:$36 sps:$4 sm:$0xff]   ;;  %v9925_v58 = vld [vmem:[#allocation5 + $0x32c] ss:$36 sps:$4 sm:$0xff]  }
  0xc0   : > { %1912 = vmatprep.subr.bf16.mxu1 %v9886_v57  ;;  %v11053_v57 = vpack.c.bf16 %v286_v53, %v283_v51  ;;  %v9974_v51 = vld [vmem:[#allocation5 + $0x568] ss:$36 sps:$4 sm:$0xff]   ;;  %v9982_v53 = vld [vmem:[#allocation5 + $0x5b4] ss:$36 sps:$4 sm:$0xff]  }
  0xc1   : > { %1715 = vmatmul.mubr.bf16.gmra.mrb[8].mxu0 %v11007_v59 }
  0xc2   : > { %1868 = vmatmul.mubr.bf16.gmra.mrb[24].mxu1 %v11009_v60  ;;  %2123 = vmatpush1.bf16.msra.mxu0 %v9887_v3  ;;  %v9926_v3 = vld [vmem:[#allocation5 + $0x518] ss:$36 sps:$4 sm:$0xff]  }
  0xc3   : > { %1913 = vmatpush1.bf16.msra.mxu1 %v9884_v2  ;;  %2124 = vmatprep.subr.bf16.mxu0 %v9895_v5  ;;  %v285_v2 = vld [vmem:[%s10931_s13 + $0x138] sm:$0xff]  ;;  %v9937_v5 = vld [vmem:[#allocation5 + $0x564] ss:$36 sps:$4 sm:$0xff]  }
  0xc4   : > { %1914 = vmatprep.subr.bf16.mxu1 %v9892_v4  ;;  %1724 = vmatprep.mubr.bf16.mxu0 %v11013_v8  ;;  %v9931_v4 = vld [vmem:[#allocation5 + $0x374] ss:$36 sps:$4 sm:$0xff]   ;;  %v11063_v11 = vpack.c.bf16 %v285_v2, %v282_v1  ;;  %v9992_v1 = vld [vmem:[#allocation5 + $0x640] ss:$36 sps:$4 sm:$0xff]   ;;  %v10000_v2 = vld [vmem:[#allocation5 + $0x68c] ss:$36 sps:$4 sm:$0xff]  }
  0xc5   : > { %1877 = vmatprep.mubr.bf16.mxu1 %v13189_v0 }
  0xc6   : > { %2125 = vmatpush1.bf16.msra.mxu0 %v9893_v7  ;;  %v292_v7 = vld [vmem:[%s10931_s13 + $0x170] sm:$0xff] }
  0xc7   : > { %1915 = vmatpush1.bf16.msra.mxu1 %v9890_v6  ;;  %2126 = vmatprep.subr.bf16.mxu0 %v9901_v15  ;;  %v289_v6 = vld [vmem:[%s10931_s13 + $0x158] sm:$0xff] }
  0xc8   : > { %1916 = vmatprep.subr.bf16.mxu1 %v9898_v14  ;;  %v11065_v13 = vpack.c.bf16 %v292_v7, %v289_v6  ;;  %v9934_v14 = vld [vmem:[#allocation5 + $0x3bc] ss:$36 sps:$4 sm:$0xff]   ;;  %v9967_v6 = vld [vmem:[#allocation5 + $0x64] ss:$36 sps:$4 sm:$0xff]  }
  0xc9   : > { %1725 = vmatmul.mubr.bf16.gmra.mrb[12].mxu0 %v11023_v18  ;;  %v9932_v15 = vld [vmem:[#allocation5 + $0x3b8] ss:$36 sps:$4 sm:$0xff]   ;;  %v9965_v7 = vld [vmem:[#allocation5 + $0x60] ss:$36 sps:$4 sm:$0xff]  }
  0xca   : > { %1878 = vmatmul.mubr.bf16.gmra.mrb[28].mxu1 %v11025_v19  ;;  %2127 = vmatpush1.bf16.msra.mxu0 %v9899_v17  ;;  %v9946_v17 = vld [vmem:[#allocation5 + $0x5ac] ss:$36 sps:$4 sm:$0xff]  }
  0xcb   : > { %1917 = vmatpush1.bf16.msra.mxu1 %v9896_v16  ;;  %2128 = vmatprep.subr.bf16.mxu0 %v9907_v23  ;;  %v288_v16 = vld [vmem:[%s10931_s13 + $0x150] sm:$0xff]  ;;  %v9940_v23 = vld [vmem:[#allocation5 + $0x404] ss:$36 sps:$4 sm:$0xff]  }
  0xcc   : > { %1918 = vmatprep.subr.bf16.mxu1 %v9904_v22  ;;  %1734 = vmatprep.mubr.bf16.mxu0 %v11029_v27  ;;  %v9949_v22 = vld [vmem:[#allocation5 + $0x5f4] ss:$36 sps:$4 sm:$0xff]  }
  0xcd   : > { %1920 = vmatprep.mubr.bf16.mxu1 %v10958_v61 }
  0xce   : > { %2129 = vmatpush1.bf16.msra.mxu0 %v9905_v28  ;;  %v9938_v28 = vld [vmem:[#allocation5 + $0x400] ss:$36 sps:$4 sm:$0xff]  }
  0xcf   : > { %1919 = vmatpush1.bf16.msra.mxu1 %v9902_v26  ;;  %2130 = vmatprep.subr.bf16.mxu0 %v9913_v33  ;;  %v11073_v26 = vpack.c.bf16 %v291_v20, %v288_v16  ;;  %v9941_v33 = vld [vmem:[#allocation5 + $0x448] ss:$36 sps:$4 sm:$0xff]   ;;  %v9985_v16 = vld [vmem:[#allocation5 + $0x13c] ss:$36 sps:$4 sm:$0xff]  }
  0xd0   : > { %2001 = vmatprep.subr.bf16.mxu1 %v9910_v31  ;;  %v9952_v31 = vld [vmem:[#allocation5 + $0x63c] ss:$36 sps:$4 sm:$0xff]   ;;  %v9991_v20 = vld [vmem:[#allocation5 + $0x184] ss:$36 sps:$4 sm:$0xff]  }
  0xd1   : > { %1735 = vmatmul.mubr.bf16.gmra.mrb[16].mxu0 %v11039_v36 }
  0xd2   : > { %1921 = vmatmul.mubr.bf16.vlgmr.msra.gmra.mrb[32].mxu1 %v10976_v24  ;;  %2131 = vmatpush1.bf16.msra.mxu0 %v9911_v39  ;;  %v9956_v39 = vld [vmem:[#allocation5 + $0x490] ss:$36 sps:$4 sm:$0xff]  }
  0xd3   : > { %2002 = vmatpush1.bf16.msra.mxu1 %v9908_v38  ;;  %2132 = vmatprep.subr.bf16.mxu0 %v9916_v40  ;;  %v9955_v38 = vld [vmem:[#allocation5 + $0x684] ss:$36 sps:$4 sm:$0xff]  }
  0xd4   : > { %1744 = vmatprep.mubr.bf16.mxu0 %v11041_v41  ;;  %1930 = vmatprep.mubr.bf16.mxu1 %v10981_v32  ;;  %v9953_v40 = vld [vmem:[#allocation5 + $0x680] ss:$36 sps:$4 sm:$0xff]  }
  0xd5   : > { %2003 = vmatprep.subr.bf16.mxu1 %v9919_v49  ;;  %v9968_v49 = vld [vmem:[#allocation5 + $0x520] ss:$36 sps:$4 sm:$0xff]  }
  0xd6   : > { %2133 = vmatpush1.bf16.msra.mxu0 %v9914_v42  ;;  %v9964_v42 = vld [vmem:[#allocation5 + $0x4dc] ss:$36 sps:$4 sm:$0xff]  }
  0xd7   : > { %2004 = vmatpush1.bf16.msra.mxu1 %v9917_v47  ;;  %2134 = vmatprep.subr.bf16.mxu0 %v9922_v50  ;;  %v9970_v47 = vld [vmem:[#allocation5 + $0x524] ss:$36 sps:$4 sm:$0xff]   ;;  %v9976_v50 = vld [vmem:[#allocation5 + $0x56c] ss:$36 sps:$4 sm:$0xff]  }
  0xd8   : > { %2005 = vmatprep.subr.bf16.mxu1 %v9928_v54  ;;  %v9980_v54 = vld [vmem:[#allocation5 + $0x5b0] ss:$36 sps:$4 sm:$0xff]  }
  0xd9   : > { %1745 = vmatmul.mubr.bf16.gmra.mrb[20].mxu0 %v11051_v55 }
  0xda   : > { %1931 = vmatmul.mubr.bf16.gmra.mrb[36].mxu1 %v10991_v43  ;;  %2135 = vmatpush1.bf16.msra.mxu0 %v9920_v56  ;;  %v9988_v56 = vld [vmem:[#allocation5 + $0x5fc] ss:$36 sps:$4 sm:$0xff]  }
  0xdb   : > { %1754 = vmatprep.mubr.bf16.mxu0 %v11053_v57  ;;  %2136 = vmatprep.subr.bf16.mxu0 %v9925_v58  ;;  %v9986_v58 = vld [vmem:[#allocation5 + $0x5f8] ss:$36 sps:$4 sm:$0xff]  }
  0xdc   : > { %1940 = vmatprep.mubr.bf16.mxu1 %v10997_v52  ;;  %2006 = vmatpush1.bf16.msra.mxu1 %v9926_v3  ;;  %v9998_v3 = vld [vmem:[#allocation5 + $0x688] ss:$36 sps:$4 sm:$0xff]  }
  0xdd   : > { %2007 = vmatprep.subr.bf16.mxu1 %v9937_v5  ;;  %v9959_v5 = vld [vmem:[#allocation5 + $0x18] ss:$36 sps:$4 sm:$0xff]  }
  0xde   : > { %2137 = vmatpush1.bf16.msra.mxu0 %v9923_v63  ;;  %v9994_v63 = vld [vmem:[#allocation5 + $0x644] ss:$36 sps:$4 sm:$0xff]  }
  0xdf   : > { %2138 = vmatprep.subr.bf16.mxu0 %v9931_v4  ;;  %v10028_v4 = vld [vmem:[#allocation5 + $0x260] ss:$36 sps:$4 sm:$0xff]  }
  0xe0   : > { %2008 = vmatpush1.bf16.msra.mxu1 %v9935_v9  ;;  %v9973_v9 = vld [vmem:[#allocation5 + $0xac] ss:$36 sps:$4 sm:$0xff]  }
  0xe1   : > { %1755 = vmatmul.mubr.bf16.gmra.mrb[24].mxu0 %v11063_v11  ;;  %2009 = vmatprep.subr.bf16.mxu1 %v9946_v17  ;;  %v9983_v17 = vld [vmem:[#allocation5 + $0x138] ss:$36 sps:$4 sm:$0xff]  }
  0xe2   : > { %1941 = vmatmul.mubr.bf16.gmra.mrb[40].mxu1 %v11007_v59  ;;  %2139 = vmatpush1.bf16.msra.mxu0 %v9929_v12  ;;  %v9971_v12 = vld [vmem:[#allocation5 + $0xa8] ss:$36 sps:$4 sm:$0xff]  }
  0xe3   : > { %1764 = vmatprep.mubr.bf16.mxu0 %v11065_v13  ;;  %2140 = vmatprep.subr.bf16.mxu0 %v9934_v14  ;;  %v9979_v14 = vld [vmem:[#allocation5 + $0xf4] ss:$36 sps:$4 sm:$0xff]  }
  0xe4   : > { %1950 = vmatprep.mubr.bf16.mxu1 %v11013_v8  ;;  %2010 = vmatpush1.bf16.msra.mxu1 %v9944_v21  ;;  %v9989_v21 = vld [vmem:[#allocation5 + $0x180] ss:$36 sps:$4 sm:$0xff]  }
  0xe5   : > { %2011 = vmatprep.subr.bf16.mxu1 %v9949_v22  ;;  %v9997_v22 = vld [vmem:[#allocation5 + $0x1cc] ss:$36 sps:$4 sm:$0xff]  }
  0xe6   : > { %2141 = vmatpush1.bf16.msra.mxu0 %v9932_v15  ;;  %v9977_v15 = vld [vmem:[#allocation5 + $0xf0] ss:$36 sps:$4 sm:$0xff]  }
  0xe7   : > { %2142 = vmatprep.subr.bf16.mxu0 %v9940_v23  ;;  %v9995_v23 = vld [vmem:[#allocation5 + $0x1c8] ss:$36 sps:$4 sm:$0xff]  }
  0xe8   : > { %2012 = vmatpush1.bf16.msra.mxu1 %v9947_v30  ;;  %v10006_v30 = vld [vmem:[#allocation5 + $0x25c] ss:$36 sps:$4 sm:$0xff]  }
  0xe9   : > { %1765 = vmatmul.mubr.bf16.gmra.mrb[28].mxu0 %v11073_v26  ;;  %2013 = vmatprep.subr.bf16.mxu1 %v9952_v31  ;;  %v10004_v31 = vld [vmem:[#allocation5 + $0x258] ss:$36 sps:$4 sm:$0xff]  }
  0xea   : > { %1951 = vmatmul.mubr.bf16.gmra.mrb[44].mxu1 %v11023_v18  ;;  %2143 = vmatpush1.bf16.msra.mxu0 %v9938_v28  ;;  %v10003_v28 = vld [vmem:[#allocation5 + $0x214] ss:$36 sps:$4 sm:$0xff]  }
  0xeb   : > { %1960 = vmatprep.mubr.bf16.mxu1 %v11029_v27  ;;  %2144 = vmatprep.subr.bf16.mxu0 %v9943_v29  ;;  %v10001_v29 = vld [vmem:[#allocation5 + $0x210] ss:$36 sps:$4 sm:$0xff]  }
  0xec   : > { %2146 = vmatprep.mubr.bf16.mxu0 %v10958_v61  ;;  %2014 = vmatpush1.bf16.msra.mxu1 %v9950_v35  ;;  %v10030_v35 = vld [vmem:[#allocation5 + $0x2a8] ss:$36 sps:$4 sm:$0xff]  }
  0xed   : > { %2015 = vmatprep.subr.bf16.mxu1 %v9955_v38  ;;  %v10007_v38 = vld [vmem:[#allocation5 + $0x2a0] ss:$36 sps:$4 sm:$0xff]  }
  0xee   : > { %2145 = vmatpush1.bf16.msra.mxu0 %v9941_v33  ;;  %v10009_v33 = vld [vmem:[#allocation5 + $0x2a4] ss:$36 sps:$4 sm:$0xff]  }
  0xef   : > { %2227 = vmatprep.subr.bf16.mxu0 %v9958_v34  ;;  %v10029_v34 = vld [vmem:[#allocation5 + $0x20] ss:$36 sps:$4 sm:$0xff]  }
  0xf0   : > { %2016 = vmatpush1.bf16.msra.mxu1 %v9953_v40  ;;  %v10031_v40 = vld [vmem:[#allocation5 + $0x68] ss:$36 sps:$4 sm:$0xff]  }
  0xf1   : > { %2147 = vmatmul.mubr.bf16.vlgmr.msra.gmra.mrb[32].mxu0 %v10976_v24  ;;  %2340 = vmatprep.subr.bf16.mxu1 %v9961_v45  ;;  %v10015_v45 = vld [vmem:[#allocation5 + $0x334] ss:$36 sps:$4 sm:$0xff]  }
  0xf2   : > { %1961 = vmatmul.mubr.bf16.gmra.mrb[48].mxu1 %v11039_v36  ;;  %2156 = vmatprep.mubr.bf16.mxu0 %v10981_v32 }
  0xf3   : > { %1970 = vmatprep.mubr.bf16.mxu1 %v11041_v41  ;;  %2228 = vmatpush1.bf16.msra.mxu0 %v9956_v39  ;;  %v10012_v39 = vld [vmem:[#allocation5 + $0x2ec] ss:$36 sps:$4 sm:$0xff]  }
  0xf4   : > { %2229 = vmatprep.subr.bf16.mxu0 %v9964_v42  ;;  %v10010_v42 = vld [vmem:[#allocation5 + $0x2e8] ss:$36 sps:$4 sm:$0xff]  }
  0xf7   : > { %2230 = vmatpush1.bf16.msra.mxu0 %v9962_v46  ;;  %v10032_v46 = vld [vmem:[#allocation5 + $0x2f0] ss:$36 sps:$4 sm:$0xff]  }
  0xf8   : > { %2231 = vmatprep.subr.bf16.mxu0 %v9970_v47  ;;  %v10033_v47 = vld [vmem:[#allocation5 + $0xb0] ss:$36 sps:$4 sm:$0xff]  }
  0xf9   : > { %2157 = vmatmul.mubr.bf16.gmra.mrb[36].mxu0 %v10991_v43 }
  0xfa   : > { %1971 = vmatmul.mubr.bf16.gmra.mrb[52].mxu1 %v11051_v55  ;;  %2166 = vmatprep.mubr.bf16.mxu0 %v10997_v52 }
  0xfb   : > { %1980 = vmatprep.mubr.bf16.mxu1 %v11053_v57  ;;  %2232 = vmatpush1.bf16.msra.mxu0 %v9968_v49  ;;  %v10013_v49 = vld [vmem:[#allocation5 + $0x330] ss:$36 sps:$4 sm:$0xff]  }
  0xfc   : > { %2233 = vmatprep.subr.bf16.mxu0 %v9976_v50  ;;  %v10034_v50 = vld [vmem:[#allocation5 + $0x338] ss:$36 sps:$4 sm:$0xff]  }
  0xff   : > { %2234 = vmatpush1.bf16.msra.mxu0 %v9974_v51  ;;  %v10018_v51 = vld [vmem:[#allocation5 + $0x37c] ss:$36 sps:$4 sm:$0xff]  }
 0x100   : > { %2235 = vmatprep.subr.bf16.mxu0 %v9982_v53  ;;  %v10016_v53 = vld [vmem:[#allocation5 + $0x378] ss:$36 sps:$4 sm:$0xff]  }
 0x101   : > { %2167 = vmatmul.mubr.bf16.gmra.mrb[40].mxu0 %v11007_v59 }
 0x102   : > { %1981 = vmatmul.mubr.bf16.gmra.mrb[56].mxu1 %v11063_v11  ;;  %2176 = vmatprep.mubr.bf16.mxu0 %v11013_v8 }
 0x103   : > { %1990 = vmatprep.mubr.bf16.mxu1 %v11065_v13  ;;  %2236 = vmatpush1.bf16.msra.mxu0 %v9980_v54  ;;  %v10021_v54 = vld [vmem:[#allocation5 + $0x3c4] ss:$36 sps:$4 sm:$0xff]  }
 0x104   : > { %2237 = vmatprep.subr.bf16.mxu0 %v9988_v56  ;;  %v10035_v56 = vld [vmem:[#allocation5 + $0xf8] ss:$36 sps:$4 sm:$0xff]  }
 0x107   : > { %2238 = vmatpush1.bf16.msra.mxu0 %v9986_v58  ;;  %v10036_v58 = vld [vmem:[#allocation5 + $0x380] ss:$36 sps:$4 sm:$0xff]  }
 0x108   : > { %2239 = vmatprep.subr.bf16.mxu0 %v9994_v63  ;;  %v10019_v63 = vld [vmem:[#allocation5 + $0x3c0] ss:$36 sps:$4 sm:$0xff]  }
 0x109   : > { %2177 = vmatmul.mubr.bf16.gmra.mrb[44].mxu0 %v11023_v18 }
 0x10a   : > { %1991 = vmatmul.mubr.bf16.gmra.mrb[60].mxu1 %v11073_v26  ;;  %2186 = vmatprep.mubr.bf16.mxu0 %v11029_v27 }
 0x10b   : > { %2033 = vmatprep.mubr.bf16.mxu1 %v13189_v0  ;;  %2240 = vmatpush1.bf16.msra.mxu0 %v9992_v1  ;;  %v10024_v1 = vld [vmem:[#allocation5 + $0x40c] ss:$36 sps:$4 sm:$0xff]  }
 0x10c   : > { %2241 = vmatprep.subr.bf16.mxu0 %v10000_v2  ;;  %v10037_v2 = vld [vmem:[#allocation5 + $0x140] ss:$36 sps:$4 sm:$0xff]  }
 0x10f   : > { %2242 = vmatpush1.bf16.msra.mxu0 %v9998_v3  ;;  %v10022_v3 = vld [vmem:[#allocation5 + $0x408] ss:$36 sps:$4 sm:$0xff]  }
 0x110   : > { %8355 = vmatprep.subr.bf16.mxu0 %v10028_v4  ;;  %v10027_v4 = vld [vmem:[#allocation5 + $0x454] ss:$36 sps:$4 sm:$0xff]  }
 0x111   : > { %2187 = vmatmul.mubr.bf16.gmra.mrb[48].mxu0 %v11039_v36 }
 0x112   : > { %2034 = vmatmul.mubr.bf16.vlgmr.msra.gmra.mrb[32].mxu1 %v10944_v37  ;;  %2196 = vmatprep.mubr.bf16.mxu0 %v11041_v41 }
 0x113   : > { %2341 = vmatpush1.bf16.msra.mxu1 %v9959_v5  ;;  %2043 = vmatprep.mubr.bf16.mxu1 %v13189_v0  ;;  %v10038_v5 = vld [vmem:[#allocation5 + $0x3c8] ss:$36 sps:$4 sm:$0xff]  }
 0x114   : > { %2342 = vmatprep.subr.bf16.mxu1 %v9967_v6  ;;  %v10039_v6 = vld [vmem:[#allocation5 + $0x188] ss:$36 sps:$4 sm:$0xff]  }
 0x117   : > { %2343 = vmatpush1.bf16.msra.mxu1 %v9965_v7  ;;  %v10025_v7 = vld [vmem:[#allocation5 + $0x450] ss:$36 sps:$4 sm:$0xff]  }
 0x118   : > { %2344 = vmatprep.subr.bf16.mxu1 %v9973_v9  ;;  %v10040_v9 = vld [vmem:[#allocation5 + $0x410] ss:$36 sps:$4 sm:$0xff]  }
 0x119   : > { %2197 = vmatmul.mubr.bf16.gmra.mrb[52].mxu0 %v11051_v55 }
 0x11a   : > { %2044 = vmatmul.mubr.bf16.gmra.mrb[36].mxu1 %v10950_v48  ;;  %2206 = vmatprep.mubr.bf16.mxu0 %v11053_v57 }
 0x11b   : > { %2345 = vmatpush1.bf16.msra.mxu1 %v9971_v12  ;;  %2053 = vmatprep.mubr.bf16.mxu1 %v13189_v0  ;;  %v10046_v12 = vld [vmem:[#allocation5 + $0x49c] ss:$36 sps:$4 sm:$0xff]  }
 0x11c   : > { %2346 = vmatprep.subr.bf16.mxu1 %v9979_v14  ;;  %v10041_v14 = vld [vmem:[#allocation5 + $0x1d0] ss:$36 sps:$4 sm:$0xff]  }
 0x11f   : > { %2347 = vmatpush1.bf16.msra.mxu1 %v9977_v15  ;;  %v10044_v15 = vld [vmem:[#allocation5 + $0x498] ss:$36 sps:$4 sm:$0xff]  }
 0x120   : > { %2348 = vmatprep.subr.bf16.mxu1 %v9985_v16  ;;  %v10042_v16 = vld [vmem:[#allocation5 + $0x458] ss:$36 sps:$4 sm:$0xff]  }
 0x121   : > { %2207 = vmatmul.mubr.bf16.gmra.mrb[56].mxu0 %v11063_v11 }
 0x122   : > { %2054 = vmatmul.mubr.bf16.gmra.mrb[40].mxu1 %v10960_v62  ;;  %2216 = vmatprep.mubr.bf16.mxu0 %v11065_v13 }
 0x123   : > { %2349 = vmatpush1.bf16.msra.mxu1 %v9983_v17  ;;  %2063 = vmatprep.mubr.bf16.mxu1 %v13189_v0  ;;  %v10049_v17 = vld [vmem:[#allocation5 + $0x4e4] ss:$36 sps:$4 sm:$0xff]  }
 0x124   : > { %2350 = vmatprep.subr.bf16.mxu1 %v9991_v20  ;;  %v10043_v20 = vld [vmem:[#allocation5 + $0x218] ss:$36 sps:$4 sm:$0xff]  }
 0x127   : > { %2351 = vmatpush1.bf16.msra.mxu1 %v9989_v21  ;;  %v10047_v21 = vld [vmem:[#allocation5 + $0x4e0] ss:$36 sps:$4 sm:$0xff]  }
 0x128   : > { %2352 = vmatprep.subr.bf16.mxu1 %v9997_v22  ;;  %v10052_v22 = vld [vmem:[#allocation5 + $0x52c] ss:$36 sps:$4 sm:$0xff]  }
 0x129   : > { %2217 = vmatmul.mubr.bf16.gmra.mrb[60].mxu0 %v11073_v26 }
 0x12a   : > { %2064 = vmatmul.mubr.bf16.gmra.mrb[44].mxu1 %v10967_v10  ;;  %2259 = vmatprep.mubr.bf16.mxu0 %v13189_v0 }
 0x12b   : > { %2353 = vmatpush1.bf16.msra.mxu1 %v9995_v23  ;;  %2073 = vmatprep.mubr.bf16.mxu1 %v13189_v0  ;;  %v10050_v23 = vld [vmem:[#allocation5 + $0x528] ss:$36 sps:$4 sm:$0xff]  }
 0x12c   : > { %2354 = vmatprep.subr.bf16.mxu1 %v10003_v28  ;;  %v10055_v28 = vld [vmem:[#allocation5 + $0x574] ss:$36 sps:$4 sm:$0xff]  }
 0x12f   : > { %2355 = vmatpush1.bf16.msra.mxu1 %v10001_v29  ;;  %v10053_v29 = vld [vmem:[#allocation5 + $0x570] ss:$36 sps:$4 sm:$0xff]  }
 0x130   : > { %2356 = vmatprep.subr.bf16.mxu1 %v10006_v30  ;;  %v10058_v30 = vld [vmem:[#allocation5 + $0x5bc] ss:$36 sps:$4 sm:$0xff]  }
 0x131   : > { %2260 = vmatmul.mubr.bf16.vlgmr.msra.gmra.mrb[32].mxu0 %v10944_v37 }
 0x132   : > { %2074 = vmatmul.mubr.bf16.gmra.mrb[48].mxu1 %v10978_v25  ;;  %2269 = vmatprep.mubr.bf16.mxu0 %v13189_v0 }
 0x133   : > { %2357 = vmatpush1.bf16.msra.mxu1 %v10004_v31  ;;  %2083 = vmatprep.mubr.bf16.mxu1 %v13189_v0  ;;  %v10056_v31 = vld [vmem:[#allocation5 + $0x5b8] ss:$36 sps:$4 sm:$0xff]  }
 0x134   : > { %2358 = vmatprep.subr.bf16.mxu1 %v10009_v33  ;;  %8356 = vmatpush3.bf16.msra.mxu0 %v10029_v34  ;;  %v10061_v33 = vld [vmem:[#allocation5 + $0x604] ss:$36 sps:$4 sm:$0xff]  }
 0x135   : > { %8357 = vmatprep.subr.bf16.mxu0 %v10030_v35  ;;  %v10059_v34 = vld [vmem:[#allocation5 + $0x600] ss:$36 sps:$4 sm:$0xff]  }
 0x137   : > { %2359 = vmatpush1.bf16.msra.mxu1 %v10007_v38  ;;  %v10064_v38 = vld [vmem:[#allocation5 + $0x64c] ss:$36 sps:$4 sm:$0xff]  }
 0x138   : > { %2360 = vmatprep.subr.bf16.mxu1 %v10012_v39  ;;  %8358 = vmatpush3.bf16.msra.mxu0 %v10031_v40 }
 0x139   : > { %2270 = vmatmul.mubr.bf16.gmra.mrb[36].mxu0 %v10950_v48  ;;  %8359 = vmatprep.subr.bf16.mxu0 %v10032_v46  ;;  %v10067_v46 = vld [vmem:[#allocation5 + $0x694] ss:$36 sps:$4 sm:$0xff]  }
 0x13a   : > { %2084 = vmatmul.mubr.bf16.gmra.mrb[52].mxu1 %v10993_v44  ;;  %2279 = vmatprep.mubr.bf16.mxu0 %v13189_v0 }
 0x13b   : > { %2361 = vmatpush1.bf16.msra.mxu1 %v10010_v42  ;;  %2093 = vmatprep.mubr.bf16.mxu1 %v13189_v0 }
 0x13c   : > { %2362 = vmatprep.subr.bf16.mxu1 %v10015_v45  ;;  %8360 = vmatpush3.bf16.msra.mxu0 %v10033_v47  ;;  %v10062_v45 = vld [vmem:[#allocation5 + $0x648] ss:$36 sps:$4 sm:$0xff]   ;;  %v10065_v47 = vld [vmem:[#allocation5 + $0x690] ss:$36 sps:$4 sm:$0xff]  }
 0x13d   : > { %8361 = vmatprep.subr.bf16.mxu0 %v10034_v50  ;;  %v10068_v50 = vld [vmem:[#allocation5 + $0x4a0] ss:$36 sps:$4 sm:$0xff]  }
 0x13f   : > { %2363 = vmatpush1.bf16.msra.mxu1 %v10013_v49 }
 0x140   : > { %2364 = vmatprep.subr.bf16.mxu1 %v10018_v51  ;;  %8362 = vmatpush3.bf16.msra.mxu0 %v10035_v56 }
 0x141   : > { %2280 = vmatmul.mubr.bf16.gmra.mrb[40].mxu0 %v10960_v62  ;;  %8363 = vmatprep.subr.bf16.mxu0 %v10036_v58 }
 0x142   : > { %2094 = vmatmul.mubr.bf16.gmra.mrb[56].mxu1 %v11009_v60  ;;  %2289 = vmatprep.mubr.bf16.mxu0 %v13189_v0 }
 0x143   : > { %2365 = vmatpush1.bf16.msra.mxu1 %v10016_v53  ;;  %2103 = vmatprep.mubr.bf16.mxu1 %v13189_v0 }
 0x144   : > { %2366 = vmatprep.subr.bf16.mxu1 %v10021_v54  ;;  %8364 = vmatpush3.bf16.msra.mxu0 %v10037_v2 }
 0x145   : > { %8365 = vmatprep.subr.bf16.mxu0 %v10038_v5 }
 0x147   : > { %2367 = vmatpush1.bf16.msra.mxu1 %v10019_v63 }
 0x148   : > { %2368 = vmatprep.subr.bf16.mxu1 %v10024_v1  ;;  %8366 = vmatpush3.bf16.msra.mxu0 %v10039_v6 }
 0x149   : > { %2290 = vmatmul.mubr.bf16.gmra.mrb[44].mxu0 %v10967_v10  ;;  %8367 = vmatprep.subr.bf16.mxu0 %v10040_v9 }
 0x14a   : > { %2104 = vmatmul.mubr.bf16.gmra.mrb[60].mxu1 %v11025_v19  ;;  %2299 = vmatprep.mubr.bf16.mxu0 %v13189_v0 }
 0x14b   : > { %2369 = vmatpush1.bf16.msra.mxu1 %v10022_v3  ;;  %2372 = vmatprep.mubr.bf16.mxu1 %v10958_v61 }
 0x14c   : > { %2370 = vmatprep.subr.bf16.mxu1 %v10027_v4  ;;  %8368 = vmatpush3.bf16.msra.mxu0 %v10041_v14 }
 0x14d   : > { %8369 = vmatprep.subr.bf16.mxu0 %v10042_v16 }
 0x14f   : > { %2371 = vmatpush1.bf16.msra.mxu1 %v10025_v7 }
 0x150   : > { %2453 = vmatprep.subr.bf16.mxu1 %v10046_v12  ;;  %8370 = vmatpush3.bf16.msra.mxu0 %v10043_v20 }
 0x151   : > { %2300 = vmatmul.mubr.bf16.gmra.mrb[48].mxu0 %v10978_v25 }
 0x152   : > { %2373 = vmatmul.mubr.bf16.vlgmr.msra.gmra.mrb[64].mxu1 %v10976_v24  ;;  %2309 = vmatprep.mubr.bf16.mxu0 %v13189_v0 }
 0x153   : > { %2382 = vmatprep.mubr.bf16.mxu1 %v10981_v32  ;;  %2454 = vmatpush1.bf16.msra.mxu1 %v10044_v15 }
 0x154   : > { %2455 = vmatprep.subr.bf16.mxu1 %v10049_v17 }
 0x157   : > { %2456 = vmatpush1.bf16.msra.mxu1 %v10047_v21 }
 0x158   : > { %2457 = vmatprep.subr.bf16.mxu1 %v10052_v22 }
 0x159   : > { %2310 = vmatmul.mubr.bf16.gmra.mrb[52].mxu0 %v10993_v44 }
 0x15a   : > { %2383 = vmatmul.mubr.bf16.gmra.mrb[68].mxu1 %v10991_v43  ;;  %2319 = vmatprep.mubr.bf16.mxu0 %v13189_v0 }
 0x15b   : > { %2392 = vmatprep.mubr.bf16.mxu1 %v10997_v52  ;;  %2458 = vmatpush1.bf16.msra.mxu1 %v10050_v23 }
 0x15c   : > { %2459 = vmatprep.subr.bf16.mxu1 %v10055_v28 }
 0x15f   : > { %2460 = vmatpush1.bf16.msra.mxu1 %v10053_v29 }
 0x160   : > { %2461 = vmatprep.subr.bf16.mxu1 %v10058_v30 }
 0x161   : > { %2320 = vmatmul.mubr.bf16.gmra.mrb[56].mxu0 %v11009_v60 }
 0x162   : > { %2393 = vmatmul.mubr.bf16.gmra.mrb[72].mxu1 %v11007_v59  ;;  %2329 = vmatprep.mubr.bf16.mxu0 %v13189_v0 }
 0x163   : > { %2402 = vmatprep.mubr.bf16.mxu1 %v11013_v8  ;;  %2462 = vmatpush1.bf16.msra.mxu1 %v10056_v31 }
 0x164   : > { %2463 = vmatprep.subr.bf16.mxu1 %v10061_v33 }
 0x165   : > { %v1809_v35 = vpop.f32.mrb[0].mxu1 }
 0x166   : > { %v1811_v39 = vpop.f32.mrb[1].mxu1 }
 0x167   : > { %v1813_v40 = vpop.f32.mrb[2].mxu1  ;;  %2464 = vmatpush1.bf16.msra.mxu1 %v10059_v34 }
 0x168   : > { %v1815_v42 = vpop.f32.mrb[3].mxu1  ;;  %2465 = vmatprep.subr.bf16.mxu1 %v10064_v38 }
 0x169   : > { %2330 = vmatmul.mubr.bf16.gmra.mrb[60].mxu0 %v11025_v19 }
 0x16a   : > { %2403 = vmatmul.mubr.bf16.gmra.mrb[76].mxu1 %v11023_v18  ;;  %2598 = vmatprep.mubr.bf16.mxu0 %v10958_v61 }
 0x16b   : > { %2412 = vmatprep.mubr.bf16.mxu1 %v11029_v27  ;;  %2466 = vmatpush1.bf16.msra.mxu1 %v10062_v45 }
 0x16c   : > { %2467 = vmatprep.subr.bf16.mxu1 %v10067_v46 }
 0x16d   : > { %v1819_v49 = vpop.f32.mrb[4].mxu1 }
 0x16e   : > { %v1821_v51 = vpop.f32.mrb[5].mxu1 }
 0x16f   : > { %v1823_v53 = vpop.f32.mrb[6].mxu1  ;;  %2468 = vmatpush1.bf16.msra.mxu1 %v10065_v47 }
 0x170   : > { %v1825_v54 = vpop.f32.mrb[7].mxu1  ;;  %8699 = vmatprep.subr.bf16.mxu1 %v10068_v50 }
 0x171   : > { %2599 = vmatmul.mubr.bf16.vlgmr.msra.gmra.mrb[64].mxu0 %v10976_v24 }
 0x172   : > { %2413 = vmatmul.mubr.bf16.gmra.mrb[80].mxu1 %v11039_v36  ;;  %2606 = vmatprep.mubr.bf16.mxu0 %v10981_v32 }
 0x173   : > { %2422 = vmatprep.mubr.bf16.mxu1 %v11041_v41 }
 0x175   : > { %v1829_v56 = vpop.f32.mrb[8].mxu1 }
 0x176   : > { %v1831_v61 = vpop.f32.mrb[9].mxu1 }
 0x177   : > { %v1833_v58 = vpop.f32.mrb[10].mxu1 }
 0x178   : > { %v11147_v63 = vpop.f32.mrb[11].mxu1 }
 0x179   : > { %2607 = vmatmul.mubr.bf16.gmra.mrb[68].mxu0 %v10991_v43 }
 0x17a   : > { %2423 = vmatmul.mubr.bf16.gmra.mrb[84].mxu1 %v11051_v55  ;;  %2614 = vmatprep.mubr.bf16.mxu0 %v10997_v52 }
 0x17b   : > { %2432 = vmatprep.mubr.bf16.mxu1 %v11053_v57 }
 0x17d   : > { %v11153_v1 = vpop.f32.mrb[12].mxu1 }
 0x17e   : > { %v11155_v24 = vpop.f32.mrb[13].mxu1 }
 0x17f   : > { %v11157_v2 = vpop.f32.mrb[14].mxu1 }
 0x180   : > { %v11159_v32 = vpop.f32.mrb[15].mxu1 }
 0x181   : > { %2615 = vmatmul.mubr.bf16.gmra.mrb[72].mxu0 %v11007_v59 }
 0x182   : > { %2433 = vmatmul.mubr.bf16.gmra.mrb[88].mxu1 %v11063_v11  ;;  %2622 = vmatprep.mubr.bf16.mxu0 %v11013_v8 }
 0x183   : > { %2442 = vmatprep.mubr.bf16.mxu1 %v11065_v13 }
 0x184   : > { %v1696_v43 = vpop.f32.mrb[0].mxu0 }
 0x185   : > { %v11165_v3 = vpop.f32.mrb[16].mxu1  ;;  %v1810_v52 = vadd.f32 %v1809_v35, %v1696_v43  ;;  %v1698_v4 = vpop.f32.mrb[1].mxu0  ;;  %v10069_v35 = vld [vmem:[#allocation5 + $0x4e8] ss:$36 sps:$4 sm:$0xff]  }
 0x186   : > { %v11167_v5 = vpop.f32.mrb[17].mxu1  ;;  %v1812_v6 = vadd.f32 %v1811_v39, %v1698_v4  ;;  %v1700_v7 = vpop.f32.mrb[2].mxu0 }
 0x187   : > { %v11169_v9 = vpop.f32.mrb[18].mxu1  ;;  %v1814_v12 = vadd.f32 %v1813_v40, %v1700_v7  ;;  %v1702_v14 = vpop.f32.mrb[3].mxu0 }
 0x188   : > { %v11171_v15 = vpop.f32.mrb[19].mxu1  ;;  %v1816_v59 = vadd.f32 %v1815_v42, %v1702_v14  ;;  %v10070_v42 = vld [vmem:[#allocation5 + $0x530] ss:$36 sps:$4 sm:$0xff]  }
 0x189   : > { %v11173_v16 = vpack.c.bf16 %v1814_v12, %v1810_v52  ;;  %2623 = vmatmul.mubr.bf16.gmra.mrb[76].mxu0 %v11023_v18 }
 0x18a   : > { %2443 = vmatmul.mubr.bf16.gmra.mrb[92].mxu1 %v11073_v26  ;;  %v11177_v8 = vpack.c.bf16 %v1816_v59, %v1812_v6  ;;  %2630 = vmatprep.mubr.bf16.mxu0 %v11029_v27 }
 0x18b   : > { %2485 = vmatprep.mubr.bf16.mxu1 %v13189_v0 }
 0x18c   : > { %13309 = vst [vmem:[#allocation12_spill] sm:$0xff] %v11177_v8  ;;  %v1706_v17 = vpop.f32.mrb[4].mxu0  ;;  %v13394_v8 = vmov 0 }
 0x18d   : > { %v11181_v20 = vpop.f32.mrb[20].mxu1  ;;  %v1820_v21 = vadd.f32 %v1819_v49, %v1706_v17  ;;  %v1708_v22 = vpop.f32.mrb[5].mxu0 }
 0x18e   : > { %v11183_v23 = vpop.f32.mrb[21].mxu1  ;;  %v1822_v28 = vadd.f32 %v1821_v51, %v1708_v22  ;;  %v1710_v29 = vpop.f32.mrb[6].mxu0  ;;  %v10073_v22 = vld [vmem:[#allocation5 + $0x608] ss:$36 sps:$4 sm:$0xff]  }
 0x18f   : > { %v11185_v30 = vpop.f32.mrb[22].mxu1  ;;  %v1824_v31 = vadd.f32 %v1823_v53, %v1710_v29  ;;  %v1712_v33 = vpop.f32.mrb[7].mxu0 }
 0x190   : > { %v11187_v18 = vpop.f32.mrb[23].mxu1  ;;  %v1826_v34 = vadd.f32 %v1825_v54, %v1712_v33 }
 0x191   : > { %v11189_v38 = vpack.c.bf16 %v1824_v31, %v1820_v21  ;;  %2631 = vmatmul.mubr.bf16.gmra.mrb[80].mxu0 %v11039_v36 }
 0x192   : > { %2486 = vmatmul.mubr.bf16.vlgmr.msra.gmra.mrb[64].mxu1 %v10944_v37  ;;  %v11193_v27 = vpack.c.bf16 %v1826_v34, %v1822_v28  ;;  %2638 = vmatprep.mubr.bf16.mxu0 %v11041_v41 }
 0x193   : > { %2495 = vmatprep.mubr.bf16.mxu1 %v13189_v0  ;;  %8700 = vmatpush3.bf16.msra.mxu1 %v10068_v50  ;;  %v10071_v50 = vld [vmem:[#allocation5 + $0x578] ss:$36 sps:$4 sm:$0xff]  }
 0x194   : > { %13310 = vst [vmem:[#allocation13_spill] sm:$0xff] %v11193_v27  ;;  %v1716_v39 = vpop.f32.mrb[8].mxu0  ;;  %8701 = vmatprep.subr.bf16.mxu1 %v10069_v35 }
 0x195   : > { %v11197_v40 = vpop.f32.mrb[24].mxu1  ;;  %v1830_v45 = vadd.f32 %v1829_v56, %v1716_v39  ;;  %v1718_v46 = vpop.f32.mrb[9].mxu0  ;;  %v10075_v39 = vld [vmem:[#allocation5 + $0x698] ss:$36 sps:$4 sm:$0xff]  }
 0x196   : > { %v11199_v47 = vpop.f32.mrb[25].mxu1  ;;  %v1832_v49 = vadd.f32 %v1831_v61, %v1718_v46  ;;  %v1720_v51 = vpop.f32.mrb[10].mxu0 }
 0x197   : > { %v11201_v53 = vpop.f32.mrb[26].mxu1  ;;  %v1834_v36 = vadd.f32 %v1833_v58, %v1720_v51  ;;  %v1722_v54 = vpop.f32.mrb[11].mxu0  ;;  %8702 = vmatpush3.bf16.msra.mxu1 %v10069_v35 }
 0x198   : > { %v11203_v43 = vpop.f32.mrb[27].mxu1  ;;  %v1836_v41 = vadd.f32 %v11147_v63, %v1722_v54  ;;  %8703 = vmatprep.subr.bf16.mxu1 %v10070_v42  ;;  %v10072_v63 = vld [vmem:[#allocation5 + $0x5c0] ss:$36 sps:$4 sm:$0xff]  }
 0x199   : > { %v11206_v52 = vpack.c.bf16 %v1834_v36, %v1830_v45  ;;  %2639 = vmatmul.mubr.bf16.gmra.mrb[84].mxu0 %v11051_v55 }
 0x19a   : > { %2496 = vmatmul.mubr.bf16.gmra.mrb[68].mxu1 %v10950_v48  ;;  %v11210_v56 = vpack.c.bf16 %v1836_v41, %v1832_v49  ;;  %2646 = vmatprep.mubr.bf16.mxu0 %v11053_v57 }
 0x19b   : > { %2505 = vmatprep.mubr.bf16.mxu1 %v13189_v0  ;;  %8704 = vmatpush3.bf16.msra.mxu1 %v10070_v42 }
 0x19c   : > { %13311 = vst [vmem:[#allocation14_spill] sm:$0xff] %v11210_v56  ;;  %v1726_v61 = vpop.f32.mrb[12].mxu0  ;;  %8705 = vmatprep.subr.bf16.mxu1 %v10071_v50 }
 0x19d   : > { %v11214_v58 = vpop.f32.mrb[28].mxu1  ;;  %v1840_v4 = vadd.f32 %v11153_v1, %v1726_v61  ;;  %v1728_v6 = vpop.f32.mrb[13].mxu0 }
 0x19e   : > { %v11217_v7 = vpop.f32.mrb[29].mxu1  ;;  %v1842_v12 = vadd.f32 %v11155_v24, %v1728_v6  ;;  %v1730_v55 = vpop.f32.mrb[14].mxu0 }
 0x19f   : > { %v11220_v14 = vpop.f32.mrb[30].mxu1  ;;  %v1844_v59 = vadd.f32 %v11157_v2, %v1730_v55  ;;  %v1732_v17 = vpop.f32.mrb[15].mxu0  ;;  %8706 = vmatpush3.bf16.msra.mxu1 %v10071_v50  ;;  %v10074_v2 = vld [vmem:[#allocation5 + $0x650] ss:$36 sps:$4 sm:$0xff]  }
 0x1a0   : > { %v11223_v57 = vpop.f32.mrb[31].mxu1  ;;  %v1846_v21 = vadd.f32 %v11159_v32, %v1732_v17  ;;  %8707 = vmatprep.subr.bf16.mxu1 %v10072_v63 }
 0x1a1   : > { %v11226_v28 = vpack.c.bf16 %v1844_v59, %v1840_v4  ;;  %2647 = vmatmul.mubr.bf16.gmra.mrb[88].mxu0 %v11063_v11 }
 0x1a2   : > { %2506 = vmatmul.mubr.bf16.gmra.mrb[72].mxu1 %v10960_v62  ;;  %v11230_v1 = vpack.c.bf16 %v1846_v21, %v1842_v12  ;;  %2654 = vmatprep.mubr.bf16.mxu0 %v11065_v13 }
 0x1a3   : > { %2515 = vmatprep.mubr.bf16.mxu1 %v13189_v0  ;;  %8708 = vmatpush3.bf16.msra.mxu1 %v10072_v63 }
 0x1a4   : > { %13312 = vst [vmem:[#allocation15_spill] sm:$0xff] %v11230_v1  ;;  %v1736_v24 = vpop.f32.mrb[16].mxu0  ;;  %8709 = vmatprep.subr.bf16.mxu1 %v10073_v22 }
 0x1a5   : > { %v1850_v32 = vadd.f32 %v11165_v3, %v1736_v24  ;;  %v1738_v29 = vpop.f32.mrb[17].mxu0 }
 0x1a6   : > { %v1852_v31 = vadd.f32 %v11167_v5, %v1738_v29  ;;  %v1740_v33 = vpop.f32.mrb[18].mxu0 }
 0x1a7   : > { %v1854_v34 = vadd.f32 %v11169_v9, %v1740_v33  ;;  %v1742_v35 = vpop.f32.mrb[19].mxu0  ;;  %8710 = vmatpush3.bf16.msra.mxu1 %v10073_v22 }
 0x1a8   : > { %v1856_v11 = vadd.f32 %v11171_v15, %v1742_v35  ;;  %8711 = vmatprep.subr.bf16.mxu1 %v10074_v2 }
 0x1a9   : > { %v11238_v13 = vpack.c.bf16 %v1854_v34, %v1850_v32  ;;  %2655 = vmatmul.mubr.bf16.gmra.mrb[92].mxu0 %v11073_v26 }
 0x1aa   : > { %2516 = vmatmul.mubr.bf16.gmra.mrb[76].mxu1 %v10967_v10  ;;  %v11242_v3 = vpack.c.bf16 %v1856_v11, %v1852_v31  ;;  %8747 = vmatprep.mubr.msk.bf16.mxu0 %vm13234_vm0, %v11173_v16 }
 0x1ab   : > { %2525 = vmatprep.mubr.bf16.mxu1 %v13189_v0  ;;  %8712 = vmatpush3.bf16.msra.mxu1 %v10074_v2 }
 0x1ac   : > { %13313 = vst [vmem:[#allocation16_spill] sm:$0xff] %v11242_v3  ;;  %v1746_v5 = vpop.f32.mrb[20].mxu0  ;;  %8713 = vmatprep.subr.bf16.mxu1 %v10075_v39 }
 0x1ad   : > { %v1860_v9 = vadd.f32 %v11181_v20, %v1746_v5  ;;  %v1748_v15 = vpop.f32.mrb[21].mxu0 }
 0x1ae   : > { %v1862_v42 = vadd.f32 %v11183_v23, %v1748_v15  ;;  %v1750_v45 = vpop.f32.mrb[22].mxu0 }
 0x1af   : > { %v1864_v46 = vadd.f32 %v11185_v30, %v1750_v45  ;;  %v1752_v49 = vpop.f32.mrb[23].mxu0  ;;  %8714 = vmatpush3.bf16.msra.mxu1 %v10075_v39 }
 0x1b0   : > { %v1866_v26 = vadd.f32 %v11187_v18, %v1752_v49 }
 0x1b1   : > { %v11251_v51 = vpack.c.bf16 %v1864_v46, %v1860_v9 }
 0x1b2   : > { %2526 = vmatmul.mubr.bf16.gmra.mrb[80].mxu1 %v10978_v25  ;;  %v11254_v36 = vpack.c.bf16 %v1866_v26, %v1862_v42 }
 0x1b3   : > { %2535 = vmatprep.mubr.bf16.mxu1 %v13189_v0 }
 0x1b4   : > { %13314 = vst [vmem:[#allocation17_spill] sm:$0xff] %v11254_v36  ;;  %v1756_v54 = vpop.f32.mrb[24].mxu0 }
 0x1b5   : > { %v1870_v20 = vadd.f32 %v11197_v40, %v1756_v54  ;;  %v1758_v41 = vpop.f32.mrb[25].mxu0 }
 0x1b6   : > { %v1872_v23 = vadd.f32 %v11199_v47, %v1758_v41  ;;  %v1760_v50 = vpop.f32.mrb[26].mxu0 }
 0x1b7   : > { %v1874_v30 = vadd.f32 %v11201_v53, %v1760_v50  ;;  %v1762_v61 = vpop.f32.mrb[27].mxu0 }
 0x1b8   : > { %v1876_v18 = vadd.f32 %v11203_v43, %v1762_v61 }
 0x1b9   : > { %v11261_v63 = vpack.c.bf16 %v1874_v30, %v1870_v20 }
 0x1ba   : > { %2536 = vmatmul.mubr.bf16.gmra.mrb[84].mxu1 %v10993_v44  ;;  %v11264_v4 = vpack.c.bf16 %v1876_v18, %v1872_v23 }
 0x1bb   : > { %2545 = vmatprep.mubr.bf16.mxu1 %v13189_v0 }
 0x1bc   : > { %13315 = vst [vmem:[#allocation18_spill] sm:$0xff] %v11264_v4  ;;  %v1766_v6 = vpop.f32.mrb[28].mxu0 }
 0x1bd   : > { %v1880_v40 = vadd.f32 %v11214_v58, %v1766_v6  ;;  %v1768_v12 = vpop.f32.mrb[29].mxu0 }
 0x1be   : > { %v1882_v47 = vadd.f32 %v11217_v7, %v1768_v12  ;;  %v1770_v55 = vpop.f32.mrb[30].mxu0 }
 0x1bf   : > { %v1884_v53 = vadd.f32 %v11220_v14, %v1770_v55  ;;  %v1772_v59 = vpop.f32.mrb[31].mxu0 }
 0x1c0   : > { %v1886_v43 = vadd.f32 %v11223_v57, %v1772_v59 }
 0x1c1   : > { %v11271_v17 = vpack.c.bf16 %v1884_v53, %v1880_v40 }
 0x1c2   : > { %2546 = vmatmul.mubr.bf16.gmra.mrb[88].mxu1 %v11009_v60  ;;  %v11274_v21 = vpack.c.bf16 %v1886_v43, %v1882_v47 }
 0x1c3   : > { %2555 = vmatprep.mubr.bf16.mxu1 %v13189_v0 }
 0x1c4   : > { %13316 = vst [vmem:[#allocation19_spill] sm:$0xff] %v11274_v21 }
 0x1ca   : > { %2556 = vmatmul.mubr.bf16.gmra.mrb[92].mxu1 %v11025_v19 }
 0x1cb   : > { %8715 = vmatprep.mubr.bf16.mxu1 %v10944_v37 }
 0x1d2   : > { %8716 = vmatmul.mubr.bf16.vlgmr.msra.gmra.mrb[96].mxu1 %v10950_v48 }
 0x1d3   : > { %8719 = vmatprep.mubr.bf16.mxu1 %v10960_v62 }
 0x1da   : > { %8720 = vmatmul.mubr.bf16.gmra.mrb[100].mxu1 %v10967_v10 }
 0x1db   : > { %8723 = vmatprep.mubr.bf16.mxu1 %v10978_v25 }
 0x1e2   : > { %8724 = vmatmul.mubr.bf16.gmra.mrb[104].mxu1 %v10993_v44 }
 0x1e3   : > { %8727 = vmatprep.mubr.bf16.mxu1 %v11009_v60 }
 0x1e5   : > { %v2035_v58 = vpop.f32.mrb[32].mxu1 }
 0x1e6   : > { %v2037_v7 = vpop.f32.mrb[33].mxu1 }
 0x1e7   : > { %v2039_v14 = vpop.f32.mrb[34].mxu1 }
 0x1e8   : > { %v11285_v57 = vpack.c.bf16 %v2039_v14, %v2035_v58  ;;  %v2041_v22 = vpop.f32.mrb[35].mxu1 }
 0x1e9   : > { %v2803_v24 = vpack.c.bf16 %v2041_v22, %v2037_v7 }
 0x1ea   : > { %13317 = vst [vmem:[#allocation20_spill] sm:$0xff] %v11285_v57  ;;  %8728 = vmatmul.mubr.bf16.gmra.mrb[108].mxu1 %v11025_v19 }
 0x1eb   : > { %3286 = vrot.lane.b32.xlu0 %v2803_v24, %s10724_s21  ;;  %9635 = vmatprep.subr.msk.bf16.mxu0 %vm13234_vm0, %v2803_v24  ;;  %v2845_v37 = vsel %vm13234_vm0, %v2803_v24, 0 }
 0x1ec   : > { %8732 = vmatpush3.bf16.xpose.msra.mxu0 %v2845_v37 }
 0x1ed   : > { %v2045_v48 = vpop.f32.mrb[36].mxu1 }
 0x1ee   : > { %v2047_v62 = vpop.f32.mrb[37].mxu1 }
 0x1ef   : > { %v2049_v10 = vpop.f32.mrb[38].mxu1 }
 0x1f0   : > { %v11291_v25 = vpack.c.bf16 %v2049_v10, %v2045_v48  ;;  %v2051_v44 = vpop.f32.mrb[39].mxu1 }
 0x1f1   : > { %v2804_v60 = vpack.c.bf16 %v2051_v44, %v2047_v62 }
 0x1f2   : > { %13318 = vst [vmem:[#allocation21_spill] sm:$0xff] %v11291_v25 }
 0x1f3   : > { %3288 = vrot.lane.b32.xlu1 %v2804_v60, %s10724_s21  ;;  %9636 = vmatprep.subr.msk.bf16.mxu0 %vm13234_vm0, %v2804_v60  ;;  %v2848_v19 = vsel %vm13234_vm0, %v2804_v60, 0 }
 0x1f4   : > { %8734 = vmatpush3.bf16.xpose.msra.mxu0 %v2848_v19 }
 0x1f5   : > { %v2055_v2 = vpop.f32.mrb[40].mxu1 }
 0x1f6   : > { %v2057_v32 = vpop.f32.mrb[41].mxu1 }
 0x1f7   : > { %v2059_v29 = vpop.f32.mrb[42].mxu1 }
 0x1f8   : > { %v11296_v31 = vpack.c.bf16 %v2059_v29, %v2055_v2  ;;  %v2061_v33 = vpop.f32.mrb[43].mxu1 }
 0x1f9   : > { %v11298_v34 = vpack.c.bf16 %v2061_v33, %v2057_v32 }
 0x1fa   : > { %13319 = vst [vmem:[#allocation22_spill] sm:$0xff] %v11296_v31 }
 0x1fb   : > { %9637 = vmatprep.subr.msk.bf16.mxu0 %vm13234_vm0, %v11298_v34  ;;  %v2851_v35 = vsel %vm13234_vm0, %v11298_v34, 0 }
 0x1fc   : > { %8736 = vmatpush3.bf16.xpose.msra.mxu0 %v2851_v35 }
 0x1fd   : > { %v2065_v11 = vpop.f32.mrb[44].mxu1 }
 0x1fe   : > { %v2067_v39 = vpop.f32.mrb[45].mxu1 }
 0x1ff   : > { %v2069_v5 = vpop.f32.mrb[46].mxu1 }
 0x200   : > { %v11304_v9 = vpack.c.bf16 %v2069_v5, %v2065_v11  ;;  %v2071_v15 = vpop.f32.mrb[47].mxu1 }
 0x201   : > { %v11306_v42 = vpack.c.bf16 %v2071_v15, %v2067_v39 }
 0x202   : > { %13320 = vst [vmem:[#allocation23_spill] sm:$0xff] %v11304_v9 }
 0x203   : > { %9638 = vmatprep.subr.msk.bf16.mxu0 %vm13234_vm0, %v11306_v42  ;;  %v2854_v45 = vsel %vm13234_vm0, %v11306_v42, 0 }
 0x204   : > { %8738 = vmatpush3.bf16.xpose.msra.mxu0 %v2854_v45  ;;  %v2261_v49 = vpop.f32.mrb[32].mxu0 }
 0x205   : > { %v2075_v46 = vpop.f32.mrb[48].mxu1  ;;  %v2263_v54 = vpop.f32.mrb[33].mxu0 }
 0x206   : > { %v2077_v26 = vpop.f32.mrb[49].mxu1  ;;  %v2265_v41 = vpop.f32.mrb[34].mxu0 }
 0x207   : > { %v2079_v20 = vpop.f32.mrb[50].mxu1  ;;  %v11314_v30 = vpack.c.bf16 %v2265_v41, %v2261_v49  ;;  %v2267_v61 = vpop.f32.mrb[35].mxu0 }
 0x208   : > { %v11312_v23 = vpack.c.bf16 %v2079_v20, %v2075_v46  ;;  %v2081_v50 = vpop.f32.mrb[51].mxu1  ;;  %v11318_v6 = vpack.c.bf16 %v2267_v61, %v2263_v54 }
 0x209   : > { %13322 = vst [vmem:[#allocation25_spill] sm:$0xff] %v11314_v30  ;;  %v11316_v18 = vpack.c.bf16 %v2081_v50, %v2077_v26 }
 0x20a   : > { %13321 = vst [vmem:[#allocation24_spill] sm:$0xff] %v11312_v23  ;;  %13323 = vst [vmem:[#allocation26_spill] sm:$0xff] %v11318_v6 }
 0x20b   : > { %9639 = vmatprep.subr.msk.bf16.mxu0 %vm13234_vm0, %v11316_v18  ;;  %v2857_v40 = vsel %vm13234_vm0, %v11316_v18, 0 }
 0x20c   : > { %8740 = vmatpush3.bf16.xpose.msra.mxu0 %v2857_v40  ;;  %v2271_v47 = vpop.f32.mrb[36].mxu0 }
 0x20d   : > { %v2085_v12 = vpop.f32.mrb[52].mxu1  ;;  %v2273_v53 = vpop.f32.mrb[37].mxu0 }
 0x20e   : > { %v2087_v55 = vpop.f32.mrb[53].mxu1  ;;  %v2275_v43 = vpop.f32.mrb[38].mxu0 }
 0x20f   : > { %v2089_v59 = vpop.f32.mrb[54].mxu1  ;;  %v11326_v14 = vpack.c.bf16 %v2275_v43, %v2271_v47  ;;  %v2277_v22 = vpop.f32.mrb[39].mxu0 }
 0x210   : > { %v11324_v58 = vpack.c.bf16 %v2089_v59, %v2085_v12  ;;  %v2091_v7 = vpop.f32.mrb[55].mxu1  ;;  %v11330_v37 = vpack.c.bf16 %v2277_v22, %v2273_v53 }
 0x211   : > { %13325 = vst [vmem:[#allocation28_spill] sm:$0xff] %v11326_v14  ;;  %v11328_v24 = vpack.c.bf16 %v2091_v7, %v2087_v55 }
 0x212   : > { %13324 = vst [vmem:[#allocation27_spill] sm:$0xff] %v11324_v58  ;;  %13326 = vst [vmem:[#allocation29_spill] sm:$0xff] %v11330_v37 }
 0x213   : > { %9640 = vmatprep.subr.msk.bf16.mxu0 %vm13234_vm0, %v11328_v24  ;;  %v2860_v48 = vsel %vm13234_vm0, %v11328_v24, 0 }
 0x214   : > { %8742 = vmatpush3.bf16.xpose.msra.mxu0 %v2860_v48  ;;  %v2281_v10 = vpop.f32.mrb[40].mxu0 }
 0x215   : > { %v2095_v62 = vpop.f32.mrb[56].mxu1  ;;  %v2283_v60 = vpop.f32.mrb[41].mxu0 }
 0x216   : > { %v2097_v44 = vpop.f32.mrb[57].mxu1  ;;  %v2285_v2 = vpop.f32.mrb[42].mxu0 }
 0x217   : > { %v2099_v19 = vpop.f32.mrb[58].mxu1  ;;  %v11338_v33 = vpack.c.bf16 %v2285_v2, %v2281_v10  ;;  %v2287_v35 = vpop.f32.mrb[43].mxu0 }
 0x218   : > { %v11336_v32 = vpack.c.bf16 %v2099_v19, %v2095_v62  ;;  %v2101_v29 = vpop.f32.mrb[59].mxu1  ;;  %v11342_v39 = vpack.c.bf16 %v2287_v35, %v2283_v60 }
 0x219   : > { %13328 = vst [vmem:[#allocation31_spill] sm:$0xff] %v11338_v33  ;;  %v11340_v11 = vpack.c.bf16 %v2101_v29, %v2097_v44 }
 0x21a   : > { %13327 = vst [vmem:[#allocation30_spill] sm:$0xff] %v11336_v32  ;;  %13329 = vst [vmem:[#allocation32_spill] sm:$0xff] %v11342_v39 }
 0x21b   : > { %9641 = vmatprep.subr.msk.bf16.mxu0 %vm13234_vm0, %v11340_v11  ;;  %v2863_v5 = vsel %vm13234_vm0, %v11340_v11, 0 }
 0x21c   : > { %8744 = vmatpush3.bf16.xpose.msra.mxu0 %v2863_v5  ;;  %v2291_v45 = vpop.f32.mrb[44].mxu0 }
 0x21d   : > { %v2105_v15 = vpop.f32.mrb[60].mxu1  ;;  %v2293_v49 = vpop.f32.mrb[45].mxu0 }
 0x21e   : > { %v2107_v46 = vpop.f32.mrb[61].mxu1  ;;  %v2295_v54 = vpop.f32.mrb[46].mxu0 }
 0x21f   : > { %v2109_v26 = vpop.f32.mrb[62].mxu1  ;;  %v11350_v50 = vpack.c.bf16 %v2295_v54, %v2291_v45  ;;  %v2297_v61 = vpop.f32.mrb[47].mxu0 }
 0x220   : > { %v11348_v20 = vpack.c.bf16 %v2109_v26, %v2105_v15  ;;  %v2111_v41 = vpop.f32.mrb[63].mxu1  ;;  %v11354_v12 = vpack.c.bf16 %v2297_v61, %v2293_v49 }
 0x221   : > { %13331 = vst [vmem:[#allocation34_spill] sm:$0xff] %v11350_v50  ;;  %v11352_v40 = vpack.c.bf16 %v2111_v41, %v2107_v46 }
 0x222   : > { %13330 = vst [vmem:[#allocation33_spill] sm:$0xff] %v11348_v20  ;;  %13332 = vst [vmem:[#allocation35_spill] sm:$0xff] %v11354_v12 }
 0x223   : > { %9642 = vmatprep.subr.msk.bf16.mxu0 %vm13234_vm0, %v11352_v40  ;;  %v2866_v47 = vsel %vm13234_vm0, %v11352_v40, 0 }
 0x224   : > { %8746 = vmatpush3.bf16.xpose.msra.mxu0 %v2866_v47  ;;  %v2301_v55 = vpop.f32.mrb[48].mxu0 }
 0x225   : > { %v2303_v53 = vpop.f32.mrb[49].mxu0 }
 0x226   : > { %v2305_v59 = vpop.f32.mrb[50].mxu0 }
 0x227   : > { %v11360_v43 = vpack.c.bf16 %v2305_v59, %v2301_v55  ;;  %v2307_v7 = vpop.f32.mrb[51].mxu0 }
 0x228   : > { %v11362_v22 = vpack.c.bf16 %v2307_v7, %v2303_v53 }
 0x229   : > { %13333 = vst [vmem:[#allocation36_spill] sm:$0xff] %v11360_v43 }
 0x22a   : > { %13334 = vst [vmem:[#allocation37_spill] sm:$0xff] %v11362_v22 }
 0x22b   : > { %8748 = vmatmul.mubr.msk.bf16.vlgmr.msra.gmra.mrb[96].mxu0 %vm13234_vm0, %v11189_v38 }
 0x22c   : > { %8751 = vmatprep.mubr.msk.bf16.mxu0 %vm13234_vm0, %v11206_v52  ;;  %v2311_v48 = vpop.f32.mrb[52].mxu0 }
 0x22d   : > { %v2313_v62 = vpop.f32.mrb[53].mxu0 }
 0x22e   : > { %v2315_v10 = vpop.f32.mrb[54].mxu0 }
 0x22f   : > { %v11368_v44 = vpack.c.bf16 %v2315_v10, %v2311_v48  ;;  %v2317_v60 = vpop.f32.mrb[55].mxu0 }
 0x230   : > { %v11370_v19 = vpack.c.bf16 %v2317_v60, %v2313_v62 }
 0x231   : > { %13335 = vst [vmem:[#allocation38_spill] sm:$0xff] %v11368_v44 }
 0x232   : > { %13336 = vst [vmem:[#allocation39_spill] sm:$0xff] %v11370_v19 }
 0x233   : > { %8752 = vmatmul.mubr.msk.bf16.gmra.mrb[100].mxu0 %vm13234_vm0, %v11226_v28 }
 0x234   : > { %8755 = vmatprep.mubr.msk.bf16.mxu0 %vm13234_vm0, %v11238_v13  ;;  %v2321_v2 = vpop.f32.mrb[56].mxu0 }
 0x235   : > { %v2323_v29 = vpop.f32.mrb[57].mxu0 }
 0x236   : > { %v2325_v35 = vpop.f32.mrb[58].mxu0 }
 0x237   : > { %v11376_v5 = vpack.c.bf16 %v2325_v35, %v2321_v2  ;;  %v2327_v15 = vpop.f32.mrb[59].mxu0 }
 0x238   : > { %v11378_v45 = vpack.c.bf16 %v2327_v15, %v2323_v29 }
 0x239   : > { %13337 = vst [vmem:[#allocation40_spill] sm:$0xff] %v11376_v5 }
 0x23a   : > { %13338 = vst [vmem:[#allocation41_spill] sm:$0xff] %v11378_v45 }
 0x23b   : > { %8756 = vmatmul.mubr.msk.bf16.gmra.mrb[104].mxu0 %vm13234_vm0, %v11251_v51 }
 0x23c   : > { %8759 = vmatprep.mubr.msk.bf16.mxu0 %vm13234_vm0, %v11261_v63  ;;  %v2331_v46 = vpop.f32.mrb[60].mxu0 }
 0x23d   : > { %v2333_v49 = vpop.f32.mrb[61].mxu0 }
 0x23e   : > { %v2335_v26 = vpop.f32.mrb[62].mxu0 }
 0x23f   : > { %v11384_v54 = vpack.c.bf16 %v2335_v26, %v2331_v46  ;;  %v2337_v41 = vpop.f32.mrb[63].mxu0 }
 0x240   : > { %v11386_v61 = vpack.c.bf16 %v2337_v41, %v2333_v49 }
 0x241   : > { %13339 = vst [vmem:[#allocation42_spill] sm:$0xff] %v11384_v54 }
 0x242   : > { %13340 = vst [vmem:[#allocation43_spill] sm:$0xff] %v11386_v61 }
 0x243   : > { %8760 = vmatmul.mubr.msk.bf16.gmra.mrb[108].mxu0 %vm13234_vm0, %v11271_v17 }
 0x244   : > { %v8371_v47 = vpop.f32.mrb[64].mxu0 }
 0x245   : > { %v8372_v55 = vpop.f32.mrb[65].mxu0 }
 0x246   : > { %v11390_v53 = vadd.f32 %v8372_v55, %v8371_v47  ;;  %v8374_v59 = vpop.f32.mrb[66].mxu0 }
 0x247   : > { %v8375_v7 = vpop.f32.mrb[67].mxu0 }
 0x248   : > { %v11392_v48 = vadd.f32 %v8375_v7, %v8374_v59 }
 0x24c   : > { %v8377_v62 = vpop.f32.mrb[68].mxu0 }
 0x24d   : > { %v8378_v10 = vpop.f32.mrb[69].mxu0 }
 0x24e   : > { %v11394_v60 = vadd.f32 %v8378_v10, %v8377_v62  ;;  %v8380_v2 = vpop.f32.mrb[70].mxu0 }
 0x24f   : > { %v8381_v29 = vpop.f32.mrb[71].mxu0 }
 0x250   : > { %v11396_v35 = vadd.f32 %v8381_v29, %v8380_v2 }
 0x254   : > { %v8383_v15 = vpop.f32.mrb[72].mxu0 }
 0x255   : > { %v8384_v46 = vpop.f32.mrb[73].mxu0 }
 0x256   : > { %v11398_v49 = vadd.f32 %v8384_v46, %v8383_v15  ;;  %v8386_v26 = vpop.f32.mrb[74].mxu0 }
 0x257   : > { %v8387_v41 = vpop.f32.mrb[75].mxu0 }
 0x258   : > { %v11400_v47 = vadd.f32 %v8387_v41, %v8386_v26 }
 0x25c   : > { %v8389_v55 = vpop.f32.mrb[76].mxu0 }
 0x25d   : > { %v8390_v0 = vpop.f32.mrb[77].mxu0  ;;  %v11469_v27 = vpop.permute.xlu0 %3286 }
 0x25e   : > { %v11402_v59 = vadd.f32 %v8390_v0, %v8389_v55  ;;  %v8392_v7 = vpop.f32.mrb[78].mxu0 }
 0x25f   : > { %v8393_v20 = vpop.f32.mrb[79].mxu0 }
 0x260   : > { %v11404_v62 = vadd.f32 %v8393_v20, %v8392_v7 }
 0x264   : > { %v8395_v2 = vpop.f32.mrb[80].mxu0 }
 0x265   : > { %v2487_v10 = vpop.f32.mrb[64].mxu1  ;;  %v8396_v58 = vpop.f32.mrb[81].mxu0 }
 0x266   : > { %v2489_v32 = vpop.f32.mrb[65].mxu1  ;;  %v11408_v46 = vadd.f32 %v8396_v58, %v8395_v2  ;;  %v8398_v26 = vpop.f32.mrb[82].mxu0 }
 0x267   : > { %v2491_v29 = vpop.f32.mrb[66].mxu1  ;;  %v8399_v9 = vpop.f32.mrb[83].mxu0 }
 0x268   : > { %v11406_v23 = vpack.c.bf16 %v2491_v29, %v2487_v10  ;;  %v2493_v15 = vpop.f32.mrb[67].mxu1  ;;  %v11413_v0 = vadd.f32 %v8399_v9, %v8398_v26 }
 0x269   : > { %v11410_v41 = vpack.c.bf16 %v2493_v15, %v2489_v32 }
 0x26a   : > { %8763 = vmatprep.subr.bf16.mxu1 %v11406_v23 }
 0x26b   : > { %13341 = vst [vmem:[#allocation44_spill] sm:$0xff] %v11410_v41  ;;  %8764 = vmatpush3.bf16.msra.mxu1 %v11406_v23 }
 0x26c   : > { %v8401_v55 = vpop.f32.mrb[84].mxu0 }
 0x26d   : > { %v2497_v20 = vpop.f32.mrb[68].mxu1  ;;  %v8402_v31 = vpop.f32.mrb[85].mxu0 }
 0x26e   : > { %v2499_v7 = vpop.f32.mrb[69].mxu1  ;;  %v11416_v10 = vadd.f32 %v8402_v31, %v8401_v55  ;;  %v8404_v29 = vpop.f32.mrb[86].mxu0 }
 0x26f   : > { %v2501_v25 = vpop.f32.mrb[70].mxu1  ;;  %v8405_v32 = vpop.f32.mrb[87].mxu0 }
 0x270   : > { %v11418_v58 = vpack.c.bf16 %v2501_v25, %v2497_v20  ;;  %v2503_v2 = vpop.f32.mrb[71].mxu1  ;;  %v11422_v57 = vadd.f32 %v8405_v32, %v8404_v29 }
 0x271   : > { %v11420_v15 = vpack.c.bf16 %v2503_v2, %v2499_v7 }
 0x272   : > { %8765 = vmatprep.subr.bf16.mxu1 %v11418_v58 }
 0x273   : > { %13342 = vst [vmem:[#allocation45_spill] sm:$0xff] %v11420_v15  ;;  %8766 = vmatpush3.bf16.msra.mxu1 %v11418_v58 }
 0x274   : > { %v8407_v26 = vpop.f32.mrb[88].mxu0 }
 0x275   : > { %v2507_v9 = vpop.f32.mrb[72].mxu1  ;;  %v8408_v45 = vpop.f32.mrb[89].mxu0 }
 0x276   : > { %v2509_v61 = vpop.f32.mrb[73].mxu1  ;;  %v11426_v31 = vadd.f32 %v8408_v45, %v8407_v26  ;;  %v8410_v55 = vpop.f32.mrb[90].mxu0 }
 0x277   : > { %v2511_v19 = vpop.f32.mrb[74].mxu1  ;;  %v8411_v22 = vpop.f32.mrb[91].mxu0 }
 0x278   : > { %v11428_v25 = vpack.c.bf16 %v2511_v19, %v2507_v9  ;;  %v2513_v20 = vpop.f32.mrb[75].mxu1  ;;  %v11432_v29 = vadd.f32 %v8411_v22, %v8410_v55 }
 0x279   : > { %v11430_v7 = vpack.c.bf16 %v2513_v20, %v2509_v61 }
 0x27a   : > { %8767 = vmatprep.subr.bf16.mxu1 %v11428_v25 }
 0x27b   : > { %13343 = vst [vmem:[#allocation46_spill] sm:$0xff] %v11430_v7  ;;  %8768 = vmatpush3.bf16.msra.mxu1 %v11428_v25 }
 0x27c   : > { %v8413_v32 = vpop.f32.mrb[92].mxu0 }
 0x27d   : > { %v2517_v2 = vpop.f32.mrb[76].mxu1  ;;  %v8414_v39 = vpop.f32.mrb[93].mxu0 }
 0x27e   : > { %v2519_v12 = vpop.f32.mrb[77].mxu1  ;;  %v11436_v45 = vadd.f32 %v8414_v39, %v8413_v32  ;;  %v8416_v26 = vpop.f32.mrb[94].mxu0 }
 0x27f   : > { %v2521_v37 = vpop.f32.mrb[78].mxu1  ;;  %v8417_v6 = vpop.f32.mrb[95].mxu0 }
 0x280   : > { %v11438_v19 = vpack.c.bf16 %v2521_v37, %v2517_v2  ;;  %v2523_v9 = vpop.f32.mrb[79].mxu1  ;;  %v11442_v22 = vadd.f32 %v8417_v6, %v8416_v26 }
 0x281   : > { %v11440_v61 = vpack.c.bf16 %v2523_v9, %v2519_v12 }
 0x282   : > { %13344 = vst [vmem:[#allocation47_spill] sm:$0xff] %v11438_v19  ;;  %8769 = vmatprep.subr.bf16.mxu1 %v11438_v19 }
 0x283   : > { %13345 = vst [vmem:[#allocation48_spill] sm:$0xff] %v11440_v61  ;;  %8770 = vmatpush3.bf16.msra.mxu1 %v11438_v19 }
 0x285   : > { %v2527_v55 = vpop.f32.mrb[80].mxu1 }
 0x286   : > { %v2529_v20 = vpop.f32.mrb[81].mxu1 }
 0x287   : > { %v2531_v21 = vpop.f32.mrb[82].mxu1 }
 0x288   : > { %v11446_v4 = vpack.c.bf16 %v2531_v21, %v2527_v55  ;;  %v2533_v39 = vpop.f32.mrb[83].mxu1 }
 0x289   : > { %v11448_v32 = vpack.c.bf16 %v2533_v39, %v2529_v20 }
 0x28a   : > { %13346 = vst [vmem:[#allocation49_spill] sm:$0xff] %v11446_v4  ;;  %8771 = vmatprep.subr.bf16.mxu1 %v11446_v4 }
 0x28b   : > { %13347 = vst [vmem:[#allocation50_spill] sm:$0xff] %v11448_v32  ;;  %8772 = vmatpush3.bf16.msra.mxu1 %v11446_v4 }
 0x28d   : > { %v2537_v37 = vpop.f32.mrb[84].mxu1 }
 0x28e   : > { %v2539_v12 = vpop.f32.mrb[85].mxu1 }
 0x28f   : > { %v2541_v6 = vpop.f32.mrb[86].mxu1 }
 0x290   : > { %v11452_v2 = vpack.c.bf16 %v2541_v6, %v2537_v37  ;;  %v2543_v26 = vpop.f32.mrb[87].mxu1 }
 0x291   : > { %v11454_v9 = vpack.c.bf16 %v2543_v26, %v2539_v12 }
 0x292   : > { %13348 = vst [vmem:[#allocation51_spill] sm:$0xff] %v11452_v2  ;;  %8773 = vmatprep.subr.bf16.mxu1 %v11452_v2 }
 0x293   : > { %13349 = vst [vmem:[#allocation52_spill] sm:$0xff] %v11454_v9  ;;  %8774 = vmatpush3.bf16.msra.mxu1 %v11452_v2 }
 0x295   : > { %v2547_v21 = vpop.f32.mrb[88].mxu1 }
 0x296   : > { %v2549_v55 = vpop.f32.mrb[89].mxu1 }
 0x297   : > { %v2551_v20 = vpop.f32.mrb[90].mxu1 }
 0x298   : > { %v11458_v39 = vpack.c.bf16 %v2551_v20, %v2547_v21  ;;  %v2553_v36 = vpop.f32.mrb[91].mxu1 }
 0x299   : > { %v11460_v3 = vpack.c.bf16 %v2553_v36, %v2549_v55 }
 0x29a   : > { %13350 = vst [vmem:[#allocation53_spill] sm:$0xff] %v11458_v39  ;;  %8775 = vmatprep.subr.bf16.mxu1 %v11458_v39 }
 0x29b   : > { %13351 = vst [vmem:[#allocation54_spill] sm:$0xff] %v11460_v3  ;;  %8776 = vmatpush3.bf16.msra.mxu1 %v11458_v39 }
 0x29d   : > { %v2557_v37 = vpop.f32.mrb[92].mxu1 }
 0x29e   : > { %v2559_v6 = vpop.f32.mrb[93].mxu1 }
 0x29f   : > { %v2561_v12 = vpop.f32.mrb[94].mxu1 }
 0x2a0   : > { %v11464_v26 = vpack.c.bf16 %v2561_v12, %v2557_v37  ;;  %v2563_v1 = vpop.f32.mrb[95].mxu1 }
 0x2a1   : > { %v11466_v56 = vpack.c.bf16 %v2563_v1, %v2559_v6 }
 0x2a2   : > { %13352 = vst [vmem:[#allocation55_spill] sm:$0xff] %v11464_v26  ;;  %8777 = vmatprep.subr.bf16.mxu1 %v11464_v26 }
 0x2a3   : > { %13353 = vst [vmem:[#allocation56_spill] sm:$0xff] %v11466_v56  ;;  %8778 = vmatpush3.bf16.msra.mxu1 %v11464_v26 }
 0x2a4   : > { %9643 = vmatprep.subr.msk.bf16.mxu1 %vm13234_vm0, %v11469_v27 }
 0x2a5   : > { %v8717_v36 = vpop.f32.mrb[96].mxu1 }
 0x2a6   : > { %v2697_v21 = vpop.f32.mrb[97].mxu1  ;;  %v2706_v55 = vadd.f32 %v8717_v36, %v11394_v60 }
 0x2a7   : > { %v2698_v20 = vadd.f32 %v11390_v53, %v2697_v21  ;;  %v8718_v37 = vpop.f32.mrb[98].mxu1 }
 0x2a8   : > { %v2700_v12 = vpop.f32.mrb[99].mxu1  ;;  %v2709_v1 = vadd.f32 %v8718_v37, %v11396_v35 }
 0x2a9   : > { %v2701_v6 = vadd.f32 %v11392_v48, %v2700_v12 }
 0x2aa   : > { %v11478_v54 = vpack.c.bf16 %v2709_v1, %v2706_v55 }
 0x2ab   : > { %v11480_v56 = vpack.c.bf16 %v2701_v6, %v2698_v20 }
 0x2ac   : > { %13354 = vst [vmem:[#allocation57_spill] sm:$0xff] %v11478_v54 }
 0x2ad   : > { %13355 = vst [vmem:[#allocation58_spill] sm:$0xff] %v11480_v56  ;;  %v8721_v3 = vpop.f32.mrb[100].mxu1 }
 0x2ae   : > { %v2713_v5 = vpop.f32.mrb[101].mxu1  ;;  %v2722_v9 = vadd.f32 %v8721_v3, %v11402_v59 }
 0x2af   : > { %v2714_v32 = vadd.f32 %v11398_v49, %v2713_v5  ;;  %v8722_v44 = vpop.f32.mrb[102].mxu1 }
 0x2b0   : > { %v2716_v60 = vpop.f32.mrb[103].mxu1  ;;  %v2725_v53 = vadd.f32 %v8722_v44, %v11404_v62 }
 0x2b1   : > { %v2717_v36 = vadd.f32 %v11400_v47, %v2716_v60 }
 0x2b2   : > { %v11486_v21 = vpack.c.bf16 %v2725_v53, %v2722_v9 }
 0x2b3   : > { %v11488_v35 = vpack.c.bf16 %v2717_v36, %v2714_v32 }
 0x2b4   : > { %13356 = vst [vmem:[#allocation59_spill] sm:$0xff] %v11486_v21 }
 0x2b5   : > { %13357 = vst [vmem:[#allocation60_spill] sm:$0xff] %v11488_v35  ;;  %v8725_v48 = vpop.f32.mrb[104].mxu1 }
 0x2b6   : > { %v2729_v55 = vpop.f32.mrb[105].mxu1  ;;  %v2738_v20 = vadd.f32 %v8725_v48, %v11416_v10 }
 0x2b7   : > { %v2730_v37 = vadd.f32 %v11408_v46, %v2729_v55  ;;  %v8726_v12 = vpop.f32.mrb[106].mxu1 }
 0x2b8   : > { %v2732_v3 = vpop.f32.mrb[107].mxu1  ;;  %v2741_v5 = vadd.f32 %v8726_v12, %v11422_v57 }
 0x2b9   : > { %v2733_v49 = vadd.f32 %v11413_v0, %v2732_v3  ;;  %v2760_v0 = vlaneseq }
 0x2ba   : > { %v11494_v59 = vpack.c.bf16 %v2741_v5, %v2738_v20 }
 0x2bb   : > { %v11496_v44 = vpack.c.bf16 %v2733_v49, %v2730_v37  ;;  %v11506_v53 = vshrl.u32 %v2760_v0, 7  ;;  %v11509_v48 = vand.u32 127, %v2760_v0 }
 0x2bc   : > { %13358 = vst [vmem:[#allocation61_spill] sm:$0xff] %v11494_v59 }
 0x2bd   : > { %13359 = vst [vmem:[#allocation62_spill] sm:$0xff] %v11496_v44  ;;  %v8729_v47 = vpop.f32.mrb[108].mxu1  ;;  %13362 = vst [vmem:[#allocation65_spill] sm:$0xff] %v11506_v53  ;;  %v2763_v36 = vadd.s32 16, %v11506_v53  ;;  %vm11519_vm2 = vcmp.le.s32.totalorder %v11509_v48, %v11506_v53  ;;  %v2767_v49 = vadd.s32 48, %v11506_v53  ;;  %v2774_v15 = vadd.s32 104, %v11506_v53 }
 0x2be   : > { %v2745_v62 = vpop.f32.mrb[109].mxu1  ;;  %v2754_v32 = vadd.f32 %v8729_v47, %v11436_v45  ;;  %v2764_v45 = vadd.s32 24, %v11506_v53 }
 0x2bf   : > { %v2746_v9 = vadd.f32 %v11426_v31, %v2745_v62  ;;  %v8730_v1 = vpop.f32.mrb[110].mxu1  ;;  %vm11512_vm1 = vcmp.le.s32.totalorder %v11509_v48, %v2763_v36  ;;  %vm11556_vm5 = vcmp.le.s32.totalorder %v11509_v48, %v2767_v49  ;;  %v2766_v36 = vadd.s32 40, %v11506_v53 }
 0x2c0   : > { %v2748_v10 = vpop.f32.mrb[111].mxu1  ;;  %v2757_v46 = vadd.f32 %v8730_v1, %v11442_v22  ;;  %v2762_v22 = vadd.s32 8, %v11506_v53  ;;  %vm11534_vm3 = vcmp.le.s32.totalorder %v11509_v48, %v2764_v45  ;;  %vm11681_vm0 = vcmp.le.s32.totalorder %v11509_v48, %v2774_v15 }
 0x2c1   : > { %v2749_v6 = vadd.f32 %v11432_v29, %v2748_v10  ;;  %v13371_v10 = vmov 0  ;;  %vm11585_vm8 = vcmp.le.s32.totalorder %v11509_v48, %v2766_v36  ;;  %v2769_v36 = vadd.s32 64, %v11506_v53 }
 0x2c2   : > { %v11502_v60 = vpack.c.bf16 %v2757_v46, %v2754_v32  ;;  %vm11541_vm4 = vcmp.le.s32.totalorder %v11509_v48, %v2762_v22  ;;  %v2768_v32 = vadd.s32 56, %v11506_v53  ;;  %v13372_v10 = vsel %vm11556_vm5, 4294967295, %v13371_v10 }
 0x2c3   : > { %v11504_v57 = vpack.c.bf16 %v2749_v6, %v2746_v9  ;;  %v2765_v46 = vadd.s32 32, %v11506_v53  ;;  %vm11623_vm11 = vcmp.le.s32.totalorder %v11509_v48, %v2769_v36 }
 0x2c4   : > { %13360 = vst [vmem:[#allocation63_spill] sm:$0xff] %v11502_v60  ;;  %vm11563_vm6 = vcmp.le.s32.totalorder %v11509_v48, %v2768_v32 }
 0x2c5   : > { %13361 = vst [vmem:[#allocation64_spill] sm:$0xff] %v11504_v57  ;;  %vm11579_vm7 = vcmp.le.s32.totalorder %v11509_v48, %v2765_v46 }
 0x2fe   : > { %v8749_v55 = vpop.f32.mrb[96].mxu0 }
 0x2ff   : > { %v2902_v20 = vpop.f32.mrb[97].mxu0  ;;  %v11526_v37 = vsel %vm11512_vm1, %v8749_v55, -1e+30 }
 0x300   : > { %2985 = vmax.xlane.f32.xlu1 %v11526_v37  ;;  %v8750_v12 = vpop.f32.mrb[98].mxu0  ;;  %v11531_v3 = vsel %vm11519_vm2, %v2902_v20, -1e+30  ;;  %v2771_v20 = vadd.s32 80, %v11506_v53 }
 0x301   : > { %2981 = vmax.xlane.f32.xlu0 %v11531_v3  ;;  %v2905_v47 = vpop.f32.mrb[99].mxu0  ;;  %v11548_v9 = vsel %vm11534_vm3, %v8750_v12, -1e+30 }
 0x302   : > { %v11553_v1 = vsel %vm11541_vm4, %v2905_v47, -1e+30  ;;  %v13375_v47 = vmov 0  ;;  %vm11595_vm9 = vcmp.le.s32.totalorder %v11509_v48, %v2771_v20  ;;  %v2770_v20 = vadd.s32 72, %v11506_v53 }
 0x303   : > { %v13376_v47 = vsel %vm11579_vm7, 4294967295, %v13375_v47 }
 0x304   : > { %2987 = vmax.xlane.f32.xlu1 %v11548_v9  ;;  %13377 = vst [vmem:[#allocation66_spill] sm:$0xff] %v13376_v47  ;;  %vm11629_vm12 = vcmp.le.s32.totalorder %v11509_v48, %v2770_v20  ;;  %v2773_v20 = vadd.s32 96, %v11506_v53 }
 0x305   : > { %2983 = vmax.xlane.f32.xlu0 %v11553_v1 }
 0x306   : > { %v8753_v6 = vpop.f32.mrb[100].mxu0  ;;  %vm11655_vm14 = vcmp.le.s32.totalorder %v11509_v48, %v2773_v20  ;;  %v13397_v20 = vmov 0 }
 0x307   : > { %v2918_v45 = vpop.f32.mrb[101].mxu0  ;;  %v11570_v22 = vsel %vm11556_vm5, %v8753_v6, -1e+30  ;;  %v2772_v6 = vadd.s32 88, %v11506_v53  ;;  %v13395_v8 = vsel %vm11655_vm14, 4294967295, %v13394_v8 }
 0x308   : > { %v8754_v55 = vpop.f32.mrb[102].mxu0  ;;  %v11592_v60 = vsel %vm11579_vm7, %v2918_v45, -1e+30  ;;  %v13383_v45 = vmov 0  ;;  %13396 = vst [vmem:[#allocation71_spill] sm:$0xff] %v13395_v8 }
 0x309   : > { %2993 = vmax.xlane.f32.xlu0 %v11570_v22  ;;  %v2921_v12 = vpop.f32.mrb[103].mxu0  ;;  %v11576_v49 = vsel %vm11563_vm6, %v8754_v55, -1e+30  ;;  %v13380_v55 = vmov 0  ;;  %vm11607_vm10 = vcmp.le.s32.totalorder %v11509_v48, %v2772_v6  ;;  %v13385_v6 = vmov 0 }
 0x30a   : > { %2995 = vmax.xlane.f32.xlu1 %v11576_v49  ;;  %v13381_v55 = vsel %vm11595_vm9, 4294967295, %v13380_v55  ;;  %v11602_v46 = vsel %vm11585_vm8, %v2921_v12, -1e+30  ;;  %v13384_v45 = vsel %vm11607_vm10, 4294967295, %v13383_v45  ;;  %v2775_v12 = vadd.s32 112, %v11506_v53 }
 0x30b   : > { %13382 = vst [vmem:[#allocation67_spill] sm:$0xff] %v13381_v55  ;;  %v13386_v6 = vsel %vm11623_vm11, 4294967295, %v13385_v6 }
 0x30c   : > { %13387 = vst [vmem:[#allocation68_spill] sm:$0xff] %v13386_v6  ;;  %vm11638_vm13 = vcmp.le.s32.totalorder %v11509_v48, %v2775_v12 }
 0x30d   : > { %2989 = vmax.xlane.f32.xlu0 %v11592_v60 }
 0x30e   : > { %2991 = vmax.xlane.f32.xlu1 %v11602_v46  ;;  %v8757_v57 = vpop.f32.mrb[104].mxu0 }
 0x30f   : > { %v2934_v59 = vpop.f32.mrb[105].mxu0  ;;  %v11614_v44 = vsel %vm11595_vm9, %v8757_v57, -1e+30  ;;  %v13388_v57 = vmov 0 }
 0x310   : > { %v8758_v21 = vpop.f32.mrb[106].mxu0  ;;  %v13389_v57 = vsel %vm11629_vm12, 4294967295, %v13388_v57  ;;  %v11635_v56 = vsel %vm11623_vm11, %v2934_v59, -1e+30 }
 0x311   : > { %3001 = vmax.xlane.f32.xlu0 %v11614_v44  ;;  %v2937_v35 = vpop.f32.mrb[107].mxu0  ;;  %v11620_v54 = vsel %vm11607_vm10, %v8758_v21, -1e+30  ;;  %13390 = vst [vmem:[#allocation69_spill] sm:$0xff] %v13389_v57  ;;  %v13391_v21 = vmov 0 }
 0x312   : > { %3003 = vmax.xlane.f32.xlu1 %v11620_v54  ;;  %v13392_v21 = vsel %vm11638_vm13, 4294967295, %v13391_v21  ;;  %v11645_v36 = vsel %vm11629_vm12, %v2937_v35, -1e+30 }
 0x313   : > { %13393 = vst [vmem:[#allocation70_spill] sm:$0xff] %v13392_v21 }
 0x315   : > { %2997 = vmax.xlane.f32.xlu0 %v11635_v56 }
 0x316   : > { %2999 = vmax.xlane.f32.xlu1 %v11645_v36  ;;  %v8761_v61 = vpop.f32.mrb[108].mxu0 }
 0x317   : > { %v2950_v7 = vpop.f32.mrb[109].mxu0  ;;  %v11651_v59 = vsel %vm11638_vm13, %v8761_v61, -1e+30  ;;  %v2776_v61 = vadd.s32 120, %v11506_v53 }
 0x318   : > { %v8762_v12 = vpop.f32.mrb[110].mxu0  ;;  %v11661_v35 = vsel %vm11655_vm14, %v2950_v7, -1e+30 }
 0x319   : > { %3009 = vmax.xlane.f32.xlu0 %v11651_v59  ;;  %v2953_v43 = vpop.f32.mrb[111].mxu0  ;;  %vm11670_vm15 = vcmp.le.s32.totalorder %v11509_v48, %v2776_v61  ;;  %v11690_v61 = vpop.permute.xlu1 %3288 }
 0x31a   : > { %v13398_v20 = vsel %vm11670_vm15, 4294967295, %v13397_v20  ;;  %v11677_v7 = vsel %vm11670_vm15, %v8762_v12, -1e+30 }
 0x31b   : > { %13399 = vst [vmem:[#allocation72_spill] sm:$0xff] %v13398_v20 }
 0x31d   : > { %3005 = vmax.xlane.f32.xlu0 %v11661_v35 }
 0x327   : > { %3292 = vrot.lane.b32.xlu1 %v11306_v42, %s10724_s21  ;;  %v13400_v42 = vmov 0 }
 0x328   : > { %v13401_v42 = vsel %vm11681_vm0, 4294967295, %v13400_v42 }
 0x329   : > { %13402 = vst [vmem:[#allocation73_spill] sm:$0xff] %v13401_v42 }
 0x333   : > { %3290 = vrot.lane.b32.xlu0 %v11298_v34, %s10724_s21  ;;  %v11687_v34 = vsel %vm11681_vm0, %v2953_v43, -1e+30  ;;  %vm13403_vm0 = vcmask 523264  }
 0x334   : > { %vm13404_vm15 = vmmov %vm13403_vm0 }
 0x335   : > { %vm13405_vm14 = vmmov %vm13403_vm0 }
 0x336   : > { %vm13406_vm13 = vmmov %vm13403_vm0 }
 0x337   : > { %vm13407_vm11 = vmmov %vm13403_vm0 }
 0x338   : > { %vm13408_vm12 = vmmov %vm13403_vm0 }
 0x339   : > { %vm13409_vm9 = vmmov %vm13403_vm0 }
 0x33a   : > { %vm13422_vm10 = vmmov %vm13403_vm0 }
 0x34b   : > { %3011 = vmax.xlane.f32.xlu1 %v11677_v7 }
 0x34f   : > { %3007 = vmax.xlane.f32.xlu1 %v11687_v34 }
 0x38d   : > { %v2986_v53 = vpop.xlane.xlu1 %2985 }
 0x38e   : > { %v3015_v41 = vsub.f32 %v11526_v37, %v2986_v53  ;;  %v2982_v12 = vpop.xlane.xlu0 %2981 }
 0x38f   : > { %v3013_v50 = vsub.f32 %v11531_v3, %v2982_v12 }
 0x390   : > { %v3033_v33 = vmul.f32 1.442695, %v3015_v41 }
 0x391   : > { %v3029_v14 = vmul.f32 1.442695, %v3013_v50  ;;  %v2988_v15 = vpop.xlane.xlu1 %2987 }
 0x392   : > { %10172 = vpow2.f32 %v3033_v33  ;;  %v3016_v48 = vsub.f32 %v11548_v9, %v2988_v15  ;;  %v2984_v30 = vpop.xlane.xlu0 %2983 }
 0x393   : > { %v3014_v43 = vsub.f32 %v11553_v1, %v2984_v30  ;;  %10174 = vpow2.f32 %v3029_v14 }
 0x394   : > { %v3035_v39 = vmul.f32 1.442695, %v3016_v48 }
 0x395   : > { %v3031_v26 = vmul.f32 1.442695, %v3014_v43 }
 0x396   : > { %10176 = vpow2.f32 %v3035_v39  ;;  %v2994_v30 = vpop.xlane.xlu0 %2993 }
 0x397   : > { %10178 = vpow2.f32 %v3031_v26  ;;  %v2996_v39 = vpop.xlane.xlu1 %2995  ;;  %v3019_v3 = vsub.f32 %v11570_v22, %v2994_v30 }
 0x398   : > { %v3020_v43 = vsub.f32 %v11576_v49, %v2996_v39 }
 0x399   : > { %v3041_v12 = vmul.f32 1.442695, %v3019_v3 }
 0x39a   : > { %v2990_v14 = vpop.xlane.xlu0 %2989  ;;  %v3043_v19 = vmul.f32 1.442695, %v3020_v43 }
 0x39b   : > { %v2992_v37 = vpop.xlane.xlu1 %2991  ;;  %v3017_v9 = vsub.f32 %v11592_v60, %v2990_v14  ;;  %10180 = vpow2.f32 %v3041_v12 }
 0x39c   : > { %v11696_v2 = vpop.eup %10172  ;;  %v3018_v15 = vsub.f32 %v11602_v46, %v2992_v37 }
 0x39d   : > { %3065 = vadd.xlane.f32.xlu0 %v11696_v2  ;;  %v11699_v53 = vpop.eup %10174  ;;  %v3037_v42 = vmul.f32 1.442695, %v3017_v9 }
 0x39e   : > { %v3002_v50 = vpop.xlane.xlu0 %3001 }
 0x39f   : > { %v3004_v48 = vpop.xlane.xlu1 %3003  ;;  %10182 = vpow2.f32 %v3037_v42  ;;  %v3023_v4 = vsub.f32 %v11614_v44, %v3002_v50 }
 0x3a0   : > { %v11701_v41 = vpop.eup %10176  ;;  %v3024_v44 = vsub.f32 %v11620_v54, %v3004_v48 }
 0x3a1   : > { %3061 = vadd.xlane.f32.xlu0 %v11699_v53  ;;  %3067 = vadd.xlane.f32.xlu1 %v11701_v41  ;;  %v11705_v33 = vpop.eup %10178  ;;  %v3049_v46 = vmul.f32 1.442695, %v3023_v4 }
 0x3a2   : > { %v2998_v26 = vpop.xlane.xlu0 %2997  ;;  %v3051_v4 = vmul.f32 1.442695, %v3024_v44 }
 0x3a3   : > { %v3000_v22 = vpop.xlane.xlu1 %2999  ;;  %v3021_v14 = vsub.f32 %v11635_v56, %v2998_v26 }
 0x3a5   : > { %3063 = vadd.xlane.f32.xlu1 %v11705_v33  ;;  %v11722_v37 = vpop.eup %10180 }
 0x3a6   : > { %v3010_v1 = vpop.xlane.xlu0 %3009 }
 0x3a7   : > { %v11720_v39 = vpop.permute.xlu1 %3292 }
 0x3a9   : > { %v11726_v42 = vpop.eup %10182 }
 0x3aa   : > { %v3006_v20 = vpop.xlane.xlu0 %3005 }
 0x3ab   : > { %v3025_v30 = vsub.f32 %v11661_v35, %v3006_v20  ;;  %v3022_v20 = vsub.f32 %v11645_v36, %v3000_v22 }
 0x3ad   : > { %v3053_v49 = vmul.f32 1.442695, %v3025_v30 }
 0x3b6   : > { %3296 = vrot.lane.b32.xlu1 %v11328_v24, %s10724_s21  ;;  %v3039_v24 = vmul.f32 1.442695, %v3018_v15 }
 0x3b7   : > { %3294 = vrot.lane.b32.xlu0 %v11316_v18, %s10724_s21  ;;  %v3027_v18 = vsub.f32 %v11651_v59, %v3010_v1  ;;  %v3045_v59 = vmul.f32 1.442695, %v3021_v14 }
 0x3b8   : > { %10184 = vpow2.f32 %v3039_v24 }
 0x3b9   : > { %v3057_v60 = vmul.f32 1.442695, %v3027_v18  ;;  %10186 = vpow2.f32 %v3043_v19 }
 0x3bb   : > { %10188 = vpow2.f32 %v3057_v60  ;;  %v3327_v60 = vsel %vm13403_vm0, %v11469_v27, 0 }
 0x3bc   : > { %10190 = vpow2.f32 %v3049_v46 }
 0x3bd   : > { %10192 = vpow2.f32 %v3053_v49 }
 0x3be   : > { %10194 = vpow2.f32 %v3045_v59 }
 0x3c2   : > { %v11728_v19 = vpop.eup %10184 }
 0x3c3   : > { %v11734_v26 = vpop.eup %10186 }
 0x3c5   : > { %v11736_v3 = vpop.eup %10188 }
 0x3c6   : > { %v11741_v1 = vpop.eup %10190 }
 0x3c7   : > { %v11743_v12 = vpop.eup %10192 }
 0x3c8   : > { %v11747_v15 = vpop.eup %10194 }
 0x3d6   : > { %3073 = vadd.xlane.f32.xlu0 %v11722_v37 }
 0x3d8   : > { %v3012_v35 = vpop.xlane.xlu1 %3011 }
 0x3d9   : > { %v3028_v56 = vsub.f32 %v11677_v7, %v3012_v35  ;;  %v3047_v7 = vmul.f32 1.442695, %v3022_v20 }
 0x3da   : > { %3071 = vadd.xlane.f32.xlu0 %v11728_v19  ;;  %3069 = vadd.xlane.f32.xlu1 %v11726_v42 }
 0x3db   : > { %v3059_v50 = vmul.f32 1.442695, %v3028_v56 }
 0x3dc   : > { %v3008_v54 = vpop.xlane.xlu1 %3007 }
 0x3dd   : > { %10196 = vpow2.f32 %v3059_v50  ;;  %v3026_v9 = vsub.f32 %v11687_v34, %v3008_v54 }
 0x3de   : > { %3089 = vadd.xlane.f32.xlu0 %v11736_v3  ;;  %3075 = vadd.xlane.f32.xlu1 %v11734_v26  ;;  %10198 = vpow2.f32 %v3051_v4 }
 0x3df   : > { %10200 = vpow2.f32 %v3047_v7  ;;  %v3055_v36 = vmul.f32 1.442695, %v3026_v9 }
 0x3e1   : > { %10202 = vpow2.f32 %v3055_v36 }
 0x3e2   : > { %3085 = vadd.xlane.f32.xlu0 %v11743_v12  ;;  %3081 = vadd.xlane.f32.xlu1 %v11741_v1 }
 0x3e6   : > { %3077 = vadd.xlane.f32.xlu1 %v11747_v15 }
 0x3e7   : > { %v11750_v48 = vpop.eup %10196 }
 0x3e8   : > { %3091 = vadd.xlane.f32.xlu0 %v11750_v48  ;;  %v11753_v34 = vpop.eup %10198 }
 0x3e9   : > { %v11756_v43 = vpop.eup %10200 }
 0x3ea   : > { %3083 = vadd.xlane.f32.xlu1 %v11753_v34 }
 0x3eb   : > { %v11759_v24 = vpop.eup %10202 }
 0x3ee   : > { %3079 = vadd.xlane.f32.xlu1 %v11756_v43 }
 0x3f2   : > { %3087 = vadd.xlane.f32.xlu1 %v11759_v24 }
 0x3fe   : > { %3298 = vrot.lane.b32.xlu0 %v11340_v11, %s10724_s21 }
 0x402   : > { %3262 = vrot.lane.b32.xlu0 %v11173_v16, %s10724_s21  ;;  %v3291_v16 = vpop.permute.xlu0 %3290 }
 0x403   : > { %3300 = vrot.lane.b32.xlu1 %v11352_v40, %s10724_s21 }
 0x406   : > { %3266 = vrot.lane.b32.xlu0 %v11206_v52, %s10724_s21 }
 0x407   : > { %3264 = vrot.lane.b32.xlu1 %v11189_v38, %s10724_s21 }
 0x40a   : > { %3270 = vrot.lane.b32.xlu0 %v11238_v13, %s10724_s21 }
 0x40b   : > { %3268 = vrot.lane.b32.xlu1 %v11226_v28, %s10724_s21 }
 0x40e   : > { %3274 = vrot.lane.b32.xlu0 %v11261_v63, %s10724_s21 }
 0x40f   : > { %3272 = vrot.lane.b32.xlu1 %v11251_v51, %s10724_s21 }
 0x412   : > { %3623 = vrot.lane.b32.xlu0 %v11406_v23, %s10724_s21 }
 0x413   : > { %3276 = vrot.lane.b32.xlu1 %v11271_v17, %s10724_s21 }
 0x416   : > { %3627 = vrot.lane.b32.xlu0 %v11428_v25, %s10724_s21 }
 0x417   : > { %3625 = vrot.lane.b32.xlu1 %v11418_v58, %s10724_s21 }
 0x42a   : > { %v3066_v38 = vpop.xlane.xlu0 %3065 }
 0x42e   : > { %v3062_v52 = vpop.xlane.xlu0 %3061  ;;  %v3068_v28 = vpop.xlane.xlu1 %3067 }
 0x42f   : > { %10204 = vrcp.f32 %v3068_v28 }
 0x430   : > { %10206 = vrcp.f32 %v3062_v52 }
 0x431   : > { %10208 = vrcp.f32 %v3066_v38 }
 0x432   : > { %v3064_v13 = vpop.xlane.xlu1 %3063  ;;  %v3295_v27 = vpop.permute.xlu0 %3294 }
 0x433   : > { %10210 = vrcp.f32 %v3064_v13 }
 0x439   : > { %v10205_v51 = vpop.eup %10204 }
 0x43a   : > { %v10207_v63 = vpop.eup %10206  ;;  %v3112_v17 = vmul.f32 %v10205_v51, %v11701_v41  ;;  %v3330_v41 = vsel %vm13405_vm14, %v11690_v61, 0  ;;  %vm13411_vm14 = vmmov %vm13403_vm0 }
 0x43b   : > { %v10209_v23 = vpop.eup %10208  ;;  %v3109_v40 = vmul.f32 %v10207_v63, %v11699_v53  ;;  %v3333_v53 = vsel %vm13407_vm11, %v3291_v16, 0  ;;  %vm13412_vm11 = vmmov %vm13403_vm0 }
 0x43c   : > { %v3111_v58 = vmul.f32 %v10209_v23, %v11696_v2  ;;  %v3336_v2 = vsel %vm13409_vm9, %v11720_v39, 0  ;;  %vm13413_vm9 = vmmov %vm13403_vm0 }
 0x43d   : > { %v10211_v11 = vpop.eup %10210 }
 0x43e   : > { %v3110_v25 = vmul.f32 %v10211_v11, %v11705_v33  ;;  %v3126_v22 = vpack.c.bf16 %v3112_v17, %v3111_v58  ;;  %v3297_v33 = vpop.permute.xlu1 %3296 }
 0x43f   : > { %v3342_v44 = vsel %vm13412_vm11, %v3297_v33, 0  ;;  %vm13418_vm11 = vmmov %vm13403_vm0 }
 0x440   : > { %v3125_v18 = vpack.c.bf16 %v3110_v25, %v3109_v40 }
 0x442   : > { %8779 = vmatprep.mubr.bf16.mxu1 %v3125_v18 }
 0x443   : > { %8780 = vmatmul.mubr.bf16.vlgmr.msra.gmra.mrb[112].mxu1 %v3126_v22 }
 0x444   : > { %8796 = vmatpush3.bf16.xpose.msra.mxu1 %v3327_v60 }
 0x445   : > { %9644 = vmatprep.subr.msk.bf16.mxu1 %vm13404_vm15, %v11690_v61  ;;  %vm13410_vm15 = vmmov %vm13403_vm0 }
 0x446   : > { %v3339_v61 = vsel %vm13410_vm15, %v3295_v27, 0  ;;  %vm13416_vm15 = vmmov %vm13403_vm0 }
 0x44c   : > { %8798 = vmatpush3.bf16.xpose.msra.mxu1 %v3330_v41 }
 0x44d   : > { %9645 = vmatprep.subr.msk.bf16.mxu1 %vm13406_vm13, %v3291_v16  ;;  %vm13415_vm13 = vmmov %vm13403_vm0 }
 0x454   : > { %8800 = vmatpush3.bf16.xpose.msra.mxu1 %v3333_v53 }
 0x455   : > { %9646 = vmatprep.subr.msk.bf16.mxu1 %vm13408_vm12, %v11720_v39  ;;  %vm13414_vm12 = vmmov %vm13403_vm0 }
 0x45c   : > { %8802 = vmatpush3.bf16.xpose.msra.mxu1 %v3336_v2 }
 0x45d   : > { %9647 = vmatprep.subr.msk.bf16.mxu1 %vm13403_vm0, %v3295_v27 }
 0x463   : > { %v3074_v30 = vpop.xlane.xlu0 %3073 }
 0x464   : > { %8804 = vmatpush3.bf16.xpose.msra.mxu1 %v3339_v61 }
 0x465   : > { %9648 = vmatprep.subr.msk.bf16.mxu1 %vm13411_vm14, %v3297_v33  ;;  %vm13417_vm14 = vmmov %vm13403_vm0 }
 0x467   : > { %v3072_v46 = vpop.xlane.xlu0 %3071  ;;  %v3070_v14 = vpop.xlane.xlu1 %3069 }
 0x468   : > { %10212 = vrcp.f32 %v3072_v46 }
 0x469   : > { %10214 = vrcp.f32 %v3070_v14 }
 0x46a   : > { %10216 = vrcp.f32 %v3074_v30 }
 0x46b   : > { %v3090_v49 = vpop.xlane.xlu0 %3089  ;;  %v3076_v39 = vpop.xlane.xlu1 %3075 }
 0x46c   : > { %8806 = vmatpush3.bf16.xpose.msra.mxu1 %v3342_v44  ;;  %10218 = vrcp.f32 %v3076_v39 }
 0x46f   : > { %v3082_v59 = vpop.xlane.xlu1 %3081  ;;  %v3086_v35 = vpop.xlane.xlu0 %3085 }
 0x472   : > { %v10213_v56 = vpop.eup %10212 }
 0x473   : > { %v10215_v4 = vpop.eup %10214  ;;  %v3078_v20 = vpop.xlane.xlu1 %3077  ;;  %v3114_v50 = vmul.f32 %v10213_v56, %v11728_v19 }
 0x474   : > { %v3113_v54 = vmul.f32 %v10215_v4, %v11726_v42  ;;  %v10217_v7 = vpop.eup %10216 }
 0x475   : > { %v3092_v9 = vpop.xlane.xlu0 %3091  ;;  %v3115_v52 = vmul.f32 %v10217_v7, %v11722_v37 }
 0x476   : > { %v3127_v36 = vpack.c.bf16 %v3114_v50, %v3113_v54  ;;  %v10219_v16 = vpop.eup %10218 }
 0x477   : > { %v3084_v38 = vpop.xlane.xlu1 %3083  ;;  %v3116_v28 = vmul.f32 %v10219_v16, %v11734_v26 }
 0x478   : > { %8783 = vmatprep.mubr.bf16.mxu1 %v3127_v36  ;;  %10220 = vrcp.f32 %v3084_v38 }
 0x479   : > { %v3299_v13 = vpop.permute.xlu0 %3298  ;;  %10222 = vrcp.f32 %v3078_v20  ;;  %v3128_v51 = vpack.c.bf16 %v3116_v28, %v3115_v52 }
 0x47a   : > { %9649 = vmatprep.subr.msk.bf16.mxu1 %vm13413_vm9, %v3299_v13  ;;  %v3345_v19 = vsel %vm13414_vm12, %v3299_v13, 0  ;;  %10224 = vrcp.f32 %v3082_v59  ;;  %vm13419_vm9 = vmmov %vm13403_vm0 }
 0x47b   : > { %8808 = vmatpush3.bf16.xpose.msra.mxu1 %v3345_v19  ;;  %v3080_v42 = vpop.xlane.xlu1 %3079  ;;  %vm13420_vm12 = vmmov %vm13403_vm0 }
 0x47c   : > { %8784 = vmatmul.mubr.bf16.gmra.mrb[116].mxu1 %v3128_v51  ;;  %10226 = vrcp.f32 %v3080_v42 }
 0x47d   : > { %v3263_v63 = vpop.permute.xlu0 %3262  ;;  %10228 = vrcp.f32 %v3086_v35 }
 0x47f   : > { %v3088_v23 = vpop.xlane.xlu1 %3087 }
 0x480   : > { %10230 = vrcp.f32 %v3088_v23 }
 0x481   : > { %10232 = vrcp.f32 %v3092_v9  ;;  %v3267_v37 = vpop.permute.xlu0 %3266 }
 0x482   : > { %v10221_v26 = vpop.eup %10220  ;;  %10234 = vrcp.f32 %v3090_v49 }
 0x483   : > { %v3301_v11 = vpop.permute.xlu1 %3300  ;;  %v10223_v17 = vpop.eup %10222  ;;  %v3120_v22 = vmul.f32 %v10221_v26, %v11753_v34 }
 0x484   : > { %9650 = vmatprep.subr.msk.bf16.mxu1 %vm13415_vm13, %v3301_v11  ;;  %v3348_v40 = vsel %vm13403_vm0, %v3301_v11, 0  ;;  %v10225_v25 = vpop.eup %10224  ;;  %v3117_v41 = vmul.f32 %v10223_v17, %v11747_v15  ;;  %vm13421_vm13 = vmmov %vm13403_vm0 }
 0x485   : > { %v3271_v58 = vpop.permute.xlu0 %3270  ;;  %8810 = vmatpush3.bf16.xpose.msra.mxu1 %v3348_v40  ;;  %v3119_v27 = vmul.f32 %v10225_v25, %v11741_v1 }
 0x486   : > { %v10227_v18 = vpop.eup %10226 }
 0x487   : > { %v3265_v60 = vpop.permute.xlu1 %3264  ;;  %v3118_v53 = vmul.f32 %v10227_v18, %v11756_v43  ;;  %v10229_v2 = vpop.eup %10228  ;;  %v3130_v46 = vpack.c.bf16 %v3120_v22, %v3119_v27 }
 0x488   : > { %v3121_v44 = vmul.f32 %v10229_v2, %v11743_v12 }
 0x489   : > { %v3275_v33 = vpop.permute.xlu0 %3274  ;;  %v3129_v30 = vpack.c.bf16 %v3118_v53, %v3117_v41 }
 0x48a   : > { %v10231_v61 = vpop.eup %10230 }
 0x48b   : > { %v10233_v14 = vpop.eup %10232  ;;  %8787 = vmatprep.mubr.bf16.mxu1 %v3129_v30  ;;  %v3269_v49 = vpop.permute.xlu1 %3268  ;;  %v3122_v39 = vmul.f32 %v10231_v61, %v11759_v24 }
 0x48c   : > { %8788 = vmatmul.mubr.bf16.gmra.mrb[120].mxu1 %v3130_v46  ;;  %v10235_v34 = vpop.eup %10234  ;;  %v3124_v43 = vmul.f32 %v10233_v14, %v11750_v48 }
 0x48d   : > { %v3624_v59 = vpop.permute.xlu0 %3623  ;;  %v3131_v15 = vpack.c.bf16 %v3122_v39, %v3121_v44  ;;  %v3123_v35 = vmul.f32 %v10235_v34, %v11736_v3 }
 0x48e   : > { %8827 = vmatprep.subr.bf16.mxu0 %v3624_v59 }
 0x48f   : > { %8791 = vmatprep.mubr.bf16.mxu1 %v3131_v15  ;;  %8828 = vmatpush3.bf16.msra.mxu0 %v3624_v59  ;;  %v3273_v1 = vpop.permute.xlu1 %3272  ;;  %v3132_v56 = vpack.c.bf16 %v3124_v43, %v3123_v35 }
 0x491   : > { %v3628_v24 = vpop.permute.xlu0 %3627 }
 0x493   : > { %v3277_v4 = vpop.permute.xlu1 %3276 }
 0x494   : > { %8792 = vmatmul.mubr.bf16.gmra.mrb[124].mxu1 %v3132_v56 }
 0x495   : > { %8811 = vmatprep.mubr.msk.bf16.mxu1 %vm13416_vm15, %v3263_v63  ;;  %vm13424_vm15 = vnez %v13381_v55 }
 0x497   : > { %v3626_v12 = vpop.permute.xlu1 %3625 }
 0x498   : > { %8829 = vmatprep.subr.bf16.mxu0 %v3626_v12 }
 0x499   : > { %8830 = vmatpush3.bf16.msra.mxu0 %v3626_v12 }
 0x49a   : > { %8831 = vmatprep.subr.bf16.mxu0 %v3628_v24 }
 0x49c   : > { %8812 = vmatmul.mubr.msk.bf16.vlgmr.msra.gmra.mrb[128].mxu1 %vm13417_vm14, %v3265_v60  ;;  %vm13425_vm14 = vnez %v13389_v57 }
 0x49d   : > { %8815 = vmatprep.mubr.msk.bf16.mxu1 %vm13418_vm11, %v3267_v37  ;;  %8832 = vmatpush3.bf16.msra.mxu0 %v3628_v24  ;;  %vm13426_vm11 = vnez %v13386_v6 }
 0x4a4   : > { %8816 = vmatmul.mubr.msk.bf16.gmra.mrb[132].mxu1 %vm13419_vm9, %v3269_v49  ;;  %vm13427_vm9 = vnez %v13392_v21 }
 0x4a5   : > { %8819 = vmatprep.mubr.msk.bf16.mxu1 %vm13420_vm12, %v3271_v58  ;;  %vm13428_vm12 = vnez %v13395_v8 }
 0x4ac   : > { %8820 = vmatmul.mubr.msk.bf16.gmra.mrb[136].mxu1 %vm13421_vm13, %v3273_v1 }
 0x4ad   : > { %8823 = vmatprep.mubr.msk.bf16.mxu1 %vm13403_vm0, %v3275_v33 }
 0x4b4   : > { %8824 = vmatmul.mubr.msk.bf16.gmra.mrb[140].mxu1 %vm13422_vm10, %v3277_v4  ;;  %vm13423_vm10 = vnez %v13384_v45 }
 0x516   : > { %v8781_v3 = vpop.f32.mrb[112].mxu1 }
 0x517   : > { %v3167_v48 = vpop.f32.mrb[113].mxu1 }
 0x518   : > { %v8782_v20 = vpop.f32.mrb[114].mxu1 }
 0x519   : > { %v11832_v50 = vpack.c.bf16 %v8782_v20, %v8781_v3  ;;  %v3170_v54 = vpop.f32.mrb[115].mxu1 }
 0x51a   : > { %v11834_v7 = vpack.c.bf16 %v3170_v54, %v3167_v48 }
 0x54f   : > { %v8785_v9 = vpop.f32.mrb[116].mxu1 }
 0x550   : > { %v3183_v36 = vpop.f32.mrb[117].mxu1 }
 0x551   : > { %v8786_v16 = vpop.f32.mrb[118].mxu1 }
 0x552   : > { %v11836_v38 = vpack.c.bf16 %v8786_v16, %v8785_v9  ;;  %v3186_v52 = vpop.f32.mrb[119].mxu1  ;;  %v13429_v9 = vld [vmem:[#allocation49_spill] sm:$0xff]  ;;  %v13431_v16 = vld [vmem:[#allocation72_spill] sm:$0xff] }
 0x553   : > { %v11838_v28 = vpack.c.bf16 %v3186_v52, %v3183_v36  ;;  %v13430_v36 = vld [vmem:[#allocation47_spill] sm:$0xff]  ;;  %vm13432_vm13 = vnez %v13431_v16 }
 0x55f   : > { %v8789_v13 = vpop.f32.mrb[120].mxu1 }
 0x560   : > { %v3199_v51 = vpop.f32.mrb[121].mxu1 }
 0x561   : > { %v8790_v19 = vpop.f32.mrb[122].mxu1 }
 0x562   : > { %v11840_v42 = vpack.c.bf16 %v8790_v19, %v8789_v13  ;;  %v3202_v63 = vpop.f32.mrb[123].mxu1  ;;  %v13433_v13 = vld [vmem:[#allocation73_spill] sm:$0xff]  ;;  %v13435_v19 = vld [vmem:[#allocation51_spill] sm:$0xff] }
 0x563   : > { %v11842_v23 = vpack.c.bf16 %v3202_v63, %v3199_v51  ;;  %vm13434_vm0 = vnez %v13433_v13 }
 0x567   : > { %v8793_v37 = vpop.f32.mrb[124].mxu1 }
 0x568   : > { %v3215_v26 = vpop.f32.mrb[125].mxu1 }
 0x569   : > { %v8794_v11 = vpop.f32.mrb[126].mxu1 }
 0x56a   : > { %v11844_v17 = vpack.c.bf16 %v8794_v11, %v8793_v37  ;;  %v3218_v40 = vpop.f32.mrb[127].mxu1 }
 0x56b   : > { %v11846_v25 = vpack.c.bf16 %v3218_v40, %v3215_v26 }
 0x56f   : > { %v8813_v58 = vpop.f32.mrb[128].mxu1 }
 0x570   : > { %v3384_v18 = vpop.f32.mrb[129].mxu1  ;;  %v3449_v22 = vsel %vm11512_vm1, %v8813_v58, -1e+30 }
 0x571   : > { %3467 = vmax.xlane.f32.xlu0 %v3449_v22  ;;  %v8814_v60 = vpop.f32.mrb[130].mxu1  ;;  %v3447_v2 = vsel %vm11519_vm2, %v3384_v18, -1e+30 }
 0x572   : > { %v3387_v41 = vpop.f32.mrb[131].mxu1  ;;  %v3450_v30 = vsel %vm11534_vm3, %v8814_v60, -1e+30 }
 0x573   : > { %v3448_v53 = vsel %vm11541_vm4, %v3387_v41, -1e+30 }
 0x574   : > { %3465 = vmax.xlane.f32.xlu1 %v3448_v53 }
 0x575   : > { %3463 = vmax.xlane.f32.xlu0 %v3447_v2 }
 0x577   : > { %v8817_v27 = vpop.f32.mrb[132].mxu1 }
 0x578   : > { %v3400_v33 = vpop.f32.mrb[133].mxu1  ;;  %v3453_v49 = vsel %vm11556_vm5, %v8817_v27, -1e+30 }
 0x579   : > { %3469 = vmax.xlane.f32.xlu0 %v3450_v30  ;;  %v8818_v61 = vpop.f32.mrb[134].mxu1  ;;  %v3451_v59 = vsel %vm11579_vm7, %v3400_v33, -1e+30 }
 0x57a   : > { %v3403_v46 = vpop.f32.mrb[135].mxu1  ;;  %v11858_v14 = vsel %vm11563_vm6, %v8818_v61, -1e+30 }
 0x57b   : > { %3477 = vmax.xlane.f32.xlu1 %v11858_v14  ;;  %v3452_v44 = vsel %vm11585_vm8, %v3403_v46, -1e+30 }
 0x57d   : > { %3475 = vmax.xlane.f32.xlu0 %v3453_v49 }
 0x57f   : > { %3473 = vmax.xlane.f32.xlu1 %v3452_v44  ;;  %v8821_v39 = vpop.f32.mrb[136].mxu1 }
 0x580   : > { %v3416_v34 = vpop.f32.mrb[137].mxu1  ;;  %v3457_v35 = vsel %vm13424_vm15, %v8821_v39, -1e+30 }
 0x581   : > { %3471 = vmax.xlane.f32.xlu0 %v3451_v59  ;;  %v8822_v15 = vpop.f32.mrb[138].mxu1  ;;  %v11881_v24 = vsel %vm13426_vm11, %v3416_v34, -1e+30 }
 0x582   : > { %v3419_v43 = vpop.f32.mrb[139].mxu1  ;;  %v11869_v1 = vsel %vm13423_vm10, %v8822_v15, -1e+30 }
 0x583   : > { %3485 = vmax.xlane.f32.xlu1 %v11869_v1  ;;  %v11876_v56 = vsel %vm13425_vm14, %v3419_v43, -1e+30 }
 0x585   : > { %3483 = vmax.xlane.f32.xlu0 %v3457_v35 }
 0x587   : > { %3481 = vmax.xlane.f32.xlu1 %v11876_v56  ;;  %v8825_v4 = vpop.f32.mrb[140].mxu1 }
 0x588   : > { %v3432_v12 = vpop.f32.mrb[141].mxu1  ;;  %v11886_v20 = vsel %vm13427_vm9, %v8825_v4, -1e+30 }
 0x589   : > { %3479 = vmax.xlane.f32.xlu0 %v11881_v24  ;;  %v8826_v3 = vpop.f32.mrb[142].mxu1  ;;  %v11891_v54 = vsel %vm13428_vm12, %v3432_v12, -1e+30 }
 0x58a   : > { %v3435_v48 = vpop.f32.mrb[143].mxu1  ;;  %v11900_v52 = vsel %vm13432_vm13, %v8826_v3, -1e+30  ;;  %vm13439_vm13 = vcmask 523264  }
 0x58b   : > { %v11905_v51 = vsel %vm13434_vm0, %v3435_v48, -1e+30  ;;  %vm13440_vm9 = vmmov %vm13439_vm13 }
 0x58c   : > { %vm13442_vm0 = vmmov %vm13440_vm9 }
 0x58d   : > { %3491 = vmax.xlane.f32.xlu0 %v11886_v20  ;;  %vm13443_vm12 = vmmov %vm13442_vm0 }
 0x58e   : > { %vm13449_vm10 = vmmov %vm13442_vm0 }
 0x58f   : > { %vm13450_vm15 = vmmov %vm13442_vm0 }
 0x590   : > { %vm13453_vm14 = vmmov %vm13442_vm0 }
 0x591   : > { %3487 = vmax.xlane.f32.xlu0 %v11891_v54  ;;  %vm13454_vm11 = vmmov %vm13442_vm0 }
 0x598   : > { %3631 = vrot.lane.b32.xlu1 %v13429_v9, %s10724_s21 }
 0x5a7   : > { %3629 = vrot.lane.b32.xlu0 %v13430_v36, %s10724_s21 }
 0x5bc   : > { %3493 = vmax.xlane.f32.xlu1 %v11900_v52 }
 0x5c0   : > { %3489 = vmax.xlane.f32.xlu1 %v11905_v51 }
 0x5d1   : > { %3633 = vrot.lane.b32.xlu1 %v13435_v19, %s10724_s21 }
 0x5fe   : > { %v3468_v63 = vpop.xlane.xlu0 %3467 }
 0x5ff   : > { %v3497_v37 = vsub.f32 %v3449_v22, %v3468_v63 }
 0x601   : > { %v3515_v26 = vmul.f32 1.442695, %v3497_v37  ;;  %v3466_v40 = vpop.xlane.xlu1 %3465 }
 0x602   : > { %v3464_v11 = vpop.xlane.xlu0 %3463  ;;  %v3496_v60 = vsub.f32 %v3448_v53, %v3466_v40 }
 0x603   : > { %10236 = vpow2.f32 %v3515_v26  ;;  %v3495_v58 = vsub.f32 %v3447_v2, %v3464_v11 }
 0x604   : > { %v3513_v46 = vmul.f32 1.442695, %v3496_v60 }
 0x605   : > { %v3511_v18 = vmul.f32 1.442695, %v3495_v58 }
 0x606   : > { %v3470_v41 = vpop.xlane.xlu0 %3469 }
 0x607   : > { %10238 = vpow2.f32 %v3511_v18  ;;  %v3498_v27 = vsub.f32 %v3450_v30, %v3470_v41 }
 0x608   : > { %v3478_v33 = vpop.xlane.xlu1 %3477 }
 0x609   : > { %v3517_v61 = vmul.f32 1.442695, %v3498_v27  ;;  %v3502_v53 = vsub.f32 %v11858_v14, %v3478_v33 }
 0x60a   : > { %v3476_v39 = vpop.xlane.xlu0 %3475 }
 0x60b   : > { %10240 = vpow2.f32 %v3517_v61  ;;  %v3501_v34 = vsub.f32 %v3453_v49, %v3476_v39  ;;  %v3525_v36 = vmul.f32 1.442695, %v3502_v53 }
 0x60c   : > { %v3474_v15 = vpop.xlane.xlu1 %3473  ;;  %10242 = vpow2.f32 %v3513_v46 }
 0x60d   : > { %v11910_v43 = vpop.eup %10236  ;;  %v3523_v22 = vmul.f32 1.442695, %v3501_v34  ;;  %v3500_v4 = vsub.f32 %v3452_v44, %v3474_v15 }
 0x60e   : > { %v3472_v12 = vpop.xlane.xlu0 %3471  ;;  %3547 = vadd.xlane.f32.xlu1 %v11910_v43 }
 0x60f   : > { %10244 = vpow2.f32 %v3523_v22  ;;  %v3521_v2 = vmul.f32 1.442695, %v3500_v4  ;;  %v3499_v30 = vsub.f32 %v3451_v59, %v3472_v12  ;;  %v13436_v22 = vld [vmem:[#allocation55_spill] sm:$0xff]  ;;  %v13437_v4 = vld [vmem:[#allocation53_spill] sm:$0xff] }
 0x610   : > { %v3486_v9 = vpop.xlane.xlu1 %3485 }
 0x611   : > { %v11914_v3 = vpop.eup %10238  ;;  %v3519_v48 = vmul.f32 1.442695, %v3499_v30  ;;  %10246 = vpow2.f32 %v3521_v2  ;;  %v3506_v14 = vsub.f32 %v11869_v1, %v3486_v9 }
 0x612   : > { %v3484_v49 = vpop.xlane.xlu0 %3483  ;;  %3543 = vadd.xlane.f32.xlu1 %v11914_v3 }
 0x613   : > { %10248 = vpow2.f32 %v3519_v48  ;;  %v3505_v44 = vsub.f32 %v3457_v35, %v3484_v49  ;;  %v3533_v35 = vmul.f32 1.442695, %v3506_v14 }
 0x614   : > { %10250 = vpow2.f32 %v3525_v36  ;;  %v3482_v11 = vpop.xlane.xlu1 %3481 }
 0x615   : > { %v11917_v19 = vpop.eup %10240  ;;  %v3531_v63 = vmul.f32 1.442695, %v3505_v44  ;;  %v3504_v60 = vsub.f32 %v11876_v56, %v3482_v11 }
 0x616   : > { %v3480_v37 = vpop.xlane.xlu0 %3479  ;;  %3549 = vadd.xlane.f32.xlu1 %v11917_v19  ;;  %v11922_v26 = vpop.eup %10242 }
 0x617   : > { %v3503_v59 = vsub.f32 %v11881_v24, %v3480_v37  ;;  %10252 = vpow2.f32 %v3531_v63  ;;  %v3529_v27 = vmul.f32 1.442695, %v3504_v60 }
 0x618   : > { %v3632_v46 = vpop.permute.xlu1 %3631 }
 0x619   : > { %v11924_v40 = vpop.eup %10244  ;;  %v3527_v58 = vmul.f32 1.442695, %v3503_v59 }
 0x61a   : > { %v3492_v18 = vpop.xlane.xlu0 %3491  ;;  %3555 = vadd.xlane.f32.xlu0 %v11924_v40  ;;  %3545 = vadd.xlane.f32.xlu1 %v11922_v26 }
 0x61b   : > { %10254 = vpow2.f32 %v3527_v58  ;;  %v11929_v41 = vpop.eup %10246  ;;  %v3509_v44 = vsub.f32 %v11886_v20, %v3492_v18 }
 0x61c   : > { %10256 = vpow2.f32 %v3533_v35 }
 0x61d   : > { %v11931_v1 = vpop.eup %10248  ;;  %10258 = vpow2.f32 %v3529_v27  ;;  %v3539_v37 = vmul.f32 1.442695, %v3509_v44 }
 0x61e   : > { %3551 = vadd.xlane.f32.xlu0 %v11931_v1  ;;  %v3488_v24 = vpop.xlane.xlu0 %3487  ;;  %3553 = vadd.xlane.f32.xlu1 %v11929_v41  ;;  %v11935_v33 = vpop.eup %10250 }
 0x61f   : > { %v3507_v12 = vsub.f32 %v11891_v54, %v3488_v24 }
 0x621   : > { %v11938_v56 = vpop.eup %10252  ;;  %v3535_v2 = vmul.f32 1.442695, %v3507_v12 }
 0x622   : > { %v3630_v61 = vpop.permute.xlu0 %3629  ;;  %3557 = vadd.xlane.f32.xlu0 %v11935_v33 }
 0x623   : > { %8833 = vmatprep.subr.bf16.mxu0 %v3630_v61  ;;  %10260 = vpow2.f32 %v3535_v2 }
 0x624   : > { %8834 = vmatpush3.bf16.msra.mxu0 %v3630_v61 }
 0x625   : > { %v11940_v39 = vpop.eup %10254  ;;  %8835 = vmatprep.subr.bf16.mxu0 %v3632_v46 }
 0x626   : > { %3563 = vadd.xlane.f32.xlu0 %v11938_v56  ;;  %3559 = vadd.xlane.f32.xlu1 %v11940_v39  ;;  %v11944_v34 = vpop.eup %10256 }
 0x627   : > { %v11947_v15 = vpop.eup %10258 }
 0x628   : > { %8836 = vmatpush3.bf16.msra.mxu0 %v3632_v46 }
 0x62a   : > { %3565 = vadd.xlane.f32.xlu0 %v11944_v34 }
 0x62d   : > { %v11958_v14 = vpop.eup %10260 }
 0x62e   : > { %3561 = vadd.xlane.f32.xlu0 %v11947_v15 }
 0x637   : > { %3637 = vrot.lane.b32.xlu1 %v13436_v22, %s10724_s21 }
 0x644   : > { %3635 = vrot.lane.b32.xlu0 %v13437_v4, %s10724_s21 }
 0x649   : > { %v3494_v53 = vpop.xlane.xlu1 %3493 }
 0x64a   : > { %v3510_v30 = vsub.f32 %v11900_v52, %v3494_v53 }
 0x64c   : > { %v3541_v9 = vmul.f32 1.442695, %v3510_v30 }
 0x64d   : > { %v3490_v48 = vpop.xlane.xlu1 %3489 }
 0x64e   : > { %v3508_v49 = vsub.f32 %v11905_v51, %v3490_v48  ;;  %10262 = vpow2.f32 %v3541_v9 }
 0x650   : > { %v3537_v63 = vmul.f32 1.442695, %v3508_v49 }
 0x651   : > { %v3634_v36 = vpop.permute.xlu1 %3633 }
 0x652   : > { %8837 = vmatprep.subr.bf16.mxu0 %v3634_v36  ;;  %10264 = vpow2.f32 %v3537_v63  ;;  %v10078_v63 = vld [vmem:[#allocation7 + $0x64] ss:$12 sps:$4 sm:$0xff]  }
 0x653   : > { %8838 = vmatpush3.bf16.msra.mxu0 %v3634_v36  ;;  %10266 = vpow2.f32 %v3539_v37 }
 0x658   : > { %v11961_v54 = vpop.eup %10262 }
 0x65b   : > { %3567 = vadd.xlane.f32.xlu1 %v11958_v14 }
 0x65c   : > { %v11964_v52 = vpop.eup %10264 }
 0x65d   : > { %v11967_v51 = vpop.eup %10266 }
 0x65f   : > { %3573 = vadd.xlane.f32.xlu1 %v11961_v54 }
 0x663   : > { %3569 = vadd.xlane.f32.xlu0 %v11964_v52 }
 0x667   : > { %3571 = vadd.xlane.f32.xlu0 %v11967_v51 }
 0x69b   : > { %v3548_v20 = vpop.xlane.xlu1 %3547 }
 0x69f   : > { %v3544_v59 = vpop.xlane.xlu1 %3543 }
 0x6a0   : > { %10268 = vrcp.f32 %v3544_v59 }
 0x6a3   : > { %v3550_v11 = vpop.xlane.xlu1 %3549 }
 0x6a7   : > { %v3556_v58 = vpop.xlane.xlu0 %3555  ;;  %v3546_v18 = vpop.xlane.xlu1 %3545 }
 0x6a8   : > { %10270 = vrcp.f32 %v3546_v18  ;;  %v10081_v18 = vld [vmem:[#allocation7 + $0x7c] ss:$12 sps:$4 sm:$0xff]  }
 0x6a9   : > { %10272 = vrcp.f32 %v3550_v11  ;;  %v10076_v11 = vld [vmem:[#allocation7 + $0x60] ss:$12 sps:$4 sm:$0xff]  }
 0x6aa   : > { %v10269_v24 = vpop.eup %10268 }
 0x6ab   : > { %v3552_v35 = vpop.xlane.xlu0 %3551  ;;  %v3554_v61 = vpop.xlane.xlu1 %3553  ;;  %v3591_v22 = vmul.f32 %v10269_v24, %v11914_v3 }
 0x6ac   : > { %10274 = vrcp.f32 %v3552_v35 }
 0x6ad   : > { %10276 = vrcp.f32 %v3554_v61 }
 0x6ae   : > { %10278 = vrcp.f32 %v3548_v20 }
 0x6af   : > { %v3558_v60 = vpop.xlane.xlu0 %3557 }
 0x6b0   : > { %10280 = vrcp.f32 %v3558_v60 }
 0x6b2   : > { %v10271_v27 = vpop.eup %10270 }
 0x6b3   : > { %v3564_v46 = vpop.xlane.xlu0 %3563  ;;  %v3592_v4 = vmul.f32 %v10271_v27, %v11922_v26  ;;  %v3560_v2 = vpop.xlane.xlu1 %3559  ;;  %v10079_v27 = vld [vmem:[#allocation7 + $0x78] ss:$12 sps:$4 sm:$0xff]  }
 0x6b4   : > { %v10273_v48 = vpop.eup %10272 }
 0x6b5   : > { %v3607_v12 = vpack.c.bf16 %v3592_v4, %v3591_v22  ;;  %v3594_v26 = vmul.f32 %v10273_v48, %v11917_v19 }
 0x6b6   : > { %v10275_v9 = vpop.eup %10274 }
 0x6b7   : > { %v3566_v53 = vpop.xlane.xlu0 %3565  ;;  %8843 = vmatprep.mubr.bf16.mxu0 %v3607_v12  ;;  %v10277_v36 = vpop.eup %10276  ;;  %v3595_v37 = vmul.f32 %v10275_v9, %v11931_v1 }
 0x6b8   : > { %v10279_v3 = vpop.eup %10278  ;;  %v3638_v44 = vpop.permute.xlu1 %3637  ;;  %v3596_v20 = vmul.f32 %v10277_v36, %v11929_v41 }
 0x6b9   : > { %v3593_v59 = vmul.f32 %v10279_v3, %v11910_v43  ;;  %v10084_v43 = vld [vmem:[#allocation7 + $0x94] ss:$12 sps:$4 sm:$0xff]  }
 0x6ba   : > { %v10281_v35 = vpop.eup %10280  ;;  %v3609_v60 = vpack.c.bf16 %v3596_v20, %v3595_v37 }
 0x6bb   : > { %v3562_v30 = vpop.xlane.xlu0 %3561  ;;  %v3598_v41 = vmul.f32 %v10281_v35, %v11935_v33  ;;  %v10088_v35 = vld [vmem:[#allocation7 + $0x68] ss:$12 sps:$4 sm:$0xff]  }
 0x6bc   : > { %10282 = vrcp.f32 %v3562_v30  ;;  %9259 = vmatprep.subr.bf16.mxu1 %v10088_v35 }
 0x6bd   : > { %10284 = vrcp.f32 %v3556_v58  ;;  %v3608_v58 = vpack.c.bf16 %v3594_v26, %v3593_v59  ;;  %9263 = vmatpush3.bf16.msra.mxu1 %v10088_v35 }
 0x6be   : > { %10286 = vrcp.f32 %v3560_v2 }
 0x6bf   : > { %v3636_v49 = vpop.permute.xlu0 %3635  ;;  %10288 = vrcp.f32 %v3566_v53 }
 0x6c0   : > { %8839 = vmatprep.subr.bf16.mxu0 %v3636_v49  ;;  %10290 = vrcp.f32 %v3564_v46  ;;  %v10082_v46 = vld [vmem:[#allocation7 + $0x90] ss:$12 sps:$4 sm:$0xff]  }
 0x6c1   : > { %8840 = vmatpush3.bf16.msra.mxu0 %v3636_v49 }
 0x6c2   : > { %8841 = vmatprep.subr.bf16.mxu0 %v3638_v44 }
 0x6c5   : > { %8842 = vmatpush3.bf16.msra.mxu0 %v3638_v44 }
 0x6c6   : > { %3856 = vmatprep.subr.bf16.mxu0 %v10078_v63  ;;  %v10283_v24 = vpop.eup %10282 }
 0x6c7   : > { %v10285_v19 = vpop.eup %10284  ;;  %v3600_v61 = vmul.f32 %v10283_v24, %v11947_v15 }
 0x6c8   : > { %8844 = vmatmul.mubr.bf16.vlgmr.msra.gmra.mrb[112].mxu0 %v3608_v58  ;;  %v10287_v1 = vpop.eup %10286  ;;  %v3597_v22 = vmul.f32 %v10285_v19, %v11924_v40  ;;  %v10087_v58 = vld [vmem:[#allocation7 + $0xac] ss:$12 sps:$4 sm:$0xff]  }
 0x6c9   : > { %8847 = vmatprep.mubr.bf16.mxu0 %v3609_v60  ;;  %3857 = vmatpush1.bf16.msra.mxu0 %v10076_v11  ;;  %v3599_v4 = vmul.f32 %v10287_v1, %v11940_v39  ;;  %v10289_v53 = vpop.eup %10288  ;;  %v13438_v11 = vmov 0  }
 0x6ca   : > { %3858 = vmatprep.subr.bf16.mxu0 %v10081_v18  ;;  %v3610_v12 = vpack.c.bf16 %v3598_v41, %v3597_v22  ;;  %v10291_v30 = vpop.eup %10290  ;;  %v3602_v33 = vmul.f32 %v10289_v53, %v11944_v34  ;;  %v10085_v18 = vld [vmem:[#allocation7 + $0xa8] ss:$12 sps:$4 sm:$0xff]  }
 0x6cb   : > { %v3611_v2 = vpack.c.bf16 %v3600_v61, %v3599_v4  ;;  %v3601_v48 = vmul.f32 %v10291_v30, %v11938_v56 }
 0x6cd   : > { %3859 = vmatpush1.bf16.msra.mxu0 %v10079_v27  ;;  %v3612_v9 = vpack.c.bf16 %v3602_v33, %v3601_v48 }
 0x6ce   : > { %3860 = vmatprep.subr.bf16.mxu0 %v10084_v43 }
 0x6d0   : > { %8848 = vmatmul.mubr.bf16.gmra.mrb[116].mxu0 %v3610_v12 }
 0x6d1   : > { %8851 = vmatprep.mubr.bf16.mxu0 %v3611_v2  ;;  %3861 = vmatpush1.bf16.msra.mxu0 %v10082_v46  ;;  %v10098_v2 = vld [vmem:[#allocation7 + $0x4] ss:$12 sps:$4 sm:$0xff]  }
 0x6d2   : > { %3862 = vmatprep.subr.bf16.mxu0 %v10087_v58  ;;  %v10101_v58 = vld [vmem:[#allocation7 + $0x1c] ss:$12 sps:$4 sm:$0xff]  }
 0x6d5   : > { %3863 = vmatpush1.bf16.msra.mxu0 %v10085_v18  ;;  %v10099_v18 = vld [vmem:[#allocation7 + $0x18] ss:$12 sps:$4 sm:$0xff]  }
 0x6d6   : > { %8859 = vmatprep.subr.bf16.mxu0 %v10088_v35 }
 0x6d8   : > { %8852 = vmatmul.mubr.bf16.gmra.mrb[120].mxu0 %v3612_v9 }
 0x6e8   : > { %v3568_v15 = vpop.xlane.xlu1 %3567 }
 0x6e9   : > { %10292 = vrcp.f32 %v3568_v15 }
 0x6ec   : > { %v3574_v40 = vpop.xlane.xlu1 %3573 }
 0x6f0   : > { %v3570_v39 = vpop.xlane.xlu0 %3569 }
 0x6f1   : > { %10294 = vrcp.f32 %v3570_v39  ;;  %v10094_v39 = vld [vmem:[#allocation7 + $0x38] ss:$12 sps:$4 sm:$0xff]  }
 0x6f2   : > { %10296 = vrcp.f32 %v3574_v40  ;;  %v10093_v40 = vld [vmem:[#allocation7 + $0x20] ss:$12 sps:$4 sm:$0xff]  }
 0x6f3   : > { %v10293_v36 = vpop.eup %10292 }
 0x6f4   : > { %v3572_v49 = vpop.xlane.xlu0 %3571  ;;  %v3603_v44 = vmul.f32 %v10293_v36, %v11958_v14  ;;  %v10089_v14 = vld [vmem:[#allocation7 + $0x80] ss:$12 sps:$4 sm:$0xff]  }
 0x6f5   : > { %10298 = vrcp.f32 %v3572_v49  ;;  %9260 = vmatprep.subr.bf16.mxu1 %v10089_v14  ;;  %v10095_v49 = vld [vmem:[#allocation7 + $0x50] ss:$12 sps:$4 sm:$0xff]   ;;  %v13445_v36 = vld [vmem:[#allocation25_spill] sm:$0xff] }
 0x6f6   : > { %9264 = vmatpush3.bf16.msra.mxu1 %v10089_v14 }
 0x6fb   : > { %v10295_v3 = vpop.eup %10294 }
 0x6fc   : > { %v3604_v26 = vmul.f32 %v10295_v3, %v11964_v52  ;;  %v10297_v63 = vpop.eup %10296  ;;  %v10090_v52 = vld [vmem:[#allocation7 + $0x98] ss:$12 sps:$4 sm:$0xff]  }
 0x6fd   : > { %v3606_v20 = vmul.f32 %v10297_v63, %v11961_v54  ;;  %9261 = vmatprep.subr.bf16.mxu1 %v10090_v52  ;;  %v10092_v54 = vld [vmem:[#allocation7 + $0x8] ss:$12 sps:$4 sm:$0xff]  }
 0x6fe   : > { %v3613_v34 = vpack.c.bf16 %v3604_v26, %v3603_v44  ;;  %9265 = vmatpush3.bf16.msra.mxu1 %v10090_v52 }
 0x6ff   : > { %v10299_v37 = vpop.eup %10298 }
 0x700   : > { %8855 = vmatprep.mubr.bf16.mxu0 %v3613_v34  ;;  %v3605_v56 = vmul.f32 %v10299_v37, %v11967_v51  ;;  %v10091_v51 = vld [vmem:[#allocation7 + $0xb0] ss:$12 sps:$4 sm:$0xff]  }
 0x701   : > { %9262 = vmatprep.subr.bf16.mxu1 %v10091_v51 }
 0x702   : > { %v3614_v59 = vpack.c.bf16 %v3606_v20, %v3605_v56  ;;  %9266 = vmatpush3.bf16.msra.mxu1 %v10091_v51  ;;  %v4413_v56 = vsel %vm13454_vm11, %v13445_v36, 0  ;;  %v13456_v20 = vld [vmem:[#allocation28_spill] sm:$0xff]  ;;  %vm13460_vm11 = vmmov %vm13442_vm0 }
 0x703   : > { %8883 = vmatprep.subr.bf16.mxu1 %v10092_v54 }
 0x704   : > { %8856 = vmatmul.mubr.bf16.gmra.mrb[124].mxu0 %v3614_v59  ;;  %v10096_v59 = vld [vmem:[#allocation7] ss:$12 sps:$4 sm:$0xff]  }
 0x705   : > { %3888 = vmatprep.mubr.bf16.mxu0 %v13438_v11 }
 0x79b   : > { %v8845_v60 = vpop.f32.mrb[112].mxu0 }
 0x79c   : > { %v3681_v24 = vpop.f32.mrb[113].mxu0 }
 0x79d   : > { %v8846_v19 = vpop.f32.mrb[114].mxu0 }
 0x79e   : > { %v11987_v27 = vpack.c.bf16 %v8846_v19, %v8845_v60  ;;  %v3684_v1 = vpop.f32.mrb[115].mxu0  ;;  %v10105_v60 = vld [vmem:[#allocation7 + $0x48] ss:$12 sps:$4 sm:$0xff]  }
 0x79f   : > { %v3744_v41 = vpack.c.bf16 %v3684_v1, %v3681_v24  ;;  %v13467_v19 = vld [vmem:[#allocation34_spill] sm:$0xff] }
 0x7a1   : > { %8164 = vmatmul.mubr.msk.bf16.vlgmr.msra.gmra.mrb[128].mxu0 %vm13439_vm13, %v3744_v41  ;;  %vm13441_vm13 = vmmov %vm13440_vm9 }
 0x7a2   : > { %3898 = vmatprep.mubr.bf16.mxu0 %v13438_v11  ;;  %8860 = vmatpush3.bf16.msra.mxu0 %v10088_v35  ;;  %v4416_v35 = vsel %vm13460_vm11, %v13456_v20, 0  ;;  %vm13470_vm11 = vmmov %vm13442_vm0 }
 0x7a3   : > { %v8849_v43 = vpop.f32.mrb[116].mxu0  ;;  %8861 = vmatprep.subr.bf16.mxu0 %v10089_v14 }
 0x7a4   : > { %v3697_v61 = vpop.f32.mrb[117].mxu0 }
 0x7a5   : > { %v8850_v22 = vpop.f32.mrb[118].mxu0 }
 0x7a6   : > { %v11991_v4 = vpack.c.bf16 %v8850_v22, %v8849_v43  ;;  %v3700_v46 = vpop.f32.mrb[119].mxu0  ;;  %8862 = vmatpush3.bf16.msra.mxu0 %v10089_v14  ;;  %v10104_v14 = vld [vmem:[#allocation7 + $0x34] ss:$12 sps:$4 sm:$0xff]  }
 0x7a7   : > { %v3746_v12 = vpack.c.bf16 %v3700_v46, %v3697_v61  ;;  %8863 = vmatprep.subr.bf16.mxu0 %v10090_v52  ;;  %v13474_v43 = vld [vmem:[#allocation12_spill] sm:$0xff]  ;;  %v13481_v46 = vld [vmem:[#allocation38_spill] sm:$0xff] }
 0x7a8   : > { %v13476_v61 = vld [vmem:[#allocation36_spill] sm:$0xff] }
 0x7a9   : > { %8165 = vmatmul.mubr.msk.bf16.gmra.mrb[132].mxu0 %vm13440_vm9, %v11987_v27  ;;  %vm13444_vm9 = vmmov %vm13442_vm0  ;;  %v4425_v22 = vsel %vm13442_vm0, %v13476_v61, 0 }
 0x7aa   : > { %3908 = vmatprep.mubr.bf16.mxu0 %v13438_v11  ;;  %8864 = vmatpush3.bf16.msra.mxu0 %v10090_v52  ;;  %v13462_v52 = vld [vmem:[#allocation31_spill] sm:$0xff] }
 0x7ab   : > { %v8853_v53 = vpop.f32.mrb[120].mxu0  ;;  %8865 = vmatprep.subr.bf16.mxu0 %v10091_v51 }
 0x7ac   : > { %v3713_v30 = vpop.f32.mrb[121].mxu0 }
 0x7ad   : > { %v8854_v33 = vpop.f32.mrb[122].mxu0 }
 0x7ae   : > { %v3749_v48 = vpack.c.bf16 %v8854_v33, %v8853_v53  ;;  %v3716_v9 = vpop.f32.mrb[123].mxu0  ;;  %8866 = vmatpush3.bf16.msra.mxu0 %v10091_v51  ;;  %v10102_v51 = vld [vmem:[#allocation7 + $0x30] ss:$12 sps:$4 sm:$0xff]   ;;  %v13486_v53 = vld [vmem:[#allocation52_spill] sm:$0xff] }
 0x7af   : > { %v3748_v15 = vpack.c.bf16 %v3716_v9, %v3713_v30  ;;  %4154 = vmatprep.subr.bf16.mxu0 %v10098_v2  ;;  %v13487_v2 = vld [vmem:[#allocation40_spill] sm:$0xff]  ;;  %v13489_v30 = vld [vmem:[#allocation54_spill] sm:$0xff]  ;;  %v13497_v9 = vld [vmem:[#allocation13_spill] sm:$0xff] }
 0x7b0   : > { %v13492_v33 = vld [vmem:[#allocation56_spill] sm:$0xff] }
 0x7b1   : > { %8166 = vmatmul.mubr.msk.bf16.gmra.mrb[136].mxu0 %vm13441_vm13, %v3746_v12  ;;  %8875 = vmatprep.mubr.msk.bf16.mxu1 %vm13442_vm0, %v3748_v15  ;;  %vm13447_vm13 = vmmov %vm13442_vm0 }
 0x7b2   : > { %8876 = vmatmul.mubr.msk.bf16.vlgmr.msra.gmra.mrb[144].mxu1 %vm13443_vm12, %v3749_v48  ;;  %3918 = vmatprep.mubr.bf16.mxu0 %v13438_v11  ;;  %vm13446_vm12 = vmmov %vm13442_vm0 }
 0x7b3   : > { %8884 = vmatpush3.bf16.msra.mxu1 %v10092_v54  ;;  %v10107_v54 = vld [vmem:[#allocation7 + $0x4c] ss:$12 sps:$4 sm:$0xff]  }
 0x7b4   : > { %8885 = vmatprep.subr.bf16.mxu1 %v10093_v40 }
 0x7b7   : > { %8886 = vmatpush3.bf16.msra.mxu1 %v10093_v40  ;;  %v13504_v40 = vld [vmem:[#allocation16_spill] sm:$0xff] }
 0x7b8   : > { %8887 = vmatprep.subr.bf16.mxu1 %v10094_v39 }
 0x7b9   : > { %8167 = vmatmul.mubr.msk.bf16.gmra.mrb[140].mxu0 %vm13444_vm9, %v11991_v4  ;;  %vm13448_vm9 = vmmov %vm13442_vm0 }
 0x7ba   : > { %3928 = vmatprep.mubr.bf16.mxu0 %v13438_v11 }
 0x7bb   : > { %8888 = vmatpush3.bf16.msra.mxu1 %v10094_v39  ;;  %v13508_v39 = vld [vmem:[#allocation18_spill] sm:$0xff] }
 0x7bc   : > { %8889 = vmatprep.subr.bf16.mxu1 %v10095_v49 }
 0x7bf   : > { %8890 = vmatpush3.bf16.msra.mxu1 %v10095_v49  ;;  %v13510_v49 = vld [vmem:[#allocation19_spill] sm:$0xff] }
 0x7c0   : > { %9651 = vmatprep.subr.msk.bf16.mxu1 %vm13442_vm0, %v13445_v36 }
 0x7c1   : > { %8168 = vmatmul.mubr.msk.bf16.gmra.mrb[144].mxu0 %vm13446_vm12, %v3748_v15  ;;  %vm13451_vm12 = vmmov %vm13442_vm0  ;;  %v13499_v15 = vld [vmem:[#allocation14_spill] sm:$0xff] }
 0x7c2   : > { %3938 = vmatprep.mubr.bf16.mxu0 %v13438_v11 }
 0x7c9   : > { %8169 = vmatmul.mubr.msk.bf16.gmra.mrb[148].mxu0 %vm13447_vm13, %v3749_v48  ;;  %vm13452_vm13 = vmmov %vm13442_vm0  ;;  %v13493_v48 = vld [vmem:[#allocation42_spill] sm:$0xff] }
 0x7ca   : > { %3948 = vmatprep.mubr.bf16.mxu0 %v13438_v11 }
 0x7d7   : > { %v8857_v3 = vpop.f32.mrb[124].mxu0 }
 0x7d8   : > { %v3729_v44 = vpop.f32.mrb[125].mxu0 }
 0x7d9   : > { %v8858_v26 = vpop.f32.mrb[126].mxu0 }
 0x7da   : > { %v3751_v63 = vpack.c.bf16 %v8858_v26, %v8857_v3  ;;  %v3732_v34 = vpop.f32.mrb[127].mxu0 }
 0x7db   : > { %v3750_v37 = vpack.c.bf16 %v3732_v34, %v3729_v44 }
 0x7dd   : > { %8170 = vmatmul.mubr.msk.bf16.gmra.mrb[152].mxu0 %vm13448_vm9, %v3750_v37  ;;  %8879 = vmatprep.mubr.msk.bf16.mxu1 %vm13449_vm10, %v3750_v37  ;;  %vm13455_vm10 = vmmov %vm13442_vm0 }
 0x7de   : > { %8880 = vmatmul.mubr.msk.bf16.gmra.mrb[148].mxu1 %vm13450_vm15, %v3751_v63  ;;  %3958 = vmatprep.mubr.bf16.mxu0 %v13438_v11  ;;  %vm13457_vm15 = vmmov %vm13442_vm0 }
 0x7df   : > { %8891 = vmatprep.mubr.msk.bf16.mxu1 %vm13442_vm0, %v11834_v7  ;;  %vm13458_vm9 = vmmov %vm13442_vm0 }
 0x7e5   : > { %8171 = vmatmul.mubr.msk.bf16.gmra.mrb[156].mxu0 %vm13451_vm12, %v3751_v63  ;;  %vm13461_vm12 = vmmov %vm13442_vm0 }
 0x7e6   : > { %8867 = vmatprep.mubr.msk.bf16.mxu0 %vm13452_vm13, %v3744_v41  ;;  %8892 = vmatmul.mubr.msk.bf16.vlgmr.msra.gmra.mrb[152].mxu1 %vm13453_vm14, %v11832_v50  ;;  %vm13459_vm14 = vmmov %vm13442_vm0  ;;  %v13473_v41 = vld [vmem:[#allocation45_spill] sm:$0xff] }
 0x7e7   : > { %8908 = vmatpush3.bf16.xpose.msra.mxu1 %v4413_v56  ;;  %8895 = vmatprep.mubr.msk.bf16.mxu1 %vm13455_vm10, %v11838_v28  ;;  %vm13463_vm13 = vmmov %vm13442_vm0 }
 0x7e8   : > { %9652 = vmatprep.subr.msk.bf16.mxu1 %vm13457_vm15, %v13456_v20  ;;  %vm13464_vm10 = vmmov %vm13442_vm0 }
 0x7e9   : > { %vm13465_vm15 = vmmov %vm13442_vm0 }
 0x7ed   : > { %8868 = vmatmul.mubr.msk.bf16.vlgmr.msra.gmra.mrb[160].mxu0 %vm13458_vm9, %v11987_v27  ;;  %vm13466_vm9 = vmmov %vm13442_vm0  ;;  %v13469_v27 = vld [vmem:[#allocation44_spill] sm:$0xff] }
 0x7ee   : > { %4155 = vmatpush1.bf16.msra.mxu0 %v10096_v59  ;;  %8871 = vmatprep.mubr.msk.bf16.mxu0 %vm13442_vm0, %v3746_v12  ;;  %v4419_v24 = vsel %vm13466_vm9, %v13462_v52, 0  ;;  %vm13479_vm9 = vmmov %vm13442_vm0  ;;  %v13483_v12 = vld [vmem:[#allocation50_spill] sm:$0xff] }
 0x7ef   : > { %8896 = vmatmul.mubr.msk.bf16.gmra.mrb[156].mxu1 %vm13459_vm14, %v11836_v38  ;;  %4156 = vmatprep.subr.bf16.mxu0 %v10101_v58  ;;  %vm13468_vm14 = vmmov %vm13442_vm0 }
 0x7f0   : > { %8910 = vmatpush3.bf16.xpose.msra.mxu1 %v4416_v35  ;;  %8899 = vmatprep.mubr.msk.bf16.mxu1 %vm13461_vm12, %v11842_v23  ;;  %vm13471_vm12 = vmmov %vm13442_vm0 }
 0x7f1   : > { %9653 = vmatprep.subr.msk.bf16.mxu1 %vm13463_vm13, %v13462_v52  ;;  %vm13472_vm13 = vmmov %vm13442_vm0 }
 0x7f2   : > { %4157 = vmatpush1.bf16.msra.mxu0 %v10099_v18  ;;  %v4422_v1 = vsel %vm13472_vm13, %v13467_v19, 0  ;;  %vm13488_vm13 = vmmov %vm13442_vm0 }
 0x7f3   : > { %4158 = vmatprep.subr.bf16.mxu0 %v10104_v14 }
 0x7f5   : > { %8872 = vmatmul.mubr.msk.bf16.gmra.mrb[164].mxu0 %vm13464_vm10, %v11991_v4  ;;  %vm13475_vm10 = vmmov %vm13442_vm0  ;;  %v13480_v4 = vld [vmem:[#allocation48_spill] sm:$0xff] }
 0x7f6   : > { %4159 = vmatpush1.bf16.msra.mxu0 %v10102_v51  ;;  %4186 = vmatprep.mubr.bf16.mxu0 %v13438_v11 }
 0x7f7   : > { %8900 = vmatmul.mubr.msk.bf16.gmra.mrb[144].mxu1 %vm13465_vm15, %v11840_v42  ;;  %4160 = vmatprep.subr.bf16.mxu0 %v10107_v54  ;;  %vm13477_vm15 = vmmov %vm13442_vm0 }
 0x7f8   : > { %8912 = vmatpush3.bf16.xpose.msra.mxu1 %v4419_v24  ;;  %8903 = vmatprep.mubr.msk.bf16.mxu1 %vm13442_vm0, %v11846_v25 }
 0x7f9   : > { %9654 = vmatprep.subr.msk.bf16.mxu1 %vm13468_vm14, %v13467_v19  ;;  %vm13482_vm14 = vmmov %vm13442_vm0 }
 0x7fa   : > { %4161 = vmatpush1.bf16.msra.mxu0 %v10105_v60 }
 0x7fb   : > { %8939 = vmatprep.subr.bf16.mxu0 %v13469_v27 }
 0x7fd   : > { %8192 = vmatmul.mubr.msk.bf16.vlgmr.msra.gmra.mrb[128].mxu0 %vm13470_vm11, %v11834_v7  ;;  %v13478_v7 = vld [vmem:[#allocation46_spill] sm:$0xff]  ;;  %vm13484_vm11 = vmmov %vm13442_vm0 }
 0x7fe   : > { %8940 = vmatpush3.bf16.msra.mxu0 %v13469_v27  ;;  %4196 = vmatprep.mubr.bf16.mxu0 %v13438_v11 }
 0x7ff   : > { %8904 = vmatmul.mubr.msk.bf16.gmra.mrb[148].mxu1 %vm13471_vm12, %v11844_v17  ;;  %8941 = vmatprep.subr.bf16.mxu0 %v13473_v41  ;;  %vm13485_vm12 = vmmov %vm13442_vm0 }
 0x800   : > { %8914 = vmatpush3.bf16.xpose.msra.mxu1 %v4422_v1  ;;  %8923 = vmatprep.mubr.msk.bf16.mxu1 %vm13475_vm10, %v13474_v43  ;;  %vm13490_vm10 = vmmov %vm13442_vm0 }
 0x801   : > { %9655 = vmatprep.subr.msk.bf16.mxu1 %vm13477_vm15, %v13476_v61  ;;  %vm13491_vm15 = vmmov %vm13442_vm0 }
 0x802   : > { %8942 = vmatpush3.bf16.msra.mxu0 %v13473_v41 }
 0x803   : > { %8943 = vmatprep.subr.bf16.mxu0 %v13478_v7 }
 0x805   : > { %8193 = vmatmul.mubr.msk.bf16.gmra.mrb[132].mxu0 %vm13479_vm9, %v11832_v50  ;;  %v4428_v50 = vsel %vm13485_vm12, %v13481_v46, 0  ;;  %vm13494_vm9 = vmmov %vm13442_vm0 }
 0x806   : > { %8944 = vmatpush3.bf16.msra.mxu0 %v13478_v7  ;;  %4206 = vmatprep.mubr.bf16.mxu0 %v13438_v11  ;;  %vm13498_vm12 = vmmov %vm13442_vm0 }
 0x807   : > { %8945 = vmatprep.subr.bf16.mxu0 %v13480_v4 }
 0x808   : > { %8916 = vmatpush3.bf16.xpose.msra.mxu1 %v4425_v22 }
 0x809   : > { %9656 = vmatprep.subr.msk.bf16.mxu1 %vm13482_vm14, %v13481_v46  ;;  %vm13495_vm14 = vmmov %vm13442_vm0 }
 0x80a   : > { %8946 = vmatpush3.bf16.msra.mxu0 %v13480_v4 }
 0x80b   : > { %8947 = vmatprep.subr.bf16.mxu0 %v13483_v12 }
 0x80d   : > { %8194 = vmatmul.mubr.msk.bf16.gmra.mrb[136].mxu0 %vm13484_vm11, %v11838_v28  ;;  %v4431_v28 = vsel %vm13491_vm15, %v13487_v2, 0  ;;  %vm13496_vm11 = vmmov %vm13442_vm0 }
 0x80e   : > { %8948 = vmatpush3.bf16.msra.mxu0 %v13483_v12  ;;  %4216 = vmatprep.mubr.bf16.mxu0 %v13438_v11  ;;  %vm13503_vm15 = vmmov %vm13442_vm0 }
 0x80f   : > { %8949 = vmatprep.subr.bf16.mxu0 %v13486_v53 }
 0x810   : > { %8918 = vmatpush3.bf16.xpose.msra.mxu1 %v4428_v50 }
 0x811   : > { %9657 = vmatprep.subr.msk.bf16.mxu1 %vm13488_vm13, %v13487_v2  ;;  %vm13500_vm13 = vmmov %vm13442_vm0 }
 0x812   : > { %8950 = vmatpush3.bf16.msra.mxu0 %v13486_v53 }
 0x813   : > { %8951 = vmatprep.subr.bf16.mxu0 %v13489_v30 }
 0x815   : > { %8195 = vmatmul.mubr.msk.bf16.gmra.mrb[140].mxu0 %vm13490_vm10, %v11836_v38  ;;  %v4434_v38 = vsel %vm13495_vm14, %v13493_v48, 0  ;;  %vm13501_vm10 = vmmov %vm13442_vm0 }
 0x816   : > { %8952 = vmatpush3.bf16.msra.mxu0 %v13489_v30  ;;  %4226 = vmatprep.mubr.bf16.mxu0 %v13438_v11  ;;  %vm13507_vm14 = vmmov %vm13442_vm0 }
 0x817   : > { %8953 = vmatprep.subr.bf16.mxu0 %v13492_v33 }
 0x818   : > { %8920 = vmatpush3.bf16.xpose.msra.mxu1 %v4431_v28 }
 0x819   : > { %9658 = vmatprep.subr.msk.bf16.mxu1 %vm13494_vm9, %v13493_v48  ;;  %vm13505_vm9 = vmmov %vm13442_vm0 }
 0x81a   : > { %8954 = vmatpush3.bf16.msra.mxu0 %v13492_v33 }
 0x81d   : > { %8196 = vmatmul.mubr.msk.bf16.gmra.mrb[144].mxu0 %vm13442_vm0, %v11842_v23  ;;  %v13502_v23 = vld [vmem:[#allocation15_spill] sm:$0xff] }
 0x81e   : > { %4236 = vmatprep.mubr.bf16.mxu0 %v13438_v11 }
 0x820   : > { %8922 = vmatpush3.bf16.xpose.msra.mxu1 %v4434_v38 }
 0x825   : > { %8197 = vmatmul.mubr.msk.bf16.gmra.mrb[148].mxu0 %vm13496_vm11, %v11840_v42  ;;  %v13506_v42 = vld [vmem:[#allocation17_spill] sm:$0xff]  ;;  %vm13509_vm11 = vmmov %vm13442_vm0 }
 0x826   : > { %4246 = vmatprep.mubr.bf16.mxu0 %v13438_v11 }
 0x827   : > { %8924 = vmatmul.mubr.msk.bf16.vlgmr.msra.gmra.mrb[160].mxu1 %vm13498_vm12, %v13497_v9  ;;  %vm13511_vm12 = vmmov %vm13442_vm0 }
 0x828   : > { %8927 = vmatprep.mubr.msk.bf16.mxu1 %vm13500_vm13, %v13499_v15  ;;  %vm13520_vm13 = vnez %v13386_v6 }
 0x82d   : > { %8198 = vmatmul.mubr.msk.bf16.gmra.mrb[152].mxu0 %vm13501_vm10, %v11846_v25  ;;  %vm13521_vm10 = vnez %v13389_v57 }
 0x82e   : > { %4256 = vmatprep.mubr.bf16.mxu0 %v13438_v11 }
 0x82f   : > { %8928 = vmatmul.mubr.msk.bf16.gmra.mrb[164].mxu1 %vm13503_vm15, %v13502_v23  ;;  %vm13522_vm15 = vnez %v13381_v55 }
 0x830   : > { %8931 = vmatprep.mubr.msk.bf16.mxu1 %vm13505_vm9, %v13504_v40  ;;  %vm13523_vm9 = vnez %v13384_v45 }
 0x835   : > { %8199 = vmatmul.mubr.msk.bf16.gmra.mrb[156].mxu0 %vm13442_vm0, %v11844_v17  ;;  %vm13524_vm0 = vnez %v13395_v8 }
 0x837   : > { %8932 = vmatmul.mubr.msk.bf16.gmra.mrb[168].mxu1 %vm13507_vm14, %v13506_v42  ;;  %vm13525_vm14 = vnez %v13433_v13 }
 0x838   : > { %8935 = vmatprep.mubr.msk.bf16.mxu1 %vm13509_vm11, %v13508_v39  ;;  %vm13526_vm11 = vnez %v13392_v21 }
 0x83f   : > { %8936 = vmatmul.mubr.msk.bf16.gmra.mrb[172].mxu1 %vm13511_vm12, %v13510_v49  ;;  %vm13527_vm12 = vnez %v13431_v16 }
 0x8c0   : > { %v12122_v25 = vpop.f32.mrb[160].mxu0 }
 0x8c1   : > { %13512 = vst [vmem:[#allocation49_spill] sm:$0xff] %v12122_v25  ;;  %v12124_v3 = vpop.f32.mrb[161].mxu0 }
 0x8c2   : > { %13513 = vst [vmem:[#allocation47_spill] sm:$0xff] %v12124_v3  ;;  %v12126_v44 = vpop.f32.mrb[162].mxu0 }
 0x8c3   : > { %13514 = vst [vmem:[#allocation51_spill] sm:$0xff] %v12126_v44  ;;  %v12128_v26 = vpop.f32.mrb[163].mxu0 }
 0x8c4   : > { %13515 = vst [vmem:[#allocation55_spill] sm:$0xff] %v12128_v26 }
 0x8c8   : > { %v12130_v63 = vpop.f32.mrb[164].mxu0 }
 0x8c9   : > { %13516 = vst [vmem:[#allocation53_spill] sm:$0xff] %v12130_v63  ;;  %v12132_v17 = vpop.f32.mrb[165].mxu0 }
 0x8ca   : > { %13517 = vst [vmem:[#allocation25_spill] sm:$0xff] %v12132_v17  ;;  %v12134_v34 = vpop.f32.mrb[166].mxu0 }
 0x8cb   : > { %13518 = vst [vmem:[#allocation28_spill] sm:$0xff] %v12134_v34  ;;  %v12136_v37 = vpop.f32.mrb[167].mxu0 }
 0x8cc   : > { %13519 = vst [vmem:[#allocation31_spill] sm:$0xff] %v12136_v37 }
 0x8fa   : > { %v8925_v56 = vpop.f32.mrb[160].mxu1 }
 0x8fb   : > { %v4470_v59 = vpop.f32.mrb[161].mxu1  ;;  %v4535_v51 = vsel %vm11512_vm1, %v8925_v56, -1e+30 }
 0x8fc   : > { %v8926_v58 = vpop.f32.mrb[162].mxu1  ;;  %v4533_v18 = vsel %vm11519_vm2, %v4470_v59, -1e+30 }
 0x8fd   : > { %4549 = vmax.xlane.f32.xlu0 %v4533_v18  ;;  %v4473_v35 = vpop.f32.mrb[163].mxu1  ;;  %v4536_v60 = vsel %vm11534_vm3, %v8926_v58, -1e+30 }
 0x8fe   : > { %v4534_v14 = vsel %vm11541_vm4, %v4473_v35, -1e+30 }
 0x8ff   : > { %4551 = vmax.xlane.f32.xlu1 %v4534_v14 }
 0x901   : > { %4553 = vmax.xlane.f32.xlu0 %v4535_v51 }
 0x902   : > { %v8929_v54 = vpop.f32.mrb[164].mxu1 }
 0x903   : > { %4555 = vmax.xlane.f32.xlu1 %v4536_v60  ;;  %v4486_v24 = vpop.f32.mrb[165].mxu1  ;;  %v4539_v38 = vsel %vm11556_vm5, %v8929_v54, -1e+30 }
 0x904   : > { %v8930_v1 = vpop.f32.mrb[166].mxu1  ;;  %v4537_v22 = vsel %vm11579_vm7, %v4486_v24, -1e+30 }
 0x905   : > { %4557 = vmax.xlane.f32.xlu0 %v4537_v22  ;;  %v4489_v50 = vpop.f32.mrb[167].mxu1  ;;  %v4540_v59 = vsel %vm11563_vm6, %v8930_v1, -1e+30 }
 0x906   : > { %v4538_v28 = vsel %vm11585_vm8, %v4489_v50, -1e+30 }
 0x907   : > { %4559 = vmax.xlane.f32.xlu1 %v4538_v28 }
 0x909   : > { %4561 = vmax.xlane.f32.xlu0 %v4539_v38 }
 0x90a   : > { %v8933_v56 = vpop.f32.mrb[168].mxu1 }
 0x90b   : > { %4563 = vmax.xlane.f32.xlu1 %v4540_v59  ;;  %v4502_v58 = vpop.f32.mrb[169].mxu1  ;;  %v12163_v54 = vsel %vm13522_vm15, %v8933_v56, -1e+30 }
 0x90c   : > { %v8934_v35 = vpop.f32.mrb[170].mxu1  ;;  %v4541_v24 = vsel %vm13520_vm13, %v4502_v58, -1e+30 }
 0x90d   : > { %4565 = vmax.xlane.f32.xlu0 %v4541_v24  ;;  %v4505_v37 = vpop.f32.mrb[171].mxu1  ;;  %v12168_v1 = vsel %vm13523_vm9, %v8934_v35, -1e+30 }
 0x90e   : > { %v12158_v50 = vsel %vm13521_vm10, %v4505_v37, -1e+30 }
 0x90f   : > { %4567 = vmax.xlane.f32.xlu1 %v12158_v50 }
 0x911   : > { %4569 = vmax.xlane.f32.xlu0 %v12163_v54 }
 0x912   : > { %v8937_v34 = vpop.f32.mrb[172].mxu1 }
 0x913   : > { %4571 = vmax.xlane.f32.xlu1 %v12168_v1  ;;  %v4518_v58 = vpop.f32.mrb[173].mxu1  ;;  %v12183_v35 = vsel %vm13526_vm11, %v8937_v34, -1e+30 }
 0x914   : > { %v12173_v37 = vsel %vm13524_vm0, %v4518_v58, -1e+30  ;;  %v8938_v17 = vpop.f32.mrb[174].mxu1  ;;  %vm13528_vm0 = vcmask 523264  }
 0x915   : > { %4573 = vmax.xlane.f32.xlu0 %v12173_v37  ;;  %v4521_v63 = vpop.f32.mrb[175].mxu1  ;;  %v12188_v58 = vsel %vm13527_vm12, %v8938_v17, -1e+30  ;;  %vm13529_vm11 = vmmov %vm13528_vm0 }
 0x916   : > { %v12178_v56 = vsel %vm13525_vm14, %v4521_v63, -1e+30  ;;  %vm13530_vm13 = vmmov %vm13528_vm0 }
 0x917   : > { %4575 = vmax.xlane.f32.xlu1 %v12178_v56  ;;  %vm13531_vm15 = vmmov %vm13528_vm0 }
 0x918   : > { %vm13532_vm7 = vmmov %vm13528_vm0 }
 0x919   : > { %4577 = vmax.xlane.f32.xlu0 %v12183_v35  ;;  %vm13533_vm5 = vmmov %vm13528_vm0 }
 0x91a   : > { %vm13546_vm14 = vmmov %vm13528_vm0 }
 0x91b   : > { %4579 = vmax.xlane.f32.xlu1 %v12188_v58  ;;  %vm13547_vm12 = vmmov %vm13528_vm0 }
 0x98a   : > { %v4550_v26 = vpop.xlane.xlu0 %4549 }
 0x98b   : > { %v4581_v44 = vsub.f32 %v4533_v18, %v4550_v26 }
 0x98c   : > { %v4552_v3 = vpop.xlane.xlu1 %4551 }
 0x98d   : > { %v4597_v25 = vmul.f32 1.442695, %v4581_v44  ;;  %v4582_v63 = vsub.f32 %v4534_v14, %v4552_v3 }
 0x98e   : > { %v4554_v33 = vpop.xlane.xlu0 %4553 }
 0x98f   : > { %10300 = vpow2.f32 %v4597_v25  ;;  %v4599_v30 = vmul.f32 1.442695, %v4582_v63  ;;  %v4583_v12 = vsub.f32 %v4535_v51, %v4554_v33 }
 0x990   : > { %v4556_v4 = vpop.xlane.xlu1 %4555 }
 0x991   : > { %10302 = vpow2.f32 %v4599_v30  ;;  %v4601_v34 = vmul.f32 1.442695, %v4583_v12  ;;  %v4584_v7 = vsub.f32 %v4536_v60, %v4556_v4 }
 0x992   : > { %v4558_v8 = vpop.xlane.xlu0 %4557 }
 0x993   : > { %10304 = vpow2.f32 %v4601_v34  ;;  %v4603_v21 = vmul.f32 1.442695, %v4584_v7  ;;  %v4585_v17 = vsub.f32 %v4537_v22, %v4558_v8 }
 0x994   : > { %v4560_v6 = vpop.xlane.xlu1 %4559 }
 0x995   : > { %10306 = vpow2.f32 %v4603_v21  ;;  %v4605_v55 = vmul.f32 1.442695, %v4585_v17  ;;  %v4586_v47 = vsub.f32 %v4538_v28, %v4560_v6 }
 0x996   : > { %v4562_v26 = vpop.xlane.xlu0 %4561 }
 0x997   : > { %10308 = vpow2.f32 %v4605_v55  ;;  %v4607_v44 = vmul.f32 1.442695, %v4586_v47  ;;  %v4587_v3 = vsub.f32 %v4539_v38, %v4562_v26 }
 0x998   : > { %v4564_v18 = vpop.xlane.xlu1 %4563 }
 0x999   : > { %v12191_v25 = vpop.eup %10300  ;;  %10310 = vpow2.f32 %v4607_v44  ;;  %v4609_v33 = vmul.f32 1.442695, %v4587_v3  ;;  %v4588_v30 = vsub.f32 %v4540_v59, %v4564_v18 }
 0x99a   : > { %v4566_v12 = vpop.xlane.xlu0 %4565  ;;  %4629 = vadd.xlane.f32.xlu0 %v12191_v25 }
 0x99b   : > { %v12194_v4 = vpop.eup %10302  ;;  %10312 = vpow2.f32 %v4609_v33  ;;  %v4611_v8 = vmul.f32 1.442695, %v4588_v30  ;;  %v4589_v21 = vsub.f32 %v4541_v24, %v4566_v12 }
 0x99c   : > { %v4568_v7 = vpop.xlane.xlu1 %4567  ;;  %4631 = vadd.xlane.f32.xlu1 %v12194_v4 }
 0x99d   : > { %v12197_v55 = vpop.eup %10304  ;;  %10314 = vpow2.f32 %v4611_v8  ;;  %v4613_v47 = vmul.f32 1.442695, %v4589_v21  ;;  %v4590_v6 = vsub.f32 %v12158_v50, %v4568_v7 }
 0x99e   : > { %v4570_v14 = vpop.xlane.xlu0 %4569  ;;  %4633 = vadd.xlane.f32.xlu0 %v12197_v55 }
 0x99f   : > { %v12201_v51 = vpop.eup %10306  ;;  %10316 = vpow2.f32 %v4613_v47  ;;  %v4615_v60 = vmul.f32 1.442695, %v4590_v6  ;;  %v4591_v22 = vsub.f32 %v12163_v54, %v4570_v14 }
 0x9a0   : > { %v4572_v28 = vpop.xlane.xlu1 %4571  ;;  %4635 = vadd.xlane.f32.xlu1 %v12201_v51 }
 0x9a1   : > { %v12205_v38 = vpop.eup %10308  ;;  %10318 = vpow2.f32 %v4615_v60  ;;  %v4617_v59 = vmul.f32 1.442695, %v4591_v22  ;;  %v4592_v24 = vsub.f32 %v12168_v1, %v4572_v28  ;;  %v10108_v22 = vld [vmem:[#allocation7 + $0xc8] ss:$12 sps:$4 sm:$0xff]   ;;  %v10109_v28 = vld [vmem:[#allocation7 + $0xe0] ss:$12 sps:$4 sm:$0xff]  }
 0x9a2   : > { %4637 = vadd.xlane.f32.xlu0 %v12205_v38  ;;  %v4574_v50 = vpop.xlane.xlu0 %4573  ;;  %8971 = vmatprep.subr.bf16.mxu1 %v10108_v22 }
 0x9a3   : > { %v12209_v63 = vpop.eup %10310  ;;  %10320 = vpow2.f32 %v4617_v59  ;;  %v4619_v34 = vmul.f32 1.442695, %v4592_v24  ;;  %v4593_v17 = vsub.f32 %v12173_v37, %v4574_v50  ;;  %8972 = vmatpush3.bf16.msra.mxu1 %v10108_v22  ;;  %v10110_v59 = vld [vmem:[#allocation7 + $0xf8] ss:$12 sps:$4 sm:$0xff]   ;;  %v10111_v24 = vld [vmem:[#allocation7 + $0x110] ss:$12 sps:$4 sm:$0xff]  }
 0x9a4   : > { %4639 = vadd.xlane.f32.xlu1 %v12209_v63  ;;  %v4576_v54 = vpop.xlane.xlu1 %4575  ;;  %8973 = vmatprep.subr.bf16.mxu1 %v10109_v28 }
 0x9a5   : > { %v12213_v26 = vpop.eup %10312  ;;  %10322 = vpow2.f32 %v4619_v34  ;;  %v4621_v44 = vmul.f32 1.442695, %v4593_v17  ;;  %v4594_v3 = vsub.f32 %v12178_v56, %v4576_v54 }
 0x9a6   : > { %4641 = vadd.xlane.f32.xlu0 %v12213_v26  ;;  %v4578_v1 = vpop.xlane.xlu0 %4577 }
 0x9a7   : > { %v12217_v18 = vpop.eup %10314  ;;  %10324 = vpow2.f32 %v4621_v44  ;;  %v4623_v33 = vmul.f32 1.442695, %v4594_v3  ;;  %v4595_v30 = vsub.f32 %v12183_v35, %v4578_v1  ;;  %8974 = vmatpush3.bf16.msra.mxu1 %v10109_v28  ;;  %v10112_v44 = vld [vmem:[#allocation7 + $0xc0] ss:$12 sps:$4 sm:$0xff]  }
 0x9a8   : > { %4643 = vadd.xlane.f32.xlu1 %v12217_v18  ;;  %v4580_v37 = vpop.xlane.xlu1 %4579  ;;  %8975 = vmatprep.subr.bf16.mxu1 %v10110_v59 }
 0x9a9   : > { %v12221_v12 = vpop.eup %10316  ;;  %10326 = vpow2.f32 %v4623_v33  ;;  %v4625_v8 = vmul.f32 1.442695, %v4595_v30  ;;  %v4596_v21 = vsub.f32 %v12188_v58, %v4580_v37 }
 0x9aa   : > { %4645 = vadd.xlane.f32.xlu0 %v12221_v12 }
 0x9ab   : > { %v12225_v56 = vpop.eup %10318  ;;  %10328 = vpow2.f32 %v4625_v8  ;;  %v4627_v7 = vmul.f32 1.442695, %v4596_v21  ;;  %8976 = vmatpush3.bf16.msra.mxu1 %v10110_v59 }
 0x9ac   : > { %4647 = vadd.xlane.f32.xlu1 %v12225_v56  ;;  %8977 = vmatprep.subr.bf16.mxu1 %v10111_v24 }
 0x9ad   : > { %v12228_v47 = vpop.eup %10320  ;;  %10330 = vpow2.f32 %v4627_v7  ;;  %v10120_v7 = vld [vmem:[#allocation7 + $0xf4] ss:$12 sps:$4 sm:$0xff]  }
 0x9ae   : > { %4649 = vadd.xlane.f32.xlu0 %v12228_v47 }
 0x9af   : > { %v12231_v35 = vpop.eup %10322  ;;  %8978 = vmatpush3.bf16.msra.mxu1 %v10111_v24 }
 0x9b0   : > { %4651 = vadd.xlane.f32.xlu1 %v12231_v35 }
 0x9b1   : > { %v12234_v6 = vpop.eup %10324 }
 0x9b2   : > { %4653 = vadd.xlane.f32.xlu0 %v12234_v6 }
 0x9b3   : > { %v12237_v58 = vpop.eup %10326 }
 0x9b4   : > { %4655 = vadd.xlane.f32.xlu1 %v12237_v58 }
 0x9b5   : > { %v12240_v14 = vpop.eup %10328 }
 0x9b6   : > { %4657 = vadd.xlane.f32.xlu0 %v12240_v14 }
 0x9b7   : > { %v12243_v60 = vpop.eup %10330 }
 0x9b8   : > { %4659 = vadd.xlane.f32.xlu1 %v12243_v60 }
 0x9c9   : > { %5202 = vrot.lane.b32.xlu1 %v13456_v20, %s10724_s21 }
 0x9cc   : > { %5200 = vrot.lane.b32.xlu0 %v13445_v36, %s10724_s21  ;;  %v10114_v36 = vld [vmem:[#allocation7 + $0xc4] ss:$12 sps:$4 sm:$0xff]  }
 0x9cd   : > { %5204 = vrot.lane.b32.xlu1 %v13462_v52, %s10724_s21  ;;  %4910 = vmatprep.subr.bf16.mxu0 %v10114_v36 }
 0x9d0   : > { %5208 = vrot.lane.b32.xlu0 %v13476_v61, %s10724_s21 }
 0x9d1   : > { %5206 = vrot.lane.b32.xlu1 %v13467_v19, %s10724_s21 }
 0x9d4   : > { %5212 = vrot.lane.b32.xlu0 %v13487_v2, %s10724_s21 }
 0x9d5   : > { %5210 = vrot.lane.b32.xlu1 %v13481_v46, %s10724_s21 }
 0x9d8   : > { %5176 = vrot.lane.b32.xlu0 %v13474_v43, %s10724_s21 }
 0x9d9   : > { %5214 = vrot.lane.b32.xlu1 %v13493_v48, %s10724_s21 }
 0x9dc   : > { %5180 = vrot.lane.b32.xlu0 %v13499_v15, %s10724_s21 }
 0x9dd   : > { %5178 = vrot.lane.b32.xlu1 %v13497_v9, %s10724_s21 }
 0x9e0   : > { %5184 = vrot.lane.b32.xlu0 %v13504_v40, %s10724_s21 }
 0x9e1   : > { %5182 = vrot.lane.b32.xlu1 %v13502_v23, %s10724_s21 }
 0x9e4   : > { %5188 = vrot.lane.b32.xlu0 %v13508_v39, %s10724_s21 }
 0x9e5   : > { %5186 = vrot.lane.b32.xlu1 %v13506_v42, %s10724_s21 }
 0x9e9   : > { %5190 = vrot.lane.b32.xlu1 %v13510_v49, %s10724_s21 }
 0x9ed   : > { %5539 = vrot.lane.b32.xlu1 %v13473_v41, %s10724_s21 }
 0xa27   : > { %v4630_v20 = vpop.xlane.xlu0 %4629 }
 0xa28   : > { %10332 = vrcp.f32 %v4630_v20 }
 0xa29   : > { %v4632_v52 = vpop.xlane.xlu1 %4631 }
 0xa2a   : > { %10334 = vrcp.f32 %v4632_v52 }
 0xa2b   : > { %v4634_v19 = vpop.xlane.xlu0 %4633 }
 0xa2c   : > { %10336 = vrcp.f32 %v4634_v19 }
 0xa2d   : > { %v4636_v43 = vpop.xlane.xlu1 %4635 }
 0xa2e   : > { %10338 = vrcp.f32 %v4636_v43 }
 0xa2f   : > { %v4638_v61 = vpop.xlane.xlu0 %4637 }
 0xa30   : > { %10340 = vrcp.f32 %v4638_v61 }
 0xa31   : > { %v4640_v46 = vpop.xlane.xlu1 %4639 }
 0xa32   : > { %v10333_v2 = vpop.eup %10332  ;;  %10342 = vrcp.f32 %v4640_v46 }
 0xa33   : > { %v4642_v48 = vpop.xlane.xlu0 %4641  ;;  %v4677_v41 = vmul.f32 %v10333_v2, %v12191_v25  ;;  %v10117_v25 = vld [vmem:[#allocation7 + $0xdc] ss:$12 sps:$4 sm:$0xff]  }
 0xa34   : > { %v10335_v9 = vpop.eup %10334  ;;  %10344 = vrcp.f32 %v4642_v48 }
 0xa35   : > { %v4644_v15 = vpop.xlane.xlu1 %4643  ;;  %v4678_v23 = vmul.f32 %v10335_v9, %v12194_v4 }
 0xa36   : > { %v10337_v40 = vpop.eup %10336  ;;  %10346 = vrcp.f32 %v4644_v15 }
 0xa37   : > { %v4646_v42 = vpop.xlane.xlu0 %4645  ;;  %v4693_v39 = vpack.c.bf16 %v4678_v23, %v4677_v41  ;;  %v4679_v50 = vmul.f32 %v10337_v40, %v12197_v55  ;;  %v10115_v55 = vld [vmem:[#allocation7 + $0xd8] ss:$12 sps:$4 sm:$0xff]  }
 0xa38   : > { %v10339_v49 = vpop.eup %10338  ;;  %10348 = vrcp.f32 %v4646_v42 }
 0xa39   : > { %v4680_v34 = vmul.f32 %v10339_v49, %v12201_v51  ;;  %8955 = vmatprep.mubr.bf16.mxu0 %v4693_v39  ;;  %v4648_v17 = vpop.xlane.xlu1 %4647 }
 0xa3a   : > { %v10341_v54 = vpop.eup %10340  ;;  %10350 = vrcp.f32 %v4648_v17 }
 0xa3b   : > { %v4650_v3 = vpop.xlane.xlu0 %4649  ;;  %v4694_v1 = vpack.c.bf16 %v4680_v34, %v4679_v50  ;;  %v4681_v30 = vmul.f32 %v10341_v54, %v12205_v38  ;;  %v10118_v38 = vld [vmem:[#allocation7 + $0xf0] ss:$12 sps:$4 sm:$0xff]  }
 0xa3c   : > { %v10343_v33 = vpop.eup %10342  ;;  %10352 = vrcp.f32 %v4650_v3 }
 0xa3d   : > { %8956 = vmatmul.mubr.bf16.vlgmr.msra.gmra.mrb[168].mxu0 %v4694_v1  ;;  %v4652_v4 = vpop.xlane.xlu1 %4651  ;;  %v4682_v37 = vmul.f32 %v10343_v33, %v12209_v63 }
 0xa3e   : > { %v10345_v8 = vpop.eup %10344  ;;  %10354 = vrcp.f32 %v4652_v4  ;;  %4911 = vmatpush1.bf16.msra.mxu0 %v10112_v44 }
 0xa3f   : > { %v4654_v51 = vpop.xlane.xlu0 %4653  ;;  %v4695_v21 = vpack.c.bf16 %v4682_v37, %v4681_v30  ;;  %4912 = vmatprep.subr.bf16.mxu0 %v10117_v25  ;;  %v4683_v59 = vmul.f32 %v10345_v8, %v12213_v26 }
 0xa40   : > { %v10347_v22 = vpop.eup %10346  ;;  %10356 = vrcp.f32 %v4654_v51 }
 0xa41   : > { %8959 = vmatprep.mubr.bf16.mxu0 %v4695_v21  ;;  %v4656_v28 = vpop.xlane.xlu1 %4655  ;;  %v4684_v24 = vmul.f32 %v10347_v22, %v12217_v18 }
 0xa42   : > { %v10349_v36 = vpop.eup %10348  ;;  %10358 = vrcp.f32 %v4656_v28  ;;  %4913 = vmatpush1.bf16.msra.mxu0 %v10115_v55 }
 0xa43   : > { %v4658_v63 = vpop.xlane.xlu0 %4657  ;;  %v4696_v20 = vpack.c.bf16 %v4684_v24, %v4683_v59  ;;  %4914 = vmatprep.subr.bf16.mxu0 %v10120_v7  ;;  %v4685_v43 = vmul.f32 %v10349_v36, %v12221_v12 }
 0xa44   : > { %v10351_v52 = vpop.eup %10350  ;;  %10360 = vrcp.f32 %v4658_v63 }
 0xa45   : > { %8960 = vmatmul.mubr.bf16.gmra.mrb[172].mxu0 %v4696_v20  ;;  %v4660_v19 = vpop.xlane.xlu1 %4659  ;;  %v4686_v61 = vmul.f32 %v10351_v52, %v12225_v56 }
 0xa46   : > { %v10353_v46 = vpop.eup %10352  ;;  %10362 = vrcp.f32 %v4660_v19  ;;  %4915 = vmatpush1.bf16.msra.mxu0 %v10118_v38 }
 0xa47   : > { %v5201_v26 = vpop.permute.xlu0 %5200  ;;  %v4697_v18 = vpack.c.bf16 %v4686_v61, %v4685_v43  ;;  %v4687_v48 = vmul.f32 %v10353_v46, %v12228_v47  ;;  %v10123_v47 = vld [vmem:[#allocation7 + $0x10c] ss:$12 sps:$4 sm:$0xff]  }
 0xa48   : > { %v10355_v2 = vpop.eup %10354  ;;  %9659 = vmatprep.subr.msk.bf16.mxu1 %vm13528_vm0, %v5201_v26  ;;  %4916 = vmatprep.subr.bf16.mxu0 %v10123_v47  ;;  %v13559_v47 = vld [vmem:[#allocation26_spill] sm:$0xff] }
 0xa49   : > { %8963 = vmatprep.mubr.bf16.mxu0 %v4697_v18  ;;  %v4688_v9 = vmul.f32 %v10355_v2, %v12231_v35  ;;  %v10121_v35 = vld [vmem:[#allocation7 + $0x108] ss:$12 sps:$4 sm:$0xff]  }
 0xa4a   : > { %v10357_v15 = vpop.eup %10356  ;;  %4917 = vmatpush1.bf16.msra.mxu0 %v10121_v35 }
 0xa4b   : > { %v4698_v41 = vpack.c.bf16 %v4688_v9, %v4687_v48  ;;  %v4689_v12 = vmul.f32 %v10357_v15, %v12234_v6  ;;  %v5209_v22 = vpop.permute.xlu0 %5208 }
 0xa4c   : > { %v10359_v23 = vpop.eup %10358  ;;  %v5253_v2 = vsel %vm13547_vm12, %v5209_v22, 0  ;;  %vm13553_vm12 = vmmov %vm13528_vm0 }
 0xa4d   : > { %8964 = vmatmul.mubr.bf16.gmra.mrb[176].mxu0 %v4698_v41  ;;  %v4690_v56 = vmul.f32 %v10359_v23, %v12237_v58  ;;  %v10124_v23 = vld [vmem:[#allocation7 + $0x128] ss:$12 sps:$4 sm:$0xff]  }
 0xa4e   : > { %v10361_v40 = vpop.eup %10360 }
 0xa4f   : > { %v4699_v42 = vpack.c.bf16 %v4690_v56, %v4689_v12  ;;  %v4691_v49 = vmul.f32 %v10361_v40, %v12240_v14  ;;  %v5241_v14 = vsel %vm13531_vm15, %v5201_v26, 0  ;;  %vm13536_vm15 = vmmov %vm13528_vm0  ;;  %v5213_v20 = vpop.permute.xlu0 %5212  ;;  %v10125_v56 = vld [vmem:[#allocation7 + $0x140] ss:$12 sps:$4 sm:$0xff]  }
 0xa50   : > { %v10363_v39 = vpop.eup %10362 }
 0xa51   : > { %8967 = vmatprep.mubr.bf16.mxu0 %v4699_v42  ;;  %v4692_v50 = vmul.f32 %v10363_v39, %v12243_v60  ;;  %v5203_v60 = vpop.permute.xlu1 %5202  ;;  %v10126_v39 = vld [vmem:[#allocation7 + $0x158] ss:$12 sps:$4 sm:$0xff]  }
 0xa53   : > { %v4700_v34 = vpack.c.bf16 %v4692_v50, %v4691_v49  ;;  %v5177_v26 = vpop.permute.xlu0 %5176  ;;  %v10127_v49 = vld [vmem:[#allocation7 + $0x170] ss:$12 sps:$4 sm:$0xff]  }
 0xa55   : > { %8968 = vmatmul.mubr.bf16.gmra.mrb[180].mxu0 %v4700_v34  ;;  %v5205_v55 = vpop.permute.xlu1 %5204 }
 0xa56   : > { %4942 = vmatprep.mubr.bf16.mxu0 %v13438_v11 }
 0xa57   : > { %v5181_v42 = vpop.permute.xlu0 %5180 }
 0xa59   : > { %v5207_v38 = vpop.permute.xlu1 %5206 }
 0xa5a   : > { %v5250_v18 = vsel %vm13528_vm0, %v5207_v38, 0 }
 0xa5b   : > { %v5185_v34 = vpop.permute.xlu0 %5184 }
 0xa5d   : > { %v5211_v48 = vpop.permute.xlu1 %5210 }
 0xa61   : > { %v5215_v41 = vpop.permute.xlu1 %5214 }
 0xa65   : > { %v5179_v40 = vpop.permute.xlu1 %5178 }
 0xa69   : > { %v5183_v50 = vpop.permute.xlu1 %5182 }
 0xa6d   : > { %v5187_v35 = vpop.permute.xlu1 %5186 }
 0xb10   : > { %v8957_v17 = vpop.f32.mrb[168].mxu0 }
 0xb11   : > { %v4735_v6 = vpop.f32.mrb[169].mxu0 }
 0xb12   : > { %v8958_v54 = vpop.f32.mrb[170].mxu0 }
 0xb13   : > { %v4799_v58 = vpack.c.bf16 %v8958_v54, %v8957_v17  ;;  %v4738_v44 = vpop.f32.mrb[171].mxu0  ;;  %v5189_v17 = vpop.permute.xlu0 %5188 }
 0xb14   : > { %v4798_v3 = vpack.c.bf16 %v4738_v44, %v4735_v6  ;;  %v5191_v6 = vpop.permute.xlu1 %5190 }
 0xb16   : > { %8228 = vmatmul.mubr.msk.bf16.vlgmr.msra.gmra.mrb[128].mxu0 %vm13528_vm0, %v4798_v3  ;;  %8979 = vmatprep.mubr.msk.bf16.mxu1 %vm13529_vm11, %v4798_v3  ;;  %vm13534_vm11 = vmmov %vm13528_vm0 }
 0xb17   : > { %8980 = vmatmul.mubr.msk.bf16.vlgmr.msra.gmra.mrb[152].mxu1 %vm13530_vm13, %v4799_v58  ;;  %4952 = vmatprep.mubr.bf16.mxu0 %v13438_v11  ;;  %vm13535_vm13 = vmmov %vm13528_vm0 }
 0xb18   : > { %8996 = vmatpush3.bf16.xpose.msra.mxu1 %v5241_v14  ;;  %v8961_v1 = vpop.f32.mrb[172].mxu0  ;;  %v5244_v8 = vsel %vm13535_vm13, %v5203_v60, 0  ;;  %vm13540_vm13 = vmmov %vm13528_vm0 }
 0xb19   : > { %9660 = vmatprep.subr.msk.bf16.mxu1 %vm13532_vm7, %v5203_v60  ;;  %v4751_v25 = vpop.f32.mrb[173].mxu0  ;;  %vm13538_vm7 = vmmov %vm13528_vm0 }
 0xb1a   : > { %v8962_v33 = vpop.f32.mrb[174].mxu0 }
 0xb1b   : > { %v4801_v4 = vpack.c.bf16 %v8962_v33, %v8961_v1  ;;  %v4754_v30 = vpop.f32.mrb[175].mxu0 }
 0xb1c   : > { %v4800_v37 = vpack.c.bf16 %v4754_v30, %v4751_v25 }
 0xb1e   : > { %8229 = vmatmul.mubr.msk.bf16.gmra.mrb[132].mxu0 %vm13533_vm5, %v4799_v58  ;;  %8983 = vmatprep.mubr.msk.bf16.mxu1 %vm13528_vm0, %v4800_v37  ;;  %vm13537_vm5 = vmmov %vm13528_vm0 }
 0xb1f   : > { %8984 = vmatmul.mubr.msk.bf16.gmra.mrb[156].mxu1 %vm13534_vm11, %v4801_v4  ;;  %4962 = vmatprep.mubr.bf16.mxu0 %v13438_v11  ;;  %vm13539_vm11 = vmmov %vm13528_vm0 }
 0xb20   : > { %8998 = vmatpush3.bf16.xpose.msra.mxu1 %v5244_v8  ;;  %v8965_v51 = vpop.f32.mrb[176].mxu0  ;;  %v5247_v36 = vsel %vm13539_vm11, %v5205_v55, 0  ;;  %vm13544_vm11 = vmmov %vm13528_vm0 }
 0xb21   : > { %9661 = vmatprep.subr.msk.bf16.mxu1 %vm13536_vm15, %v5205_v55  ;;  %v4767_v21 = vpop.f32.mrb[177].mxu0  ;;  %vm13541_vm15 = vmmov %vm13528_vm0 }
 0xb22   : > { %v8966_v7 = vpop.f32.mrb[178].mxu0 }
 0xb23   : > { %v4803_v28 = vpack.c.bf16 %v8966_v7, %v8965_v51  ;;  %v4770_v59 = vpop.f32.mrb[179].mxu0 }
 0xb24   : > { %v4802_v24 = vpack.c.bf16 %v4770_v59, %v4767_v21 }
 0xb26   : > { %8230 = vmatmul.mubr.msk.bf16.gmra.mrb[136].mxu0 %vm13537_vm5, %v4800_v37  ;;  %8987 = vmatprep.mubr.msk.bf16.mxu1 %vm13538_vm7, %v4802_v24  ;;  %vm13542_vm5 = vmmov %vm13528_vm0 }
 0xb27   : > { %8988 = vmatmul.mubr.msk.bf16.gmra.mrb[144].mxu1 %vm13528_vm0, %v4803_v28  ;;  %4972 = vmatprep.mubr.bf16.mxu0 %v13438_v11  ;;  %vm13543_vm7 = vmmov %vm13528_vm0 }
 0xb28   : > { %9000 = vmatpush3.bf16.xpose.msra.mxu1 %v5247_v36  ;;  %v8969_v63 = vpop.f32.mrb[180].mxu0 }
 0xb29   : > { %9662 = vmatprep.subr.msk.bf16.mxu1 %vm13540_vm13, %v5207_v38  ;;  %v4783_v52 = vpop.f32.mrb[181].mxu0  ;;  %vm13545_vm13 = vmmov %vm13528_vm0 }
 0xb2a   : > { %v8970_v19 = vpop.f32.mrb[182].mxu0 }
 0xb2b   : > { %v4805_v43 = vpack.c.bf16 %v8970_v19, %v8969_v63  ;;  %v4786_v61 = vpop.f32.mrb[183].mxu0 }
 0xb2c   : > { %v4804_v46 = vpack.c.bf16 %v4786_v61, %v4783_v52 }
 0xb2e   : > { %8231 = vmatmul.mubr.msk.bf16.gmra.mrb[140].mxu0 %vm13541_vm15, %v4801_v4  ;;  %8991 = vmatprep.mubr.msk.bf16.mxu1 %vm13542_vm5, %v4804_v46  ;;  %vm13548_vm15 = vmmov %vm13528_vm0 }
 0xb2f   : > { %8992 = vmatmul.mubr.msk.bf16.gmra.mrb[148].mxu1 %vm13543_vm7, %v4805_v43  ;;  %4982 = vmatprep.mubr.bf16.mxu0 %v13438_v11  ;;  %vm13549_vm5 = vmmov %vm13528_vm0 }
 0xb30   : > { %9002 = vmatpush3.bf16.xpose.msra.mxu1 %v5250_v18  ;;  %9011 = vmatprep.mubr.msk.bf16.mxu1 %vm13544_vm11, %v5177_v26  ;;  %vm13550_vm7 = vmmov %vm13528_vm0 }
 0xb31   : > { %9663 = vmatprep.subr.msk.bf16.mxu1 %vm13545_vm13, %v5209_v22  ;;  %v5256_v9 = vsel %vm13550_vm7, %v5211_v48, 0  ;;  %vm13551_vm11 = vmmov %vm13528_vm0 }
 0xb32   : > { %vm13554_vm13 = vmmov %vm13528_vm0 }
 0xb33   : > { %vm13557_vm7 = vmmov %vm13528_vm0 }
 0xb36   : > { %8232 = vmatmul.mubr.msk.bf16.gmra.mrb[144].mxu0 %vm13546_vm14, %v4802_v24  ;;  %vm13552_vm14 = vmmov %vm13528_vm0 }
 0xb37   : > { %4992 = vmatprep.mubr.bf16.mxu0 %v13438_v11  ;;  %v5259_v15 = vsel %vm13552_vm14, %v5213_v20, 0  ;;  %vm13560_vm14 = vmmov %vm13528_vm0 }
 0xb38   : > { %9004 = vmatpush3.bf16.xpose.msra.mxu1 %v5253_v2 }
 0xb39   : > { %9664 = vmatprep.subr.msk.bf16.mxu1 %vm13548_vm15, %v5211_v48  ;;  %vm13555_vm15 = vmmov %vm13528_vm0  ;;  %v13575_v48 = vld [vmem:[#allocation71_spill] sm:$0xff] }
 0xb3a   : > { %v5262_v12 = vsel %vm13555_vm15, %v5215_v41, 0  ;;  %vm13563_vm15 = vmmov %vm13528_vm0 }
 0xb3e   : > { %8233 = vmatmul.mubr.msk.bf16.gmra.mrb[148].mxu0 %vm13549_vm5, %v4803_v28  ;;  %vm13556_vm5 = vmmov %vm13528_vm0 }
 0xb3f   : > { %5002 = vmatprep.mubr.bf16.mxu0 %v13438_v11 }
 0xb40   : > { %9006 = vmatpush3.bf16.xpose.msra.mxu1 %v5256_v9 }
 0xb41   : > { %9665 = vmatprep.subr.msk.bf16.mxu1 %vm13528_vm0, %v5213_v20 }
 0xb46   : > { %8234 = vmatmul.mubr.msk.bf16.gmra.mrb[152].mxu0 %vm13551_vm11, %v4804_v46  ;;  %vm13558_vm11 = vmmov %vm13528_vm0  ;;  %v13569_v46 = vld [vmem:[#allocation67_spill] sm:$0xff] }
 0xb47   : > { %5012 = vmatprep.mubr.bf16.mxu0 %v13438_v11 }
 0xb48   : > { %9008 = vmatpush3.bf16.xpose.msra.mxu1 %v5259_v15  ;;  %v13577_v15 = vld [vmem:[#allocation46_spill] sm:$0xff] }
 0xb49   : > { %9666 = vmatprep.subr.msk.bf16.mxu1 %vm13553_vm12, %v5215_v41  ;;  %vm13561_vm12 = vmmov %vm13528_vm0  ;;  %v13578_v41 = vld [vmem:[#allocation48_spill] sm:$0xff] }
 0xb4e   : > { %8235 = vmatmul.mubr.msk.bf16.gmra.mrb[156].mxu0 %vm13554_vm13, %v4805_v43  ;;  %vm13562_vm13 = vmmov %vm13528_vm0  ;;  %v13567_v43 = vld [vmem:[#allocation66_spill] sm:$0xff] }
 0xb50   : > { %9010 = vmatpush3.bf16.xpose.msra.mxu1 %v5262_v12  ;;  %v13580_v12 = vld [vmem:[#allocation54_spill] sm:$0xff] }
 0xb51   : > { %9059 = vmatprep.subr.bf16.mxu1 %v10124_v23 }
 0xb57   : > { %9012 = vmatmul.mubr.msk.bf16.vlgmr.msra.gmra.mrb[176].mxu1 %vm13556_vm5, %v5179_v40  ;;  %vm13564_vm5 = vnez %v13431_v16 }
 0xb58   : > { %9015 = vmatprep.mubr.msk.bf16.mxu1 %vm13557_vm7, %v5181_v42  ;;  %9060 = vmatpush3.bf16.msra.mxu1 %v10124_v23  ;;  %vm13565_vm7 = vnez %v13433_v13  ;;  %v13579_v23 = vld [vmem:[#allocation50_spill] sm:$0xff]  ;;  %v5540_v42 = vpop.permute.xlu1 %5539 }
 0xb59   : > { %9061 = vmatprep.subr.bf16.mxu1 %v10125_v56 }
 0xb5c   : > { %9062 = vmatpush3.bf16.msra.mxu1 %v10125_v56 }
 0xb5d   : > { %9063 = vmatprep.subr.bf16.mxu1 %v10126_v39 }
 0xb5f   : > { %9016 = vmatmul.mubr.msk.bf16.gmra.mrb[180].mxu1 %vm13528_vm0, %v5183_v50  ;;  %vm13566_vm0 = vnez %v13372_v10 }
 0xb60   : > { %9019 = vmatprep.mubr.msk.bf16.mxu1 %vm13558_vm11, %v5185_v34  ;;  %9064 = vmatpush3.bf16.msra.mxu1 %v10126_v39  ;;  %vm13568_vm11 = vnez %v13567_v43 }
 0xb61   : > { %9065 = vmatprep.subr.bf16.mxu1 %v10127_v49 }
 0xb64   : > { %9066 = vmatpush3.bf16.msra.mxu1 %v10127_v49 }
 0xb65   : > { %9667 = vmatprep.subr.msk.bf16.mxu1 %vm13560_vm14, %v13559_v47  ;;  %vm13570_vm14 = vnez %v13569_v46 }
 0xb67   : > { %9020 = vmatmul.mubr.msk.bf16.gmra.mrb[184].mxu1 %vm13561_vm12, %v5187_v35 }
 0xb68   : > { %9023 = vmatprep.mubr.msk.bf16.mxu1 %vm13562_vm13, %v5189_v17 }
 0xb6f   : > { %9024 = vmatmul.mubr.msk.bf16.gmra.mrb[188].mxu1 %vm13563_vm15, %v5191_v6  ;;  %vm13576_vm15 = vnez %v13575_v48 }
 0xc2a   : > { %v9013_v54 = vpop.f32.mrb[176].mxu1 }
 0xc2b   : > { %v5363_v58 = vsel %vm11512_vm1, %v9013_v54, -1e+30  ;;  %v5298_v44 = vpop.f32.mrb[177].mxu1 }
 0xc2c   : > { %5381 = vmax.xlane.f32.xlu0 %v5363_v58  ;;  %v9014_v3 = vpop.f32.mrb[178].mxu1  ;;  %v5361_v1 = vsel %vm11519_vm2, %v5298_v44, -1e+30 }
 0xc2d   : > { %v5301_v14 = vpop.f32.mrb[179].mxu1  ;;  %v5364_v33 = vsel %vm11534_vm3, %v9014_v3, -1e+30 }
 0xc2e   : > { %v12350_v60 = vsel %vm11541_vm4, %v5301_v14, -1e+30 }
 0xc2f   : > { %5379 = vmax.xlane.f32.xlu1 %v12350_v60 }
 0xc30   : > { %5377 = vmax.xlane.f32.xlu0 %v5361_v1 }
 0xc32   : > { %v9017_v25 = vpop.f32.mrb[180].mxu1 }
 0xc33   : > { %v5314_v4 = vpop.f32.mrb[181].mxu1  ;;  %v12393_v19 = vsel %vm13566_vm0, %v9017_v25, -1e+30 }
 0xc34   : > { %5383 = vmax.xlane.f32.xlu0 %v5364_v33  ;;  %v9018_v30 = vpop.f32.mrb[182].mxu1  ;;  %v5365_v61 = vsel %vm13568_vm11, %v5314_v4, -1e+30  ;;  %v13581_v4 = vld [vmem:[#allocation56_spill] sm:$0xff] }
 0xc35   : > { %v12359_v37 = vsel %vm11563_vm6, %v9018_v30, -1e+30  ;;  %v5317_v8 = vpop.f32.mrb[183].mxu1 }
 0xc36   : > { %5391 = vmax.xlane.f32.xlu1 %v12359_v37  ;;  %v12364_v55 = vsel %vm11585_vm8, %v5317_v8, -1e+30 }
 0xc3a   : > { %5387 = vmax.xlane.f32.xlu1 %v12364_v55  ;;  %v9021_v51 = vpop.f32.mrb[184].mxu1 }
 0xc3b   : > { %v5330_v21 = vpop.f32.mrb[185].mxu1  ;;  %v12400_v26 = vsel %vm13570_vm14, %v9021_v51, -1e+30 }
 0xc3c   : > { %v9022_v7 = vpop.f32.mrb[186].mxu1 }
 0xc3d   : > { %v12369_v22 = vsel %vm13523_vm9, %v9022_v7, -1e+30  ;;  %v5333_v28 = vpop.f32.mrb[187].mxu1 }
 0xc3e   : > { %5399 = vmax.xlane.f32.xlu1 %v12369_v22  ;;  %v12374_v59 = vsel %vm13521_vm10, %v5333_v28, -1e+30 }
 0xc42   : > { %5395 = vmax.xlane.f32.xlu1 %v12374_v59  ;;  %v9025_v24 = vpop.f32.mrb[188].mxu1 }
 0xc43   : > { %v5346_v36 = vpop.f32.mrb[189].mxu1 }
 0xc44   : > { %v9026_v38 = vpop.f32.mrb[190].mxu1  ;;  %v12415_v9 = vsel %vm13576_vm15, %v5346_v36, -1e+30 }
 0xc45   : > { %v12379_v63 = vsel %vm13564_vm5, %v9026_v38, -1e+30  ;;  %v5349_v20 = vpop.f32.mrb[191].mxu1  ;;  %vm13583_vm5 = vcmask 523264  }
 0xc46   : > { %5407 = vmax.xlane.f32.xlu1 %v12379_v63  ;;  %v12384_v52 = vsel %vm13565_vm7, %v5349_v20, -1e+30  ;;  %vm13585_vm7 = vmmov %vm13583_vm5 }
 0xc47   : > { %vm13586_vm15 = vmmov %vm13583_vm5 }
 0xc48   : > { %vm13589_vm9 = vmmov %vm13583_vm5 }
 0xc49   : > { %vm13609_vm14 = vmmov %vm13583_vm5 }
 0xc4a   : > { %5537 = vrot.lane.b32.xlu0 %v13469_v27, %s10724_s21  ;;  %5403 = vmax.xlane.f32.xlu1 %v12384_v52  ;;  %v13571_v27 = vld [vmem:[#allocation68_spill] sm:$0xff]  ;;  %vm13626_vm10 = vmmov %vm13583_vm5 }
 0xc4b   : > { %vm13572_vm12 = vnez %v13571_v27 }
 0xc4c   : > { %v12405_v18 = vsel %vm13572_vm12, %v5330_v21, -1e+30 }
 0xc5b   : > { %5547 = vrot.lane.b32.xlu1 %v13486_v53, %s10724_s21  ;;  %v13573_v53 = vld [vmem:[#allocation70_spill] sm:$0xff] }
 0xc5c   : > { %vm13574_vm13 = vnez %v13573_v53 }
 0xc5d   : > { %v12410_v2 = vsel %vm13574_vm13, %v9025_v24, -1e+30  ;;  %vm13584_vm13 = vmmov %vm13583_vm5 }
 0xc69   : > { %5389 = vmax.xlane.f32.xlu0 %v12393_v19 }
 0xc6d   : > { %5385 = vmax.xlane.f32.xlu0 %v5365_v61 }
 0xc71   : > { %5397 = vmax.xlane.f32.xlu0 %v12400_v26 }
 0xc75   : > { %5393 = vmax.xlane.f32.xlu0 %v12405_v18 }
 0xc79   : > { %5405 = vmax.xlane.f32.xlu0 %v12410_v2 }
 0xc7d   : > { %5401 = vmax.xlane.f32.xlu0 %v12415_v9 }
 0xc93   : > { %5541 = vrot.lane.b32.xlu0 %v13577_v15, %s10724_s21 }
 0xc97   : > { %5543 = vrot.lane.b32.xlu0 %v13578_v41, %s10724_s21 }
 0xc9b   : > { %5545 = vrot.lane.b32.xlu0 %v13579_v23, %s10724_s21 }
 0xc9f   : > { %5549 = vrot.lane.b32.xlu0 %v13580_v12, %s10724_s21 }
 0xcb9   : > { %v5382_v56 = vpop.xlane.xlu0 %5381 }
 0xcba   : > { %v5411_v40 = vsub.f32 %v5363_v58, %v5382_v56 }
 0xcbc   : > { %v5429_v39 = vmul.f32 1.442695, %v5411_v40  ;;  %v5380_v34 = vpop.xlane.xlu1 %5379 }
 0xcbd   : > { %v5378_v49 = vpop.xlane.xlu0 %5377  ;;  %v5410_v6 = vsub.f32 %v12350_v60, %v5380_v34 }
 0xcbe   : > { %10364 = vpow2.f32 %v5429_v39  ;;  %v5409_v50 = vsub.f32 %v5361_v1, %v5378_v49 }
 0xcbf   : > { %v5427_v14 = vmul.f32 1.442695, %v5410_v6 }
 0xcc0   : > { %v5425_v35 = vmul.f32 1.442695, %v5409_v50 }
 0xcc1   : > { %v5384_v17 = vpop.xlane.xlu0 %5383 }
 0xcc2   : > { %10366 = vpow2.f32 %v5425_v35  ;;  %v5412_v54 = vsub.f32 %v5364_v33, %v5384_v17 }
 0xcc3   : > { %v5392_v33 = vpop.xlane.xlu1 %5391 }
 0xcc4   : > { %v5431_v44 = vmul.f32 1.442695, %v5412_v54  ;;  %v5416_v23 = vsub.f32 %v12359_v37, %v5392_v33 }
 0xcc5   : > { %v5538_v3 = vpop.permute.xlu0 %5537 }
 0xcc6   : > { %10368 = vpow2.f32 %v5431_v44  ;;  %9027 = vmatprep.subr.bf16.mxu0 %v5538_v3 }
 0xcc7   : > { %9028 = vmatpush3.bf16.msra.mxu0 %v5538_v3  ;;  %10370 = vpow2.f32 %v5427_v14  ;;  %v5388_v30 = vpop.xlane.xlu1 %5387 }
 0xcc8   : > { %v12427_v25 = vpop.eup %10364  ;;  %9029 = vmatprep.subr.bf16.mxu0 %v5540_v42  ;;  %v5414_v21 = vsub.f32 %v12364_v55, %v5388_v30  ;;  %v5439_v55 = vmul.f32 1.442695, %v5416_v23 }
 0xcc9   : > { %5461 = vadd.xlane.f32.xlu1 %v12427_v25 }
 0xcca   : > { %v5435_v24 = vmul.f32 1.442695, %v5414_v21 }
 0xccb   : > { %9030 = vmatpush3.bf16.msra.mxu0 %v5540_v42  ;;  %v5400_v8 = vpop.xlane.xlu1 %5399 }
 0xccc   : > { %v12430_v58 = vpop.eup %10366  ;;  %10372 = vpow2.f32 %v5435_v24  ;;  %v5420_v40 = vsub.f32 %v12369_v22, %v5400_v8 }
 0xccd   : > { %5457 = vadd.xlane.f32.xlu1 %v12430_v58 }
 0xcce   : > { %v5447_v50 = vmul.f32 1.442695, %v5420_v40 }
 0xccf   : > { %v5396_v51 = vpop.xlane.xlu1 %5395 }
 0xcd0   : > { %v12433_v60 = vpop.eup %10368  ;;  %v5418_v36 = vsub.f32 %v12374_v59, %v5396_v51 }
 0xcd1   : > { %5463 = vadd.xlane.f32.xlu1 %v12433_v60  ;;  %v12436_v1 = vpop.eup %10370 }
 0xcd2   : > { %v5443_v12 = vmul.f32 1.442695, %v5418_v36 }
 0xcd3   : > { %v5408_v28 = vpop.xlane.xlu1 %5407 }
 0xcd4   : > { %v5424_v37 = vsub.f32 %v12379_v63, %v5408_v28 }
 0xcd5   : > { %5459 = vadd.xlane.f32.xlu1 %v12436_v1 }
 0xcd6   : > { %v12450_v17 = vpop.eup %10372  ;;  %v5455_v54 = vmul.f32 1.442695, %v5424_v37 }
 0xcd7   : > { %v5404_v42 = vpop.xlane.xlu1 %5403 }
 0xcd8   : > { %v5422_v49 = vsub.f32 %v12384_v52, %v5404_v42 }
 0xcdb   : > { %v5548_v28 = vpop.permute.xlu1 %5547 }
 0xce6   : > { %5551 = vrot.lane.b32.xlu1 %v13581_v4, %s10724_s21 }
 0xcf6   : > { %v5390_v7 = vpop.xlane.xlu0 %5389 }
 0xcf7   : > { %v5415_v20 = vsub.f32 %v12393_v19, %v5390_v7 }
 0xcf9   : > { %v5437_v39 = vmul.f32 1.442695, %v5415_v20 }
 0xcfa   : > { %v5386_v38 = vpop.xlane.xlu0 %5385 }
 0xcfb   : > { %v5413_v15 = vsub.f32 %v5365_v61, %v5386_v38  ;;  %v5451_v61 = vmul.f32 1.442695, %v5422_v49 }
 0xcfd   : > { %v5433_v41 = vmul.f32 1.442695, %v5413_v15 }
 0xcfe   : > { %v5398_v56 = vpop.xlane.xlu0 %5397 }
 0xcff   : > { %10374 = vpow2.f32 %v5433_v41  ;;  %v5419_v22 = vsub.f32 %v12400_v26, %v5398_v56  ;;  %v10130_v56 = vld [vmem:[#allocation7 + $0x124] ss:$12 sps:$4 sm:$0xff]  }
 0xd00   : > { %10376 = vpow2.f32 %v5443_v12 }
 0xd01   : > { %10378 = vpow2.f32 %v5437_v39 }
 0xd02   : > { %v5394_v59 = vpop.xlane.xlu0 %5393  ;;  %10380 = vpow2.f32 %v5439_v55 }
 0xd03   : > { %v5417_v19 = vsub.f32 %v12405_v18, %v5394_v59  ;;  %10382 = vpow2.f32 %v5447_v50  ;;  %v5445_v18 = vmul.f32 1.442695, %v5419_v22 }
 0xd04   : > { %10384 = vpow2.f32 %v5451_v61 }
 0xd05   : > { %v5441_v35 = vmul.f32 1.442695, %v5417_v19 }
 0xd06   : > { %v5406_v34 = vpop.xlane.xlu0 %5405 }
 0xd07   : > { %10386 = vpow2.f32 %v5441_v35  ;;  %v5423_v14 = vsub.f32 %v12410_v2, %v5406_v34  ;;  %v10128_v34 = vld [vmem:[#allocation7 + $0x120] ss:$12 sps:$4 sm:$0xff]   ;;  %v10133_v35 = vld [vmem:[#allocation7 + $0x13c] ss:$12 sps:$4 sm:$0xff]  }
 0xd08   : > { %10388 = vpow2.f32 %v5455_v54  ;;  %v10131_v54 = vld [vmem:[#allocation7 + $0x138] ss:$12 sps:$4 sm:$0xff]  }
 0xd09   : > { %v12452_v6 = vpop.eup %10374  ;;  %10390 = vpow2.f32 %v5445_v18  ;;  %v5453_v8 = vmul.f32 1.442695, %v5423_v14  ;;  %v10134_v18 = vld [vmem:[#allocation7 + $0x150] ss:$12 sps:$4 sm:$0xff]  }
 0xd0a   : > { %5465 = vadd.xlane.f32.xlu0 %v12452_v6  ;;  %v5402_v52 = vpop.xlane.xlu0 %5401  ;;  %5467 = vadd.xlane.f32.xlu1 %v12450_v17  ;;  %v12457_v44 = vpop.eup %10376 }
 0xd0b   : > { %v5421_v63 = vsub.f32 %v12415_v9, %v5402_v52  ;;  %v12459_v3 = vpop.eup %10378  ;;  %v10136_v52 = vld [vmem:[#allocation7 + $0x154] ss:$12 sps:$4 sm:$0xff]  }
 0xd0c   : > { %v12464_v4 = vpop.eup %10380 }
 0xd0d   : > { %v5449_v33 = vmul.f32 1.442695, %v5421_v63  ;;  %v12466_v30 = vpop.eup %10382 }
 0xd0e   : > { %5469 = vadd.xlane.f32.xlu0 %v12459_v3  ;;  %v5542_v26 = vpop.permute.xlu0 %5541  ;;  %5475 = vadd.xlane.f32.xlu1 %v12457_v44  ;;  %v12470_v51 = vpop.eup %10384 }
 0xd0f   : > { %9031 = vmatprep.subr.bf16.mxu0 %v5542_v26  ;;  %10392 = vpow2.f32 %v5449_v33 }
 0xd10   : > { %9032 = vmatpush3.bf16.msra.mxu0 %v5542_v26  ;;  %10394 = vpow2.f32 %v5453_v8 }
 0xd11   : > { %v12472_v21 = vpop.eup %10386 }
 0xd12   : > { %v5544_v9 = vpop.permute.xlu0 %5543  ;;  %5471 = vadd.xlane.f32.xlu0 %v12464_v4  ;;  %5479 = vadd.xlane.f32.xlu1 %v12466_v30  ;;  %v12476_v7 = vpop.eup %10388 }
 0xd13   : > { %9033 = vmatprep.subr.bf16.mxu0 %v5544_v9  ;;  %v12478_v24 = vpop.eup %10390 }
 0xd14   : > { %9034 = vmatpush3.bf16.msra.mxu0 %v5544_v9 }
 0xd16   : > { %v5546_v2 = vpop.permute.xlu0 %5545  ;;  %5473 = vadd.xlane.f32.xlu0 %v12472_v21  ;;  %5483 = vadd.xlane.f32.xlu1 %v12470_v51 }
 0xd17   : > { %9035 = vmatprep.subr.bf16.mxu0 %v5546_v2 }
 0xd18   : > { %9036 = vmatpush3.bf16.msra.mxu0 %v5546_v2 }
 0xd19   : > { %9037 = vmatprep.subr.bf16.mxu0 %v5548_v28  ;;  %v12482_v38 = vpop.eup %10392 }
 0xd1a   : > { %5477 = vadd.xlane.f32.xlu0 %v12478_v24  ;;  %5487 = vadd.xlane.f32.xlu1 %v12476_v7  ;;  %v5550_v36 = vpop.permute.xlu0 %5549  ;;  %v12485_v20 = vpop.eup %10394 }
 0xd1c   : > { %9038 = vmatpush3.bf16.msra.mxu0 %v5548_v28 }
 0xd1d   : > { %9039 = vmatprep.subr.bf16.mxu0 %v5550_v36 }
 0xd1e   : > { %5481 = vadd.xlane.f32.xlu0 %v12482_v38 }
 0xd20   : > { %9040 = vmatpush3.bf16.msra.mxu0 %v5550_v36 }
 0xd22   : > { %5485 = vadd.xlane.f32.xlu0 %v12485_v20 }
 0xd56   : > { %v5462_v15 = vpop.xlane.xlu1 %5461 }
 0xd5a   : > { %v5458_v41 = vpop.xlane.xlu1 %5457 }
 0xd5e   : > { %v5464_v23 = vpop.xlane.xlu1 %5463 }
 0xd5f   : > { %10396 = vrcp.f32 %v5464_v23 }
 0xd60   : > { %10398 = vrcp.f32 %v5458_v41 }
 0xd61   : > { %10400 = vrcp.f32 %v5462_v15 }
 0xd62   : > { %v5460_v12 = vpop.xlane.xlu1 %5459 }
 0xd63   : > { %10402 = vrcp.f32 %v5460_v12 }
 0xd66   : > { %v5552_v40 = vpop.permute.xlu1 %5551 }
 0xd67   : > { %9041 = vmatprep.subr.bf16.mxu0 %v5552_v40 }
 0xd68   : > { %9042 = vmatpush3.bf16.msra.mxu0 %v5552_v40 }
 0xd69   : > { %5770 = vmatprep.subr.bf16.mxu0 %v10130_v56  ;;  %v10397_v42 = vpop.eup %10396 }
 0xd6a   : > { %v10399_v39 = vpop.eup %10398  ;;  %v5508_v59 = vmul.f32 %v10397_v42, %v12433_v60  ;;  %v10139_v60 = vld [vmem:[#allocation7 + $0x16c] ss:$12 sps:$4 sm:$0xff]  }
 0xd6b   : > { %v10401_v55 = vpop.eup %10400  ;;  %v5505_v50 = vmul.f32 %v10399_v39, %v12430_v58  ;;  %v10137_v58 = vld [vmem:[#allocation7 + $0x168] ss:$12 sps:$4 sm:$0xff]  }
 0xd6c   : > { %v5507_v37 = vmul.f32 %v10401_v55, %v12427_v25 }
 0xd6d   : > { %v10403_v49 = vpop.eup %10402 }
 0xd6e   : > { %v5506_v19 = vmul.f32 %v10403_v49, %v12436_v1  ;;  %v5522_v22 = vpack.c.bf16 %v5508_v59, %v5507_v37  ;;  %v13582_v1 = vld [vmem:[#allocation58_spill] sm:$0xff] }
 0xd70   : > { %v5521_v61 = vpack.c.bf16 %v5506_v19, %v5505_v50 }
 0xd72   : > { %9043 = vmatprep.mubr.bf16.mxu0 %v5521_v61 }
 0xd73   : > { %9044 = vmatmul.mubr.bf16.vlgmr.msra.gmra.mrb[184].mxu0 %v5522_v22 }
 0xd74   : > { %5771 = vmatpush1.bf16.msra.mxu0 %v10128_v34 }
 0xd75   : > { %5772 = vmatprep.subr.bf16.mxu0 %v10133_v35 }
 0xd78   : > { %5773 = vmatpush1.bf16.msra.mxu0 %v10131_v54 }
 0xd79   : > { %5774 = vmatprep.subr.bf16.mxu0 %v10136_v52 }
 0xd7c   : > { %5775 = vmatpush1.bf16.msra.mxu0 %v10134_v18 }
 0xd7d   : > { %5776 = vmatprep.subr.bf16.mxu0 %v10139_v60 }
 0xd80   : > { %5777 = vmatpush1.bf16.msra.mxu0 %v10137_v58 }
 0xd81   : > { %9115 = vmatprep.subr.bf16.mxu0 %v13582_v1 }
 0xd97   : > { %v5466_v25 = vpop.xlane.xlu0 %5465  ;;  %v5468_v63 = vpop.xlane.xlu1 %5467 }
 0xd98   : > { %10404 = vrcp.f32 %v5466_v25 }
 0xd99   : > { %10406 = vrcp.f32 %v5468_v63 }
 0xd9b   : > { %v5470_v26 = vpop.xlane.xlu0 %5469  ;;  %v5476_v14 = vpop.xlane.xlu1 %5475 }
 0xd9c   : > { %10408 = vrcp.f32 %v5470_v26 }
 0xd9f   : > { %v5472_v33 = vpop.xlane.xlu0 %5471  ;;  %v5480_v9 = vpop.xlane.xlu1 %5479 }
 0xda0   : > { %10410 = vrcp.f32 %v5472_v33 }
 0xda1   : > { %10412 = vrcp.f32 %v5476_v14 }
 0xda2   : > { %v10405_v8 = vpop.eup %10404 }
 0xda3   : > { %v10407_v2 = vpop.eup %10406  ;;  %v5474_v28 = vpop.xlane.xlu0 %5473  ;;  %v5509_v36 = vmul.f32 %v10405_v8, %v12452_v6  ;;  %v13590_v8 = vld [vmem:[#allocation60_spill] sm:$0xff] }
 0xda4   : > { %10414 = vrcp.f32 %v5474_v28  ;;  %v5510_v15 = vmul.f32 %v10407_v2, %v12450_v17  ;;  %v5484_v41 = vpop.xlane.xlu1 %5483  ;;  %v13592_v28 = vld [vmem:[#allocation59_spill] sm:$0xff] }
 0xda5   : > { %10416 = vrcp.f32 %v5480_v9 }
 0xda6   : > { %v5523_v23 = vpack.c.bf16 %v5510_v15, %v5509_v36  ;;  %v10409_v56 = vpop.eup %10408  ;;  %v13593_v36 = vld [vmem:[#allocation32_spill] sm:$0xff]  ;;  %v13595_v15 = vld [vmem:[#allocation62_spill] sm:$0xff] }
 0xda7   : > { %v5478_v12 = vpop.xlane.xlu0 %5477  ;;  %v5511_v55 = vmul.f32 %v10409_v56, %v12459_v3  ;;  %v13600_v56 = vld [vmem:[#allocation64_spill] sm:$0xff] }
 0xda8   : > { %10418 = vrcp.f32 %v5478_v12  ;;  %9047 = vmatprep.mubr.bf16.mxu0 %v5523_v23  ;;  %v5488_v42 = vpop.xlane.xlu1 %5487  ;;  %v13597_v23 = vld [vmem:[#allocation61_spill] sm:$0xff]  ;;  %v13598_v12 = vld [vmem:[#allocation35_spill] sm:$0xff] }
 0xda9   : > { %10420 = vrcp.f32 %v5484_v41 }
 0xdaa   : > { %v10411_v40 = vpop.eup %10410 }
 0xdab   : > { %v5482_v39 = vpop.xlane.xlu0 %5481  ;;  %v5512_v49 = vmul.f32 %v10411_v40, %v12464_v4  ;;  %v10413_v59 = vpop.eup %10412  ;;  %v6086_v40 = vsel %vm13583_vm5, %v13598_v12, 0 }
 0xdac   : > { %10422 = vrcp.f32 %v5482_v39  ;;  %v5514_v37 = vmul.f32 %v10413_v59, %v12457_v44  ;;  %v13602_v39 = vld [vmem:[#allocation37_spill] sm:$0xff] }
 0xdad   : > { %v5524_v6 = vpack.c.bf16 %v5512_v49, %v5511_v55  ;;  %10424 = vrcp.f32 %v5488_v42  ;;  %v13601_v42 = vld [vmem:[#allocation63_spill] sm:$0xff] }
 0xdae   : > { %v10415_v50 = vpop.eup %10414  ;;  %v13605_v49 = vld [vmem:[#allocation39_spill] sm:$0xff] }
 0xdaf   : > { %v5486_v17 = vpop.xlane.xlu0 %5485  ;;  %9048 = vmatmul.mubr.bf16.gmra.mrb[188].mxu0 %v5524_v6  ;;  %v5513_v19 = vmul.f32 %v10415_v50, %v12472_v21  ;;  %v10417_v61 = vpop.eup %10416  ;;  %v13608_v6 = vld [vmem:[#allocation41_spill] sm:$0xff] }
 0xdb0   : > { %10426 = vrcp.f32 %v5486_v17  ;;  %v5516_v4 = vmul.f32 %v10417_v61, %v12466_v30  ;;  %v6095_v50 = vsel %vm13609_vm14, %v13608_v6, 0  ;;  %v13610_v17 = vld [vmem:[#allocation43_spill] sm:$0xff]  ;;  %vm13615_vm14 = vmmov %vm13583_vm5 }
 0xdb1   : > { %v5525_v34 = vpack.c.bf16 %v5514_v37, %v5513_v19 }
 0xdb2   : > { %v10419_v22 = vpop.eup %10418 }
 0xdb3   : > { %9051 = vmatprep.mubr.bf16.mxu0 %v5525_v34  ;;  %v5515_v3 = vmul.f32 %v10419_v22, %v12478_v24  ;;  %v10421_v35 = vpop.eup %10420 }
 0xdb4   : > { %v5518_v60 = vmul.f32 %v10421_v35, %v12470_v51  ;;  %v6077_v51 = vsel %vm13586_vm15, %v13559_v47, 0  ;;  %vm13599_vm15 = vmmov %vm13583_vm5 }
 0xdb5   : > { %v5526_v54 = vpack.c.bf16 %v5516_v4, %v5515_v3 }
 0xdb6   : > { %v10423_v52 = vpop.eup %10422 }
 0xdb7   : > { %9052 = vmatmul.mubr.bf16.gmra.mrb[192].mxu0 %v5526_v54  ;;  %v5517_v18 = vmul.f32 %v10423_v52, %v12482_v38  ;;  %v10425_v21 = vpop.eup %10424 }
 0xdb8   : > { %v5520_v63 = vmul.f32 %v10425_v21, %v12476_v7  ;;  %v13587_v7 = vld [vmem:[#allocation57_spill] sm:$0xff] }
 0xdb9   : > { %v5527_v58 = vpack.c.bf16 %v5518_v60, %v5517_v18 }
 0xdba   : > { %v10427_v44 = vpop.eup %10426 }
 0xdbb   : > { %9055 = vmatprep.mubr.bf16.mxu0 %v5527_v58  ;;  %v5519_v25 = vmul.f32 %v10427_v44, %v12485_v20  ;;  %v13588_v20 = vld [vmem:[#allocation29_spill] sm:$0xff] }
 0xdbd   : > { %v5528_v26 = vpack.c.bf16 %v5520_v63, %v5519_v25 }
 0xdbf   : > { %9056 = vmatmul.mubr.bf16.gmra.mrb[196].mxu0 %v5528_v26 }
 0xdc0   : > { %5802 = vmatprep.mubr.bf16.mxu0 %v13438_v11 }
 0xe46   : > { %v9045_v30 = vpop.f32.mrb[184].mxu0 }
 0xe47   : > { %v5595_v24 = vpop.f32.mrb[185].mxu0 }
 0xe48   : > { %v9046_v14 = vpop.f32.mrb[186].mxu0 }
 0xe49   : > { %v5659_v33 = vpack.c.bf16 %v9046_v14, %v9045_v30  ;;  %v5598_v9 = vpop.f32.mrb[187].mxu0  ;;  %v13623_v14 = vld [vmem:[#allocation21_spill] sm:$0xff] }
 0xe4a   : > { %v5658_v38 = vpack.c.bf16 %v5598_v9, %v5595_v24  ;;  %v13620_v24 = vld [vmem:[#allocation20_spill] sm:$0xff]  ;;  %v13628_v9 = vld [vmem:[#allocation23_spill] sm:$0xff] }
 0xe4c   : > { %8264 = vmatmul.mubr.msk.bf16.vlgmr.msra.gmra.mrb[128].mxu0 %vm13583_vm5, %v5658_v38  ;;  %9067 = vmatprep.mubr.msk.bf16.mxu1 %vm13584_vm13, %v5658_v38  ;;  %vm13596_vm13 = vmmov %vm13583_vm5  ;;  %v13630_v38 = vld [vmem:[#allocation24_spill] sm:$0xff] }
 0xe4d   : > { %9116 = vmatpush3.bf16.msra.mxu0 %v13582_v1  ;;  %9068 = vmatmul.mubr.msk.bf16.vlgmr.msra.gmra.mrb[152].mxu1 %vm13585_vm7, %v5659_v33  ;;  %vm13591_vm7 = vmmov %vm13583_vm5  ;;  %v6083_v41 = vsel %vm13596_vm13, %v13593_v36, 0 }
 0xe4e   : > { %9084 = vmatpush3.bf16.xpose.msra.mxu1 %v6077_v51  ;;  %9117 = vmatprep.subr.bf16.mxu0 %v13587_v7  ;;  %v6080_v2 = vsel %vm13591_vm7, %v13588_v20, 0  ;;  %vm13603_vm7 = vmmov %vm13583_vm5  ;;  %v13632_v51 = vld [vmem:[#allocation27_spill] sm:$0xff] }
 0xe4f   : > { %9668 = vmatprep.subr.msk.bf16.mxu1 %vm13589_vm9, %v13588_v20  ;;  %5812 = vmatprep.mubr.bf16.mxu0 %v13438_v11  ;;  %vm13594_vm9 = vmmov %vm13583_vm5 }
 0xe50   : > { %vm13606_vm13 = vmmov %vm13583_vm5 }
 0xe51   : > { %9118 = vmatpush3.bf16.msra.mxu0 %v13587_v7 }
 0xe52   : > { %9119 = vmatprep.subr.bf16.mxu0 %v13590_v8 }
 0xe54   : > { %8265 = vmatmul.mubr.msk.bf16.gmra.mrb[132].mxu0 %vm13583_vm5, %v5659_v33  ;;  %v13625_v33 = vld [vmem:[#allocation22_spill] sm:$0xff] }
 0xe55   : > { %9120 = vmatpush3.bf16.msra.mxu0 %v13590_v8  ;;  %5822 = vmatprep.mubr.bf16.mxu0 %v13438_v11 }
 0xe56   : > { %9086 = vmatpush3.bf16.xpose.msra.mxu1 %v6080_v2  ;;  %9121 = vmatprep.subr.bf16.mxu0 %v13592_v28  ;;  %v13634_v2 = vld [vmem:[#allocation30_spill] sm:$0xff] }
 0xe57   : > { %9669 = vmatprep.subr.msk.bf16.mxu1 %vm13594_vm9, %v13593_v36  ;;  %vm13604_vm9 = vmmov %vm13583_vm5 }
 0xe58   : > { %v6089_v55 = vsel %vm13604_vm9, %v13602_v39, 0  ;;  %vm13612_vm9 = vmmov %vm13583_vm5 }
 0xe59   : > { %9122 = vmatpush3.bf16.msra.mxu0 %v13592_v28  ;;  %v6098_v3 = vsel %vm13612_vm9, %v13610_v17, 0  ;;  %vm13617_vm9 = vmmov %vm13583_vm5 }
 0xe5a   : > { %9123 = vmatprep.subr.bf16.mxu0 %v13595_v15 }
 0xe5d   : > { %9124 = vmatpush3.bf16.msra.mxu0 %v13595_v15 }
 0xe5e   : > { %9088 = vmatpush3.bf16.xpose.msra.mxu1 %v6083_v41  ;;  %9125 = vmatprep.subr.bf16.mxu0 %v13597_v23  ;;  %v13636_v41 = vld [vmem:[#allocation33_spill] sm:$0xff] }
 0xe5f   : > { %9670 = vmatprep.subr.msk.bf16.mxu1 %vm13599_vm15, %v13598_v12  ;;  %vm13607_vm15 = vmmov %vm13583_vm5 }
 0xe60   : > { %v6092_v59 = vsel %vm13607_vm15, %v13605_v49, 0  ;;  %vm13614_vm15 = vmmov %vm13583_vm5 }
 0xe61   : > { %9126 = vmatpush3.bf16.msra.mxu0 %v13597_v23 }
 0xe62   : > { %9127 = vmatprep.subr.bf16.mxu0 %v13600_v56 }
 0xe65   : > { %9128 = vmatpush3.bf16.msra.mxu0 %v13600_v56 }
 0xe66   : > { %9090 = vmatpush3.bf16.xpose.msra.mxu1 %v6086_v40  ;;  %9129 = vmatprep.subr.bf16.mxu0 %v13601_v42 }
 0xe67   : > { %9671 = vmatprep.subr.msk.bf16.mxu1 %vm13603_vm7, %v13602_v39  ;;  %vm13611_vm7 = vmmov %vm13583_vm5 }
 0xe69   : > { %9130 = vmatpush3.bf16.msra.mxu0 %v13601_v42 }
 0xe6e   : > { %9092 = vmatpush3.bf16.xpose.msra.mxu1 %v6089_v55 }
 0xe6f   : > { %9672 = vmatprep.subr.msk.bf16.mxu1 %vm13606_vm13, %v13605_v49  ;;  %vm13613_vm13 = vmmov %vm13583_vm5 }
 0xe76   : > { %9094 = vmatpush3.bf16.xpose.msra.mxu1 %v6092_v59 }
 0xe77   : > { %9673 = vmatprep.subr.msk.bf16.mxu1 %vm13583_vm5, %v13608_v6 }
 0xe7e   : > { %9096 = vmatpush3.bf16.xpose.msra.mxu1 %v6095_v50 }
 0xe7f   : > { %9674 = vmatprep.subr.msk.bf16.mxu1 %vm13611_vm7, %v13610_v17  ;;  %vm13616_vm7 = vmmov %vm13583_vm5 }
 0xe82   : > { %v9049_v19 = vpop.f32.mrb[188].mxu0 }
 0xe83   : > { %v5611_v37 = vpop.f32.mrb[189].mxu0 }
 0xe84   : > { %v9050_v61 = vpop.f32.mrb[190].mxu0 }
 0xe85   : > { %v5661_v34 = vpack.c.bf16 %v9050_v61, %v9049_v19  ;;  %v5614_v22 = vpop.f32.mrb[191].mxu0 }
 0xe86   : > { %v5660_v4 = vpack.c.bf16 %v5614_v22, %v5611_v37  ;;  %9098 = vmatpush3.bf16.xpose.msra.mxu1 %v6098_v3 }
 0xe88   : > { %8266 = vmatmul.mubr.msk.bf16.gmra.mrb[136].mxu0 %vm13613_vm13, %v5660_v4  ;;  %9071 = vmatprep.mubr.msk.bf16.mxu1 %vm13614_vm15, %v5660_v4  ;;  %vm13618_vm13 = vmmov %vm13583_vm5 }
 0xe89   : > { %9072 = vmatmul.mubr.msk.bf16.gmra.mrb[156].mxu1 %vm13583_vm5, %v5661_v34  ;;  %5832 = vmatprep.mubr.bf16.mxu0 %v13438_v11  ;;  %vm13619_vm15 = vmmov %vm13583_vm5 }
 0xe8a   : > { %v9053_v35 = vpop.f32.mrb[192].mxu0 }
 0xe8b   : > { %v5627_v54 = vpop.f32.mrb[193].mxu0 }
 0xe8c   : > { %v9054_v52 = vpop.f32.mrb[194].mxu0 }
 0xe8d   : > { %v5663_v18 = vpack.c.bf16 %v9054_v52, %v9053_v35  ;;  %v5630_v60 = vpop.f32.mrb[195].mxu0 }
 0xe8e   : > { %v5662_v21 = vpack.c.bf16 %v5630_v60, %v5627_v54 }
 0xe90   : > { %8267 = vmatmul.mubr.msk.bf16.gmra.mrb[140].mxu0 %vm13615_vm14, %v5661_v34  ;;  %9075 = vmatprep.mubr.msk.bf16.mxu1 %vm13616_vm7, %v5662_v21  ;;  %vm13621_vm14 = vmmov %vm13583_vm5 }
 0xe91   : > { %9076 = vmatmul.mubr.msk.bf16.gmra.mrb[144].mxu1 %vm13617_vm9, %v5663_v18  ;;  %5842 = vmatprep.mubr.bf16.mxu0 %v13438_v11  ;;  %vm13622_vm7 = vmmov %vm13583_vm5 }
 0xe92   : > { %v9057_v58 = vpop.f32.mrb[196].mxu0  ;;  %vm13624_vm9 = vmmov %vm13583_vm5 }
 0xe93   : > { %v5643_v44 = vpop.f32.mrb[197].mxu0 }
 0xe94   : > { %v9058_v25 = vpop.f32.mrb[198].mxu0 }
 0xe95   : > { %v5665_v63 = vpack.c.bf16 %v9058_v25, %v9057_v58  ;;  %v5646_v26 = vpop.f32.mrb[199].mxu0 }
 0xe96   : > { %v5664_v30 = vpack.c.bf16 %v5646_v26, %v5643_v44 }
 0xe98   : > { %8268 = vmatmul.mubr.msk.bf16.gmra.mrb[144].mxu0 %vm13618_vm13, %v5662_v21  ;;  %9079 = vmatprep.mubr.msk.bf16.mxu1 %vm13619_vm15, %v5664_v30  ;;  %vm13627_vm13 = vmmov %vm13583_vm5 }
 0xe99   : > { %9080 = vmatmul.mubr.msk.bf16.gmra.mrb[148].mxu1 %vm13583_vm5, %v5665_v63  ;;  %5852 = vmatprep.mubr.bf16.mxu0 %v13438_v11  ;;  %vm13629_vm15 = vmmov %vm13583_vm5 }
 0xe9a   : > { %9099 = vmatprep.mubr.msk.bf16.mxu1 %vm13621_vm14, %v13620_v24  ;;  %vm13631_vm14 = vmmov %vm13583_vm5 }
 0xea0   : > { %8269 = vmatmul.mubr.msk.bf16.gmra.mrb[148].mxu0 %vm13622_vm7, %v5663_v18  ;;  %vm13633_vm7 = vmmov %vm13583_vm5 }
 0xea1   : > { %9100 = vmatmul.mubr.msk.bf16.vlgmr.msra.gmra.mrb[192].mxu1 %vm13624_vm9, %v13623_v14  ;;  %5862 = vmatprep.mubr.bf16.mxu0 %v13438_v11  ;;  %vm13635_vm9 = vmmov %vm13583_vm5 }
 0xea2   : > { %9103 = vmatprep.mubr.msk.bf16.mxu1 %vm13626_vm10, %v13625_v33  ;;  %vm13637_vm10 = vmmov %vm13583_vm5 }
 0xea8   : > { %8270 = vmatmul.mubr.msk.bf16.gmra.mrb[152].mxu0 %vm13627_vm13, %v5664_v30  ;;  %vm13638_vm13 = vnez %v13389_v57 }
 0xea9   : > { %9104 = vmatmul.mubr.msk.bf16.gmra.mrb[196].mxu1 %vm13629_vm15, %v13628_v9  ;;  %5872 = vmatprep.mubr.bf16.mxu0 %v13438_v11  ;;  %vm13639_vm15 = vnez %v13569_v46 }
 0xeaa   : > { %9107 = vmatprep.mubr.msk.bf16.mxu1 %vm13583_vm5, %v13630_v38  ;;  %vm13640_vm5 = vnez %v13384_v45 }
 0xeb0   : > { %8271 = vmatmul.mubr.msk.bf16.gmra.mrb[156].mxu0 %vm13631_vm14, %v5665_v63  ;;  %vm13641_vm14 = vnez %v13575_v48 }
 0xeb1   : > { %9108 = vmatmul.mubr.msk.bf16.gmra.mrb[200].mxu1 %vm13633_vm7, %v13632_v51  ;;  %vm13642_vm7 = vnez %v13433_v13 }
 0xeb2   : > { %9111 = vmatprep.mubr.msk.bf16.mxu1 %vm13635_vm9, %v13634_v2  ;;  %vm13643_vm9 = vnez %v13573_v53 }
 0xeb9   : > { %9112 = vmatmul.mubr.msk.bf16.gmra.mrb[204].mxu1 %vm13637_vm10, %v13636_v41  ;;  %vm13644_vm10 = vnez %v13431_v16 }
 0xf74   : > { %v9101_v40 = vpop.f32.mrb[192].mxu1 }
 0xf75   : > { %v6134_v55 = vpop.f32.mrb[193].mxu1  ;;  %v6199_v61 = vsel %vm11512_vm1, %v9101_v40, -1e+30 }
 0xf76   : > { %v6197_v59 = vsel %vm11519_vm2, %v6134_v55, -1e+30  ;;  %v9102_v50 = vpop.f32.mrb[194].mxu1 }
 0xf77   : > { %6213 = vmax.xlane.f32.xlu0 %v6197_v59  ;;  %v6137_v19 = vpop.f32.mrb[195].mxu1  ;;  %v6200_v34 = vsel %vm11534_vm3, %v9102_v50, -1e+30 }
 0xf78   : > { %v6198_v37 = vsel %vm11541_vm4, %v6137_v19, -1e+30 }
 0xf79   : > { %6215 = vmax.xlane.f32.xlu1 %v6198_v37 }
 0xf7b   : > { %6217 = vmax.xlane.f32.xlu0 %v6199_v61 }
 0xf7c   : > { %v9105_v22 = vpop.f32.mrb[196].mxu1 }
 0xf7d   : > { %6219 = vmax.xlane.f32.xlu1 %v6200_v34  ;;  %v6150_v3 = vpop.f32.mrb[197].mxu1  ;;  %v6203_v18 = vsel %vm13566_vm0, %v9105_v22, -1e+30 }
 0xf7e   : > { %v6201_v4 = vsel %vm13568_vm11, %v6150_v3, -1e+30  ;;  %v9106_v35 = vpop.f32.mrb[198].mxu1 }
 0xf7f   : > { %6221 = vmax.xlane.f32.xlu0 %v6201_v4  ;;  %v6153_v54 = vpop.f32.mrb[199].mxu1  ;;  %v6204_v60 = vsel %vm11563_vm6, %v9106_v35, -1e+30 }
 0xf80   : > { %v6202_v52 = vsel %vm11585_vm8, %v6153_v54, -1e+30 }
 0xf81   : > { %6223 = vmax.xlane.f32.xlu1 %v6202_v52 }
 0xf83   : > { %6225 = vmax.xlane.f32.xlu0 %v6203_v18 }
 0xf84   : > { %v9109_v21 = vpop.f32.mrb[200].mxu1 }
 0xf85   : > { %6227 = vmax.xlane.f32.xlu1 %v6204_v60  ;;  %v6166_v58 = vpop.f32.mrb[201].mxu1  ;;  %v12615_v30 = vsel %vm13639_vm15, %v9109_v21, -1e+30 }
 0xf86   : > { %v6205_v44 = vsel %vm13572_vm12, %v6166_v58, -1e+30  ;;  %v9110_v25 = vpop.f32.mrb[202].mxu1 }
 0xf87   : > { %6229 = vmax.xlane.f32.xlu0 %v6205_v44  ;;  %v6169_v63 = vpop.f32.mrb[203].mxu1  ;;  %v12620_v40 = vsel %vm13640_vm5, %v9110_v25, -1e+30 }
 0xf88   : > { %v12610_v26 = vsel %vm13638_vm13, %v6169_v63, -1e+30 }
 0xf89   : > { %6231 = vmax.xlane.f32.xlu1 %v12610_v26 }
 0xf8b   : > { %6233 = vmax.xlane.f32.xlu0 %v12615_v30 }
 0xf8c   : > { %v9113_v55 = vpop.f32.mrb[204].mxu1 }
 0xf8d   : > { %6235 = vmax.xlane.f32.xlu1 %v12620_v40  ;;  %v6182_v50 = vpop.f32.mrb[205].mxu1  ;;  %v12635_v54 = vsel %vm13643_vm9, %v9113_v55, -1e+30 }
 0xf8e   : > { %v12625_v19 = vsel %vm13641_vm14, %v6182_v50, -1e+30  ;;  %v9114_v22 = vpop.f32.mrb[206].mxu1 }
 0xf8f   : > { %6237 = vmax.xlane.f32.xlu0 %v12625_v19  ;;  %v6185_v3 = vpop.f32.mrb[207].mxu1  ;;  %v12640_v21 = vsel %vm13644_vm10, %v9114_v22, -1e+30 }
 0xf90   : > { %v12630_v35 = vsel %vm13642_vm7, %v6185_v3, -1e+30  ;;  %vm13645_vm7 = vcmask 523264  }
 0xf91   : > { %6239 = vmax.xlane.f32.xlu1 %v12630_v35  ;;  %vm13646_vm10 = vmmov %vm13645_vm7 }
 0xf92   : > { %vm13647_vm14 = vmmov %vm13645_vm7 }
 0xf93   : > { %6241 = vmax.xlane.f32.xlu0 %v12635_v54  ;;  %vm13648_vm9 = vmmov %vm13645_vm7 }
 0xf94   : > { %vm13649_vm12 = vmmov %vm13645_vm7 }
 0xf95   : > { %6243 = vmax.xlane.f32.xlu1 %v12640_v21  ;;  %vm13658_vm13 = vmmov %vm13645_vm7 }
 0xf96   : > { %vm13663_vm15 = vmmov %vm13645_vm7 }
0x1004   : > { %v6214_v58 = vpop.xlane.xlu0 %6213 }
0x1005   : > { %v6245_v25 = vsub.f32 %v6197_v59, %v6214_v58 }
0x1006   : > { %v6216_v63 = vpop.xlane.xlu1 %6215 }
0x1007   : > { %v6261_v50 = vmul.f32 1.442695, %v6245_v25  ;;  %v6246_v3 = vsub.f32 %v6198_v37, %v6216_v63 }
0x1008   : > { %v6218_v56 = vpop.xlane.xlu0 %6217 }
0x1009   : > { %10428 = vpow2.f32 %v6261_v50  ;;  %v6263_v42 = vmul.f32 1.442695, %v6246_v3  ;;  %v6247_v13 = vsub.f32 %v6199_v61, %v6218_v56 }
0x100a   : > { %v6220_v15 = vpop.xlane.xlu1 %6219 }
0x100b   : > { %10430 = vpow2.f32 %v6263_v42  ;;  %v6265_v55 = vmul.f32 1.442695, %v6247_v13  ;;  %v6248_v23 = vsub.f32 %v6200_v34, %v6220_v15 }
0x100c   : > { %v6222_v48 = vpop.xlane.xlu0 %6221 }
0x100d   : > { %10432 = vpow2.f32 %v6265_v55  ;;  %v6267_v16 = vmul.f32 1.442695, %v6248_v23  ;;  %v6249_v22 = vsub.f32 %v6201_v4, %v6222_v48 }
0x100e   : > { %v6224_v53 = vpop.xlane.xlu1 %6223 }
0x100f   : > { %10434 = vpow2.f32 %v6267_v16  ;;  %v6269_v27 = vmul.f32 1.442695, %v6249_v22  ;;  %v6250_v57 = vsub.f32 %v6202_v52, %v6224_v53 }
0x1010   : > { %v6226_v59 = vpop.xlane.xlu0 %6225 }
0x1011   : > { %10436 = vpow2.f32 %v6269_v27  ;;  %v6271_v58 = vmul.f32 1.442695, %v6250_v57  ;;  %v6251_v37 = vsub.f32 %v6203_v18, %v6226_v59 }
0x1012   : > { %v6228_v25 = vpop.xlane.xlu1 %6227 }
0x1013   : > { %v12643_v63 = vpop.eup %10428  ;;  %10438 = vpow2.f32 %v6271_v58  ;;  %v6273_v56 = vmul.f32 1.442695, %v6251_v37  ;;  %v6252_v42 = vsub.f32 %v6204_v60, %v6228_v25 }
0x1014   : > { %v6230_v13 = vpop.xlane.xlu0 %6229  ;;  %6293 = vadd.xlane.f32.xlu0 %v12643_v63 }
0x1015   : > { %v12646_v15 = vpop.eup %10430  ;;  %10440 = vpow2.f32 %v6273_v56  ;;  %v6275_v48 = vmul.f32 1.442695, %v6252_v42  ;;  %v6253_v16 = vsub.f32 %v6205_v44, %v6230_v13 }
0x1016   : > { %v6232_v23 = vpop.xlane.xlu1 %6231  ;;  %6295 = vadd.xlane.f32.xlu1 %v12646_v15 }
0x1017   : > { %v12649_v27 = vpop.eup %10432  ;;  %10442 = vpow2.f32 %v6275_v48  ;;  %v6277_v57 = vmul.f32 1.442695, %v6253_v16  ;;  %v6254_v53 = vsub.f32 %v12610_v26, %v6232_v23 }
0x1018   : > { %v6234_v61 = vpop.xlane.xlu0 %6233  ;;  %6297 = vadd.xlane.f32.xlu0 %v12649_v27 }
0x1019   : > { %v12653_v34 = vpop.eup %10434  ;;  %10444 = vpow2.f32 %v6277_v57  ;;  %v6279_v4 = vmul.f32 1.442695, %v6254_v53  ;;  %v6255_v52 = vsub.f32 %v12615_v30, %v6234_v61 }
0x101a   : > { %v6236_v18 = vpop.xlane.xlu1 %6235  ;;  %6299 = vadd.xlane.f32.xlu1 %v12653_v34 }
0x101b   : > { %v12657_v60 = vpop.eup %10436  ;;  %10446 = vpow2.f32 %v6279_v4  ;;  %v6281_v44 = vmul.f32 1.442695, %v6255_v52  ;;  %v6256_v50 = vsub.f32 %v12620_v40, %v6236_v18  ;;  %v10140_v52 = vld [vmem:[#allocation7 + $0x188] ss:$12 sps:$4 sm:$0xff]   ;;  %v10141_v18 = vld [vmem:[#allocation7 + $0x1a0] ss:$12 sps:$4 sm:$0xff]  }
0x101c   : > { %6301 = vadd.xlane.f32.xlu0 %v12657_v60  ;;  %v6238_v26 = vpop.xlane.xlu0 %6237  ;;  %9147 = vmatprep.subr.bf16.mxu1 %v10140_v52 }
0x101d   : > { %v12661_v3 = vpop.eup %10438  ;;  %10448 = vpow2.f32 %v6281_v44  ;;  %v6283_v55 = vmul.f32 1.442695, %v6256_v50  ;;  %v6257_v22 = vsub.f32 %v12625_v19, %v6238_v26  ;;  %9148 = vmatpush3.bf16.msra.mxu1 %v10140_v52  ;;  %v10142_v44 = vld [vmem:[#allocation7 + $0x1b8] ss:$12 sps:$4 sm:$0xff]   ;;  %v10143_v50 = vld [vmem:[#allocation7 + $0x1d0] ss:$12 sps:$4 sm:$0xff]  }
0x101e   : > { %6303 = vadd.xlane.f32.xlu1 %v12661_v3  ;;  %v6240_v30 = vpop.xlane.xlu1 %6239  ;;  %9149 = vmatprep.subr.bf16.mxu1 %v10141_v18  ;;  %v10146_v26 = vld [vmem:[#allocation7 + $0x184] ss:$12 sps:$4 sm:$0xff]  }
0x101f   : > { %v12665_v59 = vpop.eup %10440  ;;  %10450 = vpow2.f32 %v6283_v55  ;;  %v6285_v58 = vmul.f32 1.442695, %v6257_v22  ;;  %v6258_v37 = vsub.f32 %v12630_v35, %v6240_v30  ;;  %6574 = vmatprep.subr.bf16.mxu0 %v10146_v26  ;;  %v10144_v55 = vld [vmem:[#allocation7 + $0x180] ss:$12 sps:$4 sm:$0xff]  }
0x1020   : > { %6305 = vadd.xlane.f32.xlu0 %v12665_v59  ;;  %v6242_v40 = vpop.xlane.xlu0 %6241 }
0x1021   : > { %v12669_v25 = vpop.eup %10442  ;;  %10452 = vpow2.f32 %v6285_v58  ;;  %v6287_v56 = vmul.f32 1.442695, %v6258_v37  ;;  %v6259_v42 = vsub.f32 %v12635_v54, %v6242_v40  ;;  %9150 = vmatpush3.bf16.msra.mxu1 %v10141_v18 }
0x1022   : > { %6307 = vadd.xlane.f32.xlu1 %v12669_v25  ;;  %v6244_v19 = vpop.xlane.xlu1 %6243  ;;  %9151 = vmatprep.subr.bf16.mxu1 %v10142_v44 }
0x1023   : > { %v12673_v13 = vpop.eup %10444  ;;  %10454 = vpow2.f32 %v6287_v56  ;;  %v6289_v48 = vmul.f32 1.442695, %v6259_v42  ;;  %v6260_v16 = vsub.f32 %v12640_v21, %v6244_v19  ;;  %v10152_v19 = vld [vmem:[#allocation7 + $0x1b4] ss:$12 sps:$4 sm:$0xff]  }
0x1024   : > { %6309 = vadd.xlane.f32.xlu0 %v12673_v13 }
0x1025   : > { %v12677_v35 = vpop.eup %10446  ;;  %10456 = vpow2.f32 %v6289_v48  ;;  %v6291_v23 = vmul.f32 1.442695, %v6260_v16  ;;  %9152 = vmatpush3.bf16.msra.mxu1 %v10142_v44 }
0x1026   : > { %6311 = vadd.xlane.f32.xlu1 %v12677_v35  ;;  %9153 = vmatprep.subr.bf16.mxu1 %v10143_v50 }
0x1027   : > { %v12680_v57 = vpop.eup %10448  ;;  %10458 = vpow2.f32 %v6291_v23 }
0x1028   : > { %6313 = vadd.xlane.f32.xlu0 %v12680_v57 }
0x1029   : > { %v12683_v54 = vpop.eup %10450  ;;  %9154 = vmatpush3.bf16.msra.mxu1 %v10143_v50  ;;  %v10155_v50 = vld [vmem:[#allocation7 + $0x1cc] ss:$12 sps:$4 sm:$0xff]  }
0x102a   : > { %6315 = vadd.xlane.f32.xlu1 %v12683_v54 }
0x102b   : > { %v12686_v53 = vpop.eup %10452 }
0x102c   : > { %6317 = vadd.xlane.f32.xlu0 %v12686_v53 }
0x102d   : > { %v12689_v21 = vpop.eup %10454 }
0x102e   : > { %6319 = vadd.xlane.f32.xlu1 %v12689_v21 }
0x102f   : > { %v12692_v61 = vpop.eup %10456 }
0x1030   : > { %6321 = vadd.xlane.f32.xlu0 %v12692_v61 }
0x1031   : > { %v12695_v4 = vpop.eup %10458 }
0x1032   : > { %6323 = vadd.xlane.f32.xlu1 %v12695_v4 }
0x1043   : > { %6866 = vrot.lane.b32.xlu1 %v13588_v20, %s10724_s21 }
0x1046   : > { %6864 = vrot.lane.b32.xlu0 %v13559_v47, %s10724_s21 }
0x1047   : > { %6868 = vrot.lane.b32.xlu1 %v13593_v36, %s10724_s21 }
0x104a   : > { %6872 = vrot.lane.b32.xlu0 %v13602_v39, %s10724_s21 }
0x104b   : > { %6870 = vrot.lane.b32.xlu1 %v13598_v12, %s10724_s21 }
0x104e   : > { %6876 = vrot.lane.b32.xlu0 %v13608_v6, %s10724_s21 }
0x104f   : > { %6874 = vrot.lane.b32.xlu1 %v13605_v49, %s10724_s21 }
0x1052   : > { %6840 = vrot.lane.b32.xlu0 %v13620_v24, %s10724_s21 }
0x1053   : > { %6878 = vrot.lane.b32.xlu1 %v13610_v17, %s10724_s21 }
0x1056   : > { %6844 = vrot.lane.b32.xlu0 %v13625_v33, %s10724_s21 }
0x1057   : > { %6842 = vrot.lane.b32.xlu1 %v13623_v14, %s10724_s21 }
0x105a   : > { %6848 = vrot.lane.b32.xlu0 %v13630_v38, %s10724_s21 }
0x105b   : > { %6846 = vrot.lane.b32.xlu1 %v13628_v9, %s10724_s21 }
0x105e   : > { %6852 = vrot.lane.b32.xlu0 %v13634_v2, %s10724_s21 }
0x105f   : > { %6850 = vrot.lane.b32.xlu1 %v13632_v51, %s10724_s21 }
0x1062   : > { %7201 = vrot.lane.b32.xlu0 %v13582_v1, %s10724_s21 }
0x1063   : > { %6854 = vrot.lane.b32.xlu1 %v13636_v41, %s10724_s21 }
0x1066   : > { %7205 = vrot.lane.b32.xlu0 %v13590_v8, %s10724_s21 }
0x1067   : > { %7203 = vrot.lane.b32.xlu1 %v13587_v7, %s10724_s21 }
0x106a   : > { %7207 = vrot.lane.b32.xlu0 %v13592_v28, %s10724_s21 }
0x10a1   : > { %v6294_v47 = vpop.xlane.xlu0 %6293 }
0x10a2   : > { %10460 = vrcp.f32 %v6294_v47 }
0x10a3   : > { %v6296_v20 = vpop.xlane.xlu1 %6295 }
0x10a4   : > { %10462 = vrcp.f32 %v6296_v20 }
0x10a5   : > { %v6298_v36 = vpop.xlane.xlu0 %6297 }
0x10a6   : > { %10464 = vrcp.f32 %v6298_v36 }
0x10a7   : > { %v6300_v12 = vpop.xlane.xlu1 %6299 }
0x10a8   : > { %10466 = vrcp.f32 %v6300_v12 }
0x10a9   : > { %v6302_v1 = vpop.xlane.xlu0 %6301 }
0x10aa   : > { %10468 = vrcp.f32 %v6302_v1 }
0x10ab   : > { %v6304_v39 = vpop.xlane.xlu1 %6303 }
0x10ac   : > { %v10461_v49 = vpop.eup %10460  ;;  %10470 = vrcp.f32 %v6304_v39 }
0x10ad   : > { %v6306_v8 = vpop.xlane.xlu0 %6305  ;;  %v6341_v17 = vmul.f32 %v10461_v49, %v12643_v63  ;;  %v10149_v63 = vld [vmem:[#allocation7 + $0x19c] ss:$12 sps:$4 sm:$0xff]  }
0x10ae   : > { %v10463_v6 = vpop.eup %10462  ;;  %10472 = vrcp.f32 %v6306_v8 }
0x10af   : > { %v6308_v7 = vpop.xlane.xlu1 %6307  ;;  %v6342_v28 = vmul.f32 %v10463_v6, %v12646_v15 }
0x10b0   : > { %v10465_v24 = vpop.eup %10464  ;;  %10474 = vrcp.f32 %v6308_v7 }
0x10b1   : > { %v6310_v14 = vpop.xlane.xlu0 %6309  ;;  %v6357_v33 = vpack.c.bf16 %v6342_v28, %v6341_v17  ;;  %v6343_v38 = vmul.f32 %v10465_v24, %v12649_v27  ;;  %v10147_v27 = vld [vmem:[#allocation7 + $0x198] ss:$12 sps:$4 sm:$0xff]  }
0x10b2   : > { %v10467_v9 = vpop.eup %10466  ;;  %10476 = vrcp.f32 %v6310_v14 }
0x10b3   : > { %v6344_v51 = vmul.f32 %v10467_v9, %v12653_v34  ;;  %v6312_v2 = vpop.xlane.xlu1 %6311  ;;  %9131 = vmatprep.mubr.bf16.mxu0 %v6357_v33 }
0x10b4   : > { %v10469_v41 = vpop.eup %10468  ;;  %10478 = vrcp.f32 %v6312_v2 }
0x10b5   : > { %v6314_v22 = vpop.xlane.xlu0 %6313  ;;  %v6358_v30 = vpack.c.bf16 %v6344_v51, %v6343_v38  ;;  %v6345_v37 = vmul.f32 %v10469_v41, %v12657_v60  ;;  %v10150_v60 = vld [vmem:[#allocation7 + $0x1b0] ss:$12 sps:$4 sm:$0xff]  }
0x10b6   : > { %v10471_v58 = vpop.eup %10470  ;;  %10480 = vrcp.f32 %v6314_v22 }
0x10b7   : > { %v6316_v15 = vpop.xlane.xlu1 %6315  ;;  %9132 = vmatmul.mubr.bf16.vlgmr.msra.gmra.mrb[200].mxu0 %v6358_v30  ;;  %v6346_v40 = vmul.f32 %v10471_v58, %v12661_v3 }
0x10b8   : > { %v10473_v56 = vpop.eup %10472  ;;  %10482 = vrcp.f32 %v6316_v15  ;;  %6575 = vmatpush1.bf16.msra.mxu0 %v10144_v55 }
0x10b9   : > { %v6318_v34 = vpop.xlane.xlu0 %6317  ;;  %v6359_v42 = vpack.c.bf16 %v6346_v40, %v6345_v37  ;;  %6576 = vmatprep.subr.bf16.mxu0 %v10149_v63  ;;  %v6347_v23 = vmul.f32 %v10473_v56, %v12665_v59  ;;  %v10153_v59 = vld [vmem:[#allocation7 + $0x1c8] ss:$12 sps:$4 sm:$0xff]  }
0x10ba   : > { %v10475_v48 = vpop.eup %10474  ;;  %10484 = vrcp.f32 %v6318_v34 }
0x10bb   : > { %v6320_v16 = vpop.xlane.xlu1 %6319  ;;  %9135 = vmatprep.mubr.bf16.mxu0 %v6359_v42  ;;  %v6348_v52 = vmul.f32 %v10475_v48, %v12669_v25 }
0x10bc   : > { %v10477_v18 = vpop.eup %10476  ;;  %10486 = vrcp.f32 %v6320_v16  ;;  %6577 = vmatpush1.bf16.msra.mxu0 %v10147_v27 }
0x10bd   : > { %v6322_v3 = vpop.xlane.xlu0 %6321  ;;  %v6360_v44 = vpack.c.bf16 %v6348_v52, %v6347_v23  ;;  %6578 = vmatprep.subr.bf16.mxu0 %v10152_v19  ;;  %v6349_v20 = vmul.f32 %v10477_v18, %v12673_v13 }
0x10be   : > { %v10479_v26 = vpop.eup %10478  ;;  %10488 = vrcp.f32 %v6322_v3 }
0x10bf   : > { %v6324_v47 = vpop.xlane.xlu1 %6323  ;;  %9136 = vmatmul.mubr.bf16.gmra.mrb[204].mxu0 %v6360_v44  ;;  %v6350_v36 = vmul.f32 %v10479_v26, %v12677_v35 }
0x10c0   : > { %v10481_v12 = vpop.eup %10480  ;;  %10490 = vrcp.f32 %v6324_v47  ;;  %6579 = vmatpush1.bf16.msra.mxu0 %v10150_v60 }
0x10c1   : > { %v6865_v25 = vpop.permute.xlu0 %6864  ;;  %v6361_v1 = vpack.c.bf16 %v6350_v36, %v6349_v20  ;;  %6580 = vmatprep.subr.bf16.mxu0 %v10155_v50  ;;  %v6351_v49 = vmul.f32 %v10481_v12, %v12680_v57 }
0x10c2   : > { %v10483_v39 = vpop.eup %10482  ;;  %9675 = vmatprep.subr.msk.bf16.mxu1 %vm13645_vm7, %v6865_v25  ;;  %v6905_v48 = vsel %vm13647_vm14, %v6865_v25, 0  ;;  %vm13650_vm14 = vmmov %vm13645_vm7 }
0x10c3   : > { %9139 = vmatprep.mubr.bf16.mxu0 %v6361_v1  ;;  %v6352_v8 = vmul.f32 %v10483_v39, %v12683_v54  ;;  %v6867_v55 = vpop.permute.xlu1 %6866 }
0x10c4   : > { %v10485_v6 = vpop.eup %10484  ;;  %6581 = vmatpush1.bf16.msra.mxu0 %v10153_v59 }
0x10c5   : > { %v12751_v13 = vpop.permute.xlu0 %6872  ;;  %v6362_v35 = vpack.c.bf16 %v6352_v8, %v6351_v49  ;;  %v6353_v17 = vmul.f32 %v10485_v6, %v12686_v53 }
0x10c6   : > { %v10487_v7 = vpop.eup %10486 }
0x10c7   : > { %9140 = vmatmul.mubr.bf16.gmra.mrb[208].mxu0 %v6362_v35  ;;  %v6354_v28 = vmul.f32 %v10487_v7, %v12689_v21  ;;  %v6869_v22 = vpop.permute.xlu1 %6868 }
0x10c8   : > { %v10489_v24 = vpop.eup %10488 }
0x10c9   : > { %v12755_v14 = vpop.permute.xlu0 %6876  ;;  %v6363_v33 = vpack.c.bf16 %v6354_v28, %v6353_v17  ;;  %v6355_v57 = vmul.f32 %v10489_v24, %v12692_v61 }
0x10ca   : > { %v10491_v9 = vpop.eup %10490 }
0x10cb   : > { %9143 = vmatprep.mubr.bf16.mxu0 %v6363_v33  ;;  %v6356_v54 = vmul.f32 %v10491_v9, %v12695_v4  ;;  %v12768_v30 = vpop.permute.xlu1 %6870 }
0x10cd   : > { %v12759_v38 = vpop.permute.xlu0 %6840  ;;  %v6364_v51 = vpack.c.bf16 %v6356_v54, %v6355_v57 }
0x10cf   : > { %9144 = vmatmul.mubr.bf16.gmra.mrb[212].mxu0 %v6364_v51  ;;  %v12770_v61 = vpop.permute.xlu1 %6874 }
0x10d0   : > { %6606 = vmatprep.mubr.bf16.mxu0 %v13438_v11 }
0x10d1   : > { %v12762_v2 = vpop.permute.xlu0 %6844 }
0x10d3   : > { %v12772_v4 = vpop.permute.xlu1 %6878 }
0x10d5   : > { %v12764_v53 = vpop.permute.xlu0 %6848 }
0x10d7   : > { %v12774_v63 = vpop.permute.xlu1 %6842 }
0x10d9   : > { %v12766_v21 = vpop.permute.xlu0 %6852 }
0x10db   : > { %v12776_v58 = vpop.permute.xlu1 %6846 }
0x10dd   : > { %v7202_v41 = vpop.permute.xlu0 %7201 }
0x10de   : > { %9203 = vmatprep.subr.bf16.mxu0 %v7202_v41 }
0x10df   : > { %v12778_v15 = vpop.permute.xlu1 %6850 }
0x10e1   : > { %v7206_v52 = vpop.permute.xlu0 %7205 }
0x10e3   : > { %v12780_v40 = vpop.permute.xlu1 %6854 }
0x10e5   : > { %v7208_v47 = vpop.permute.xlu0 %7207 }
0x10e7   : > { %v7204_v16 = vpop.permute.xlu1 %7203 }
0x118a   : > { %v9133_v37 = vpop.f32.mrb[200].mxu0 }
0x118b   : > { %v6399_v56 = vpop.f32.mrb[201].mxu0 }
0x118c   : > { %v9134_v27 = vpop.f32.mrb[202].mxu0 }
0x118d   : > { %v6463_v34 = vpack.c.bf16 %v9134_v27, %v9133_v37  ;;  %v6402_v42 = vpop.f32.mrb[203].mxu0  ;;  %v13682_v37 = vld [vmem:[#allocation68_spill] sm:$0xff]  ;;  %v13684_v27 = vld [vmem:[#allocation70_spill] sm:$0xff] }
0x118e   : > { %v6462_v19 = vpack.c.bf16 %v6402_v42, %v6399_v56  ;;  %v13686_v42 = vld [vmem:[#allocation71_spill] sm:$0xff] }
0x1190   : > { %8300 = vmatmul.mubr.msk.bf16.vlgmr.msra.gmra.mrb[128].mxu0 %vm13645_vm7, %v6462_v19  ;;  %9155 = vmatprep.mubr.msk.bf16.mxu1 %vm13646_vm10, %v6462_v19  ;;  %vm13651_vm10 = vmmov %vm13645_vm7 }
0x1191   : > { %9204 = vmatpush3.bf16.msra.mxu0 %v7202_v41  ;;  %9156 = vmatmul.mubr.msk.bf16.vlgmr.msra.gmra.mrb[152].mxu1 %vm13648_vm9, %v6463_v34  ;;  %vm13652_vm9 = vmmov %vm13645_vm7 }
0x1192   : > { %9172 = vmatpush3.bf16.xpose.msra.mxu1 %v6905_v48  ;;  %9205 = vmatprep.subr.bf16.mxu0 %v7204_v16  ;;  %v9137_v23 = vpop.f32.mrb[204].mxu0  ;;  %v6908_v26 = vsel %vm13652_vm9, %v6867_v55, 0  ;;  %vm13656_vm9 = vmmov %vm13645_vm7  ;;  %v13688_v48 = vld [vmem:[#allocation61_spill] sm:$0xff] }
0x1193   : > { %9676 = vmatprep.subr.msk.bf16.mxu1 %vm13649_vm12, %v6867_v55  ;;  %v6415_v18 = vpop.f32.mrb[205].mxu0  ;;  %6616 = vmatprep.mubr.bf16.mxu0 %v13438_v11  ;;  %vm13653_vm12 = vmmov %vm13645_vm7  ;;  %v6911_v39 = vsel %vm13656_vm9, %v6869_v22, 0 }
0x1194   : > { %v9138_v60 = vpop.f32.mrb[206].mxu0  ;;  %vm13661_vm9 = vmmov %vm13645_vm7 }
0x1195   : > { %v6465_v3 = vpack.c.bf16 %v9138_v60, %v9137_v23  ;;  %9206 = vmatpush3.bf16.msra.mxu0 %v7204_v16  ;;  %v6418_v44 = vpop.f32.mrb[207].mxu0  ;;  %v13689_v16 = vld [vmem:[#allocation62_spill] sm:$0xff]  ;;  %v13690_v23 = vld [vmem:[#allocation72_spill] sm:$0xff] }
0x1196   : > { %v6464_v50 = vpack.c.bf16 %v6418_v44, %v6415_v18  ;;  %9207 = vmatprep.subr.bf16.mxu0 %v7206_v52  ;;  %v13692_v18 = vld [vmem:[#allocation73_spill] sm:$0xff] }
0x1198   : > { %8301 = vmatmul.mubr.msk.bf16.gmra.mrb[132].mxu0 %vm13650_vm14, %v6463_v34  ;;  %9159 = vmatprep.mubr.msk.bf16.mxu1 %vm13651_vm10, %v6464_v50  ;;  %vm13654_vm14 = vmmov %vm13645_vm7 }
0x1199   : > { %9208 = vmatpush3.bf16.msra.mxu0 %v7206_v52  ;;  %9160 = vmatmul.mubr.msk.bf16.gmra.mrb[156].mxu1 %vm13645_vm7, %v6465_v3  ;;  %vm13655_vm10 = vmmov %vm13645_vm7 }
0x119a   : > { %9174 = vmatpush3.bf16.xpose.msra.mxu1 %v6908_v26  ;;  %9209 = vmatprep.subr.bf16.mxu0 %v7208_v47  ;;  %v9141_v20 = vpop.f32.mrb[208].mxu0 }
0x119b   : > { %9677 = vmatprep.subr.msk.bf16.mxu1 %vm13653_vm12, %v6869_v22  ;;  %v6431_v36 = vpop.f32.mrb[209].mxu0  ;;  %6626 = vmatprep.mubr.bf16.mxu0 %v13438_v11  ;;  %vm13657_vm12 = vmmov %vm13645_vm7 }
0x119c   : > { %v9142_v12 = vpop.f32.mrb[210].mxu0 }
0x119d   : > { %v6467_v59 = vpack.c.bf16 %v9142_v12, %v9141_v20  ;;  %9210 = vmatpush3.bf16.msra.mxu0 %v7208_v47  ;;  %v6434_v25 = vpop.f32.mrb[211].mxu0 }
0x119e   : > { %v6466_v1 = vpack.c.bf16 %v6434_v25, %v6431_v36 }
0x11a0   : > { %8302 = vmatmul.mubr.msk.bf16.gmra.mrb[136].mxu0 %vm13654_vm14, %v6464_v50  ;;  %9163 = vmatprep.mubr.msk.bf16.mxu1 %vm13655_vm10, %v6466_v1  ;;  %vm13659_vm14 = vmmov %vm13645_vm7 }
0x11a1   : > { %9164 = vmatmul.mubr.msk.bf16.gmra.mrb[144].mxu1 %vm13645_vm7, %v6467_v59  ;;  %6636 = vmatprep.mubr.bf16.mxu0 %v13438_v11  ;;  %vm13660_vm10 = vmmov %vm13645_vm7 }
0x11a2   : > { %9176 = vmatpush3.bf16.xpose.msra.mxu1 %v6911_v39  ;;  %v9145_v49 = vpop.f32.mrb[212].mxu0  ;;  %v6914_v28 = vsel %vm13660_vm10, %v12768_v30, 0  ;;  %vm13666_vm10 = vmmov %vm13645_vm7 }
0x11a3   : > { %9678 = vmatprep.subr.msk.bf16.mxu1 %vm13657_vm12, %v12768_v30  ;;  %v6447_v8 = vpop.f32.mrb[213].mxu0  ;;  %vm13662_vm12 = vmmov %vm13645_vm7 }
0x11a4   : > { %v9146_v6 = vpop.f32.mrb[214].mxu0 }
0x11a5   : > { %v6469_v35 = vpack.c.bf16 %v9146_v6, %v9145_v49  ;;  %v6450_v7 = vpop.f32.mrb[215].mxu0 }
0x11a6   : > { %v6468_v17 = vpack.c.bf16 %v6450_v7, %v6447_v8 }
0x11a8   : > { %8303 = vmatmul.mubr.msk.bf16.gmra.mrb[140].mxu0 %vm13658_vm13, %v6465_v3  ;;  %9167 = vmatprep.mubr.msk.bf16.mxu1 %vm13659_vm14, %v6468_v17  ;;  %vm13664_vm13 = vmmov %vm13645_vm7 }
0x11a9   : > { %9168 = vmatmul.mubr.msk.bf16.gmra.mrb[148].mxu1 %vm13661_vm9, %v6469_v35  ;;  %6646 = vmatprep.mubr.bf16.mxu0 %v13438_v11  ;;  %v6917_v24 = vsel %vm13664_vm13, %v12751_v13, 0  ;;  %vm13665_vm14 = vmmov %vm13645_vm7 }
0x11aa   : > { %9178 = vmatpush3.bf16.xpose.msra.mxu1 %v6914_v28  ;;  %9187 = vmatprep.mubr.msk.bf16.mxu1 %vm13645_vm7, %v12759_v38  ;;  %vm13667_vm9 = vmmov %vm13645_vm7 }
0x11ab   : > { %9679 = vmatprep.subr.msk.bf16.mxu1 %vm13662_vm12, %v12751_v13  ;;  %v6920_v33 = vsel %vm13667_vm9, %v12770_v61, 0  ;;  %vm13669_vm12 = vmmov %vm13645_vm7 }
0x11ac   : > { %v6923_v13 = vsel %vm13669_vm12, %v12755_v14, 0  ;;  %vm13670_vm13 = vmmov %vm13645_vm7 }
0x11ad   : > { %vm13673_vm9 = vmmov %vm13645_vm7 }
0x11ae   : > { %vm13675_vm12 = vmmov %vm13645_vm7 }
0x11b0   : > { %8304 = vmatmul.mubr.msk.bf16.gmra.mrb[144].mxu0 %vm13663_vm15, %v6466_v1  ;;  %vm13668_vm15 = vmmov %vm13645_vm7 }
0x11b1   : > { %6656 = vmatprep.mubr.bf16.mxu0 %v13438_v11 }
0x11b2   : > { %9180 = vmatpush3.bf16.xpose.msra.mxu1 %v6917_v24 }
0x11b3   : > { %9680 = vmatprep.subr.msk.bf16.mxu1 %vm13665_vm14, %v12770_v61  ;;  %vm13671_vm14 = vmmov %vm13645_vm7 }
0x11b8   : > { %8305 = vmatmul.mubr.msk.bf16.gmra.mrb[148].mxu0 %vm13666_vm10, %v6467_v59  ;;  %vm13672_vm10 = vmmov %vm13645_vm7 }
0x11b9   : > { %6666 = vmatprep.mubr.bf16.mxu0 %v13438_v11  ;;  %v6926_v9 = vsel %vm13672_vm10, %v12772_v4, 0  ;;  %vm13678_vm10 = vmmov %vm13645_vm7 }
0x11ba   : > { %9182 = vmatpush3.bf16.xpose.msra.mxu1 %v6920_v33 }
0x11bb   : > { %9681 = vmatprep.subr.msk.bf16.mxu1 %vm13645_vm7, %v12755_v14 }
0x11c0   : > { %8306 = vmatmul.mubr.msk.bf16.gmra.mrb[152].mxu0 %vm13668_vm15, %v6468_v17  ;;  %vm13674_vm15 = vmmov %vm13645_vm7 }
0x11c1   : > { %6676 = vmatprep.mubr.bf16.mxu0 %v13438_v11 }
0x11c2   : > { %9184 = vmatpush3.bf16.xpose.msra.mxu1 %v6923_v13 }
0x11c3   : > { %9682 = vmatprep.subr.msk.bf16.mxu1 %vm13670_vm13, %v12772_v4  ;;  %vm13676_vm13 = vmmov %vm13645_vm7 }
0x11c8   : > { %8307 = vmatmul.mubr.msk.bf16.gmra.mrb[156].mxu0 %vm13671_vm14, %v6469_v35  ;;  %vm13677_vm14 = vmmov %vm13645_vm7 }
0x11ca   : > { %9186 = vmatpush3.bf16.xpose.msra.mxu1 %v6926_v9 }
0x11d1   : > { %9188 = vmatmul.mubr.msk.bf16.vlgmr.msra.gmra.mrb[208].mxu1 %vm13673_vm9, %v12774_v63 }
0x11d2   : > { %9191 = vmatprep.mubr.msk.bf16.mxu1 %vm13645_vm7, %v12762_v2 }
0x11d9   : > { %9192 = vmatmul.mubr.msk.bf16.gmra.mrb[212].mxu1 %vm13674_vm15, %v12776_v58  ;;  %v13680_v58 = vld [vmem:[#allocation69_spill] sm:$0xff] }
0x11da   : > { %9195 = vmatprep.mubr.msk.bf16.mxu1 %vm13675_vm12, %v12764_v53 }
0x11e1   : > { %9196 = vmatmul.mubr.msk.bf16.gmra.mrb[216].mxu1 %vm13676_vm13, %v12778_v15 }
0x11e2   : > { %9199 = vmatprep.mubr.msk.bf16.mxu1 %vm13677_vm14, %v12766_v21 }
0x11e9   : > { %9200 = vmatmul.mubr.msk.bf16.gmra.mrb[220].mxu1 %vm13678_vm10, %v12780_v40 }
0x12a4   : > { %v9189_v14 = vpop.f32.mrb[208].mxu1 }
0x12a5   : > { %v7027_v57 = vsel %vm11512_vm1, %v9189_v14, -1e+30  ;;  %v6962_v54 = vpop.f32.mrb[209].mxu1  ;;  %vm13679_vm1 = vnez %v13569_v46 }
0x12a6   : > { %7045 = vmax.xlane.f32.xlu0 %v7027_v57  ;;  %v9190_v38 = vpop.f32.mrb[210].mxu1  ;;  %v7025_v53 = vsel %vm11519_vm2, %v6962_v54, -1e+30  ;;  %vm13681_vm2 = vnez %v13680_v58 }
0x12a7   : > { %v6965_v51 = vpop.f32.mrb[211].mxu1  ;;  %v7028_v41 = vsel %vm11534_vm3, %v9190_v38, -1e+30  ;;  %vm13683_vm3 = vnez %v13682_v37 }
0x12a8   : > { %v7026_v2 = vsel %vm11541_vm4, %v6965_v51, -1e+30  ;;  %vm13685_vm4 = vnez %v13684_v27 }
0x12a9   : > { %7043 = vmax.xlane.f32.xlu1 %v7026_v2 }
0x12aa   : > { %7041 = vmax.xlane.f32.xlu0 %v7025_v53 }
0x12ac   : > { %v9193_v21 = vpop.f32.mrb[212].mxu1 }
0x12ad   : > { %v6978_v55 = vpop.f32.mrb[213].mxu1  ;;  %v7031_v62 = vsel %vm13566_vm0, %v9193_v21, -1e+30  ;;  %vm13693_vm0 = vnez %v13692_v18 }
0x12ae   : > { %7047 = vmax.xlane.f32.xlu0 %v7028_v41  ;;  %v9194_v31 = vpop.f32.mrb[214].mxu1  ;;  %v7029_v61 = vsel %vm13568_vm11, %v6978_v55, -1e+30  ;;  %vm13696_vm11 = vmmov %vm13645_vm7 }
0x12af   : > { %v7032_v22 = vsel %vm11563_vm6, %v9194_v31, -1e+30  ;;  %v6981_v30 = vpop.f32.mrb[215].mxu1  ;;  %vm13687_vm6 = vnez %v13686_v42 }
0x12b0   : > { %7055 = vmax.xlane.f32.xlu1 %v7032_v22  ;;  %v12860_v29 = vsel %vm11585_vm8, %v6981_v30, -1e+30  ;;  %vm13691_vm8 = vnez %v13690_v23 }
0x12b2   : > { %7053 = vmax.xlane.f32.xlu0 %v7031_v62 }
0x12b4   : > { %7051 = vmax.xlane.f32.xlu1 %v12860_v29  ;;  %v9197_v5 = vpop.f32.mrb[216].mxu1 }
0x12b5   : > { %v6994_v4 = vpop.f32.mrb[217].mxu1  ;;  %v12872_v32 = vsel %vm13679_vm1, %v9197_v5, -1e+30 }
0x12b6   : > { %7049 = vmax.xlane.f32.xlu0 %v7029_v61  ;;  %v9198_v0 = vpop.f32.mrb[218].mxu1  ;;  %v12882_v45 = vsel %vm13683_vm3, %v6994_v4, -1e+30  ;;  %v13694_v4 = vld [vmem:[#allocation63_spill] sm:$0xff] }
0x12b7   : > { %v12867_v63 = vsel %vm13640_vm5, %v9198_v0, -1e+30  ;;  %v6997_v10 = vpop.f32.mrb[219].mxu1  ;;  %v13695_v0 = vld [vmem:[#allocation64_spill] sm:$0xff]  ;;  %vm13697_vm5 = vmmov %vm13645_vm7 }
0x12b8   : > { %7063 = vmax.xlane.f32.xlu1 %v12867_v63  ;;  %v12877_v43 = vsel %vm13681_vm2, %v6997_v10, -1e+30  ;;  %vm13698_vm9 = vmmov %vm13697_vm5 }
0x12b9   : > { %vm13699_vm7 = vmmov %vm13697_vm5 }
0x12ba   : > { %7061 = vmax.xlane.f32.xlu0 %v12872_v32  ;;  %vm13700_vm15 = vmmov %vm13697_vm5 }
0x12bb   : > { %vm13701_vm12 = vmmov %vm13697_vm5 }
0x12bc   : > { %7059 = vmax.xlane.f32.xlu1 %v12877_v43  ;;  %v9201_v15 = vpop.f32.mrb[220].mxu1  ;;  %vm13702_vm13 = vmmov %vm13697_vm5 }
0x12bd   : > { %v7010_v40 = vpop.f32.mrb[221].mxu1  ;;  %v12887_v34 = vsel %vm13685_vm4, %v9201_v15, -1e+30  ;;  %vm13703_vm14 = vmmov %vm13697_vm5 }
0x12be   : > { %7057 = vmax.xlane.f32.xlu0 %v12882_v45  ;;  %v9202_v56 = vpop.f32.mrb[222].mxu1  ;;  %v12892_v19 = vsel %vm13687_vm6, %v7010_v40, -1e+30  ;;  %vm13704_vm10 = vmmov %vm13697_vm5 }
0x12bf   : > { %v7013_v46 = vpop.f32.mrb[223].mxu1  ;;  %v12901_v52 = vsel %vm13691_vm8, %v9202_v56, -1e+30  ;;  %vm13705_vm1 = vmmov %vm13697_vm5 }
0x12c0   : > { %v12906_v60 = vsel %vm13693_vm0, %v7013_v46, -1e+30  ;;  %vm13706_vm2 = vmmov %vm13705_vm1 }
0x12c1   : > { %vm13707_vm3 = vmmov %vm13705_vm1 }
0x12c2   : > { %7069 = vmax.xlane.f32.xlu0 %v12887_v34  ;;  %vm13708_vm4 = vmmov %vm13705_vm1 }
0x12c3   : > { %vm13709_vm6 = vmmov %vm13705_vm1 }
0x12c4   : > { %vm13710_vm8 = vmmov %vm13705_vm1 }
0x12c5   : > { %vm13711_vm0 = vmmov %vm13705_vm1 }
0x12c6   : > { %7065 = vmax.xlane.f32.xlu0 %v12892_v19 }
0x12cd   : > { %7211 = vrot.lane.b32.xlu1 %v13688_v48, %s10724_s21 }
0x12dc   : > { %7209 = vrot.lane.b32.xlu0 %v13689_v16, %s10724_s21 }
0x12f1   : > { %7071 = vmax.xlane.f32.xlu1 %v12901_v52 }
0x12f5   : > { %7067 = vmax.xlane.f32.xlu1 %v12906_v60 }
0x1333   : > { %v7046_v3 = vpop.xlane.xlu0 %7045 }
0x1334   : > { %v7075_v44 = vsub.f32 %v7027_v57, %v7046_v3 }
0x1336   : > { %v7093_v50 = vmul.f32 1.442695, %v7075_v44  ;;  %v7044_v47 = vpop.xlane.xlu1 %7043 }
0x1337   : > { %v7042_v26 = vpop.xlane.xlu0 %7041  ;;  %v7074_v12 = vsub.f32 %v7026_v2, %v7044_v47 }
0x1338   : > { %10492 = vpow2.f32 %v7093_v50  ;;  %v7073_v20 = vsub.f32 %v7025_v53, %v7042_v26 }
0x1339   : > { %v7091_v49 = vmul.f32 1.442695, %v7074_v12  ;;  %v10167_v12 = vld [vmem:[#allocation7 + $0x218] ss:$12 sps:$4 sm:$0xff]  }
0x133a   : > { %v7089_v36 = vmul.f32 1.442695, %v7073_v20  ;;  %v10159_v20 = vld [vmem:[#allocation7 + $0x1e8] ss:$12 sps:$4 sm:$0xff]  }
0x133b   : > { %v7048_v59 = vpop.xlane.xlu0 %7047  ;;  %9235 = vmatprep.subr.bf16.mxu1 %v10159_v20 }
0x133c   : > { %10494 = vpow2.f32 %v7089_v36  ;;  %v7076_v25 = vsub.f32 %v7028_v41, %v7048_v59  ;;  %v10163_v36 = vld [vmem:[#allocation7 + $0x200] ss:$12 sps:$4 sm:$0xff]   ;;  %9236 = vmatpush3.bf16.msra.mxu1 %v10159_v20 }
0x133d   : > { %v7056_v1 = vpop.xlane.xlu1 %7055  ;;  %9237 = vmatprep.subr.bf16.mxu1 %v10163_v36 }
0x133e   : > { %v7095_v39 = vmul.f32 1.442695, %v7076_v25  ;;  %v7080_v8 = vsub.f32 %v7032_v22, %v7056_v1 }
0x133f   : > { %v7054_v6 = vpop.xlane.xlu0 %7053 }
0x1340   : > { %10496 = vpow2.f32 %v7095_v39  ;;  %v7079_v35 = vsub.f32 %v7031_v62, %v7054_v6  ;;  %v7103_v24 = vmul.f32 1.442695, %v7080_v8  ;;  %9238 = vmatpush3.bf16.msra.mxu1 %v10163_v36 }
0x1341   : > { %v7052_v7 = vpop.xlane.xlu1 %7051  ;;  %10498 = vpow2.f32 %v7091_v49  ;;  %9239 = vmatprep.subr.bf16.mxu1 %v10167_v12 }
0x1342   : > { %v12909_v17 = vpop.eup %10492  ;;  %v7101_v28 = vmul.f32 1.442695, %v7079_v35  ;;  %v7078_v13 = vsub.f32 %v12860_v29, %v7052_v7 }
0x1343   : > { %v7050_v33 = vpop.xlane.xlu0 %7049  ;;  %7125 = vadd.xlane.f32.xlu1 %v12909_v17 }
0x1344   : > { %10500 = vpow2.f32 %v7101_v28  ;;  %v7077_v9 = vsub.f32 %v7029_v61, %v7050_v33  ;;  %v7099_v38 = vmul.f32 1.442695, %v7078_v13  ;;  %9240 = vmatpush3.bf16.msra.mxu1 %v10167_v12 }
0x1345   : > { %10502 = vpow2.f32 %v7103_v24  ;;  %v7064_v21 = vpop.xlane.xlu1 %7063 }
0x1346   : > { %v12913_v14 = vpop.eup %10494  ;;  %v7097_v57 = vmul.f32 1.442695, %v7077_v9  ;;  %v7084_v58 = vsub.f32 %v12867_v63, %v7064_v21  ;;  %v10158_v21 = vld [vmem:[#allocation7 + $0x1e4] ss:$12 sps:$4 sm:$0xff]  }
0x1347   : > { %v7062_v54 = vpop.xlane.xlu0 %7061  ;;  %7121 = vadd.xlane.f32.xlu1 %v12913_v14 }
0x1348   : > { %10504 = vpow2.f32 %v7097_v57  ;;  %v7111_v40 = vmul.f32 1.442695, %v7084_v58  ;;  %v7083_v56 = vsub.f32 %v12872_v32, %v7062_v54  ;;  %v10160_v58 = vld [vmem:[#allocation7 + $0x1f8] ss:$12 sps:$4 sm:$0xff]  }
0x1349   : > { %10506 = vpow2.f32 %v7099_v38  ;;  %v7060_v30 = vpop.xlane.xlu1 %7059 }
0x134a   : > { %v12916_v51 = vpop.eup %10496  ;;  %v7082_v15 = vsub.f32 %v12877_v43, %v7060_v30  ;;  %v7109_v42 = vmul.f32 1.442695, %v7083_v56 }
0x134b   : > { %v7058_v2 = vpop.xlane.xlu0 %7057  ;;  %7127 = vadd.xlane.f32.xlu1 %v12916_v51  ;;  %v12919_v53 = vpop.eup %10498 }
0x134c   : > { %v7081_v10 = vsub.f32 %v12882_v45, %v7058_v2  ;;  %v7107_v46 = vmul.f32 1.442695, %v7082_v15 }
0x134d   : > { %v7212_v61 = vpop.permute.xlu1 %7211 }
0x134e   : > { %v12921_v41 = vpop.eup %10500  ;;  %v7105_v37 = vmul.f32 1.442695, %v7081_v10 }
0x134f   : > { %v7070_v55 = vpop.xlane.xlu0 %7069  ;;  %7133 = vadd.xlane.f32.xlu0 %v12921_v41  ;;  %7123 = vadd.xlane.f32.xlu1 %v12919_v53  ;;  %v12925_v31 = vpop.eup %10502 }
0x1350   : > { %10508 = vpow2.f32 %v7105_v37  ;;  %v7087_v63 = vsub.f32 %v12887_v34, %v7070_v55 }
0x1351   : > { %10510 = vpow2.f32 %v7111_v40  ;;  %v10164_v40 = vld [vmem:[#allocation7 + $0x210] ss:$12 sps:$4 sm:$0xff]  }
0x1352   : > { %v12927_v22 = vpop.eup %10504  ;;  %10512 = vpow2.f32 %v7107_v46  ;;  %v7117_v44 = vmul.f32 1.442695, %v7087_v63 }
0x1353   : > { %7135 = vadd.xlane.f32.xlu0 %v12925_v31  ;;  %v7066_v62 = vpop.xlane.xlu0 %7065  ;;  %7129 = vadd.xlane.f32.xlu1 %v12927_v22  ;;  %v12931_v29 = vpop.eup %10506  ;;  %10514 = vpow2.f32 %v7109_v42 }
0x1354   : > { %v7085_v48 = vsub.f32 %v12892_v19, %v7066_v62  ;;  %v10156_v62 = vld [vmem:[#allocation7 + $0x1e0] ss:$12 sps:$4 sm:$0xff]  }
0x1356   : > { %v7113_v43 = vmul.f32 1.442695, %v7085_v48 }
0x1357   : > { %7131 = vadd.xlane.f32.xlu0 %v12931_v29  ;;  %v7210_v5 = vpop.permute.xlu0 %7209 }
0x1358   : > { %9211 = vmatprep.subr.bf16.mxu0 %v7210_v5 }
0x1359   : > { %9212 = vmatpush3.bf16.msra.mxu0 %v7210_v5 }
0x135a   : > { %9213 = vmatprep.subr.bf16.mxu0 %v7212_v61  ;;  %v12946_v3 = vpop.eup %10508 }
0x135b   : > { %v12949_v50 = vpop.eup %10510 }
0x135c   : > { %v12951_v19 = vpop.eup %10512 }
0x135d   : > { %9214 = vmatpush3.bf16.msra.mxu0 %v7212_v61  ;;  %v12955_v34 = vpop.eup %10514 }
0x1364   : > { %7215 = vrot.lane.b32.xlu1 %v13694_v4, %s10724_s21 }
0x136d   : > { %7213 = vrot.lane.b32.xlu0 %v13695_v0, %s10724_s21 }
0x137e   : > { %v7072_v27 = vpop.xlane.xlu1 %7071 }
0x137f   : > { %v7088_v23 = vsub.f32 %v12901_v52, %v7072_v27 }
0x1381   : > { %v7119_v32 = vmul.f32 1.442695, %v7088_v23 }
0x1382   : > { %v7068_v16 = vpop.xlane.xlu1 %7067 }
0x1383   : > { %v7086_v45 = vsub.f32 %v12906_v60, %v7068_v16 }
0x1385   : > { %v7115_v18 = vmul.f32 1.442695, %v7086_v45 }
0x1387   : > { %10516 = vpow2.f32 %v7115_v18 }
0x1388   : > { %7137 = vadd.xlane.f32.xlu1 %v12946_v3  ;;  %10518 = vpow2.f32 %v7113_v43 }
0x1389   : > { %10520 = vpow2.f32 %v7119_v32 }
0x138a   : > { %10522 = vpow2.f32 %v7117_v44 }
0x138c   : > { %7139 = vadd.xlane.f32.xlu0 %v12951_v19  ;;  %7143 = vadd.xlane.f32.xlu1 %v12949_v50 }
0x1390   : > { %7141 = vadd.xlane.f32.xlu0 %v12955_v34 }
0x1391   : > { %v12958_v52 = vpop.eup %10516 }
0x1392   : > { %7147 = vadd.xlane.f32.xlu1 %v12958_v52  ;;  %v12961_v60 = vpop.eup %10518 }
0x1393   : > { %v12964_v26 = vpop.eup %10520 }
0x1394   : > { %7145 = vadd.xlane.f32.xlu0 %v12961_v60  ;;  %v12967_v47 = vpop.eup %10522 }
0x1396   : > { %7151 = vadd.xlane.f32.xlu1 %v12964_v26 }
0x1398   : > { %7149 = vadd.xlane.f32.xlu0 %v12967_v47 }
0x13d0   : > { %v7126_v59 = vpop.xlane.xlu1 %7125 }
0x13d4   : > { %v7122_v25 = vpop.xlane.xlu1 %7121 }
0x13d5   : > { %10524 = vrcp.f32 %v7122_v25 }
0x13d8   : > { %v7128_v1 = vpop.xlane.xlu1 %7127 }
0x13d9   : > { %10526 = vrcp.f32 %v7128_v1 }
0x13dc   : > { %v7134_v39 = vpop.xlane.xlu0 %7133  ;;  %v7124_v49 = vpop.xlane.xlu1 %7123 }
0x13dd   : > { %10528 = vrcp.f32 %v7124_v49 }
0x13de   : > { %10530 = vrcp.f32 %v7126_v59 }
0x13df   : > { %v10525_v7 = vpop.eup %10524 }
0x13e0   : > { %v7136_v8 = vpop.xlane.xlu0 %7135  ;;  %v7130_v6 = vpop.xlane.xlu1 %7129  ;;  %v7169_v13 = vmul.f32 %v10525_v7, %v12913_v14  ;;  %v10162_v14 = vld [vmem:[#allocation7 + $0x1fc] ss:$12 sps:$4 sm:$0xff]  }
0x13e1   : > { %10532 = vrcp.f32 %v7130_v6 }
0x13e3   : > { %v10527_v28 = vpop.eup %10526 }
0x13e4   : > { %v7132_v35 = vpop.xlane.xlu0 %7131  ;;  %v7216_v54 = vpop.permute.xlu1 %7215  ;;  %v7172_v38 = vmul.f32 %v10527_v28, %v12916_v51 }
0x13e5   : > { %10534 = vrcp.f32 %v7132_v35  ;;  %v10171_v35 = vld [vmem:[#allocation7 + $0x230] ss:$12 sps:$4 sm:$0xff]  }
0x13e6   : > { %10536 = vrcp.f32 %v7136_v8  ;;  %9241 = vmatprep.subr.bf16.mxu1 %v10171_v35 }
0x13e7   : > { %v10529_v24 = vpop.eup %10528  ;;  %10538 = vrcp.f32 %v7134_v39  ;;  %9242 = vmatpush3.bf16.msra.mxu1 %v10171_v35 }
0x13e8   : > { %v7214_v33 = vpop.permute.xlu0 %7213  ;;  %v7170_v9 = vmul.f32 %v10529_v24, %v12919_v53  ;;  %v10531_v57 = vpop.eup %10530 }
0x13e9   : > { %9215 = vmatprep.subr.bf16.mxu0 %v7214_v33  ;;  %v7171_v30 = vmul.f32 %v10531_v57, %v12909_v17  ;;  %v10166_v17 = vld [vmem:[#allocation7 + $0x214] ss:$12 sps:$4 sm:$0xff]  }
0x13ea   : > { %9216 = vmatpush3.bf16.msra.mxu0 %v7214_v33  ;;  %v7185_v2 = vpack.c.bf16 %v7170_v9, %v7169_v13 }
0x13eb   : > { %9217 = vmatprep.subr.bf16.mxu0 %v7216_v54  ;;  %v10533_v55 = vpop.eup %10532  ;;  %v7186_v61 = vpack.c.bf16 %v7172_v38, %v7171_v30 }
0x13ec   : > { %9219 = vmatprep.mubr.bf16.mxu0 %v7185_v2  ;;  %v7173_v53 = vmul.f32 %v10533_v55, %v12927_v22 }
0x13ee   : > { %9218 = vmatpush3.bf16.msra.mxu0 %v7216_v54 }
0x13ef   : > { %v10535_v5 = vpop.eup %10534  ;;  %7434 = vmatprep.subr.bf16.mxu0 %v10158_v21 }
0x13f0   : > { %v10537_v4 = vpop.eup %10536  ;;  %v7174_v0 = vmul.f32 %v10535_v5, %v12931_v29 }
0x13f1   : > { %9220 = vmatmul.mubr.bf16.vlgmr.msra.gmra.mrb[216].mxu0 %v7186_v61  ;;  %v10539_v51 = vpop.eup %10538  ;;  %v7176_v15 = vmul.f32 %v10537_v4, %v12925_v31 }
0x13f2   : > { %v7187_v10 = vpack.c.bf16 %v7174_v0, %v7173_v53  ;;  %7435 = vmatpush1.bf16.msra.mxu0 %v10156_v62  ;;  %v7175_v37 = vmul.f32 %v10539_v51, %v12921_v41  ;;  %v13712_v51 = vld [vmem:[#allocation65_spill] sm:$0xff] }
0x13f3   : > { %7436 = vmatprep.subr.bf16.mxu0 %v10162_v14 }
0x13f4   : > { %9223 = vmatprep.mubr.bf16.mxu0 %v7187_v10  ;;  %v7188_v56 = vpack.c.bf16 %v7176_v15, %v7175_v37  ;;  %v7696_v10 = vsub.s32 0, %v13712_v51  ;;  %v7700_v15 = vsub.s32 1, %v13712_v51 }
0x13f6   : > { %7437 = vmatpush1.bf16.msra.mxu0 %v10160_v58  ;;  %v7692_v58 = vld [vmem:[%s13184_s3] sm:$0x7] }
0x13f7   : > { %7438 = vmatprep.subr.bf16.mxu0 %v10166_v17  ;;  %v7704_v17 = vsub.s32 2, %v13712_v51  ;;  %v13016_v37 = vrot.slane %v7692_v58, %v7696_v10 }
0x13f9   : > { %9224 = vmatmul.mubr.bf16.gmra.mrb[220].mxu0 %v7188_v56 }
0x13fa   : > { %7439 = vmatpush1.bf16.msra.mxu0 %v10164_v40  ;;  %v13018_v40 = vrot.slane %v7692_v58, %v7700_v15 }
0x1415   : > { %v7138_v22 = vpop.xlane.xlu1 %7137 }
0x1416   : > { %10540 = vrcp.f32 %v7138_v22  ;;  %v13020_v22 = vrot.slane %v7692_v58, %v7704_v17 }
0x1419   : > { %v7140_v29 = vpop.xlane.xlu0 %7139  ;;  %v7144_v46 = vpop.xlane.xlu1 %7143 }
0x141a   : > { %10542 = vrcp.f32 %v7140_v29 }
0x141b   : > { %10544 = vrcp.f32 %v7144_v46 }
0x141d   : > { %v7142_v27 = vpop.xlane.xlu0 %7141 }
0x141e   : > { %10546 = vrcp.f32 %v7142_v27 }
0x141f   : > { %v7148_v31 = vpop.xlane.xlu1 %7147 }
0x1420   : > { %10548 = vrcp.f32 %v7148_v31  ;;  %v10541_v48 = vpop.eup %10540  ;;  %v13713_v31 = vld [vmem:[#allocation49_spill] sm:$0xff] }
0x1421   : > { %v7146_v42 = vpop.xlane.xlu0 %7145  ;;  %v7177_v45 = vmul.f32 %v10541_v48, %v12946_v3 }
0x1422   : > { %10550 = vrcp.f32 %v7146_v42 }
0x1423   : > { %v7152_v41 = vpop.xlane.xlu1 %7151 }
0x1424   : > { %v10543_v16 = vpop.eup %10542  ;;  %10552 = vrcp.f32 %v7152_v41 }
0x1425   : > { %v7150_v23 = vpop.xlane.xlu0 %7149  ;;  %v7178_v63 = vmul.f32 %v10543_v16, %v12951_v19  ;;  %v10545_v43 = vpop.eup %10544 }
0x1426   : > { %10554 = vrcp.f32 %v7150_v23  ;;  %v7180_v20 = vmul.f32 %v10545_v43, %v12949_v50  ;;  %v10170_v50 = vld [vmem:[#allocation7 + $0x22c] ss:$12 sps:$4 sm:$0xff]  }
0x1427   : > { %v7189_v18 = vpack.c.bf16 %v7178_v63, %v7177_v45  ;;  %7440 = vmatprep.subr.bf16.mxu0 %v10170_v50  ;;  %v13714_v23 = vld [vmem:[#allocation47_spill] sm:$0xff]  ;;  %v13717_v50 = vld [vmem:[#allocation53_spill] sm:$0xff] }
0x1428   : > { %v10547_v32 = vpop.eup %10546 }
0x1429   : > { %9227 = vmatprep.mubr.bf16.mxu0 %v7189_v18  ;;  %v7179_v44 = vmul.f32 %v10547_v32, %v12955_v34  ;;  %v10168_v34 = vld [vmem:[#allocation7 + $0x228] ss:$12 sps:$4 sm:$0xff]  }
0x142a   : > { %v10549_v36 = vpop.eup %10548  ;;  %7441 = vmatpush1.bf16.msra.mxu0 %v10168_v34 }
0x142b   : > { %v7190_v12 = vpack.c.bf16 %v7180_v20, %v7179_v44  ;;  %v7182_v1 = vmul.f32 %v10549_v36, %v12958_v52  ;;  %v13715_v44 = vld [vmem:[#allocation51_spill] sm:$0xff] }
0x142c   : > { %v10551_v59 = vpop.eup %10550 }
0x142d   : > { %9228 = vmatmul.mubr.bf16.gmra.mrb[224].mxu0 %v7190_v12  ;;  %v7181_v25 = vmul.f32 %v10551_v59, %v12961_v60  ;;  %v13716_v59 = vld [vmem:[#allocation55_spill] sm:$0xff] }
0x142e   : > { %v10553_v3 = vpop.eup %10552 }
0x142f   : > { %v7191_v39 = vpack.c.bf16 %v7182_v1, %v7181_v25  ;;  %v7184_v8 = vmul.f32 %v10553_v3, %v12964_v26 }
0x1430   : > { %v10555_v19 = vpop.eup %10554 }
0x1431   : > { %9231 = vmatprep.mubr.bf16.mxu0 %v7191_v39  ;;  %v7183_v49 = vmul.f32 %v10555_v19, %v12967_v47 }
0x1433   : > { %v7192_v6 = vpack.c.bf16 %v7184_v8, %v7183_v49 }
0x1435   : > { %9232 = vmatmul.mubr.bf16.gmra.mrb[228].mxu0 %v7192_v6 }
0x1436   : > { %7466 = vmatprep.mubr.bf16.mxu0 %v13438_v11 }
0x14c4   : > { %v9221_v52 = vpop.f32.mrb[216].mxu0 }
0x14c5   : > { %v7259_v60 = vpop.f32.mrb[217].mxu0 }
0x14c6   : > { %v9222_v7 = vpop.f32.mrb[218].mxu0 }
0x14c7   : > { %v7323_v28 = vpack.c.bf16 %v9222_v7, %v9221_v52  ;;  %v7262_v24 = vpop.f32.mrb[219].mxu0  ;;  %v13718_v7 = vld [vmem:[#allocation25_spill] sm:$0xff] }
0x14c8   : > { %v7322_v33 = vpack.c.bf16 %v7262_v24, %v7259_v60 }
0x14ca   : > { %8336 = vmatmul.mubr.msk.bf16.vlgmr.msra.gmra.mrb[128].mxu0 %vm13696_vm11, %v7322_v33  ;;  %9243 = vmatprep.mubr.msk.bf16.mxu1 %vm13697_vm5, %v7322_v33 }
0x14cb   : > { %9244 = vmatmul.mubr.msk.bf16.vlgmr.msra.gmra.mrb[152].mxu1 %vm13698_vm9, %v7323_v28  ;;  %7476 = vmatprep.mubr.bf16.mxu0 %v13438_v11 }
0x14cc   : > { %v9225_v26 = vpop.f32.mrb[220].mxu0 }
0x14cd   : > { %v7275_v47 = vpop.f32.mrb[221].mxu0 }
0x14ce   : > { %v9226_v13 = vpop.f32.mrb[222].mxu0 }
0x14cf   : > { %v7325_v9 = vpack.c.bf16 %v9226_v13, %v9225_v26  ;;  %v7278_v57 = vpop.f32.mrb[223].mxu0  ;;  %v13719_v13 = vld [vmem:[#allocation28_spill] sm:$0xff] }
0x14d0   : > { %v7324_v54 = vpack.c.bf16 %v7278_v57, %v7275_v47 }
0x14d2   : > { %8337 = vmatmul.mubr.msk.bf16.gmra.mrb[132].mxu0 %vm13699_vm7, %v7323_v28  ;;  %9247 = vmatprep.mubr.msk.bf16.mxu1 %vm13700_vm15, %v7324_v54 }
0x14d3   : > { %9248 = vmatmul.mubr.msk.bf16.gmra.mrb[156].mxu1 %vm13701_vm12, %v7325_v9  ;;  %7486 = vmatprep.mubr.bf16.mxu0 %v13438_v11 }
0x14da   : > { %8338 = vmatmul.mubr.msk.bf16.gmra.mrb[136].mxu0 %vm13702_vm13, %v7324_v54 }
0x14db   : > { %7496 = vmatprep.mubr.bf16.mxu0 %v13438_v11 }
0x14e2   : > { %8339 = vmatmul.mubr.msk.bf16.gmra.mrb[140].mxu0 %vm13703_vm14, %v7325_v9 }
0x14e3   : > { %7506 = vmatprep.mubr.bf16.mxu0 %v13438_v11 }
0x1500   : > { %v9229_v38 = vpop.f32.mrb[224].mxu0 }
0x1501   : > { %v7291_v2 = vpop.f32.mrb[225].mxu0 }
0x1502   : > { %v9230_v21 = vpop.f32.mrb[226].mxu0 }
0x1503   : > { %v7327_v55 = vpack.c.bf16 %v9230_v21, %v9229_v38  ;;  %v7294_v30 = vpop.f32.mrb[227].mxu0  ;;  %v13720_v38 = vld [vmem:[#allocation31_spill] sm:$0xff] }
0x1504   : > { %v7326_v62 = vpack.c.bf16 %v7294_v30, %v7291_v2 }
0x1506   : > { %8340 = vmatmul.mubr.msk.bf16.gmra.mrb[144].mxu0 %vm13704_vm10, %v7326_v62  ;;  %9251 = vmatprep.mubr.msk.bf16.mxu1 %vm13705_vm1, %v7326_v62 }
0x1507   : > { %9252 = vmatmul.mubr.msk.bf16.gmra.mrb[144].mxu1 %vm13706_vm2, %v7327_v55  ;;  %7516 = vmatprep.mubr.bf16.mxu0 %v13438_v11 }
0x1508   : > { %v9233_v5 = vpop.f32.mrb[228].mxu0 }
0x1509   : > { %v7307_v61 = vpop.f32.mrb[229].mxu0 }
0x150a   : > { %v9234_v14 = vpop.f32.mrb[230].mxu0 }
0x150b   : > { %v7329_v4 = vpack.c.bf16 %v9234_v14, %v9233_v5  ;;  %v7310_v53 = vpop.f32.mrb[231].mxu0 }
0x150c   : > { %v7328_v0 = vpack.c.bf16 %v7310_v53, %v7307_v61 }
0x150e   : > { %8341 = vmatmul.mubr.msk.bf16.gmra.mrb[148].mxu0 %vm13707_vm3, %v7327_v55  ;;  %9255 = vmatprep.mubr.msk.bf16.mxu1 %vm13708_vm4, %v7328_v0 }
0x150f   : > { %9256 = vmatmul.mubr.msk.bf16.gmra.mrb[148].mxu1 %vm13709_vm6, %v7329_v4  ;;  %7526 = vmatprep.mubr.bf16.mxu0 %v13438_v11 }
0x1516   : > { %8342 = vmatmul.mubr.msk.bf16.gmra.mrb[152].mxu0 %vm13710_vm8, %v7328_v0 }
0x1517   : > { %7536 = vmatprep.mubr.bf16.mxu0 %v13438_v11 }
0x151e   : > { %8343 = vmatmul.mubr.msk.bf16.gmra.mrb[156].mxu0 %vm13711_vm0, %v7329_v4 }
0x159d   : > { %v7468_v56 = vpop.f32.mrb[128].mxu0 }
0x159e   : > { %v7709_v11 = vadd.f32 %v13016_v37, %v7468_v56  ;;  %v7470_v29 = vpop.f32.mrb[129].mxu0  ;;  %v9245_v46 = vpop.f32.mrb[152].mxu1 }
0x159f   : > { %v7710_v27 = vadd.f32 %v13018_v40, %v7470_v29  ;;  %v9299_v42 = vadd.f32 %v9245_v46, %v13713_v31  ;;  %v7472_v48 = vpop.f32.mrb[130].mxu0  ;;  %v7581_v41 = vpop.f32.mrb[153].mxu1 }
0x15a0   : > { %7757 = vst [vmem:[%s13027_s5] sm:$0xff] %v7709_v11  ;;  %v7712_v16 = vadd.f32 %v13016_v37, %v7472_v48  ;;  %v9300_v45 = vadd.f32 %v7581_v41, %v13714_v23  ;;  %v7474_v63 = vpop.f32.mrb[131].mxu0  ;;  %v9246_v43 = vpop.f32.mrb[154].mxu1 }
0x15a1   : > { %7758 = vst [vmem:[%s13027_s5 + $0x8] sm:$0xff] %v7710_v27  ;;  %v7717_v18 = vadd.f32 %v9299_v42, %v13020_v22  ;;  %v7713_v32 = vadd.f32 %v13018_v40, %v7474_v63  ;;  %v9301_v20 = vadd.f32 %v9246_v43, %v13715_v44  ;;  %v7584_v36 = vpop.f32.mrb[155].mxu1 }
0x15a2   : > { %7760 = vst [vmem:[%s13027_s5 + $0x18] sm:$0xff] %v7712_v16  ;;  %v7711_v12 = vadd.f32 %v9300_v45, %v13020_v22  ;;  %v9302_v25 = vadd.f32 %v7584_v36, %v13716_v59 }
0x15a3   : > { %7765 = vst [vmem:[%s13027_s5 + $0x40] sm:$0xff] %v7717_v18  ;;  %7761 = vst [vmem:[%s13027_s5 + $0x20] sm:$0xff] %v7713_v32  ;;  %v7720_v1 = vadd.f32 %v9301_v20, %v13020_v22 }
0x15a4   : > { %7759 = vst [vmem:[%s13027_s5 + $0x10] sm:$0xff] %v7711_v12  ;;  %v7714_v3 = vadd.f32 %v9302_v25, %v13020_v22 }
0x15a5   : > { %7768 = vst [vmem:[%s13027_s5 + $0x58] sm:$0xff] %v7720_v1  ;;  %v7478_v39 = vpop.f32.mrb[132].mxu0 }
0x15a6   : > { %7762 = vst [vmem:[%s13027_s5 + $0x28] sm:$0xff] %v7714_v3  ;;  %v7715_v19 = vadd.f32 %v13016_v37, %v7478_v39  ;;  %v7480_v49 = vpop.f32.mrb[133].mxu0  ;;  %v9249_v8 = vpop.f32.mrb[156].mxu1 }
0x15a7   : > { %v7716_v6 = vadd.f32 %v13018_v40, %v7480_v49  ;;  %v9303_v34 = vadd.f32 %v9249_v8, %v13717_v50  ;;  %v7482_v35 = vpop.f32.mrb[134].mxu0  ;;  %v7597_v52 = vpop.f32.mrb[157].mxu1 }
0x15a8   : > { %7763 = vst [vmem:[%s13027_s5 + $0x30] sm:$0xff] %v7715_v19  ;;  %v7718_v60 = vadd.f32 %v13016_v37, %v7482_v35  ;;  %v9304_v28 = vadd.f32 %v7597_v52, %v13718_v7  ;;  %v7484_v24 = vpop.f32.mrb[135].mxu0  ;;  %v9250_v33 = vpop.f32.mrb[158].mxu1 }
0x15a9   : > { %7764 = vst [vmem:[%s13027_s5 + $0x38] sm:$0xff] %v7716_v6  ;;  %v7729_v26 = vadd.f32 %v9303_v34, %v13020_v22  ;;  %v7719_v47 = vadd.f32 %v13018_v40, %v7484_v24  ;;  %v9305_v9 = vadd.f32 %v9250_v33, %v13719_v13  ;;  %v7600_v57 = vpop.f32.mrb[159].mxu1 }
0x15aa   : > { %7766 = vst [vmem:[%s13027_s5 + $0x48] sm:$0xff] %v7718_v60  ;;  %v7723_v54 = vadd.f32 %v9304_v28, %v13020_v22  ;;  %v9306_v2 = vadd.f32 %v7600_v57, %v13720_v38 }
0x15ab   : > { %7777 = vst [vmem:[%s13027_s5 + $0xa0] sm:$0xff] %v7729_v26  ;;  %7767 = vst [vmem:[%s13027_s5 + $0x50] sm:$0xff] %v7719_v47  ;;  %v7732_v21 = vadd.f32 %v9305_v9, %v13020_v22 }
0x15ac   : > { %7771 = vst [vmem:[%s13027_s5 + $0x70] sm:$0xff] %v7723_v54  ;;  %v7726_v55 = vadd.f32 %v9306_v2, %v13020_v22 }
0x15ad   : > { %7780 = vst [vmem:[%s13027_s5 + $0xb8] sm:$0xff] %v7732_v21  ;;  %v7488_v30 = vpop.f32.mrb[136].mxu0 }
0x15ae   : > { %7774 = vst [vmem:[%s13027_s5 + $0x88] sm:$0xff] %v7726_v55  ;;  %v7721_v62 = vadd.f32 %v13016_v37, %v7488_v30  ;;  %v7490_v5 = vpop.f32.mrb[137].mxu0 }
0x15af   : > { %v7722_v61 = vadd.f32 %v13018_v40, %v7490_v5  ;;  %v7492_v14 = vpop.f32.mrb[138].mxu0 }
0x15b0   : > { %7769 = vst [vmem:[%s13027_s5 + $0x60] sm:$0xff] %v7721_v62  ;;  %v7724_v4 = vadd.f32 %v13016_v37, %v7492_v14  ;;  %v7494_v53 = vpop.f32.mrb[139].mxu0 }
0x15b1   : > { %7770 = vst [vmem:[%s13027_s5 + $0x68] sm:$0xff] %v7722_v61  ;;  %v7725_v0 = vadd.f32 %v13018_v40, %v7494_v53 }
0x15b2   : > { %7772 = vst [vmem:[%s13027_s5 + $0x78] sm:$0xff] %v7724_v4 }
0x15b3   : > { %7773 = vst [vmem:[%s13027_s5 + $0x80] sm:$0xff] %v7725_v0 }
0x15b5   : > { %v7498_v51 = vpop.f32.mrb[140].mxu0 }
0x15b6   : > { %v7727_v10 = vadd.f32 %v13016_v37, %v7498_v51  ;;  %v7500_v58 = vpop.f32.mrb[141].mxu0 }
0x15b7   : > { %v7728_v15 = vadd.f32 %v13018_v40, %v7500_v58  ;;  %v7502_v17 = vpop.f32.mrb[142].mxu0 }
0x15b8   : > { %7775 = vst [vmem:[%s13027_s5 + $0x90] sm:$0xff] %v7727_v10  ;;  %v7730_v56 = vadd.f32 %v13016_v37, %v7502_v17  ;;  %v7504_v11 = vpop.f32.mrb[143].mxu0 }
0x15b9   : > { %7776 = vst [vmem:[%s13027_s5 + $0x98] sm:$0xff] %v7728_v15  ;;  %v7731_v29 = vadd.f32 %v13018_v40, %v7504_v11 }
0x15ba   : > { %7778 = vst [vmem:[%s13027_s5 + $0xa8] sm:$0xff] %v7730_v56 }
0x15bb   : > { %7779 = vst [vmem:[%s13027_s5 + $0xb0] sm:$0xff] %v7731_v29 }
0x15d9   : > { %v7508_v46 = vpop.f32.mrb[144].mxu0 }
0x15da   : > { %v7733_v27 = vadd.f32 %v13016_v37, %v7508_v46  ;;  %v7510_v31 = vpop.f32.mrb[145].mxu0  ;;  %v9253_v42 = vpop.f32.mrb[144].mxu1 }
0x15db   : > { %v7734_v48 = vadd.f32 %v13018_v40, %v7510_v31  ;;  %v7741_v41 = vadd.f32 %v9253_v42, %v13020_v22  ;;  %v7512_v16 = vpop.f32.mrb[146].mxu0  ;;  %v7613_v23 = vpop.f32.mrb[145].mxu1 }
0x15dc   : > { %7781 = vst [vmem:[%s13027_s5 + $0xc0] sm:$0xff] %v7733_v27  ;;  %v7736_v45 = vadd.f32 %v13016_v37, %v7512_v16  ;;  %v7735_v63 = vadd.f32 %v13020_v22, %v7613_v23  ;;  %v7514_v43 = vpop.f32.mrb[147].mxu0  ;;  %v9254_v18 = vpop.f32.mrb[146].mxu1 }
0x15dd   : > { %7782 = vst [vmem:[%s13027_s5 + $0xc8] sm:$0xff] %v7734_v48  ;;  %7789 = vst [vmem:[%s13027_s5 + $0x100] sm:$0xff] %v7741_v41  ;;  %v7737_v32 = vadd.f32 %v13018_v40, %v7514_v43  ;;  %v7744_v44 = vadd.f32 %v9254_v18, %v13020_v22  ;;  %v7616_v20 = vpop.f32.mrb[147].mxu1 }
0x15de   : > { %7784 = vst [vmem:[%s13027_s5 + $0xd8] sm:$0xff] %v7736_v45  ;;  %7783 = vst [vmem:[%s13027_s5 + $0xd0] sm:$0xff] %v7735_v63  ;;  %v7738_v36 = vadd.f32 %v13020_v22, %v7616_v20 }
0x15df   : > { %7785 = vst [vmem:[%s13027_s5 + $0xe0] sm:$0xff] %v7737_v32  ;;  %7792 = vst [vmem:[%s13027_s5 + $0x118] sm:$0xff] %v7744_v44 }
0x15e0   : > { %7786 = vst [vmem:[%s13027_s5 + $0xe8] sm:$0xff] %v7738_v36 }
0x15e1   : > { %v7518_v12 = vpop.f32.mrb[148].mxu0 }
0x15e2   : > { %v7739_v59 = vadd.f32 %v13016_v37, %v7518_v12  ;;  %v7520_v25 = vpop.f32.mrb[149].mxu0  ;;  %v9257_v1 = vpop.f32.mrb[148].mxu1 }
0x15e3   : > { %v7740_v3 = vadd.f32 %v13018_v40, %v7520_v25  ;;  %v7753_v39 = vadd.f32 %v9257_v1, %v13020_v22  ;;  %v7522_v19 = vpop.f32.mrb[150].mxu0  ;;  %v7629_v49 = vpop.f32.mrb[149].mxu1 }
0x15e4   : > { %7787 = vst [vmem:[%s13027_s5 + $0xf0] sm:$0xff] %v7739_v59  ;;  %v7742_v8 = vadd.f32 %v13016_v37, %v7522_v19  ;;  %v7747_v6 = vadd.f32 %v13020_v22, %v7629_v49  ;;  %v7524_v50 = vpop.f32.mrb[151].mxu0  ;;  %v9258_v34 = vpop.f32.mrb[150].mxu1 }
0x15e5   : > { %7788 = vst [vmem:[%s13027_s5 + $0xf8] sm:$0xff] %v7740_v3  ;;  %7801 = vst [vmem:[%s13027_s5 + $0x160] sm:$0xff] %v7753_v39  ;;  %v7743_v35 = vadd.f32 %v13018_v40, %v7524_v50  ;;  %v7756_v52 = vadd.f32 %v9258_v34, %v13020_v22  ;;  %v7632_v60 = vpop.f32.mrb[151].mxu1 }
0x15e6   : > { %7790 = vst [vmem:[%s13027_s5 + $0x108] sm:$0xff] %v7742_v8  ;;  %7795 = vst [vmem:[%s13027_s5 + $0x130] sm:$0xff] %v7747_v6  ;;  %v7750_v7 = vadd.f32 %v13020_v22, %v7632_v60 }
0x15e7   : > { %7791 = vst [vmem:[%s13027_s5 + $0x110] sm:$0xff] %v7743_v35  ;;  %7804 = vst [vmem:[%s13027_s5 + $0x178] sm:$0xff] %v7756_v52 }
0x15e8   : > { %7798 = vst [vmem:[%s13027_s5 + $0x148] sm:$0xff] %v7750_v7 }
0x15e9   : > { %v7528_v28 = vpop.f32.mrb[152].mxu0 }
0x15ea   : > { %v7745_v24 = vadd.f32 %v13016_v37, %v7528_v28  ;;  %v7530_v33 = vpop.f32.mrb[153].mxu0 }
0x15eb   : > { %v7746_v26 = vadd.f32 %v13018_v40, %v7530_v33  ;;  %v7532_v47 = vpop.f32.mrb[154].mxu0 }
0x15ec   : > { %7793 = vst [vmem:[%s13027_s5 + $0x120] sm:$0xff] %v7745_v24  ;;  %v7748_v13 = vadd.f32 %v13016_v37, %v7532_v47  ;;  %v7534_v9 = vpop.f32.mrb[155].mxu0 }
0x15ed   : > { %7794 = vst [vmem:[%s13027_s5 + $0x128] sm:$0xff] %v7746_v26  ;;  %v7749_v22 = vadd.f32 %v13018_v40, %v7534_v9 }
0x15ee   : > { %7796 = vst [vmem:[%s13027_s5 + $0x138] sm:$0xff] %v7748_v13 }
0x15ef   : > { %7797 = vst [vmem:[%s13027_s5 + $0x140] sm:$0xff] %v7749_v22 }
0x15f1   : > { %v7538_v57 = vpop.f32.mrb[156].mxu0 }
0x15f2   : > { %v7751_v54 = vadd.f32 %v13016_v37, %v7538_v57  ;;  %v7540_v38 = vpop.f32.mrb[157].mxu0 }
0x15f3   : > { %v7752_v2 = vadd.f32 %v13018_v40, %v7540_v38  ;;  %v7542_v21 = vpop.f32.mrb[158].mxu0 }
0x15f4   : > { %7799 = vst [vmem:[%s13027_s5 + $0x150] sm:$0xff] %v7751_v54  ;;  %v7754_v55 = vadd.f32 %v13016_v37, %v7542_v21  ;;  %v7544_v30 = vpop.f32.mrb[159].mxu0 }
0x15f5   : > { %7800 = vst [vmem:[%s13027_s5 + $0x158] sm:$0xff] %v7752_v2  ;;  %v7755_v62 = vadd.f32 %v13018_v40, %v7544_v30 }
0x15f6   : > { %7802 = vst [vmem:[%s13027_s5 + $0x168] sm:$0xff] %v7754_v55 }
0x15f7   : > { %7803 = vst [vmem:[%s13027_s5 + $0x170] sm:$0xff] %v7755_v62 }
0x15f8   : > { %10655 = shalt.err (!%p10652_p2)
}
0x15f9   : > { %s10656_s10 = scalar_lea.hbm %s13131_s24, 6144  ;;  %s10660_s21 = scalar_lea.hbm %s13185_s4, 12288 }
0x15fa   : > { %p10657_p13 = scmp.ne.s32.totalorder %s13131_s24, %s10656_s10  ;;  %p10661_p4 = scmp.lt.u32.totalorder %s13131_s24, %s13185_s4 }
0x15fb   : > { %p10662_p7 = scmp.lt.u32.totalorder %s10660_s21, %s10656_s10  ;;  %p10664_p11 = scmp.lt.u32.totalorder %s10656_s10, %s13131_s24 }
0x15fc   : > { %p10658_p6 = pnand %p10657_p13, %p13721_p0 }
0x15fd   : > { %p10663_p8 = por %p10662_p7, %p10661_p4 }
0x15fe   : > { %p10659_p10 = pneg %p10658_p6 }
0x15ff   : > { %p10665_p1 = por %p10664_p11, %p10663_p8 }
0x1601   : > { %p10666_p3 = pnand %p10665_p1, %p10659_p10 }
0x1603   : > { %10669 = shalt.err (!%p10666_p3)
}
0x1604   : > { %s10726_s5 = smov 384   ;;  %s10727_s25 = smov 24  }
0x1605   : > { %9697 = dma.vmem_to_hbm [thread:$0]  (%p13721_p0), %s13133_s7, 6144, %s13131_s24, %s7806_s19, %s10726_s5, %s10726_s5, %s10727_s25  }
0x1606 PF: > { %s7834_s28 = sand.u32 1, %s10700_s15   ;;  %p13722_p5 = scmp.ne.s32.totalorder %s13300_s22, 0 }
0x1607   : > { %p13723_p9 = scmp.ge.s32.totalorder %s10712_s18, 2  ;;  %s7835_s26 = scalar_lea.sflag [#allocation4], %s7834_s28 }
0x1609   : > { %p9711_p12 = pnand %p13723_p9, %p13722_p5 }
0x160b   : > { %10695 = dma.done.wait (!%p9711_p12), %s7835_s26, 6144  }
0x160c   : > { %10697 = vsyncadd (!%p9711_p12), %s7835_s26, 4294961152  ;;  %p18_p2 = scmp.ge.s32.totalorder %s10863_s11, 4   ;;  %s13724_s15 = smov %s10704_s16 }
0x160d   : > { %s13725_s16 = smov %s10708_s17  ;;  %s13726_s17 = smov %s10872_s14 }
0x160e   : > { %s13727_s18 = smov %s10863_s11  ;;  %20 = sbr.rel (!%p18_p2) target bundleno = 6 (0x6), region = 89 }
0x1615   :  { %7840 = vsyncpa [#allocation3], 1 }
0x1616   :  { %7842 = vsyncpa [#allocation3 + $0x1], 1 }
0x1617   :  { %7843 = vsyncpa [#allocation6], 1 }
0x1618   :  { %7844 = vsyncpa [#allocation4], 1 }
0x1619   :  { %7846 = vsyncpa [#allocation4 + $0x1], 1 }

</bundles_post_ra>
